<compile_context>
chip_gen: v6e
topology: v6e:2x2x1
jax: 0.10.0
libtpu: 0.0.40
codegen_flags: <defaults>
</compile_context>

<pallas_src>
import functools

import jax
import jax.numpy as jnp
from jax.experimental import pallas as pl
from jax.experimental.pallas import tpu as pltpu


_LANES = 128            # vreg lane width: keep the last slab axis lane-dense.
_SUBLANES = 8           # f32 sublane count; accumulator partials are (8, 128).
_ROW_ALIGN = 32         # tile_rows multiple of 32 covers f32/bf16/f16/int8 packing.
_MAX_TILE_ROWS = 2048   # 2048 x 128 f32 = 1 MiB per stream per tile.
_PALLAS_MIN_ELEMENTS = 64 * 1024  # below this, pure jnp beats a kernel launch.


def _cdiv(a, b):
    return -(-a // b)


def _round_up(a, b):
    return _cdiv(a, b) * b


# ---------------------------------------------------------------------------
# Kernels
# ---------------------------------------------------------------------------
def _masked_kernel(thr, thr_pow, tile_rows, valid_rows, needs_mask,
                   pred_ref, gt_ref, valid_ref, diff_acc_ref, valid_acc_ref):
    """One (tile_rows, 128) tile: smoothed squared error + validity mass."""
    i = pl.program_id(0)

    @pl.when(i == 0)
    def _init():
        diff_acc_ref[...] = jnp.zeros_like(diff_acc_ref)
        valid_acc_ref[...] = jnp.zeros_like(valid_acc_ref)

    pred = pred_ref[...].astype(jnp.float32)
    gt = gt_ref[...].astype(jnp.float32)
    valid = valid_ref[...].astype(jnp.float32)

    d = gt - pred
    diff = d * d * valid

    if needs_mask:
        # Mask rows past the real slab extent (the last grid step's block may
        # overhang the array; its out-of-bounds rows hold unspecified data).
        row = (jax.lax.broadcasted_iota(jnp.int32, (tile_rows, _LANES), 0)
               + i * tile_rows)
        in_bounds = row < valid_rows
        diff = jnp.where(in_bounds, diff, 0.0)
        valid = jnp.where(in_bounds, valid, 0.0)

    # Unconditional smoothing: pow() goes to the EUP slot and is hidden under
    # the HBM streaming; where() never selects the 1e-30-clamped values.
    smooth = jnp.power(jnp.maximum(diff, 1e-30), jnp.float32(0.1)) * thr_pow
    diff = jnp.where(diff > thr, smooth, diff)

    # Fold the tile to an (8, 128) partial: layout-preserving reshape + plain
    # cross-vreg VPU adds, then accumulate into the VMEM-resident output.
    diff_acc_ref[...] += diff.reshape(
        tile_rows // _SUBLANES, _SUBLANES, _LANES).sum(axis=0)
    valid_acc_ref[...] += valid.reshape(
        tile_rows // _SUBLANES, _SUBLANES, _LANES).sum(axis=0)


def _plain_kernel(thr, thr_pow, tile_rows, valid_rows, needs_mask,
                  pred_ref, gt_ref, diff_acc_ref):
    """validity=None variant: no third HBM stream; validity sum is just n."""
    i = pl.program_id(0)

    @pl.when(i == 0)
    def _init():
        diff_acc_ref[...] = jnp.zeros_like(diff_acc_ref)

    pred = pred_ref[...].astype(jnp.float32)
    gt = gt_ref[...].astype(jnp.float32)

    d = gt - pred
    diff = d * d

    if needs_mask:
        row = (jax.lax.broadcasted_iota(jnp.int32, (tile_rows, _LANES), 0)
               + i * tile_rows)
        diff = jnp.where(row < valid_rows, diff, 0.0)

    smooth = jnp.power(jnp.maximum(diff, 1e-30), jnp.float32(0.1)) * thr_pow
    diff = jnp.where(diff > thr, smooth, diff)

    diff_acc_ref[...] += diff.reshape(
        tile_rows // _SUBLANES, _SUBLANES, _LANES).sum(axis=0)


# ---------------------------------------------------------------------------
# Wrapper
# ---------------------------------------------------------------------------
def _as_float(x):
    x = jnp.asarray(x)
    if not jnp.issubdtype(x.dtype, jnp.floating):
        x = x.astype(jnp.float32)
    return x


def _to_slab(x, rows):
    """Flatten to 1-D and view as a lane-dense (rows, 128) slab.

    Zero-copy reshape when x.size == rows * 128; otherwise pads at most
    127 zero elements (exact for both sums: padded diff == 0, valid == 0).
    """
    flat = jnp.ravel(x)
    pad = rows * _LANES - flat.shape[0]
    if pad:
        flat = jnp.pad(flat, (0, pad))
    return flat.reshape(rows, _LANES)


def _reference_loss(pred, gt, valid, threshold=400.0):
    """Pure-JAX reference mirroring the PyTorch semantics (f32 math)."""
    pred = jnp.asarray(pred, jnp.float32)
    gt = jnp.asarray(gt, jnp.float32)
    if valid is None:
        valid = jnp.ones_like(pred)
    else:
        valid = jnp.asarray(valid, jnp.float32)
    dimension = pred.shape[-1]
    diff = (gt - pred) ** 2 * valid
    diff = jnp.where(diff > threshold,
                     jnp.power(diff, 0.1) * threshold ** 0.9,
                     diff)
    return jnp.sum(diff) / (dimension * jnp.maximum(1.0, jnp.sum(valid)))


def keypoints_mse_smooth_loss(keypoints_pred, keypoints_gt,
                              keypoints_binary_validity=None,
                              threshold=400.0):
    pred = _as_float(keypoints_pred)
    gt = _as_float(keypoints_gt)          # kept in native floating dtype
    dimension = pred.shape[-1]
    n = pred.size                          # static Python int

    thr = float(threshold)
    thr_pow = float(threshold) ** 0.9      # precomputed on host

    valid = keypoints_binary_validity
    if valid is not None:
        valid = jnp.asarray(valid)
        if valid.dtype == jnp.bool_:
            valid = valid.astype(jnp.int8)     # 1-byte HBM stream
        elif not jnp.issubdtype(valid.dtype, jnp.floating):
            valid = valid.astype(jnp.float32)
        # floating validity streams in its native dtype (f32/bf16/f16).

    # Tiny inputs (the typical keypoint shapes): pure jnp beats a launch.
    if n < _PALLAS_MIN_ELEMENTS:
        v = None if valid is None else valid.astype(jnp.float32)
        return _reference_loss(pred, gt, v, thr)

    rows = _cdiv(n, _LANES)
    tile_rows = min(_MAX_TILE_ROWS, _round_up(rows, _ROW_ALIGN))
    grid = (_cdiv(rows, tile_rows),)
    needs_mask = (rows % tile_rows) != 0

    pred2d = _to_slab(pred, rows)
    gt2d = _to_slab(gt, rows)

    in_spec = pl.BlockSpec((tile_rows, _LANES), lambda i: (i, 0))
    # Per-call (8, 128) accumulator: block index constant across the grid so
    # it stays VMEM-resident for the whole "arbitrary" reduction.
    acc_spec = pl.BlockSpec((_SUBLANES, _LANES), lambda i: (0, 0))
    acc_shape = jax.ShapeDtypeStruct((_SUBLANES, _LANES), jnp.float32)
    cparams = pltpu.CompilerParams(
        dimension_semantics=("arbitrary",),
        vmem_limit_bytes=32 * 1024 * 1024)

    padded_n = rows * _LANES
    acc_bytes = _SUBLANES * _LANES * 4

    if valid is None:
        kernel = functools.partial(_plain_kernel, thr, thr_pow, tile_rows,
                                   rows, needs_mask)
        cost = pl.CostEstimate(
            flops=int(6 * padded_n),
            transcendentals=int(2 * padded_n),
            bytes_accessed=int(pred2d.size * pred2d.dtype.itemsize
                               + gt2d.size * gt2d.dtype.itemsize
                               + acc_bytes))
        diff_acc = pl.pallas_call(
            kernel,
            out_shape=acc_shape,
            grid=grid,
            in_specs=[in_spec, in_spec],
            out_specs=acc_spec,
            compiler_params=cparams,
            cost_estimate=cost,
        )(pred2d, gt2d)
        valid_sum = jnp.float32(n)
    else:
        valid2d = _to_slab(valid, rows)
        kernel = functools.partial(_masked_kernel, thr, thr_pow, tile_rows,
                                   rows, needs_mask)
        cost = pl.CostEstimate(
            flops=int(8 * padded_n),
            transcendentals=int(2 * padded_n),
            bytes_accessed=int(pred2d.size * pred2d.dtype.itemsize
                               + gt2d.size * gt2d.dtype.itemsize
                               + valid2d.size * valid2d.dtype.itemsize
                               + 2 * acc_bytes))
        diff_acc, valid_acc = pl.pallas_call(
            kernel,
            out_shape=(acc_shape, acc_shape),
            grid=grid,
            in_specs=[in_spec, in_spec, in_spec],
            out_specs=(acc_spec, acc_spec),
            compiler_params=cparams,
            cost_estimate=cost,
        )(pred2d, gt2d, valid2d)
        valid_sum = jnp.sum(valid_acc)

    # Tiny plain-JAX glue: reduce the (8, 128) partials and divide.
    diff_sum = jnp.sum(diff_acc)
    return diff_sum / (dimension * jnp.maximum(jnp.float32(1.0), valid_sum))


# ---------------------------------------------------------------------------
# Self-test
# ---------------------------------------------------------------------------
if __name__ == "__main__":
    key = jax.random.PRNGKey(0)
    keys = jax.random.split(key, 8)

    # Tiny shape typical of keypoint losses (pure-jnp fast path).
    pred_s = jax.random.normal(keys[0], (2, 16, 3), jnp.float32) * 30.0
    gt_s = jax.random.normal(keys[1], (2, 16, 3), jnp.float32) * 30.0
    valid_s = (jax.random.uniform(keys[2], (2, 16, 3)) > 0.2).astype(jnp.float32)

    loss = jax.block_until_ready(keypoints_mse_smooth_loss(pred_s, gt_s, valid_s))
    ref = _reference_loss(pred_s, gt_s, valid_s)
    assert jnp.allclose(loss, ref, rtol=1e-5, atol=1e-5), (loss, ref)

    loss = jax.block_until_ready(keypoints_mse_smooth_loss(pred_s, gt_s, None))
    ref = _reference_loss(pred_s, gt_s, None)
    assert jnp.allclose(loss, ref, rtol=1e-5, atol=1e-5), (loss, ref)

    # Medium, 128-aligned shape: kernel path, zero-copy slab, no tail mask.
    shape_m = (64, 1024, 3)
    pred_m = jax.random.normal(keys[3], shape_m, jnp.float32) * 30.0
    gt_m = jax.random.normal(keys[4], shape_m, jnp.float32) * 30.0
    valid_m = (jax.random.uniform(keys[5], shape_m) > 0.2).astype(jnp.float32)

    loss = jax.block_until_ready(keypoints_mse_smooth_loss(pred_m, gt_m, valid_m))
    ref = _reference_loss(pred_m, gt_m, valid_m)
    assert jnp.allclose(loss, ref, rtol=1e-4, atol=1e-5), (loss, ref)

    # validity=None variant (two-stream kernel).
    loss = jax.block_until_ready(keypoints_mse_smooth_loss(pred_m, gt_m, None))
    ref = _reference_loss(pred_m, gt_m, None)
    assert jnp.allclose(loss, ref, rtol=1e-4, atol=1e-5), (loss, ref)

    # bool validity streams as int8.
    loss = jax.block_until_ready(
        keypoints_mse_smooth_loss(pred_m, gt_m, valid_m.astype(bool)))
    ref = _reference_loss(pred_m, gt_m, valid_m)
    assert jnp.allclose(loss, ref, rtol=1e-4, atol=1e-5), (loss, ref)

    # bf16 predictions stream half-width (gt stays f32; math in f32 in-kernel).
    pred_bf = pred_m.astype(jnp.bfloat16)
    loss = jax.block_until_ready(keypoints_mse_smooth_loss(pred_bf, gt_m, valid_m))
    ref = _reference_loss(pred_bf, gt_m, valid_m)
    assert jnp.allclose(loss, ref, rtol=1e-4, atol=1e-5), (loss, ref)

    # Unaligned shape: minimal (<128-element) pad, multi-tile grid, in-kernel
    # tail masking (rows = 2050, tile_rows = 2048, grid = 2).
    shape_u = (96, 911, 3)
    pred_u = jax.random.normal(keys[6], shape_u, jnp.float32) * 30.0
    gt_u = jax.random.normal(keys[7], shape_u, jnp.float32) * 30.0
    valid_u = (jax.random.uniform(keys[2], shape_u) > 0.2).astype(jnp.float32)

    loss = jax.block_until_ready(keypoints_mse_smooth_loss(pred_u, gt_u, valid_u))
    ref = _reference_loss(pred_u, gt_u, valid_u)
    assert jnp.allclose(loss, ref, rtol=1e-4, atol=1e-5), (loss, ref)

    loss = jax.block_until_ready(keypoints_mse_smooth_loss(pred_u, gt_u, None))
    ref = _reference_loss(pred_u, gt_u, None)
    assert jnp.allclose(loss, ref, rtol=1e-4, atol=1e-5), (loss, ref)

    print("KERNEL_OK")
</pallas_src>

<mosaic_0001>
module attributes {stable_mosaic.version = 11 : i64} {
  func.func @_masked_kernel(%arg0: i32, %arg1: memref<1536x128xf32, #tpu.memory_space<vmem>>, %arg2: memref<1536x128xf32, #tpu.memory_space<vmem>>, %arg3: memref<1536x128xf32, #tpu.memory_space<vmem>>, %arg4: memref<8x128xf32, #tpu.memory_space<vmem>>, %arg5: memref<8x128xf32, #tpu.memory_space<vmem>>) attributes {dimension_semantics = [#tpu.dimension_semantics<arbitrary>], iteration_bounds = array<i64: 1>, scalar_prefetch = 0 : i64, scratch_operands = 0 : i64, tpu.core_type = #tpu.core_type<tc>, window_params = [{transform_indices = @transform_0, window_bounds = array<i64: 1536, 128>}, {transform_indices = @transform_1, window_bounds = array<i64: 1536, 128>}, {transform_indices = @transform_2, window_bounds = array<i64: 1536, 128>}, {pipeline_mode = #tpu.pipeline_mode<synchronous>, transform_indices = @transform_3, window_bounds = array<i64: 8, 128>}, {pipeline_mode = #tpu.pipeline_mode<synchronous>, transform_indices = @transform_4, window_bounds = array<i64: 8, 128>}]} {
    %c0_i32 = arith.constant 0 : i32
    %0 = arith.cmpi eq, %arg0, %c0_i32 : i32
    %1 = arith.extui %0 : i1 to i32
    %c0_i32_0 = arith.constant 0 : i32
    %2 = arith.cmpi ne, %1, %c0_i32_0 : i32
    scf.if %2 {
      %cst_19 = arith.constant 0.000000e+00 : f32
      %28 = vector.broadcast %cst_19 : f32 to vector<8x128xf32>
      %c0_20 = arith.constant 0 : index
      %c0_21 = arith.constant 0 : index
      %29 = vector.load %arg4[%c0_20, %c0_21] : memref<8x128xf32, #tpu.memory_space<vmem>>, vector<8x128xf32>
      tpu.vector_store %arg4[%c0_20, %c0_21], %28 {strides = array<i32>} : memref<8x128xf32, #tpu.memory_space<vmem>>, vector<8x128xf32>,
      %cst_22 = arith.constant 0.000000e+00 : f32
      %30 = vector.broadcast %cst_22 : f32 to vector<8x128xf32>
      %c0_23 = arith.constant 0 : index
      %c0_24 = arith.constant 0 : index
      %31 = vector.load %arg5[%c0_23, %c0_24] : memref<8x128xf32, #tpu.memory_space<vmem>>, vector<8x128xf32>
      tpu.vector_store %arg5[%c0_23, %c0_24], %30 {strides = array<i32>} : memref<8x128xf32, #tpu.memory_space<vmem>>, vector<8x128xf32>,
    } else {
    }
    %c0 = arith.constant 0 : index
    %c0_1 = arith.constant 0 : index
    %3 = vector.load %arg1[%c0, %c0_1] : memref<1536x128xf32, #tpu.memory_space<vmem>>, vector<1536x128xf32>
    %c0_2 = arith.constant 0 : index
    %c0_3 = arith.constant 0 : index
    %4 = vector.load %arg2[%c0_2, %c0_3] : memref<1536x128xf32, #tpu.memory_space<vmem>>, vector<1536x128xf32>
    %c0_4 = arith.constant 0 : index
    %c0_5 = arith.constant 0 : index
    %5 = vector.load %arg3[%c0_4, %c0_5] : memref<1536x128xf32, #tpu.memory_space<vmem>>, vector<1536x128xf32>
    %6 = arith.subf %4, %3 : vector<1536x128xf32>
    %7 = arith.mulf %6, %6 : vector<1536x128xf32>
    %8 = arith.mulf %7, %5 : vector<1536x128xf32>
    %cst = arith.constant 1.000000e-30 : f32
    %9 = vector.broadcast %cst : f32 to vector<1536x128xf32>
    %10 = arith.maximumf %8, %9 : vector<1536x128xf32>
    %cst_6 = arith.constant 1.000000e-01 : f32
    %11 = vector.broadcast %cst_6 : f32 to vector<1536x128xf32>
    %12 = math.powf %10, %11 : vector<1536x128xf32>
    %cst_7 = arith.constant 219.712112 : f32
    %13 = vector.broadcast %cst_7 : f32 to vector<1536x128xf32>
    %14 = arith.mulf %12, %13 : vector<1536x128xf32>
    %cst_8 = arith.constant 4.000000e+02 : f32
    %15 = vector.broadcast %cst_8 : f32 to vector<1536x128xf32>
    %16 = arith.cmpf ogt, %8, %15 : vector<1536x128xf32>
    %17 = arith.select %16, %14, %8 : vector<1536x128xi1>, vector<1536x128xf32>
    %c0_9 = arith.constant 0 : index
    %c0_10 = arith.constant 0 : index
    %18 = vector.load %arg4[%c0_9, %c0_10] : memref<8x128xf32, #tpu.memory_space<vmem>>, vector<8x128xf32>
    %19 = vector.shape_cast %17 : vector<1536x128xf32> to vector<192x8x128xf32>
    %cst_11 = arith.constant dense<0.000000e+00> : vector<8x128xf32>
    %20 = vector.multi_reduction <add>, %19, %cst_11 [0] : vector<192x8x128xf32> to vector<8x128xf32>
    %21 = arith.addf %18, %20 : vector<8x128xf32>
    %c0_12 = arith.constant 0 : index
    %c0_13 = arith.constant 0 : index
    %22 = vector.load %arg4[%c0_12, %c0_13] : memref<8x128xf32, #tpu.memory_space<vmem>>, vector<8x128xf32>
    tpu.vector_store %arg4[%c0_12, %c0_13], %21 {strides = array<i32>} : memref<8x128xf32, #tpu.memory_space<vmem>>, vector<8x128xf32>,
    %c0_14 = arith.constant 0 : index
    %c0_15 = arith.constant 0 : index
    %23 = vector.load %arg5[%c0_14, %c0_15] : memref<8x128xf32, #tpu.memory_space<vmem>>, vector<8x128xf32>
    %24 = vector.shape_cast %5 : vector<1536x128xf32> to vector<192x8x128xf32>
    %cst_16 = arith.constant dense<0.000000e+00> : vector<8x128xf32>
    %25 = vector.multi_reduction <add>, %24, %cst_16 [0] : vector<192x8x128xf32> to vector<8x128xf32>
    %26 = arith.addf %23, %25 : vector<8x128xf32>
    %c0_17 = arith.constant 0 : index
    %c0_18 = arith.constant 0 : index
    %27 = vector.load %arg5[%c0_17, %c0_18] : memref<8x128xf32, #tpu.memory_space<vmem>>, vector<8x128xf32>
    tpu.vector_store %arg5[%c0_17, %c0_18], %26 {strides = array<i32>} : memref<8x128xf32, #tpu.memory_space<vmem>>, vector<8x128xf32>,
    return
  }
  func.func @transform_0(%arg0: i32) -> (i32, i32) {
    %c0_i32 = arith.constant 0 : i32
    %c0_i32_0 = arith.constant 0 : i32
    return %arg0, %c0_i32 : i32, i32
  }
  func.func @transform_1(%arg0: i32) -> (i32, i32) {
    %c0_i32 = arith.constant 0 : i32
    %c0_i32_0 = arith.constant 0 : i32
    return %arg0, %c0_i32 : i32, i32
  }
  func.func @transform_2(%arg0: i32) -> (i32, i32) {
    %c0_i32 = arith.constant 0 : i32
    %c0_i32_0 = arith.constant 0 : i32
    return %arg0, %c0_i32 : i32, i32
  }
  func.func @transform_3(%arg0: i32) -> (i32, i32) {
    %c0_i32 = arith.constant 0 : i32
    %c0_i32_0 = arith.constant 0 : i32
    %c0_i32_1 = arith.constant 0 : i32
    return %c0_i32, %c0_i32_0 : i32, i32
  }
  func.func @transform_4(%arg0: i32) -> (i32, i32) {
    %c0_i32 = arith.constant 0 : i32
    %c0_i32_0 = arith.constant 0 : i32
    %c0_i32_1 = arith.constant 0 : i32
    return %c0_i32, %c0_i32_0 : i32, i32
  }
}

</mosaic_0001>

<bundles_post_ra>
// kernel: tpu_custom_call.1
= control target key start
LH: loop header
LB: loop body
LE: loop exit
PB: predicated region body
PF: predicated region fallthrough
CT: control target
= control target key end

     0   :  { %10 = vsyncpa [#allocation3], 0  ;;  %s17138_s0 = inlined_call_operand.hbm [shape: f32[1536,128], index: 0, kind: input, shape index: {}]   ;;  %s17139_s1 = inlined_call_operand.hbm [shape: f32[1536,128], index: 1, kind: input, shape index: {}]   ;;  %s17140_s2 = inlined_call_operand.hbm [shape: f32[1536,128], index: 2, kind: input, shape index: {}]   ;;  %s17141_s3 = inlined_call_operand.hbm [shape: f32[8,128], index: 3, kind: output, shape index: {0}]   ;;  %s17142_s4 = inlined_call_operand.hbm [shape: f32[8,128], index: 4, kind: output, shape index: {1}]  }
   0x1   :  { %11 = vsyncpa [#allocation6], 0 }
   0x2   :  { %12 = vsyncpa [#allocation4], 0 }
   0x3   :  { %13 = vsyncpa [#allocation10], 0  ;;  %s8663_s15 = smov [#allocation5]   ;;  %s8664_s17 = smov [#allocation2]  }
   0x4   :  { %s31_s16 = sshll.u32 %s8663_s15, 4  ;;  %s19_s18 = sshll.u32 %s8664_s17, 4  ;;  %s32_s16 = int_to_ptr.vmem [resolvable:$true] %s31_s16  ;;  %s20_s18 = int_to_ptr.vmem [resolvable:$true] %s19_s18 }
   0x5   :  { %s8563_s19 = scalar_lea.vmem %s32_s16, 24576  ;;  %p8568_p1 = scmp.lt.s32.totalorder %s32_s16, %s32_s16 }
   0x6   :  { %p8564_p0 = scmp.ne.s32.totalorder %s32_s16, %s8563_s19  ;;  %p8569_p2 = scmp.lt.s32.totalorder %s8563_s19, %s8563_s19 }
   0x8   :  { %p8570_p3 = por %p8569_p2, %p8568_p1 }
   0xa   :  { %p8571_p4 = pnand %p8570_p3, %p8564_p0 }
   0xc   :  { %8574 = shalt.err (!%p8571_p4)
}
   0xd   :  { %s8665_s20 = smov 128   ;;  %s8666_s21 = smov 8  }
   0xe   :  { %37 = dma.hbm_to_vmem [thread:$0]  %s17139_s1, 24576, %s32_s16, [#allocation6], %s8665_s20, %s8665_s20, %s8666_s21  }
   0xf   :  { %s8583_s24 = scalar_lea.vmem %s20_s18, 24576  ;;  %p8588_p6 = scmp.lt.s32.totalorder %s20_s18, %s20_s18 }
  0x10   :  { %p8584_p5 = scmp.ne.s32.totalorder %s20_s18, %s8583_s24  ;;  %p8589_p7 = scmp.lt.s32.totalorder %s8583_s24, %s8583_s24 }
  0x12   :  { %p8590_p8 = por %p8589_p7, %p8588_p6 }
  0x14   :  { %p8591_p9 = pnand %p8590_p8, %p8584_p5 }
  0x16   :  { %8594 = shalt.err (!%p8591_p9)
}
  0x17   :  { %25 = dma.hbm_to_vmem [thread:$0]  %s17138_s0, 24576, %s20_s18, [#allocation3], %s8665_s20, %s8665_s20, %s8666_s21  }
  0x18   :  { %s8667_s27 = smov [#allocation7]  }
  0x19   :  { %s43_s28 = sshll.u32 %s8667_s27, 4  ;;  %s44_s28 = int_to_ptr.vmem [resolvable:$true] %s43_s28 }
  0x1a   :  { %s8603_s29 = scalar_lea.vmem %s44_s28, 24576  ;;  %p8608_p11 = scmp.lt.s32.totalorder %s44_s28, %s44_s28 }
  0x1b   :  { %p8604_p10 = scmp.ne.s32.totalorder %s44_s28, %s8603_s29  ;;  %p8609_p12 = scmp.lt.s32.totalorder %s8603_s29, %s8603_s29 }
  0x1d   :  { %p8610_p13 = por %p8609_p12, %p8608_p11 }
  0x1f   :  { %p8611_p0 = pnand %p8610_p13, %p8604_p10 }
  0x21   :  { %8614 = shalt.err (!%p8611_p0)
}
  0x22   :  { %49 = dma.hbm_to_vmem [thread:$0]  %s17140_s2, 24576, %s44_s28, [#allocation6], %s8665_s20, %s8665_s20, %s8666_s21  }
  0x23   :  { %8655 = dma.done.wait [#allocation3], 24576  }
  0x24   :  { %8656 = vsyncadd [#allocation3], 4294942720 }
  0x25   :  { %8657 = dma.done.wait [#allocation6], 49152  }
  0x26   :  { %8658 = vsyncadd [#allocation6], 4294918144  ;;  %v65_v0 = vld [vmem:[#allocation2] sm:$0xff]  ;;  %v66_v1 = vld [vmem:[#allocation2 + $0x8] sm:$0xff]  ;;  %s8668_s0 = smov [#allocation8]   ;;  %s8669_s5 = smov [#allocation9]  }
  0x27   :  { %v67_v2 = vld [vmem:[#allocation2 + $0x10] sm:$0xff]  ;;  %v68_v3 = vld [vmem:[#allocation2 + $0x18] sm:$0xff]  ;;  %v257_v4 = vld [vmem:[#allocation5] sm:$0xff]  ;;  %s2571_s2 = sshll.u32 %s8668_s0, 4  ;;  %s2581_s6 = sshll.u32 %s8669_s5, 4  ;;  %s2572_s2 = int_to_ptr.vmem [resolvable:$true] %s2571_s2  ;;  %s2582_s6 = int_to_ptr.vmem [resolvable:$true] %s2581_s6 }
  0x28   :  { %v69_v5 = vld [vmem:[#allocation2 + $0x20] sm:$0xff]  ;;  %v70_v6 = vld [vmem:[#allocation2 + $0x28] sm:$0xff]  ;;  %v71_v7 = vld [vmem:[#allocation2 + $0x30] sm:$0xff]  ;;  %v641_v22 = vsub.f32 %v257_v4, %v65_v0  ;;  %s8615_s7 = scalar_lea.vmem %s2572_s2, 128  ;;  %p8620_p2 = scmp.lt.s32.totalorder %s2572_s2, %s2572_s2 }
  0x29   :  { %v72_v8 = vld [vmem:[#allocation2 + $0x38] sm:$0xff]  ;;  %v258_v9 = vld [vmem:[#allocation5 + $0x8] sm:$0xff]  ;;  %v73_v10 = vld [vmem:[#allocation2 + $0x40] sm:$0xff]  ;;  %p8616_p1 = scmp.ne.s32.totalorder %s2572_s2, %s8615_s7  ;;  %p8621_p3 = scmp.lt.s32.totalorder %s8615_s7, %s8615_s7 }
  0x2a   :  { %v74_v11 = vld [vmem:[#allocation2 + $0x48] sm:$0xff]  ;;  %v75_v12 = vld [vmem:[#allocation2 + $0x50] sm:$0xff]  ;;  %v260_v14 = vld [vmem:[#allocation5 + $0x18] sm:$0xff]  ;;  %v642_v29 = vsub.f32 %v258_v9, %v66_v1  ;;  %v8714_v57 = vmul.f32 %v641_v22, %v641_v22 }
  0x2b   :  { %v259_v13 = vld [vmem:[#allocation5 + $0x10] sm:$0xff]  ;;  %v261_v15 = vld [vmem:[#allocation5 + $0x20] sm:$0xff]  ;;  %v76_v16 = vld [vmem:[#allocation2 + $0x58] sm:$0xff]  ;;  %v644_v37 = vsub.f32 %v260_v14, %v68_v3  ;;  %p8622_p4 = por %p8621_p3, %p8620_p2 }
  0x2c   :  { %v77_v17 = vld [vmem:[#allocation2 + $0x60] sm:$0xff]  ;;  %v78_v18 = vld [vmem:[#allocation2 + $0x68] sm:$0xff]  ;;  %v263_v20 = vld [vmem:[#allocation5 + $0x30] sm:$0xff]  ;;  %v643_v36 = vsub.f32 %v259_v13, %v67_v2  ;;  %v645_v44 = vsub.f32 %v261_v15, %v69_v5  ;;  %17641 = vst [vmem:[#allocation15_spill] sm:$0xff] %v8714_v57  ;;  %v8722_v3 = vmul.f32 %v642_v29, %v642_v29 }
  0x2d   :  { %v262_v19 = vld [vmem:[#allocation5 + $0x28] sm:$0xff]  ;;  %v264_v21 = vld [vmem:[#allocation5 + $0x38] sm:$0xff]  ;;  %v79_v23 = vld [vmem:[#allocation2 + $0x70] sm:$0xff]  ;;  %v8704_v46 = vsub.f32 %v263_v20, %v71_v7  ;;  %p8623_p5 = pnand %p8622_p4, %p8616_p1 }
  0x2e   :  { %v80_v24 = vld [vmem:[#allocation2 + $0x78] sm:$0xff]  ;;  %v81_v25 = vld [vmem:[#allocation2 + $0x80] sm:$0xff]  ;;  %v266_v27 = vld [vmem:[#allocation5 + $0x48] sm:$0xff]  ;;  %v646_v45 = vsub.f32 %v262_v19, %v70_v6  ;;  %v8706_v47 = vsub.f32 %v264_v21, %v72_v8  ;;  %17642 = vst [vmem:[#allocation16_spill] sm:$0xff] %v8722_v3  ;;  %v8730_v13 = vmul.f32 %v643_v36, %v643_v36 }
  0x2f   :  { %v265_v26 = vld [vmem:[#allocation5 + $0x40] sm:$0xff]  ;;  %v267_v28 = vld [vmem:[#allocation5 + $0x50] sm:$0xff]  ;;  %v82_v30 = vld [vmem:[#allocation2 + $0x88] sm:$0xff]  ;;  %v8710_v55 = vsub.f32 %v266_v27, %v74_v11 }
  0x30   :  { %v83_v31 = vld [vmem:[#allocation2 + $0x90] sm:$0xff]  ;;  %v84_v32 = vld [vmem:[#allocation2 + $0x98] sm:$0xff]  ;;  %v269_v34 = vld [vmem:[#allocation5 + $0x60] sm:$0xff]  ;;  %v8708_v54 = vsub.f32 %v265_v26, %v73_v10  ;;  %v8712_v56 = vsub.f32 %v267_v28, %v75_v12  ;;  %17643 = vst [vmem:[#allocation17_spill] sm:$0xff] %v8730_v13 }
  0x31   :  { %v268_v33 = vld [vmem:[#allocation5 + $0x58] sm:$0xff]  ;;  %v270_v35 = vld [vmem:[#allocation5 + $0x68] sm:$0xff]  ;;  %v85_v38 = vld [vmem:[#allocation2 + $0xa0] sm:$0xff]  ;;  %v8718_v1 = vsub.f32 %v269_v34, %v77_v17 }
  0x32   :  { %v86_v39 = vld [vmem:[#allocation2 + $0xa8] sm:$0xff]  ;;  %v87_v40 = vld [vmem:[#allocation2 + $0xb0] sm:$0xff]  ;;  %v272_v42 = vld [vmem:[#allocation5 + $0x78] sm:$0xff]  ;;  %v8716_v0 = vsub.f32 %v268_v33, %v76_v16  ;;  %v8720_v2 = vsub.f32 %v270_v35, %v78_v18 }
  0x33   :  { %v271_v41 = vld [vmem:[#allocation5 + $0x70] sm:$0xff]  ;;  %v273_v43 = vld [vmem:[#allocation5 + $0x80] sm:$0xff]  ;;  %v88_v48 = vld [vmem:[#allocation2 + $0xb8] sm:$0xff]  ;;  %v8726_v11 = vsub.f32 %v272_v42, %v80_v24 }
  0x34   :  { %v89_v49 = vld [vmem:[#allocation2 + $0xc0] sm:$0xff]  ;;  %v90_v50 = vld [vmem:[#allocation2 + $0xc8] sm:$0xff]  ;;  %v275_v52 = vld [vmem:[#allocation5 + $0x90] sm:$0xff]  ;;  %v8724_v10 = vsub.f32 %v271_v41, %v79_v23  ;;  %v8728_v12 = vsub.f32 %v273_v43, %v81_v25  ;;  %v8738_v23 = vmul.f32 %v644_v37, %v644_v37 }
  0x35   :  { %v274_v51 = vld [vmem:[#allocation5 + $0x88] sm:$0xff]  ;;  %v276_v53 = vld [vmem:[#allocation5 + $0x98] sm:$0xff]  ;;  %v91_v58 = vld [vmem:[#allocation2 + $0xd0] sm:$0xff]  ;;  %v8734_v21 = vsub.f32 %v275_v52, %v83_v31 }
  0x36   :  { %v92_v59 = vld [vmem:[#allocation2 + $0xd8] sm:$0xff]  ;;  %v93_v60 = vld [vmem:[#allocation2 + $0xe0] sm:$0xff]  ;;  %v278_v62 = vld [vmem:[#allocation5 + $0xa8] sm:$0xff]  ;;  %v8732_v20 = vsub.f32 %v274_v51, %v82_v30  ;;  %v8736_v22 = vsub.f32 %v276_v53, %v84_v32  ;;  %17644 = vst [vmem:[#allocation18_spill] sm:$0xff] %v8738_v23  ;;  %v8746_v30 = vmul.f32 %v645_v44, %v645_v44 }
  0x37   :  { %v277_v61 = vld [vmem:[#allocation5 + $0xa0] sm:$0xff]  ;;  %v279_v63 = vld [vmem:[#allocation5 + $0xb0] sm:$0xff]  ;;  %v94_v4 = vld [vmem:[#allocation2 + $0xe8] sm:$0xff]  ;;  %v8742_v34 = vsub.f32 %v278_v62, %v86_v39 }
  0x38   :  { %v95_v5 = vld [vmem:[#allocation2 + $0xf0] sm:$0xff]  ;;  %v96_v6 = vld [vmem:[#allocation2 + $0xf8] sm:$0xff]  ;;  %v281_v8 = vld [vmem:[#allocation5 + $0xc0] sm:$0xff]  ;;  %v8740_v33 = vsub.f32 %v277_v61, %v85_v38  ;;  %v8744_v35 = vsub.f32 %v279_v63, %v87_v40  ;;  %17645 = vst [vmem:[#allocation19_spill] sm:$0xff] %v8746_v30  ;;  %v8754_v38 = vmul.f32 %v646_v45, %v646_v45 }
  0x39   :  { %v280_v7 = vld [vmem:[#allocation5 + $0xb8] sm:$0xff]  ;;  %v282_v9 = vld [vmem:[#allocation5 + $0xc8] sm:$0xff]  ;;  %v97_v14 = vld [vmem:[#allocation2 + $0x100] sm:$0xff]  ;;  %v8750_v51 = vsub.f32 %v281_v8, %v89_v49 }
  0x3a   :  { %v98_v15 = vld [vmem:[#allocation2 + $0x108] sm:$0xff]  ;;  %v99_v16 = vld [vmem:[#allocation2 + $0x110] sm:$0xff]  ;;  %v284_v18 = vld [vmem:[#allocation5 + $0xd8] sm:$0xff]  ;;  %v8748_v43 = vsub.f32 %v280_v7, %v88_v48  ;;  %v8752_v52 = vsub.f32 %v282_v9, %v90_v50  ;;  %17646 = vst [vmem:[#allocation20_spill] sm:$0xff] %v8754_v38  ;;  %v8764_v48 = vmul.f32 %v8704_v46, %v8704_v46 }
  0x3b   :  { %v283_v17 = vld [vmem:[#allocation5 + $0xd0] sm:$0xff]  ;;  %v285_v19 = vld [vmem:[#allocation5 + $0xe0] sm:$0xff]  ;;  %v100_v24 = vld [vmem:[#allocation2 + $0x118] sm:$0xff]  ;;  %v8758_v30 = vsub.f32 %v284_v18, %v92_v59  ;;  %v8774_v59 = vmul.f32 %v8706_v47, %v8706_v47 }
  0x3c   :  { %v101_v26 = vld [vmem:[#allocation2 + $0x120] sm:$0xff]  ;;  %v102_v25 = vld [vmem:[#allocation2 + $0x128] sm:$0xff]  ;;  %v287_v28 = vld [vmem:[#allocation5 + $0xf0] sm:$0xff]  ;;  %v8756_v63 = vsub.f32 %v283_v17, %v91_v58  ;;  %v8760_v23 = vsub.f32 %v285_v19, %v93_v60  ;;  %17647 = vst [vmem:[#allocation21_spill] sm:$0xff] %v8764_v48 }
  0x3d   :  { %v286_v27 = vld [vmem:[#allocation5 + $0xe8] sm:$0xff]  ;;  %v288_v29 = vld [vmem:[#allocation5 + $0xf8] sm:$0xff]  ;;  %v103_v31 = vld [vmem:[#allocation2 + $0x130] sm:$0xff]  ;;  %v8768_v13 = vsub.f32 %v287_v28, %v95_v5  ;;  %17650 = vst [vmem:[#allocation24_spill] sm:$0xff] %v8774_v59  ;;  %v8784_v5 = vmul.f32 %v8708_v54, %v8708_v54 }
  0x3e   :  { %v104_v36 = vld [vmem:[#allocation2 + $0x138] sm:$0xff]  ;;  %v105_v32 = vld [vmem:[#allocation2 + $0x140] sm:$0xff]  ;;  %v290_v37 = vld [vmem:[#allocation5 + $0x108] sm:$0xff]  ;;  %v8766_v38 = vsub.f32 %v286_v27, %v94_v4  ;;  %v8770_v58 = vsub.f32 %v288_v29, %v96_v6 }
  0x3f   :  { %v289_v41 = vld [vmem:[#allocation5 + $0x100] sm:$0xff]  ;;  %v291_v42 = vld [vmem:[#allocation5 + $0x110] sm:$0xff]  ;;  %v106_v39 = vld [vmem:[#allocation2 + $0x148] sm:$0xff]  ;;  %17648 = vst [vmem:[#allocation22_spill] sm:$0xff] %v8768_v13  ;;  %v8778_v57 = vsub.f32 %v290_v37, %v98_v15  ;;  %v8794_v15 = vmul.f32 %v8710_v55, %v8710_v55 }
  0x40   :  { %v107_v53 = vld [vmem:[#allocation2 + $0x150] sm:$0xff]  ;;  %v108_v40 = vld [vmem:[#allocation2 + $0x158] sm:$0xff]  ;;  %v293_v44 = vld [vmem:[#allocation5 + $0x120] sm:$0xff]  ;;  %17649 = vst [vmem:[#allocation23_spill] sm:$0xff] %v8770_v58  ;;  %v8776_v3 = vsub.f32 %v289_v41, %v97_v14  ;;  %v8780_v4 = vsub.f32 %v291_v42, %v99_v16 }
  0x41   :  { %v292_v61 = vld [vmem:[#allocation5 + $0x118] sm:$0xff]  ;;  %v294_v62 = vld [vmem:[#allocation5 + $0x128] sm:$0xff]  ;;  %v109_v49 = vld [vmem:[#allocation2 + $0x160] sm:$0xff]  ;;  %17651 = vst [vmem:[#allocation25_spill] sm:$0xff] %v8778_v57  ;;  %v8788_v13 = vsub.f32 %v293_v44, %v101_v26  ;;  %v8804_v26 = vmul.f32 %v8712_v56, %v8712_v56 }
  0x42   :  { %v110_v50 = vld [vmem:[#allocation2 + $0x168] sm:$0xff]  ;;  %v111_v45 = vld [vmem:[#allocation2 + $0x170] sm:$0xff]  ;;  %v296_v8 = vld [vmem:[#allocation5 + $0x138] sm:$0xff]  ;;  %17652 = vst [vmem:[#allocation26_spill] sm:$0xff] %v8780_v4  ;;  %v8786_v58 = vsub.f32 %v292_v61, %v100_v24  ;;  %v8790_v14 = vsub.f32 %v294_v62, %v102_v25 }
  0x43   :  { %v295_v7 = vld [vmem:[#allocation5 + $0x130] sm:$0xff]  ;;  %v297_v9 = vld [vmem:[#allocation5 + $0x140] sm:$0xff]  ;;  %v112_v60 = vld [vmem:[#allocation2 + $0x178] sm:$0xff]  ;;  %17653 = vst [vmem:[#allocation27_spill] sm:$0xff] %v8784_v5  ;;  %v8798_v57 = vsub.f32 %v296_v8, %v104_v36  ;;  %v8814_v36 = vmul.f32 %v8716_v0, %v8716_v0 }
  0x44   :  { %v113_v17 = vld [vmem:[#allocation2 + $0x180] sm:$0xff]  ;;  %v114_v46 = vld [vmem:[#allocation2 + $0x188] sm:$0xff]  ;;  %v299_v19 = vld [vmem:[#allocation5 + $0x150] sm:$0xff]  ;;  %17654 = vst [vmem:[#allocation28_spill] sm:$0xff] %v8788_v13  ;;  %v8796_v4 = vsub.f32 %v295_v7, %v103_v31  ;;  %v8800_v24 = vsub.f32 %v297_v9, %v105_v32 }
  0x45   :  { %v298_v18 = vld [vmem:[#allocation5 + $0x148] sm:$0xff]  ;;  %v300_v48 = vld [vmem:[#allocation5 + $0x158] sm:$0xff]  ;;  %v115_v6 = vld [vmem:[#allocation2 + $0x190] sm:$0xff]  ;;  %17655 = vst [vmem:[#allocation29_spill] sm:$0xff] %v8790_v14  ;;  %v8808_v13 = vsub.f32 %v299_v19, %v107_v53  ;;  %v8824_v53 = vmul.f32 %v8718_v1, %v8718_v1 }
  0x46   :  { %v116_v27 = vld [vmem:[#allocation2 + $0x198] sm:$0xff]  ;;  %v117_v47 = vld [vmem:[#allocation2 + $0x1a0] sm:$0xff]  ;;  %v302_v29 = vld [vmem:[#allocation5 + $0x168] sm:$0xff]  ;;  %17656 = vst [vmem:[#allocation30_spill] sm:$0xff] %v8794_v15  ;;  %v8806_v14 = vsub.f32 %v298_v18, %v106_v39  ;;  %v8810_v31 = vsub.f32 %v300_v48, %v108_v40 }
  0x47   :  { %v301_v28 = vld [vmem:[#allocation5 + $0x160] sm:$0xff]  ;;  %v303_v59 = vld [vmem:[#allocation5 + $0x170] sm:$0xff]  ;;  %v118_v16 = vld [vmem:[#allocation2 + $0x1a8] sm:$0xff]  ;;  %17657 = vst [vmem:[#allocation31_spill] sm:$0xff] %v8798_v57  ;;  %v8818_v57 = vsub.f32 %v302_v29, %v110_v50  ;;  %v8834_v50 = vmul.f32 %v8720_v2, %v8720_v2 }
  0x48   :  { %v119_v41 = vld [vmem:[#allocation2 + $0x1b0] sm:$0xff]  ;;  %v120_v54 = vld [vmem:[#allocation2 + $0x1b8] sm:$0xff]  ;;  %v305_v42 = vld [vmem:[#allocation5 + $0x180] sm:$0xff]  ;;  %17658 = vst [vmem:[#allocation32_spill] sm:$0xff] %v8800_v24  ;;  %v8816_v24 = vsub.f32 %v301_v28, %v109_v49  ;;  %v8820_v39 = vsub.f32 %v303_v59, %v111_v45 }
  0x49   :  { %v304_v37 = vld [vmem:[#allocation5 + $0x178] sm:$0xff]  ;;  %v306_v5 = vld [vmem:[#allocation5 + $0x188] sm:$0xff]  ;;  %17659 = vst [vmem:[#allocation33_spill] sm:$0xff] %v8804_v26  ;;  %v121_v25 = vld [vmem:[#allocation2 + $0x1c0] sm:$0xff] }
  0x4a   :  { %v122_v61 = vld [vmem:[#allocation2 + $0x1c8] sm:$0xff]  ;;  %v123_v55 = vld [vmem:[#allocation2 + $0x1d0] sm:$0xff]  ;;  %v308_v62 = vld [vmem:[#allocation5 + $0x198] sm:$0xff]  ;;  %17660 = vst [vmem:[#allocation34_spill] sm:$0xff] %v8808_v13  ;;  %v8828_v13 = vsub.f32 %v305_v42, %v113_v17  ;;  %v8830_v49 = vsub.f32 %v306_v5, %v114_v46  ;;  %v8844_v17 = vmul.f32 %v8724_v10, %v8724_v10 }
  0x4b   :  { %v307_v44 = vld [vmem:[#allocation5 + $0x190] sm:$0xff]  ;;  %v309_v15 = vld [vmem:[#allocation5 + $0x1a0] sm:$0xff]  ;;  %17661 = vst [vmem:[#allocation35_spill] sm:$0xff] %v8810_v31  ;;  %17662 = vst [vmem:[#allocation36_spill] sm:$0xff] %v8814_v36  ;;  %v8826_v31 = vsub.f32 %v304_v37, %v112_v60 }
  0x4c   :  { %v124_v32 = vld [vmem:[#allocation2 + $0x1d8] sm:$0xff]  ;;  %v125_v7 = vld [vmem:[#allocation2 + $0x1e0] sm:$0xff]  ;;  %v126_v56 = vld [vmem:[#allocation2 + $0x1e8] sm:$0xff]  ;;  %17663 = vst [vmem:[#allocation37_spill] sm:$0xff] %v8818_v57  ;;  %v8838_v57 = vsub.f32 %v308_v62, %v116_v27  ;;  %v8840_v60 = vsub.f32 %v309_v15, %v117_v47  ;;  %v8854_v27 = vmul.f32 %v8726_v11, %v8726_v11 }
  0x4d   :  { %v310_v8 = vld [vmem:[#allocation5 + $0x1a8] sm:$0xff]  ;;  %v311_v9 = vld [vmem:[#allocation5 + $0x1b0] sm:$0xff]  ;;  %v312_v26 = vld [vmem:[#allocation5 + $0x1b8] sm:$0xff]  ;;  %17664 = vst [vmem:[#allocation38_spill] sm:$0xff] %v8820_v39  ;;  %v8836_v39 = vsub.f32 %v307_v44, %v115_v6 }
  0x4e   :  { %17665 = vst [vmem:[#allocation39_spill] sm:$0xff] %v8824_v53  ;;  %v127_v40 = vld [vmem:[#allocation2 + $0x1f0] sm:$0xff]  ;;  %v128_v48 = vld [vmem:[#allocation2 + $0x1f8] sm:$0xff]  ;;  %v129_v0 = vld [vmem:[#allocation2 + $0x200] sm:$0xff]  ;;  %v8850_v6 = vsub.f32 %v312_v26, %v120_v54 }
  0x4f   :  { %v313_v18 = vld [vmem:[#allocation5 + $0x1c0] sm:$0xff]  ;;  %v314_v19 = vld [vmem:[#allocation5 + $0x1c8] sm:$0xff]  ;;  %v315_v36 = vld [vmem:[#allocation5 + $0x1d0] sm:$0xff]  ;;  %17666 = vst [vmem:[#allocation40_spill] sm:$0xff] %v8828_v13  ;;  %v8848_v13 = vsub.f32 %v311_v9, %v119_v41  ;;  %v8864_v41 = vmul.f32 %v8728_v12, %v8728_v12 }
  0x50   :  { %17667 = vst [vmem:[#allocation41_spill] sm:$0xff] %v8830_v49  ;;  %17668 = vst [vmem:[#allocation42_spill] sm:$0xff] %v8834_v50  ;;  %v130_v45 = vld [vmem:[#allocation2 + $0x208] sm:$0xff]  ;;  %v131_v59 = vld [vmem:[#allocation2 + $0x210] sm:$0xff]  ;;  %v8846_v49 = vsub.f32 %v310_v8, %v118_v16  ;;  %v8860_v16 = vsub.f32 %v315_v36, %v123_v55 }
  0x51   :  { %v132_v1 = vld [vmem:[#allocation2 + $0x218] sm:$0xff]  ;;  %v317_v29 = vld [vmem:[#allocation5 + $0x1e0] sm:$0xff]  ;;  %v318_v53 = vld [vmem:[#allocation5 + $0x1e8] sm:$0xff]  ;;  %17669 = vst [vmem:[#allocation43_spill] sm:$0xff] %v8838_v57  ;;  %v8858_v57 = vsub.f32 %v314_v19, %v122_v61  ;;  %v8874_v61 = vmul.f32 %v8732_v20, %v8732_v20 }
  0x52   :  { %v316_v28 = vld [vmem:[#allocation5 + $0x1d8] sm:$0xff]  ;;  %17670 = vst [vmem:[#allocation44_spill] sm:$0xff] %v8840_v60  ;;  %17671 = vst [vmem:[#allocation45_spill] sm:$0xff] %v8844_v17  ;;  %v133_v46 = vld [vmem:[#allocation2 + $0x220] sm:$0xff]  ;;  %v8856_v60 = vsub.f32 %v313_v18, %v121_v25  ;;  %v8870_v25 = vsub.f32 %v318_v53, %v126_v56 }
  0x53   :  { %v134_v5 = vld [vmem:[#allocation2 + $0x228] sm:$0xff]  ;;  %v135_v2 = vld [vmem:[#allocation2 + $0x230] sm:$0xff]  ;;  %v320_v42 = vld [vmem:[#allocation5 + $0x1f8] sm:$0xff]  ;;  %17672 = vst [vmem:[#allocation46_spill] sm:$0xff] %v8848_v13  ;;  %v8868_v13 = vsub.f32 %v317_v29, %v125_v7  ;;  %v8884_v7 = vmul.f32 %v8734_v21, %v8734_v21 }
  0x54   :  { %v319_v37 = vld [vmem:[#allocation5 + $0x1f0] sm:$0xff]  ;;  %v321_v50 = vld [vmem:[#allocation5 + $0x200] sm:$0xff]  ;;  %17673 = vst [vmem:[#allocation47_spill] sm:$0xff] %v8850_v6  ;;  %17674 = vst [vmem:[#allocation48_spill] sm:$0xff] %v8854_v27  ;;  %v8866_v6 = vsub.f32 %v316_v28, %v124_v32 }
  0x55   :  { %v136_v47 = vld [vmem:[#allocation2 + $0x238] sm:$0xff]  ;;  %v137_v15 = vld [vmem:[#allocation2 + $0x240] sm:$0xff]  ;;  %v138_v10 = vld [vmem:[#allocation2 + $0x248] sm:$0xff]  ;;  %17675 = vst [vmem:[#allocation49_spill] sm:$0xff] %v8858_v57  ;;  %v8878_v57 = vsub.f32 %v320_v42, %v128_v48  ;;  %v8880_v32 = vsub.f32 %v321_v50, %v129_v0  ;;  %v8894_v48 = vmul.f32 %v8736_v22, %v8736_v22 }
  0x56   :  { %v322_v44 = vld [vmem:[#allocation5 + $0x208] sm:$0xff]  ;;  %v323_v62 = vld [vmem:[#allocation5 + $0x210] sm:$0xff]  ;;  %v324_v17 = vld [vmem:[#allocation5 + $0x218] sm:$0xff]  ;;  %17676 = vst [vmem:[#allocation50_spill] sm:$0xff] %v8860_v16  ;;  %v8876_v16 = vsub.f32 %v319_v37, %v127_v40 }
  0x57   :  { %17677 = vst [vmem:[#allocation51_spill] sm:$0xff] %v8864_v41  ;;  %v139_v54 = vld [vmem:[#allocation2 + $0x250] sm:$0xff]  ;;  %v140_v26 = vld [vmem:[#allocation2 + $0x258] sm:$0xff]  ;;  %v141_v11 = vld [vmem:[#allocation2 + $0x260] sm:$0xff]  ;;  %v8890_v40 = vsub.f32 %v324_v17, %v132_v1 }
  0x58   :  { %v325_v8 = vld [vmem:[#allocation5 + $0x220] sm:$0xff]  ;;  %v326_v9 = vld [vmem:[#allocation5 + $0x228] sm:$0xff]  ;;  %v327_v27 = vld [vmem:[#allocation5 + $0x230] sm:$0xff]  ;;  %17678 = vst [vmem:[#allocation52_spill] sm:$0xff] %v8868_v13  ;;  %v8888_v13 = vsub.f32 %v323_v62, %v131_v59  ;;  %v8904_v59 = vmul.f32 %v8740_v33, %v8740_v33 }
  0x59   :  { %17679 = vst [vmem:[#allocation53_spill] sm:$0xff] %v8870_v25  ;;  %17680 = vst [vmem:[#allocation54_spill] sm:$0xff] %v8874_v61  ;;  %v142_v55 = vld [vmem:[#allocation2 + $0x268] sm:$0xff]  ;;  %v143_v36 = vld [vmem:[#allocation2 + $0x270] sm:$0xff]  ;;  %v8886_v25 = vsub.f32 %v322_v44, %v130_v45  ;;  %v8900_v45 = vsub.f32 %v327_v27, %v135_v2 }
  0x5a   :  { %v144_v12 = vld [vmem:[#allocation2 + $0x278] sm:$0xff]  ;;  %v329_v19 = vld [vmem:[#allocation5 + $0x240] sm:$0xff]  ;;  %v330_v41 = vld [vmem:[#allocation5 + $0x248] sm:$0xff]  ;;  %17681 = vst [vmem:[#allocation55_spill] sm:$0xff] %v8878_v57  ;;  %v8898_v57 = vsub.f32 %v326_v9, %v134_v5  ;;  %v8914_v5 = vmul.f32 %v8742_v34, %v8742_v34 }
  0x5b   :  { %v328_v18 = vld [vmem:[#allocation5 + $0x238] sm:$0xff]  ;;  %17682 = vst [vmem:[#allocation56_spill] sm:$0xff] %v8880_v32  ;;  %17683 = vst [vmem:[#allocation57_spill] sm:$0xff] %v8884_v7  ;;  %v145_v56 = vld [vmem:[#allocation2 + $0x280] sm:$0xff]  ;;  %v8896_v32 = vsub.f32 %v325_v8, %v133_v46  ;;  %v8910_v46 = vsub.f32 %v330_v41, %v138_v10 }
  0x5c   :  { %v146_v53 = vld [vmem:[#allocation2 + $0x288] sm:$0xff]  ;;  %v147_v20 = vld [vmem:[#allocation2 + $0x290] sm:$0xff]  ;;  %v332_v29 = vld [vmem:[#allocation5 + $0x258] sm:$0xff]  ;;  %17684 = vst [vmem:[#allocation58_spill] sm:$0xff] %v8888_v13  ;;  %v8908_v13 = vsub.f32 %v329_v19, %v137_v15  ;;  %v8924_v15 = vmul.f32 %v8744_v35, %v8744_v35 }
  0x5d   :  { %v331_v28 = vld [vmem:[#allocation5 + $0x250] sm:$0xff]  ;;  %v333_v61 = vld [vmem:[#allocation5 + $0x260] sm:$0xff]  ;;  %17685 = vst [vmem:[#allocation59_spill] sm:$0xff] %v8890_v40  ;;  %17686 = vst [vmem:[#allocation60_spill] sm:$0xff] %v8894_v48  ;;  %v8906_v40 = vsub.f32 %v328_v18, %v136_v47 }
  0x5e   :  { %v148_v0 = vld [vmem:[#allocation2 + $0x298] sm:$0xff]  ;;  %v149_v50 = vld [vmem:[#allocation2 + $0x2a0] sm:$0xff]  ;;  %v150_v21 = vld [vmem:[#allocation2 + $0x2a8] sm:$0xff]  ;;  %17687 = vst [vmem:[#allocation61_spill] sm:$0xff] %v8898_v57  ;;  %v8918_v57 = vsub.f32 %v332_v29, %v140_v26  ;;  %v8920_v47 = vsub.f32 %v333_v61, %v141_v11  ;;  %v8934_v26 = vmul.f32 %v8748_v43, %v8748_v43 }
  0x5f   :  { %v334_v37 = vld [vmem:[#allocation5 + $0x268] sm:$0xff]  ;;  %v335_v42 = vld [vmem:[#allocation5 + $0x270] sm:$0xff]  ;;  %v336_v7 = vld [vmem:[#allocation5 + $0x278] sm:$0xff]  ;;  %17688 = vst [vmem:[#allocation62_spill] sm:$0xff] %v8900_v45  ;;  %v8916_v45 = vsub.f32 %v331_v28, %v139_v54 }
  0x60   :  { %17689 = vst [vmem:[#allocation63_spill] sm:$0xff] %v8904_v59  ;;  %v151_v1 = vld [vmem:[#allocation2 + $0x2b0] sm:$0xff]  ;;  %v152_v17 = vld [vmem:[#allocation2 + $0x2b8] sm:$0xff]  ;;  %v153_v22 = vld [vmem:[#allocation2 + $0x2c0] sm:$0xff]  ;;  %v8930_v54 = vsub.f32 %v336_v7, %v144_v12 }
  0x61   :  { %v337_v44 = vld [vmem:[#allocation5 + $0x280] sm:$0xff]  ;;  %v338_v62 = vld [vmem:[#allocation5 + $0x288] sm:$0xff]  ;;  %v339_v48 = vld [vmem:[#allocation5 + $0x290] sm:$0xff]  ;;  %17690 = vst [vmem:[#allocation64_spill] sm:$0xff] %v8908_v13  ;;  %v8928_v13 = vsub.f32 %v335_v42, %v143_v36  ;;  %v8944_v36 = vmul.f32 %v8750_v51, %v8750_v51 }
  0x62   :  { %17691 = vst [vmem:[#allocation65_spill] sm:$0xff] %v8910_v46  ;;  %17692 = vst [vmem:[#allocation66_spill] sm:$0xff] %v8914_v5  ;;  %v154_v2 = vld [vmem:[#allocation2 + $0x2c8] sm:$0xff]  ;;  %v155_v27 = vld [vmem:[#allocation2 + $0x2d0] sm:$0xff]  ;;  %v8926_v46 = vsub.f32 %v334_v37, %v142_v55  ;;  %v8940_v55 = vsub.f32 %v339_v48, %v147_v20 }
  0x63   :  { %v156_v33 = vld [vmem:[#allocation2 + $0x2d8] sm:$0xff]  ;;  %v341_v9 = vld [vmem:[#allocation5 + $0x2a0] sm:$0xff]  ;;  %v342_v59 = vld [vmem:[#allocation5 + $0x2a8] sm:$0xff]  ;;  %17693 = vst [vmem:[#allocation67_spill] sm:$0xff] %v8918_v57  ;;  %v8938_v57 = vsub.f32 %v338_v62, %v146_v53  ;;  %v8954_v53 = vmul.f32 %v8752_v52, %v8752_v52 }
  0x64   :  { %v340_v8 = vld [vmem:[#allocation5 + $0x298] sm:$0xff]  ;;  %17694 = vst [vmem:[#allocation68_spill] sm:$0xff] %v8920_v47  ;;  %17695 = vst [vmem:[#allocation69_spill] sm:$0xff] %v8924_v15  ;;  %v157_v10 = vld [vmem:[#allocation2 + $0x2e0] sm:$0xff]  ;;  %v8936_v47 = vsub.f32 %v337_v44, %v145_v56  ;;  %v8950_v56 = vsub.f32 %v342_v59, %v150_v21 }
  0x65   :  { %v158_v41 = vld [vmem:[#allocation2 + $0x2e8] sm:$0xff]  ;;  %v159_v34 = vld [vmem:[#allocation2 + $0x2f0] sm:$0xff]  ;;  %v344_v19 = vld [vmem:[#allocation5 + $0x2b8] sm:$0xff]  ;;  %17696 = vst [vmem:[#allocation70_spill] sm:$0xff] %v8928_v13  ;;  %v8948_v13 = vsub.f32 %v341_v9, %v149_v50  ;;  %v8964_v50 = vmul.f32 %v8756_v63, %v8756_v63 }
  0x66   :  { %v343_v18 = vld [vmem:[#allocation5 + $0x2b0] sm:$0xff]  ;;  %v345_v5 = vld [vmem:[#allocation5 + $0x2c0] sm:$0xff]  ;;  %17697 = vst [vmem:[#allocation71_spill] sm:$0xff] %v8930_v54  ;;  %17698 = vst [vmem:[#allocation72_spill] sm:$0xff] %v8934_v26  ;;  %v8946_v54 = vsub.f32 %v340_v8, %v148_v0 }
  0x67   :  { %v160_v11 = vld [vmem:[#allocation2 + $0x2f8] sm:$0xff]  ;;  %v161_v61 = vld [vmem:[#allocation2 + $0x300] sm:$0xff]  ;;  %v162_v35 = vld [vmem:[#allocation2 + $0x308] sm:$0xff]  ;;  %17699 = vst [vmem:[#allocation73_spill] sm:$0xff] %v8938_v57  ;;  %v8958_v57 = vsub.f32 %v344_v19, %v152_v17  ;;  %v8960_v0 = vsub.f32 %v345_v5, %v153_v22  ;;  %v8974_v17 = vmul.f32 %v8758_v30, %v8758_v30 }
  0x68   :  { %v346_v28 = vld [vmem:[#allocation5 + $0x2c8] sm:$0xff]  ;;  %v347_v29 = vld [vmem:[#allocation5 + $0x2d0] sm:$0xff]  ;;  %v348_v15 = vld [vmem:[#allocation5 + $0x2d8] sm:$0xff]  ;;  %17700 = vst [vmem:[#allocation74_spill] sm:$0xff] %v8940_v55  ;;  %v8956_v55 = vsub.f32 %v343_v18, %v151_v1 }
  0x69   :  { %17701 = vst [vmem:[#allocation75_spill] sm:$0xff] %v8944_v36  ;;  %v163_v12 = vld [vmem:[#allocation2 + $0x310] sm:$0xff]  ;;  %v164_v7 = vld [vmem:[#allocation2 + $0x318] sm:$0xff]  ;;  %v165_v43 = vld [vmem:[#allocation2 + $0x320] sm:$0xff]  ;;  %v8970_v1 = vsub.f32 %v348_v15, %v156_v33 }
  0x6a   :  { %v349_v37 = vld [vmem:[#allocation5 + $0x2e0] sm:$0xff]  ;;  %v350_v42 = vld [vmem:[#allocation5 + $0x2e8] sm:$0xff]  ;;  %v351_v26 = vld [vmem:[#allocation5 + $0x2f0] sm:$0xff]  ;;  %17702 = vst [vmem:[#allocation76_spill] sm:$0xff] %v8948_v13  ;;  %v8968_v13 = vsub.f32 %v347_v29, %v155_v27  ;;  %v8984_v27 = vmul.f32 %v8760_v23, %v8760_v23 }
  0x6b   :  { %17703 = vst [vmem:[#allocation77_spill] sm:$0xff] %v8950_v56  ;;  %17704 = vst [vmem:[#allocation78_spill] sm:$0xff] %v8954_v53  ;;  %v166_v20 = vld [vmem:[#allocation2 + $0x328] sm:$0xff]  ;;  %v167_v48 = vld [vmem:[#allocation2 + $0x330] sm:$0xff]  ;;  %v8966_v56 = vsub.f32 %v346_v28, %v154_v2  ;;  %v8980_v2 = vsub.f32 %v351_v26, %v159_v34 }
  0x6c   :  { %v168_v51 = vld [vmem:[#allocation2 + $0x338] sm:$0xff]  ;;  %v353_v62 = vld [vmem:[#allocation5 + $0x300] sm:$0xff]  ;;  %v354_v36 = vld [vmem:[#allocation5 + $0x308] sm:$0xff]  ;;  %17705 = vst [vmem:[#allocation79_spill] sm:$0xff] %v8958_v57  ;;  %v8978_v57 = vsub.f32 %v350_v42, %v158_v41  ;;  %v8994_v41 = vmul.f32 %v8766_v38, %v8766_v38 }
  0x6d   :  { %v352_v44 = vld [vmem:[#allocation5 + $0x2f8] sm:$0xff]  ;;  %17706 = vst [vmem:[#allocation80_spill] sm:$0xff] %v8960_v0  ;;  %17707 = vst [vmem:[#allocation81_spill] sm:$0xff] %v8964_v50  ;;  %v169_v21 = vld [vmem:[#allocation2 + $0x340] sm:$0xff]  ;;  %v8976_v0 = vsub.f32 %v349_v37, %v157_v10  ;;  %v8990_v10 = vsub.f32 %v354_v36, %v162_v35 }
  0x6e   :  { %v170_v59 = vld [vmem:[#allocation2 + $0x348] sm:$0xff]  ;;  %v171_v52 = vld [vmem:[#allocation2 + $0x350] sm:$0xff]  ;;  %v356_v9 = vld [vmem:[#allocation5 + $0x318] sm:$0xff]  ;;  %17708 = vst [vmem:[#allocation82_spill] sm:$0xff] %v8968_v13  ;;  %v8988_v13 = vsub.f32 %v353_v62, %v161_v61 }
  0x6f   :  { %v355_v8 = vld [vmem:[#allocation5 + $0x310] sm:$0xff]  ;;  %v357_v53 = vld [vmem:[#allocation5 + $0x320] sm:$0xff]  ;;  %17709 = vst [vmem:[#allocation83_spill] sm:$0xff] %v8970_v1  ;;  %17710 = vst [vmem:[#allocation84_spill] sm:$0xff] %v8974_v17  ;;  %v8986_v1 = vsub.f32 %v352_v44, %v160_v11 }
  0x70   :  { %v172_v22 = vld [vmem:[#allocation2 + $0x358] sm:$0xff]  ;;  %v173_v5 = vld [vmem:[#allocation2 + $0x360] sm:$0xff]  ;;  %v174_v63 = vld [vmem:[#allocation2 + $0x368] sm:$0xff]  ;;  %17711 = vst [vmem:[#allocation85_spill] sm:$0xff] %v8978_v57  ;;  %v8998_v57 = vsub.f32 %v356_v9, %v164_v7  ;;  %v9000_v11 = vsub.f32 %v357_v53, %v165_v43 }
  0x71   :  { %v358_v18 = vld [vmem:[#allocation5 + $0x328] sm:$0xff]  ;;  %v359_v19 = vld [vmem:[#allocation5 + $0x330] sm:$0xff]  ;;  %v360_v50 = vld [vmem:[#allocation5 + $0x338] sm:$0xff]  ;;  %17712 = vst [vmem:[#allocation86_spill] sm:$0xff] %v8980_v2  ;;  %v8996_v2 = vsub.f32 %v355_v8, %v163_v12 }
  0x72   :  { %17713 = vst [vmem:[#allocation87_spill] sm:$0xff] %v8984_v27  ;;  %v175_v33 = vld [vmem:[#allocation2 + $0x370] sm:$0xff]  ;;  %v176_v15 = vld [vmem:[#allocation2 + $0x378] sm:$0xff]  ;;  %v177_v30 = vld [vmem:[#allocation2 + $0x380] sm:$0xff]  ;;  %v9010_v12 = vsub.f32 %v360_v50, %v168_v51 }
  0x73   :  { %v361_v28 = vld [vmem:[#allocation5 + $0x340] sm:$0xff]  ;;  %v362_v29 = vld [vmem:[#allocation5 + $0x348] sm:$0xff]  ;;  %v363_v17 = vld [vmem:[#allocation5 + $0x350] sm:$0xff]  ;;  %17714 = vst [vmem:[#allocation88_spill] sm:$0xff] %v8986_v1  ;;  %v9008_v1 = vsub.f32 %v359_v19, %v167_v48  ;;  %v9024_v48 = vmul.f32 %v8776_v3, %v8776_v3 }
  0x74   :  { %17715 = vst [vmem:[#allocation89_spill] sm:$0xff] %v8988_v13  ;;  %17716 = vst [vmem:[#allocation90_spill] sm:$0xff] %v8990_v10  ;;  %v178_v34 = vld [vmem:[#allocation2 + $0x388] sm:$0xff]  ;;  %v179_v26 = vld [vmem:[#allocation2 + $0x390] sm:$0xff]  ;;  %v9006_v13 = vsub.f32 %v358_v18, %v166_v20  ;;  %v9020_v20 = vsub.f32 %v363_v17, %v171_v52 }
  0x75   :  { %17717 = vst [vmem:[#allocation91_spill] sm:$0xff] %v8994_v41  ;;  %v180_v23 = vld [vmem:[#allocation2 + $0x398] sm:$0xff]  ;;  %v365_v42 = vld [vmem:[#allocation5 + $0x360] sm:$0xff]  ;;  %v366_v27 = vld [vmem:[#allocation5 + $0x368] sm:$0xff] }
  0x76   :  { %v364_v37 = vld [vmem:[#allocation5 + $0x358] sm:$0xff]  ;;  %17718 = vst [vmem:[#allocation92_spill] sm:$0xff] %v8996_v2  ;;  %17719 = vst [vmem:[#allocation93_spill] sm:$0xff] %v8998_v57  ;;  %v17721_v61 = vld [vmem:[#allocation22_spill] sm:$0xff]  ;;  %v9016_v57 = vsub.f32 %v361_v28, %v169_v21  ;;  %v9018_v2 = vsub.f32 %v362_v29, %v170_v59  ;;  %v9030_v21 = vsub.f32 %v366_v27, %v174_v63 }
  0x77   :  { %17720 = vst [vmem:[#allocation94_spill] sm:$0xff] %v9000_v11  ;;  %v9004_v35 = vmul.f32 %v17721_v61, %v17721_v61  ;;  %v181_v36 = vld [vmem:[#allocation2 + $0x3a0] sm:$0xff]  ;;  %v182_v44 = vld [vmem:[#allocation2 + $0x3a8] sm:$0xff]  ;;  %v183_v38 = vld [vmem:[#allocation2 + $0x3b0] sm:$0xff] }
  0x78   :  { %v367_v62 = vld [vmem:[#allocation5 + $0x370] sm:$0xff]  ;;  %v368_v41 = vld [vmem:[#allocation5 + $0x378] sm:$0xff]  ;;  %v369_v10 = vld [vmem:[#allocation5 + $0x380] sm:$0xff]  ;;  %17723 = vst [vmem:[#allocation95_spill] sm:$0xff] %v9008_v1  ;;  %v9028_v1 = vsub.f32 %v365_v42, %v173_v5 }
  0x79   :  { %17722 = vst [vmem:[#allocation22_spill] sm:$0xff] %v9004_v35  ;;  %17724 = vst [vmem:[#allocation96_spill] sm:$0xff] %v9010_v12  ;;  %v17725_v7 = vld [vmem:[#allocation23_spill] sm:$0xff]  ;;  %v184_v53 = vld [vmem:[#allocation2 + $0x3b8] sm:$0xff]  ;;  %v9026_v12 = vsub.f32 %v364_v37, %v172_v22  ;;  %v9040_v22 = vsub.f32 %v369_v10, %v177_v30 }
  0x7a   :  { %v9014_v43 = vmul.f32 %v17725_v7, %v17725_v7  ;;  %v185_v8 = vld [vmem:[#allocation2 + $0x3c0] sm:$0xff]  ;;  %v186_v9 = vld [vmem:[#allocation2 + $0x3c8] sm:$0xff]  ;;  %v371_v35 = vld [vmem:[#allocation5 + $0x390] sm:$0xff]  ;;  %17727 = vst [vmem:[#allocation97_spill] sm:$0xff] %v9016_v57  ;;  %v9038_v57 = vsub.f32 %v368_v41, %v176_v15  ;;  %v9054_v15 = vmul.f32 %v8786_v58, %v8786_v58 }
  0x7b   :  { %v370_v61 = vld [vmem:[#allocation5 + $0x388] sm:$0xff]  ;;  %v372_v11 = vld [vmem:[#allocation5 + $0x398] sm:$0xff]  ;;  %17728 = vst [vmem:[#allocation98_spill] sm:$0xff] %v9018_v2  ;;  %17729 = vst [vmem:[#allocation99_spill] sm:$0xff] %v9020_v20  ;;  %v9036_v2 = vsub.f32 %v367_v62, %v175_v33 }
  0x7c   :  { %17726 = vst [vmem:[#allocation23_spill] sm:$0xff] %v9014_v43  ;;  %17730 = vst [vmem:[#allocation100_spill] sm:$0xff] %v9024_v48  ;;  %v187_v51 = vld [vmem:[#allocation2 + $0x3d0] sm:$0xff]  ;;  %v188_v50 = vld [vmem:[#allocation2 + $0x3d8] sm:$0xff]  ;;  %v9050_v33 = vsub.f32 %v372_v11, %v180_v23 }
  0x7d   :  { %v189_v18 = vld [vmem:[#allocation2 + $0x3e0] sm:$0xff]  ;;  %v374_v7 = vld [vmem:[#allocation5 + $0x3a8] sm:$0xff]  ;;  %v375_v43 = vld [vmem:[#allocation5 + $0x3b0] sm:$0xff]  ;;  %17731 = vst [vmem:[#allocation101_spill] sm:$0xff] %v9026_v12  ;;  %v9048_v12 = vsub.f32 %v371_v35, %v179_v26 }
  0x7e   :  { %v373_v19 = vld [vmem:[#allocation5 + $0x3a0] sm:$0xff]  ;;  %17732 = vst [vmem:[#allocation102_spill] sm:$0xff] %v9028_v1  ;;  %17733 = vst [vmem:[#allocation103_spill] sm:$0xff] %v9030_v21  ;;  %v190_v17 = vld [vmem:[#allocation2 + $0x3e8] sm:$0xff]  ;;  %v9046_v1 = vsub.f32 %v370_v61, %v178_v34  ;;  %v9060_v34 = vsub.f32 %v375_v43, %v183_v38 }
  0x7f   :  { %v17734_v59 = vld [vmem:[#allocation25_spill] sm:$0xff]  ;;  %v191_v28 = vld [vmem:[#allocation2 + $0x3f0] sm:$0xff]  ;;  %v192_v3 = vld [vmem:[#allocation2 + $0x3f8] sm:$0xff]  ;;  %17736 = vst [vmem:[#allocation104_spill] sm:$0xff] %v9038_v57  ;;  %v9058_v57 = vsub.f32 %v374_v7, %v182_v44 }
  0x80   :  { %v9034_v52 = vmul.f32 %v17734_v59, %v17734_v59  ;;  %v376_v29 = vld [vmem:[#allocation5 + $0x3b8] sm:$0xff]  ;;  %v377_v48 = vld [vmem:[#allocation5 + $0x3c0] sm:$0xff]  ;;  %v378_v20 = vld [vmem:[#allocation5 + $0x3c8] sm:$0xff]  ;;  %17737 = vst [vmem:[#allocation105_spill] sm:$0xff] %v9040_v22  ;;  %v9056_v22 = vsub.f32 %v373_v19, %v181_v36 }
  0x81   :  { %v17738_v5 = vld [vmem:[#allocation26_spill] sm:$0xff]  ;;  %v193_v27 = vld [vmem:[#allocation2 + $0x400] sm:$0xff]  ;;  %v195_v42 = vld [vmem:[#allocation2 + $0x410] sm:$0xff]  ;;  %17740 = vst [vmem:[#allocation106_spill] sm:$0xff] %v9046_v1  ;;  %v9068_v1 = vsub.f32 %v377_v48, %v185_v8  ;;  %v9070_v36 = vsub.f32 %v378_v20, %v186_v9  ;;  %v9084_v8 = vmul.f32 %v8796_v4, %v8796_v4 }
  0x82   :  { %17735 = vst [vmem:[#allocation25_spill] sm:$0xff] %v9034_v52  ;;  %v9044_v63 = vmul.f32 %v17738_v5, %v17738_v5  ;;  %v194_v37 = vld [vmem:[#allocation2 + $0x408] sm:$0xff]  ;;  %v379_v59 = vld [vmem:[#allocation5 + $0x3d0] sm:$0xff]  ;;  %v380_v52 = vld [vmem:[#allocation5 + $0x3d8] sm:$0xff] }
  0x83   :  { %v381_v21 = vld [vmem:[#allocation5 + $0x3e0] sm:$0xff]  ;;  %17741 = vst [vmem:[#allocation107_spill] sm:$0xff] %v9048_v12  ;;  %17742 = vst [vmem:[#allocation108_spill] sm:$0xff] %v9050_v33  ;;  %v196_v30 = vld [vmem:[#allocation2 + $0x418] sm:$0xff]  ;;  %v9066_v12 = vsub.f32 %v376_v29, %v184_v53 }
  0x84   :  { %17739 = vst [vmem:[#allocation26_spill] sm:$0xff] %v9044_v63  ;;  %17743 = vst [vmem:[#allocation109_spill] sm:$0xff] %v9054_v15  ;;  %v197_v10 = vld [vmem:[#allocation2 + $0x420] sm:$0xff]  ;;  %v198_v41 = vld [vmem:[#allocation2 + $0x428] sm:$0xff]  ;;  %v9080_v53 = vsub.f32 %v381_v21, %v189_v18 }
  0x85   :  { %v382_v62 = vld [vmem:[#allocation5 + $0x3e8] sm:$0xff]  ;;  %v383_v5 = vld [vmem:[#allocation5 + $0x3f0] sm:$0xff]  ;;  %v384_v63 = vld [vmem:[#allocation5 + $0x3f8] sm:$0xff]  ;;  %17744 = vst [vmem:[#allocation110_spill] sm:$0xff] %v9056_v22  ;;  %v9078_v22 = vsub.f32 %v380_v52, %v188_v50 }
  0x86   :  { %17745 = vst [vmem:[#allocation111_spill] sm:$0xff] %v9058_v57  ;;  %17746 = vst [vmem:[#allocation112_spill] sm:$0xff] %v9060_v34  ;;  %v17747_v26 = vld [vmem:[#allocation28_spill] sm:$0xff]  ;;  %v199_v11 = vld [vmem:[#allocation2 + $0x430] sm:$0xff]  ;;  %v9076_v57 = vsub.f32 %v379_v59, %v187_v51  ;;  %v9090_v51 = vsub.f32 %v384_v63, %v192_v3 }
  0x87   :  { %v9064_v23 = vmul.f32 %v17747_v26, %v17747_v26  ;;  %v200_v35 = vld [vmem:[#allocation2 + $0x438] sm:$0xff]  ;;  %v201_v58 = vld [vmem:[#allocation2 + $0x440] sm:$0xff]  ;;  %v386_v15 = vld [vmem:[#allocation5 + $0x408] sm:$0xff]  ;;  %17749 = vst [vmem:[#allocation113_spill] sm:$0xff] %v9068_v1  ;;  %v9088_v1 = vsub.f32 %v383_v5, %v191_v28 }
  0x88   :  { %v385_v61 = vld [vmem:[#allocation5 + $0x400] sm:$0xff]  ;;  %v387_v33 = vld [vmem:[#allocation5 + $0x410] sm:$0xff]  ;;  %17750 = vst [vmem:[#allocation114_spill] sm:$0xff] %v9070_v36  ;;  %v202_v43 = vld [vmem:[#allocation2 + $0x448] sm:$0xff]  ;;  %v9086_v36 = vsub.f32 %v382_v62, %v190_v17 }
  0x89   :  { %17748 = vst [vmem:[#allocation28_spill] sm:$0xff] %v9064_v23  ;;  %v17751_v44 = vld [vmem:[#allocation29_spill] sm:$0xff]  ;;  %v203_v19 = vld [vmem:[#allocation2 + $0x450] sm:$0xff]  ;;  %v204_v7 = vld [vmem:[#allocation2 + $0x458] sm:$0xff]  ;;  %v9100_v17 = vsub.f32 %v387_v33, %v195_v42 }
  0x8a   :  { %v9074_v38 = vmul.f32 %v17751_v44, %v17751_v44  ;;  %v388_v26 = vld [vmem:[#allocation5 + $0x418] sm:$0xff]  ;;  %v389_v23 = vld [vmem:[#allocation5 + $0x420] sm:$0xff]  ;;  %v390_v34 = vld [vmem:[#allocation5 + $0x428] sm:$0xff]  ;;  %17753 = vst [vmem:[#allocation115_spill] sm:$0xff] %v9076_v57  ;;  %v9098_v57 = vsub.f32 %v386_v15, %v194_v37  ;;  %v9114_v37 = vmul.f32 %v8806_v14, %v8806_v14 }
  0x8b   :  { %17754 = vst [vmem:[#allocation116_spill] sm:$0xff] %v9078_v22  ;;  %17755 = vst [vmem:[#allocation117_spill] sm:$0xff] %v9080_v53  ;;  %v205_v9 = vld [vmem:[#allocation2 + $0x460] sm:$0xff]  ;;  %v206_v20 = vld [vmem:[#allocation2 + $0x468] sm:$0xff]  ;;  %v9096_v22 = vsub.f32 %v385_v61, %v193_v27  ;;  %v9110_v27 = vsub.f32 %v390_v34, %v198_v41 }
  0x8c   :  { %17752 = vst [vmem:[#allocation29_spill] sm:$0xff] %v9074_v38  ;;  %17756 = vst [vmem:[#allocation118_spill] sm:$0xff] %v9084_v8  ;;  %v207_v48 = vld [vmem:[#allocation2 + $0x470] sm:$0xff]  ;;  %v392_v44 = vld [vmem:[#allocation5 + $0x438] sm:$0xff] }
  0x8d   :  { %v391_v29 = vld [vmem:[#allocation5 + $0x430] sm:$0xff]  ;;  %v393_v38 = vld [vmem:[#allocation5 + $0x440] sm:$0xff]  ;;  %17757 = vst [vmem:[#allocation119_spill] sm:$0xff] %v9086_v36  ;;  %17758 = vst [vmem:[#allocation120_spill] sm:$0xff] %v9088_v1  ;;  %v9106_v1 = vsub.f32 %v388_v26, %v196_v30  ;;  %v9108_v36 = vsub.f32 %v389_v23, %v197_v10 }
  0x8e   :  { %17759 = vst [vmem:[#allocation121_spill] sm:$0xff] %v9090_v51  ;;  %v17760_v50 = vld [vmem:[#allocation31_spill] sm:$0xff]  ;;  %v208_v21 = vld [vmem:[#allocation2 + $0x478] sm:$0xff]  ;;  %v209_v52 = vld [vmem:[#allocation2 + $0x480] sm:$0xff]  ;;  %v9120_v30 = vsub.f32 %v393_v38, %v201_v58 }
  0x8f   :  { %v9094_v18 = vmul.f32 %v17760_v50, %v17760_v50  ;;  %v210_v4 = vld [vmem:[#allocation2 + $0x488] sm:$0xff]  ;;  %v395_v8 = vld [vmem:[#allocation5 + $0x450] sm:$0xff]  ;;  %v396_v53 = vld [vmem:[#allocation5 + $0x458] sm:$0xff]  ;;  %17762 = vst [vmem:[#allocation122_spill] sm:$0xff] %v9098_v57  ;;  %v9118_v57 = vsub.f32 %v392_v44, %v200_v35 }
  0x90   :  { %v394_v59 = vld [vmem:[#allocation5 + $0x448] sm:$0xff]  ;;  %17763 = vst [vmem:[#allocation123_spill] sm:$0xff] %v9100_v17  ;;  %v17764_v28 = vld [vmem:[#allocation32_spill] sm:$0xff]  ;;  %v211_v63 = vld [vmem:[#allocation2 + $0x490] sm:$0xff]  ;;  %v9116_v17 = vsub.f32 %v391_v29, %v199_v11  ;;  %v9130_v11 = vsub.f32 %v396_v53, %v204_v7 }
  0x91   :  { %17761 = vst [vmem:[#allocation31_spill] sm:$0xff] %v9094_v18  ;;  %v9104_v3 = vmul.f32 %v17764_v28, %v17764_v28  ;;  %v212_v62 = vld [vmem:[#allocation2 + $0x498] sm:$0xff]  ;;  %v213_v5 = vld [vmem:[#allocation2 + $0x4a0] sm:$0xff]  ;;  %v398_v18 = vld [vmem:[#allocation5 + $0x468] sm:$0xff] }
  0x92   :  { %v397_v50 = vld [vmem:[#allocation5 + $0x460] sm:$0xff]  ;;  %v399_v51 = vld [vmem:[#allocation5 + $0x470] sm:$0xff]  ;;  %17766 = vst [vmem:[#allocation124_spill] sm:$0xff] %v9106_v1  ;;  %17767 = vst [vmem:[#allocation125_spill] sm:$0xff] %v9108_v36  ;;  %v9126_v36 = vsub.f32 %v394_v59, %v202_v43  ;;  %v9128_v1 = vsub.f32 %v395_v8, %v203_v19  ;;  %v9144_v19 = vmul.f32 %v8816_v24, %v8816_v24 }
  0x93   :  { %17765 = vst [vmem:[#allocation32_spill] sm:$0xff] %v9104_v3  ;;  %17768 = vst [vmem:[#allocation126_spill] sm:$0xff] %v9110_v27  ;;  %v214_v42 = vld [vmem:[#allocation2 + $0x4a8] sm:$0xff]  ;;  %v215_v33 = vld [vmem:[#allocation2 + $0x4b0] sm:$0xff]  ;;  %v9140_v43 = vsub.f32 %v399_v51, %v207_v48 }
  0x94   :  { %17769 = vst [vmem:[#allocation127_spill] sm:$0xff] %v9114_v37  ;;  %v216_v15 = vld [vmem:[#allocation2 + $0x4b8] sm:$0xff]  ;;  %v401_v28 = vld [vmem:[#allocation5 + $0x480] sm:$0xff]  ;;  %v402_v3 = vld [vmem:[#allocation5 + $0x488] sm:$0xff] }
  0x95   :  { %v400_v61 = vld [vmem:[#allocation5 + $0x478] sm:$0xff]  ;;  %17770 = vst [vmem:[#allocation128_spill] sm:$0xff] %v9116_v17  ;;  %17771 = vst [vmem:[#allocation129_spill] sm:$0xff] %v9118_v57  ;;  %v17773_v10 = vld [vmem:[#allocation34_spill] sm:$0xff]  ;;  %v9136_v57 = vsub.f32 %v397_v50, %v205_v9  ;;  %v9138_v17 = vsub.f32 %v398_v18, %v206_v20  ;;  %v9150_v9 = vsub.f32 %v402_v3, %v210_v4 }
  0x96   :  { %17772 = vst [vmem:[#allocation130_spill] sm:$0xff] %v9120_v30  ;;  %v9124_v41 = vmul.f32 %v17773_v10, %v17773_v10  ;;  %v217_v34 = vld [vmem:[#allocation2 + $0x4c0] sm:$0xff]  ;;  %v218_v23 = vld [vmem:[#allocation2 + $0x4c8] sm:$0xff]  ;;  %v219_v14 = vld [vmem:[#allocation2 + $0x4d0] sm:$0xff] }
  0x97   :  { %v403_v26 = vld [vmem:[#allocation5 + $0x490] sm:$0xff]  ;;  %v404_v37 = vld [vmem:[#allocation5 + $0x498] sm:$0xff]  ;;  %v405_v27 = vld [vmem:[#allocation5 + $0x4a0] sm:$0xff]  ;;  %17775 = vst [vmem:[#allocation131_spill] sm:$0xff] %v9128_v1  ;;  %v9148_v1 = vsub.f32 %v401_v28, %v209_v52 }
  0x98   :  { %17774 = vst [vmem:[#allocation34_spill] sm:$0xff] %v9124_v41  ;;  %17776 = vst [vmem:[#allocation132_spill] sm:$0xff] %v9130_v11  ;;  %v17777_v35 = vld [vmem:[#allocation35_spill] sm:$0xff]  ;;  %v220_v38 = vld [vmem:[#allocation2 + $0x4d8] sm:$0xff]  ;;  %v9146_v11 = vsub.f32 %v400_v61, %v208_v21  ;;  %v9160_v21 = vsub.f32 %v405_v27, %v213_v5 }
  0x99   :  { %v9134_v58 = vmul.f32 %v17777_v35, %v17777_v35  ;;  %v221_v29 = vld [vmem:[#allocation2 + $0x4e0] sm:$0xff]  ;;  %v222_v44 = vld [vmem:[#allocation2 + $0x4e8] sm:$0xff]  ;;  %v407_v41 = vld [vmem:[#allocation5 + $0x4b0] sm:$0xff]  ;;  %17779 = vst [vmem:[#allocation133_spill] sm:$0xff] %v9136_v57  ;;  %v9158_v57 = vsub.f32 %v404_v37, %v212_v62  ;;  %v9174_v62 = vmul.f32 %v8826_v31, %v8826_v31 }
  0x9a   :  { %v406_v10 = vld [vmem:[#allocation5 + $0x4a8] sm:$0xff]  ;;  %v408_v30 = vld [vmem:[#allocation5 + $0x4b8] sm:$0xff]  ;;  %17780 = vst [vmem:[#allocation134_spill] sm:$0xff] %v9138_v17  ;;  %17781 = vst [vmem:[#allocation135_spill] sm:$0xff] %v9140_v43  ;;  %v9156_v17 = vsub.f32 %v403_v26, %v211_v63 }
  0x9b   :  { %17778 = vst [vmem:[#allocation35_spill] sm:$0xff] %v9134_v58  ;;  %17782 = vst [vmem:[#allocation136_spill] sm:$0xff] %v9144_v19  ;;  %v223_v7 = vld [vmem:[#allocation2 + $0x4f0] sm:$0xff]  ;;  %v224_v53 = vld [vmem:[#allocation2 + $0x4f8] sm:$0xff]  ;;  %v9170_v63 = vsub.f32 %v408_v30, %v216_v15 }
  0x9c   :  { %v225_v8 = vld [vmem:[#allocation2 + $0x500] sm:$0xff]  ;;  %v410_v35 = vld [vmem:[#allocation5 + $0x4c8] sm:$0xff]  ;;  %v411_v58 = vld [vmem:[#allocation5 + $0x4d0] sm:$0xff]  ;;  %17783 = vst [vmem:[#allocation137_spill] sm:$0xff] %v9146_v11  ;;  %v9168_v11 = vsub.f32 %v407_v41, %v215_v33 }
  0x9d   :  { %v409_v59 = vld [vmem:[#allocation5 + $0x4c0] sm:$0xff]  ;;  %17784 = vst [vmem:[#allocation138_spill] sm:$0xff] %v9148_v1  ;;  %17785 = vst [vmem:[#allocation139_spill] sm:$0xff] %v9150_v9  ;;  %v226_v51 = vld [vmem:[#allocation2 + $0x508] sm:$0xff]  ;;  %v9166_v1 = vsub.f32 %v406_v10, %v214_v42  ;;  %v9180_v42 = vsub.f32 %v411_v58, %v219_v14 }
  0x9e   :  { %v17786_v20 = vld [vmem:[#allocation37_spill] sm:$0xff]  ;;  %v227_v18 = vld [vmem:[#allocation2 + $0x510] sm:$0xff]  ;;  %v228_v24 = vld [vmem:[#allocation2 + $0x518] sm:$0xff]  ;;  %17788 = vst [vmem:[#allocation140_spill] sm:$0xff] %v9158_v57  ;;  %v9178_v57 = vsub.f32 %v410_v35, %v218_v23 }
  0x9f   :  { %v9154_v48 = vmul.f32 %v17786_v20, %v17786_v20  ;;  %v412_v50 = vld [vmem:[#allocation5 + $0x4d8] sm:$0xff]  ;;  %v413_v19 = vld [vmem:[#allocation5 + $0x4e0] sm:$0xff]  ;;  %v414_v43 = vld [vmem:[#allocation5 + $0x4e8] sm:$0xff]  ;;  %17789 = vst [vmem:[#allocation141_spill] sm:$0xff] %v9160_v21  ;;  %v9176_v21 = vsub.f32 %v409_v59, %v217_v34 }
  0xa0   :  { %v17790_v52 = vld [vmem:[#allocation38_spill] sm:$0xff]  ;;  %v229_v3 = vld [vmem:[#allocation2 + $0x520] sm:$0xff]  ;;  %v231_v28 = vld [vmem:[#allocation2 + $0x530] sm:$0xff]  ;;  %17792 = vst [vmem:[#allocation142_spill] sm:$0xff] %v9166_v1  ;;  %v9188_v1 = vsub.f32 %v413_v19, %v221_v29  ;;  %v9190_v34 = vsub.f32 %v414_v43, %v222_v44  ;;  %v9204_v29 = vmul.f32 %v8836_v39, %v8836_v39 }
  0xa1   :  { %17787 = vst [vmem:[#allocation37_spill] sm:$0xff] %v9154_v48  ;;  %v9164_v4 = vmul.f32 %v17790_v52, %v17790_v52  ;;  %v230_v61 = vld [vmem:[#allocation2 + $0x528] sm:$0xff]  ;;  %v415_v20 = vld [vmem:[#allocation5 + $0x4f0] sm:$0xff]  ;;  %v416_v48 = vld [vmem:[#allocation5 + $0x4f8] sm:$0xff] }
  0xa2   :  { %v417_v9 = vld [vmem:[#allocation5 + $0x500] sm:$0xff]  ;;  %17793 = vst [vmem:[#allocation143_spill] sm:$0xff] %v9168_v11  ;;  %17794 = vst [vmem:[#allocation144_spill] sm:$0xff] %v9170_v63  ;;  %v232_v5 = vld [vmem:[#allocation2 + $0x538] sm:$0xff]  ;;  %v9186_v11 = vsub.f32 %v412_v50, %v220_v38 }
  0xa3   :  { %17791 = vst [vmem:[#allocation38_spill] sm:$0xff] %v9164_v4  ;;  %17795 = vst [vmem:[#allocation145_spill] sm:$0xff] %v9174_v62  ;;  %v233_v27 = vld [vmem:[#allocation2 + $0x540] sm:$0xff]  ;;  %v234_v37 = vld [vmem:[#allocation2 + $0x548] sm:$0xff]  ;;  %v9200_v38 = vsub.f32 %v417_v9, %v225_v8 }
  0xa4   :  { %v418_v26 = vld [vmem:[#allocation5 + $0x508] sm:$0xff]  ;;  %v419_v52 = vld [vmem:[#allocation5 + $0x510] sm:$0xff]  ;;  %v420_v4 = vld [vmem:[#allocation5 + $0x518] sm:$0xff]  ;;  %17796 = vst [vmem:[#allocation146_spill] sm:$0xff] %v9176_v21  ;;  %v9198_v21 = vsub.f32 %v416_v48, %v224_v53 }
  0xa5   :  { %17797 = vst [vmem:[#allocation147_spill] sm:$0xff] %v9178_v57  ;;  %17798 = vst [vmem:[#allocation148_spill] sm:$0xff] %v9180_v42  ;;  %v17799_v33 = vld [vmem:[#allocation40_spill] sm:$0xff]  ;;  %v235_v30 = vld [vmem:[#allocation2 + $0x550] sm:$0xff]  ;;  %v9196_v57 = vsub.f32 %v415_v20, %v223_v7  ;;  %v9210_v7 = vsub.f32 %v420_v4, %v228_v24 }
  0xa6   :  { %v9184_v15 = vmul.f32 %v17799_v33, %v17799_v33  ;;  %v236_v41 = vld [vmem:[#allocation2 + $0x558] sm:$0xff]  ;;  %v237_v31 = vld [vmem:[#allocation2 + $0x560] sm:$0xff]  ;;  %v422_v62 = vld [vmem:[#allocation5 + $0x528] sm:$0xff]  ;;  %17801 = vst [vmem:[#allocation149_spill] sm:$0xff] %v9188_v1  ;;  %v9208_v1 = vsub.f32 %v419_v52, %v227_v18 }
  0xa7   :  { %v421_v10 = vld [vmem:[#allocation5 + $0x520] sm:$0xff]  ;;  %v423_v63 = vld [vmem:[#allocation5 + $0x530] sm:$0xff]  ;;  %17802 = vst [vmem:[#allocation150_spill] sm:$0xff] %v9190_v34  ;;  %v238_v58 = vld [vmem:[#allocation2 + $0x568] sm:$0xff]  ;;  %v9206_v34 = vsub.f32 %v418_v26, %v226_v51 }
  0xa8   :  { %17800 = vst [vmem:[#allocation40_spill] sm:$0xff] %v9184_v15  ;;  %v17803_v23 = vld [vmem:[#allocation41_spill] sm:$0xff]  ;;  %v239_v59 = vld [vmem:[#allocation2 + $0x570] sm:$0xff]  ;;  %v240_v35 = vld [vmem:[#allocation2 + $0x578] sm:$0xff]  ;;  %v9220_v51 = vsub.f32 %v423_v63, %v231_v28 }
  0xa9   :  { %v9194_v14 = vmul.f32 %v17803_v23, %v17803_v23  ;;  %v424_v33 = vld [vmem:[#allocation5 + $0x538] sm:$0xff]  ;;  %v425_v15 = vld [vmem:[#allocation5 + $0x540] sm:$0xff]  ;;  %v426_v42 = vld [vmem:[#allocation5 + $0x548] sm:$0xff]  ;;  %17805 = vst [vmem:[#allocation151_spill] sm:$0xff] %v9196_v57  ;;  %v9218_v57 = vsub.f32 %v422_v62, %v230_v61  ;;  %v9234_v61 = vmul.f32 %v8846_v49, %v8846_v49 }
  0xaa   :  { %17806 = vst [vmem:[#allocation152_spill] sm:$0xff] %v9198_v21  ;;  %17807 = vst [vmem:[#allocation153_spill] sm:$0xff] %v9200_v38  ;;  %v241_v44 = vld [vmem:[#allocation2 + $0x580] sm:$0xff]  ;;  %v242_v43 = vld [vmem:[#allocation2 + $0x588] sm:$0xff]  ;;  %v9216_v21 = vsub.f32 %v421_v10, %v229_v3  ;;  %v9230_v3 = vsub.f32 %v426_v42, %v234_v37 }
  0xab   :  { %17804 = vst [vmem:[#allocation41_spill] sm:$0xff] %v9194_v14  ;;  %17808 = vst [vmem:[#allocation154_spill] sm:$0xff] %v9204_v29  ;;  %v243_v19 = vld [vmem:[#allocation2 + $0x590] sm:$0xff]  ;;  %v428_v23 = vld [vmem:[#allocation5 + $0x558] sm:$0xff] }
  0xac   :  { %v427_v50 = vld [vmem:[#allocation5 + $0x550] sm:$0xff]  ;;  %v429_v14 = vld [vmem:[#allocation5 + $0x560] sm:$0xff]  ;;  %17809 = vst [vmem:[#allocation155_spill] sm:$0xff] %v9206_v34  ;;  %17810 = vst [vmem:[#allocation156_spill] sm:$0xff] %v9208_v1  ;;  %v9226_v1 = vsub.f32 %v424_v33, %v232_v5  ;;  %v9228_v34 = vsub.f32 %v425_v15, %v233_v27 }
  0xad   :  { %17811 = vst [vmem:[#allocation157_spill] sm:$0xff] %v9210_v7  ;;  %v17812_v53 = vld [vmem:[#allocation43_spill] sm:$0xff]  ;;  %v244_v9 = vld [vmem:[#allocation2 + $0x598] sm:$0xff]  ;;  %v245_v48 = vld [vmem:[#allocation2 + $0x5a0] sm:$0xff]  ;;  %v9240_v5 = vsub.f32 %v429_v14, %v237_v31 }
  0xae   :  { %v9214_v8 = vmul.f32 %v17812_v53, %v17812_v53  ;;  %v246_v39 = vld [vmem:[#allocation2 + $0x5a8] sm:$0xff]  ;;  %v431_v29 = vld [vmem:[#allocation5 + $0x570] sm:$0xff]  ;;  %v432_v38 = vld [vmem:[#allocation5 + $0x578] sm:$0xff]  ;;  %17814 = vst [vmem:[#allocation158_spill] sm:$0xff] %v9218_v57  ;;  %v9238_v57 = vsub.f32 %v428_v23, %v236_v41 }
  0xaf   :  { %v430_v20 = vld [vmem:[#allocation5 + $0x568] sm:$0xff]  ;;  %17815 = vst [vmem:[#allocation159_spill] sm:$0xff] %v9220_v51  ;;  %v17816_v18 = vld [vmem:[#allocation44_spill] sm:$0xff]  ;;  %v247_v4 = vld [vmem:[#allocation2 + $0x5b0] sm:$0xff]  ;;  %v9236_v51 = vsub.f32 %v427_v50, %v235_v30  ;;  %v9250_v30 = vsub.f32 %v432_v38, %v240_v35 }
  0xb0   :  { %17813 = vst [vmem:[#allocation43_spill] sm:$0xff] %v9214_v8  ;;  %v9224_v24 = vmul.f32 %v17816_v18, %v17816_v18  ;;  %v248_v26 = vld [vmem:[#allocation2 + $0x5b8] sm:$0xff]  ;;  %v249_v52 = vld [vmem:[#allocation2 + $0x5c0] sm:$0xff]  ;;  %v434_v8 = vld [vmem:[#allocation5 + $0x588] sm:$0xff] }
  0xb1   :  { %v433_v53 = vld [vmem:[#allocation5 + $0x580] sm:$0xff]  ;;  %v435_v7 = vld [vmem:[#allocation5 + $0x590] sm:$0xff]  ;;  %17818 = vst [vmem:[#allocation160_spill] sm:$0xff] %v9226_v1  ;;  %17819 = vst [vmem:[#allocation161_spill] sm:$0xff] %v9228_v34  ;;  %v9246_v34 = vsub.f32 %v430_v20, %v238_v58  ;;  %v9248_v1 = vsub.f32 %v431_v29, %v239_v59  ;;  %v9264_v58 = vmul.f32 %v8856_v60, %v8856_v60 }
  0xb2   :  { %17817 = vst [vmem:[#allocation44_spill] sm:$0xff] %v9224_v24  ;;  %17820 = vst [vmem:[#allocation162_spill] sm:$0xff] %v9230_v3  ;;  %v250_v28 = vld [vmem:[#allocation2 + $0x5c8] sm:$0xff]  ;;  %v251_v63 = vld [vmem:[#allocation2 + $0x5d0] sm:$0xff] }
  0xb3   :  { %17821 = vst [vmem:[#allocation163_spill] sm:$0xff] %v9234_v61  ;;  %v252_v62 = vld [vmem:[#allocation2 + $0x5d8] sm:$0xff]  ;;  %v437_v18 = vld [vmem:[#allocation5 + $0x5a0] sm:$0xff]  ;;  %v438_v24 = vld [vmem:[#allocation5 + $0x5a8] sm:$0xff] }
  0xb4   :  { %v436_v10 = vld [vmem:[#allocation5 + $0x598] sm:$0xff]  ;;  %17822 = vst [vmem:[#allocation164_spill] sm:$0xff] %v9240_v5  ;;  %v17823_v27 = vld [vmem:[#allocation46_spill] sm:$0xff]  ;;  %v253_v42 = vld [vmem:[#allocation2 + $0x5e0] sm:$0xff]  ;;  %v9260_v5 = vsub.f32 %v435_v7, %v243_v19  ;;  %v9268_v20 = vsub.f32 %v437_v18, %v245_v48 }
  0xb5   :  { %v9244_v37 = vmul.f32 %v17823_v27, %v17823_v27  ;;  %v254_v15 = vld [vmem:[#allocation2 + $0x5e8] sm:$0xff]  ;;  %v255_v49 = vld [vmem:[#allocation2 + $0x5f0] sm:$0xff]  ;;  %v440_v61 = vld [vmem:[#allocation5 + $0x5b8] sm:$0xff]  ;;  %v9256_v27 = vsub.f32 %v433_v53, %v241_v44  ;;  %v9266_v29 = vsub.f32 %v436_v10, %v244_v9  ;;  %v9294_v10 = vmul.f32 %v8866_v6, %v8866_v6 }
  0xb6   :  { %v439_v33 = vld [vmem:[#allocation5 + $0x5b0] sm:$0xff]  ;;  %v441_v3 = vld [vmem:[#allocation5 + $0x5c0] sm:$0xff]  ;;  %v442_v14 = vld [vmem:[#allocation5 + $0x5c8] sm:$0xff]  ;;  %v9314_v6 = vmul.f32 %v8876_v16, %v8876_v16 }
  0xb7   :  { %17824 = vst [vmem:[#allocation46_spill] sm:$0xff] %v9244_v37  ;;  %v17825_v41 = vld [vmem:[#allocation47_spill] sm:$0xff]  ;;  %v444_v23 = vld [vmem:[#allocation5 + $0x5d8] sm:$0xff]  ;;  %v9258_v37 = vsub.f32 %v434_v8, %v242_v43  ;;  %v445_v59 = vld [vmem:[#allocation5 + $0x5e0] sm:$0xff]  ;;  %v9276_v7 = vsub.f32 %v439_v33, %v247_v4  ;;  %v9278_v8 = vsub.f32 %v440_v61, %v248_v26  ;;  %v9280_v60 = vsub.f32 %v441_v3, %v249_v52 }
  0xb8   :  { %v9254_v31 = vmul.f32 %v17825_v41, %v17825_v41  ;;  %v443_v50 = vld [vmem:[#allocation5 + $0x5d0] sm:$0xff]  ;;  %v446_v35 = vld [vmem:[#allocation5 + $0x5e8] sm:$0xff]  ;;  %v9270_v41 = vsub.f32 %v438_v24, %v246_v39  ;;  %v256_v43 = vld [vmem:[#allocation2 + $0x5f8] sm:$0xff]  ;;  %v9286_v48 = vsub.f32 %v442_v14, %v250_v28  ;;  %v9290_v24 = vsub.f32 %v444_v23, %v252_v62 }
  0xb9   :  { %v447_v38 = vld [vmem:[#allocation5 + $0x5f0] sm:$0xff]  ;;  %v448_v19 = vld [vmem:[#allocation5 + $0x5f8] sm:$0xff]  ;;  %v17828_v53 = vld [vmem:[#allocation50_spill] sm:$0xff]  ;;  %v9288_v39 = vsub.f32 %v443_v50, %v251_v63  ;;  %v9296_v4 = vsub.f32 %v445_v59, %v253_v42  ;;  %v9298_v26 = vsub.f32 %v446_v35, %v254_v15  ;;  %v9326_v33 = vmul.f32 %v8886_v25, %v8886_v25 }
  0xba   :  { %17826 = vst [vmem:[#allocation47_spill] sm:$0xff] %v9254_v31  ;;  %v17827_v31 = vld [vmem:[#allocation49_spill] sm:$0xff]  ;;  %v9284_v9 = vmul.f32 %v17828_v53, %v17828_v53  ;;  %v9300_v52 = vsub.f32 %v447_v38, %v255_v49  ;;  %v17829_v3 = vld [vmem:[#allocation52_spill] sm:$0xff]  ;;  %v9306_v28 = vsub.f32 %v448_v19, %v256_v43  ;;  %v17831_v18 = vld [vmem:[#allocation55_spill] sm:$0xff]  ;;  %v9338_v23 = vmul.f32 %v8896_v32, %v8896_v32 }
  0xbb   :  { %v9274_v44 = vmul.f32 %v17827_v31, %v17827_v31  ;;  %v9304_v61 = vmul.f32 %v17829_v3, %v17829_v3  ;;  %v17830_v63 = vld [vmem:[#allocation53_spill] sm:$0xff]  ;;  %v9318_v42 = vmul.f32 %v17831_v18, %v17831_v18  ;;  %v17832_v15 = vld [vmem:[#allocation56_spill] sm:$0xff]  ;;  %v17833_v31 = vld [vmem:[#allocation58_spill] sm:$0xff]  ;;  %v9350_v43 = vmul.f32 %v8906_v40, %v8906_v40 }
  0xbc   :  { %v9310_v62 = vmul.f32 %v17830_v63, %v17830_v63  ;;  %v9322_v49 = vmul.f32 %v17832_v15, %v17832_v15  ;;  %v9330_v14 = vmul.f32 %v17833_v31, %v17833_v31  ;;  %v17834_v50 = vld [vmem:[#allocation59_spill] sm:$0xff]  ;;  %v17835_v59 = vld [vmem:[#allocation61_spill] sm:$0xff]  ;;  %v17836_v38 = vld [vmem:[#allocation62_spill] sm:$0xff]  ;;  %v9362_v63 = vmul.f32 %v8916_v45, %v8916_v45 }
  0xbd   :  { %v9334_v16 = vmul.f32 %v17834_v50, %v17834_v50  ;;  %v9342_v35 = vmul.f32 %v17835_v59, %v17835_v59  ;;  %v9346_v25 = vmul.f32 %v17836_v38, %v17836_v38  ;;  %v17837_v19 = vld [vmem:[#allocation64_spill] sm:$0xff]  ;;  %v17838_v3 = vld [vmem:[#allocation65_spill] sm:$0xff]  ;;  %v17839_v18 = vld [vmem:[#allocation67_spill] sm:$0xff]  ;;  %v9374_v50 = vmul.f32 %v8926_v46, %v8926_v46 }
  0xbe   :  { %v9354_v53 = vmul.f32 %v17837_v19, %v17837_v19  ;;  %v9358_v32 = vmul.f32 %v17838_v3, %v17838_v3  ;;  %v9366_v15 = vmul.f32 %v17839_v18, %v17839_v18  ;;  %v17840_v31 = vld [vmem:[#allocation68_spill] sm:$0xff]  ;;  %v17842_v59 = vld [vmem:[#allocation70_spill] sm:$0xff]  ;;  %v17844_v19 = vld [vmem:[#allocation71_spill] sm:$0xff]  ;;  %v9386_v3 = vmul.f32 %v8936_v47, %v8936_v47 }
  0xbf   :  { %v9370_v40 = vmul.f32 %v17840_v31, %v17840_v31  ;;  %v9378_v38 = vmul.f32 %v17842_v59, %v17842_v59  ;;  %v9382_v45 = vmul.f32 %v17844_v19, %v17844_v19  ;;  %v17846_v18 = vld [vmem:[#allocation73_spill] sm:$0xff]  ;;  %v9398_v59 = vmul.f32 %v8946_v54, %v8946_v54 }
  0xc0   :  { %v9390_v31 = vmul.f32 %v17846_v18, %v17846_v18  ;;  %v9410_v18 = vmul.f32 %v8956_v55, %v8956_v55 }
  0xc1   :  { %17841 = vst [vmem:[#allocation49_spill] sm:$0xff] %v9370_v40  ;;  %17843 = vst [vmem:[#allocation50_spill] sm:$0xff] %v9378_v38  ;;  %v17848_v40 = vld [vmem:[#allocation74_spill] sm:$0xff]  ;;  %v17850_v38 = vld [vmem:[#allocation76_spill] sm:$0xff] }
  0xc2   :  { %17845 = vst [vmem:[#allocation52_spill] sm:$0xff] %v9382_v45  ;;  %17847 = vst [vmem:[#allocation53_spill] sm:$0xff] %v9390_v31  ;;  %v9394_v46 = vmul.f32 %v17848_v40, %v17848_v40  ;;  %v9402_v19 = vmul.f32 %v17850_v38, %v17850_v38  ;;  %v17852_v45 = vld [vmem:[#allocation77_spill] sm:$0xff]  ;;  %v17854_v31 = vld [vmem:[#allocation79_spill] sm:$0xff]  ;;  %v9422_v38 = vmul.f32 %v8966_v56, %v8966_v56 }
  0xc3   :  { %v9406_v47 = vmul.f32 %v17852_v45, %v17852_v45  ;;  %v9414_v40 = vmul.f32 %v17854_v31, %v17854_v31  ;;  %v9434_v31 = vmul.f32 %v8976_v0, %v8976_v0 }
  0xc4   :  { %17849 = vst [vmem:[#allocation55_spill] sm:$0xff] %v9394_v46  ;;  %17851 = vst [vmem:[#allocation56_spill] sm:$0xff] %v9402_v19  ;;  %v17856_v46 = vld [vmem:[#allocation80_spill] sm:$0xff]  ;;  %v17859_v19 = vld [vmem:[#allocation82_spill] sm:$0xff] }
  0xc5   :  { %17853 = vst [vmem:[#allocation58_spill] sm:$0xff] %v9406_v47  ;;  %17855 = vst [vmem:[#allocation59_spill] sm:$0xff] %v9414_v40  ;;  %v9418_v54 = vmul.f32 %v17856_v46, %v17856_v46  ;;  %v9426_v45 = vmul.f32 %v17859_v19, %v17859_v19  ;;  %v17861_v47 = vld [vmem:[#allocation83_spill] sm:$0xff]  ;;  %v17864_v40 = vld [vmem:[#allocation85_spill] sm:$0xff] }
  0xc6   :  { %17858 = vst [vmem:[#allocation62_spill] sm:$0xff] %v9422_v38  ;;  %v9430_v55 = vmul.f32 %v17861_v47, %v17861_v47  ;;  %17863 = vst [vmem:[#allocation67_spill] sm:$0xff] %v9434_v31  ;;  %v9438_v46 = vmul.f32 %v17864_v40, %v17864_v40  ;;  %v17868_v38 = vld [vmem:[#allocation88_spill] sm:$0xff] }
  0xc7   :  { %17857 = vst [vmem:[#allocation61_spill] sm:$0xff] %v9418_v54  ;;  %17860 = vst [vmem:[#allocation64_spill] sm:$0xff] %v9426_v45  ;;  %v17866_v54 = vld [vmem:[#allocation86_spill] sm:$0xff]  ;;  %v9446_v19 = vmul.f32 %v17868_v38, %v17868_v38  ;;  %v17870_v45 = vld [vmem:[#allocation89_spill] sm:$0xff] }
  0xc8   :  { %17862 = vst [vmem:[#allocation65_spill] sm:$0xff] %v9430_v55  ;;  %17865 = vst [vmem:[#allocation68_spill] sm:$0xff] %v9438_v46  ;;  %v9442_v56 = vmul.f32 %v17866_v54, %v17866_v54  ;;  %v9450_v47 = vmul.f32 %v17870_v45, %v17870_v45  ;;  %v17872_v55 = vld [vmem:[#allocation90_spill] sm:$0xff]  ;;  %v17874_v31 = vld [vmem:[#allocation92_spill] sm:$0xff]  ;;  %v9470_v45 = vmul.f32 %v9006_v13, %v9006_v13 }
  0xc9   :  { %17869 = vst [vmem:[#allocation71_spill] sm:$0xff] %v9446_v19  ;;  %v9454_v0 = vmul.f32 %v17872_v55, %v17872_v55  ;;  %v9458_v40 = vmul.f32 %v17874_v31, %v17874_v31  ;;  %v17876_v46 = vld [vmem:[#allocation93_spill] sm:$0xff] }
  0xca   :  { %17867 = vst [vmem:[#allocation70_spill] sm:$0xff] %v9442_v56  ;;  %17871 = vst [vmem:[#allocation73_spill] sm:$0xff] %v9450_v47  ;;  %v9462_v54 = vmul.f32 %v17876_v46, %v17876_v46  ;;  %v17878_v56 = vld [vmem:[#allocation94_spill] sm:$0xff]  ;;  %v17881_v47 = vld [vmem:[#allocation95_spill] sm:$0xff] }
  0xcb   :  { %17873 = vst [vmem:[#allocation74_spill] sm:$0xff] %v9454_v0  ;;  %17875 = vst [vmem:[#allocation76_spill] sm:$0xff] %v9458_v40  ;;  %v9466_v38 = vmul.f32 %v17878_v56, %v17878_v56  ;;  %v9474_v55 = vmul.f32 %v17881_v47, %v17881_v47  ;;  %v17883_v0 = vld [vmem:[#allocation96_spill] sm:$0xff]  ;;  %v17885_v40 = vld [vmem:[#allocation97_spill] sm:$0xff] }
  0xcc   :  { %17877 = vst [vmem:[#allocation77_spill] sm:$0xff] %v9462_v54  ;;  %17880 = vst [vmem:[#allocation80_spill] sm:$0xff] %v9470_v45  ;;  %v9478_v31 = vmul.f32 %v17883_v0, %v17883_v0  ;;  %v9482_v46 = vmul.f32 %v17885_v40, %v17885_v40  ;;  %v17887_v54 = vld [vmem:[#allocation98_spill] sm:$0xff]  ;;  %v17891_v45 = vld [vmem:[#allocation101_spill] sm:$0xff] }
  0xcd   :  { %17879 = vst [vmem:[#allocation79_spill] sm:$0xff] %v9466_v38  ;;  %17882 = vst [vmem:[#allocation82_spill] sm:$0xff] %v9474_v55  ;;  %v9486_v56 = vmul.f32 %v17887_v54, %v17887_v54  ;;  %v17889_v38 = vld [vmem:[#allocation99_spill] sm:$0xff]  ;;  %v9494_v47 = vmul.f32 %v17891_v45, %v17891_v45  ;;  %v17893_v55 = vld [vmem:[#allocation102_spill] sm:$0xff]  ;;  %v9506_v54 = vmul.f32 %v9036_v2, %v9036_v2 }
  0xce   :  { %17884 = vst [vmem:[#allocation83_spill] sm:$0xff] %v9478_v31  ;;  %17886 = vst [vmem:[#allocation85_spill] sm:$0xff] %v9482_v46  ;;  %v9490_v13 = vmul.f32 %v17889_v38, %v17889_v38  ;;  %v9498_v0 = vmul.f32 %v17893_v55, %v17893_v55  ;;  %v17895_v31 = vld [vmem:[#allocation103_spill] sm:$0xff]  ;;  %v18043_v46 = vld [vmem:[#allocation20_spill] sm:$0xff] }
  0xcf   :  { %17888 = vst [vmem:[#allocation86_spill] sm:$0xff] %v9486_v56  ;;  %17892 = vst [vmem:[#allocation89_spill] sm:$0xff] %v9494_v47  ;;  %v9502_v40 = vmul.f32 %v17895_v31, %v17895_v31  ;;  %v17898_v56 = vld [vmem:[#allocation104_spill] sm:$0xff]  ;;  %v17902_v47 = vld [vmem:[#allocation106_spill] sm:$0xff] }
  0xd0   :  { %17890 = vst [vmem:[#allocation88_spill] sm:$0xff] %v9490_v13  ;;  %17894 = vst [vmem:[#allocation90_spill] sm:$0xff] %v9498_v0  ;;  %v9510_v38 = vmul.f32 %v17898_v56, %v17898_v56  ;;  %v17900_v13 = vld [vmem:[#allocation105_spill] sm:$0xff]  ;;  %v9518_v55 = vmul.f32 %v17902_v47, %v17902_v47  ;;  %v17904_v0 = vld [vmem:[#allocation107_spill] sm:$0xff] }
  0xd1   :  { %17896 = vst [vmem:[#allocation92_spill] sm:$0xff] %v9502_v40  ;;  %17897 = vst [vmem:[#allocation93_spill] sm:$0xff] %v9506_v54  ;;  %v9514_v45 = vmul.f32 %v17900_v13, %v17900_v13  ;;  %v9522_v31 = vmul.f32 %v17904_v0, %v17904_v0  ;;  %v17906_v40 = vld [vmem:[#allocation108_spill] sm:$0xff]  ;;  %v17908_v54 = vld [vmem:[#allocation110_spill] sm:$0xff]  ;;  %v9542_v0 = vmul.f32 %v9066_v12, %v9066_v12 }
  0xd2   :  { %17899 = vst [vmem:[#allocation94_spill] sm:$0xff] %v9510_v38  ;;  %17903 = vst [vmem:[#allocation96_spill] sm:$0xff] %v9518_v55  ;;  %v9526_v2 = vmul.f32 %v17906_v40, %v17906_v40  ;;  %v9530_v56 = vmul.f32 %v17908_v54, %v17908_v54  ;;  %v17910_v38 = vld [vmem:[#allocation111_spill] sm:$0xff] }
  0xd3   :  { %17901 = vst [vmem:[#allocation95_spill] sm:$0xff] %v9514_v45  ;;  %17905 = vst [vmem:[#allocation97_spill] sm:$0xff] %v9522_v31  ;;  %v9534_v13 = vmul.f32 %v17910_v38, %v17910_v38  ;;  %v17912_v45 = vld [vmem:[#allocation112_spill] sm:$0xff]  ;;  %v17915_v31 = vld [vmem:[#allocation113_spill] sm:$0xff] }
  0xd4   :  { %17907 = vst [vmem:[#allocation98_spill] sm:$0xff] %v9526_v2  ;;  %17909 = vst [vmem:[#allocation99_spill] sm:$0xff] %v9530_v56  ;;  %v9538_v47 = vmul.f32 %v17912_v45, %v17912_v45  ;;  %v9546_v40 = vmul.f32 %v17915_v31, %v17915_v31  ;;  %v17917_v2 = vld [vmem:[#allocation114_spill] sm:$0xff]  ;;  %v17919_v56 = vld [vmem:[#allocation115_spill] sm:$0xff] }
  0xd5   :  { %17911 = vst [vmem:[#allocation101_spill] sm:$0xff] %v9534_v13  ;;  %17914 = vst [vmem:[#allocation103_spill] sm:$0xff] %v9542_v0  ;;  %v9550_v54 = vmul.f32 %v17917_v2, %v17917_v2  ;;  %v9554_v38 = vmul.f32 %v17919_v56, %v17919_v56  ;;  %v17921_v13 = vld [vmem:[#allocation116_spill] sm:$0xff]  ;;  %v17925_v0 = vld [vmem:[#allocation119_spill] sm:$0xff] }
  0xd6   :  { %17913 = vst [vmem:[#allocation102_spill] sm:$0xff] %v9538_v47  ;;  %17916 = vst [vmem:[#allocation104_spill] sm:$0xff] %v9546_v40  ;;  %v9558_v45 = vmul.f32 %v17921_v13, %v17921_v13  ;;  %v17923_v47 = vld [vmem:[#allocation117_spill] sm:$0xff]  ;;  %v9566_v31 = vmul.f32 %v17925_v0, %v17925_v0  ;;  %v17927_v40 = vld [vmem:[#allocation120_spill] sm:$0xff]  ;;  %v9578_v13 = vmul.f32 %v9096_v22, %v9096_v22 }
  0xd7   :  { %17918 = vst [vmem:[#allocation105_spill] sm:$0xff] %v9550_v54  ;;  %17920 = vst [vmem:[#allocation106_spill] sm:$0xff] %v9554_v38  ;;  %v9562_v12 = vmul.f32 %v17923_v47, %v17923_v47  ;;  %v9570_v2 = vmul.f32 %v17927_v40, %v17927_v40  ;;  %v17929_v54 = vld [vmem:[#allocation121_spill] sm:$0xff]  ;;  %v18041_v38 = vld [vmem:[#allocation19_spill] sm:$0xff] }
  0xd8   :  { %17922 = vst [vmem:[#allocation107_spill] sm:$0xff] %v9558_v45  ;;  %17926 = vst [vmem:[#allocation110_spill] sm:$0xff] %v9566_v31  ;;  %v9574_v56 = vmul.f32 %v17929_v54, %v17929_v54  ;;  %v17932_v45 = vld [vmem:[#allocation122_spill] sm:$0xff]  ;;  %v17936_v31 = vld [vmem:[#allocation124_spill] sm:$0xff] }
  0xd9   :  { %17924 = vst [vmem:[#allocation108_spill] sm:$0xff] %v9562_v12  ;;  %17928 = vst [vmem:[#allocation111_spill] sm:$0xff] %v9570_v2  ;;  %v9582_v47 = vmul.f32 %v17932_v45, %v17932_v45  ;;  %v17934_v12 = vld [vmem:[#allocation123_spill] sm:$0xff]  ;;  %v9590_v40 = vmul.f32 %v17936_v31, %v17936_v31  ;;  %v17938_v2 = vld [vmem:[#allocation125_spill] sm:$0xff] }
  0xda   :  { %17930 = vst [vmem:[#allocation112_spill] sm:$0xff] %v9574_v56  ;;  %17931 = vst [vmem:[#allocation113_spill] sm:$0xff] %v9578_v13  ;;  %v9586_v0 = vmul.f32 %v17934_v12, %v17934_v12  ;;  %v9594_v54 = vmul.f32 %v17938_v2, %v17938_v2  ;;  %v17940_v56 = vld [vmem:[#allocation126_spill] sm:$0xff]  ;;  %v17942_v13 = vld [vmem:[#allocation128_spill] sm:$0xff]  ;;  %v9614_v2 = vmul.f32 %v9126_v36, %v9126_v36 }
  0xdb   :  { %17933 = vst [vmem:[#allocation114_spill] sm:$0xff] %v9582_v47  ;;  %17937 = vst [vmem:[#allocation116_spill] sm:$0xff] %v9590_v40  ;;  %v9598_v22 = vmul.f32 %v17940_v56, %v17940_v56  ;;  %v9602_v45 = vmul.f32 %v17942_v13, %v17942_v13  ;;  %v17944_v47 = vld [vmem:[#allocation129_spill] sm:$0xff]  ;;  %v474_v40 = vld [vmem:[#allocation7 + $0xc8] sm:$0xff] }
  0xdc   :  { %17935 = vst [vmem:[#allocation115_spill] sm:$0xff] %v9586_v0  ;;  %17939 = vst [vmem:[#allocation117_spill] sm:$0xff] %v9594_v54  ;;  %v9606_v12 = vmul.f32 %v17944_v47, %v17944_v47  ;;  %v17946_v0 = vld [vmem:[#allocation130_spill] sm:$0xff]  ;;  %v17949_v54 = vld [vmem:[#allocation131_spill] sm:$0xff] }
  0xdd   :  { %17941 = vst [vmem:[#allocation119_spill] sm:$0xff] %v9598_v22  ;;  %17943 = vst [vmem:[#allocation120_spill] sm:$0xff] %v9602_v45  ;;  %v9610_v31 = vmul.f32 %v17946_v0, %v17946_v0  ;;  %v9618_v56 = vmul.f32 %v17949_v54, %v17949_v54  ;;  %v17951_v22 = vld [vmem:[#allocation132_spill] sm:$0xff]  ;;  %v17953_v45 = vld [vmem:[#allocation133_spill] sm:$0xff] }
  0xde   :  { %17945 = vst [vmem:[#allocation121_spill] sm:$0xff] %v9606_v12  ;;  %17948 = vst [vmem:[#allocation123_spill] sm:$0xff] %v9614_v2  ;;  %v9622_v13 = vmul.f32 %v17951_v22, %v17951_v22  ;;  %v9626_v47 = vmul.f32 %v17953_v45, %v17953_v45  ;;  %v17955_v12 = vld [vmem:[#allocation134_spill] sm:$0xff]  ;;  %v17959_v2 = vld [vmem:[#allocation137_spill] sm:$0xff] }
  0xdf   :  { %17947 = vst [vmem:[#allocation122_spill] sm:$0xff] %v9610_v31  ;;  %17950 = vst [vmem:[#allocation124_spill] sm:$0xff] %v9618_v56  ;;  %v9630_v0 = vmul.f32 %v17955_v12, %v17955_v12  ;;  %v17957_v31 = vld [vmem:[#allocation135_spill] sm:$0xff]  ;;  %v9638_v54 = vmul.f32 %v17959_v2, %v17959_v2  ;;  %v17961_v56 = vld [vmem:[#allocation138_spill] sm:$0xff]  ;;  %v9650_v12 = vmul.f32 %v9156_v17, %v9156_v17 }
  0xe0   :  { %17952 = vst [vmem:[#allocation125_spill] sm:$0xff] %v9622_v13  ;;  %17954 = vst [vmem:[#allocation126_spill] sm:$0xff] %v9626_v47  ;;  %v9634_v36 = vmul.f32 %v17957_v31, %v17957_v31  ;;  %v9642_v22 = vmul.f32 %v17961_v56, %v17961_v56  ;;  %v17963_v13 = vld [vmem:[#allocation139_spill] sm:$0xff]  ;;  %v18039_v47 = vld [vmem:[#allocation18_spill] sm:$0xff] }
  0xe1   :  { %17956 = vst [vmem:[#allocation128_spill] sm:$0xff] %v9630_v0  ;;  %17960 = vst [vmem:[#allocation130_spill] sm:$0xff] %v9638_v54  ;;  %v9646_v45 = vmul.f32 %v17963_v13, %v17963_v13  ;;  %v17966_v0 = vld [vmem:[#allocation140_spill] sm:$0xff]  ;;  %v17970_v54 = vld [vmem:[#allocation142_spill] sm:$0xff] }
  0xe2   :  { %17958 = vst [vmem:[#allocation129_spill] sm:$0xff] %v9634_v36  ;;  %17962 = vst [vmem:[#allocation131_spill] sm:$0xff] %v9642_v22  ;;  %v9654_v31 = vmul.f32 %v17966_v0, %v17966_v0  ;;  %v17968_v36 = vld [vmem:[#allocation141_spill] sm:$0xff]  ;;  %v9662_v56 = vmul.f32 %v17970_v54, %v17970_v54  ;;  %v17972_v22 = vld [vmem:[#allocation143_spill] sm:$0xff] }
  0xe3   :  { %17964 = vst [vmem:[#allocation132_spill] sm:$0xff] %v9646_v45  ;;  %17965 = vst [vmem:[#allocation133_spill] sm:$0xff] %v9650_v12  ;;  %v9658_v2 = vmul.f32 %v17968_v36, %v17968_v36  ;;  %v9666_v13 = vmul.f32 %v17972_v22, %v17972_v22  ;;  %v17974_v45 = vld [vmem:[#allocation144_spill] sm:$0xff]  ;;  %v17976_v12 = vld [vmem:[#allocation146_spill] sm:$0xff]  ;;  %v9686_v22 = vmul.f32 %v9186_v11, %v9186_v11 }
  0xe4   :  { %17967 = vst [vmem:[#allocation134_spill] sm:$0xff] %v9654_v31  ;;  %17971 = vst [vmem:[#allocation137_spill] sm:$0xff] %v9662_v56  ;;  %v9670_v17 = vmul.f32 %v17974_v45, %v17974_v45  ;;  %v9674_v0 = vmul.f32 %v17976_v12, %v17976_v12  ;;  %v17978_v31 = vld [vmem:[#allocation147_spill] sm:$0xff] }
  0xe5   :  { %17969 = vst [vmem:[#allocation135_spill] sm:$0xff] %v9658_v2  ;;  %17973 = vst [vmem:[#allocation138_spill] sm:$0xff] %v9666_v13  ;;  %v9678_v36 = vmul.f32 %v17978_v31, %v17978_v31  ;;  %v17980_v2 = vld [vmem:[#allocation148_spill] sm:$0xff]  ;;  %v17983_v13 = vld [vmem:[#allocation149_spill] sm:$0xff] }
  0xe6   :  { %17975 = vst [vmem:[#allocation139_spill] sm:$0xff] %v9670_v17  ;;  %17977 = vst [vmem:[#allocation140_spill] sm:$0xff] %v9674_v0  ;;  %v9682_v54 = vmul.f32 %v17980_v2, %v17980_v2  ;;  %v9690_v45 = vmul.f32 %v17983_v13, %v17983_v13  ;;  %v17985_v17 = vld [vmem:[#allocation150_spill] sm:$0xff]  ;;  %v17987_v0 = vld [vmem:[#allocation151_spill] sm:$0xff] }
  0xe7   :  { %17979 = vst [vmem:[#allocation141_spill] sm:$0xff] %v9678_v36  ;;  %17982 = vst [vmem:[#allocation143_spill] sm:$0xff] %v9686_v22  ;;  %v9694_v12 = vmul.f32 %v17985_v17, %v17985_v17  ;;  %v9698_v31 = vmul.f32 %v17987_v0, %v17987_v0  ;;  %v17989_v36 = vld [vmem:[#allocation152_spill] sm:$0xff]  ;;  %v17993_v22 = vld [vmem:[#allocation155_spill] sm:$0xff] }
  0xe8   :  { %17981 = vst [vmem:[#allocation142_spill] sm:$0xff] %v9682_v54  ;;  %17984 = vst [vmem:[#allocation144_spill] sm:$0xff] %v9690_v45  ;;  %v9702_v2 = vmul.f32 %v17989_v36, %v17989_v36  ;;  %v17991_v54 = vld [vmem:[#allocation153_spill] sm:$0xff]  ;;  %v9710_v13 = vmul.f32 %v17993_v22, %v17993_v22  ;;  %v17995_v45 = vld [vmem:[#allocation156_spill] sm:$0xff]  ;;  %v9722_v36 = vmul.f32 %v9216_v21, %v9216_v21 }
  0xe9   :  { %17986 = vst [vmem:[#allocation146_spill] sm:$0xff] %v9694_v12  ;;  %17988 = vst [vmem:[#allocation147_spill] sm:$0xff] %v9698_v31  ;;  %v9706_v11 = vmul.f32 %v17991_v54, %v17991_v54  ;;  %v9714_v17 = vmul.f32 %v17995_v45, %v17995_v45  ;;  %v17997_v12 = vld [vmem:[#allocation157_spill] sm:$0xff]  ;;  %v18033_v31 = vld [vmem:[#allocation15_spill] sm:$0xff] }
  0xea   :  { %17990 = vst [vmem:[#allocation148_spill] sm:$0xff] %v9702_v2  ;;  %17994 = vst [vmem:[#allocation150_spill] sm:$0xff] %v9710_v13  ;;  %v9718_v0 = vmul.f32 %v17997_v12, %v17997_v12  ;;  %v18000_v2 = vld [vmem:[#allocation158_spill] sm:$0xff]  ;;  %v18004_v13 = vld [vmem:[#allocation160_spill] sm:$0xff] }
  0xeb   :  { %17992 = vst [vmem:[#allocation149_spill] sm:$0xff] %v9706_v11  ;;  %17996 = vst [vmem:[#allocation151_spill] sm:$0xff] %v9714_v17  ;;  %v9726_v54 = vmul.f32 %v18000_v2, %v18000_v2  ;;  %v18002_v11 = vld [vmem:[#allocation159_spill] sm:$0xff]  ;;  %v9734_v45 = vmul.f32 %v18004_v13, %v18004_v13  ;;  %v18006_v17 = vld [vmem:[#allocation161_spill] sm:$0xff]  ;;  %v9746_v2 = vmul.f32 %v9236_v51, %v9236_v51 }
  0xec   :  { %17998 = vst [vmem:[#allocation152_spill] sm:$0xff] %v9718_v0  ;;  %17999 = vst [vmem:[#allocation153_spill] sm:$0xff] %v9722_v36  ;;  %v9730_v22 = vmul.f32 %v18002_v11, %v18002_v11  ;;  %v9738_v12 = vmul.f32 %v18006_v17, %v18006_v17  ;;  %v18008_v0 = vld [vmem:[#allocation162_spill] sm:$0xff]  ;;  %v9750_v11 = vmul.f32 %v9238_v57, %v9238_v57  ;;  %v451_v13 = vld [vmem:[#allocation7 + $0x10] sm:$0xff] }
  0xed   :  { %18001 = vst [vmem:[#allocation155_spill] sm:$0xff] %v9726_v54  ;;  %18005 = vst [vmem:[#allocation157_spill] sm:$0xff] %v9734_v45  ;;  %v9742_v21 = vmul.f32 %v18008_v0, %v18008_v0  ;;  %v450_v54 = vld [vmem:[#allocation7 + $0x8] sm:$0xff]  ;;  %v452_v45 = vld [vmem:[#allocation7 + $0x18] sm:$0xff]  ;;  %v9758_v0 = vmul.f32 %v9246_v34, %v9246_v34  ;;  %v9762_v51 = vmul.f32 %v9248_v1, %v9248_v1 }
  0xee   :  { %18003 = vst [vmem:[#allocation156_spill] sm:$0xff] %v9730_v22  ;;  %18007 = vst [vmem:[#allocation158_spill] sm:$0xff] %v9738_v12  ;;  %v449_v22 = vld [vmem:[#allocation7] sm:$0xff]  ;;  %v18012_v36 = vld [vmem:[#allocation164_spill] sm:$0xff]  ;;  %v9766_v57 = vmul.f32 %v9250_v30, %v9250_v30  ;;  %v9774_v34 = vmul.f32 %v9258_v37, %v9258_v37  ;;  %v9778_v1 = vmul.f32 %v9260_v5, %v9260_v5 }
  0xef   :  { %18009 = vst [vmem:[#allocation159_spill] sm:$0xff] %v9742_v21  ;;  %18010 = vst [vmem:[#allocation160_spill] sm:$0xff] %v9746_v2  ;;  %v9754_v17 = vmul.f32 %v18012_v36, %v18012_v36  ;;  %v454_v2 = vld [vmem:[#allocation7 + $0x28] sm:$0xff]  ;;  %v455_v21 = vld [vmem:[#allocation7 + $0x30] sm:$0xff]  ;;  %v9770_v36 = vmul.f32 %v9256_v27, %v9256_v27  ;;  %v9782_v30 = vmul.f32 %v9266_v29, %v9266_v29 }
  0xf0   :  { %18011 = vst [vmem:[#allocation161_spill] sm:$0xff] %v9750_v11  ;;  %18014 = vst [vmem:[#allocation164_spill] sm:$0xff] %v9758_v0  ;;  %v453_v11 = vld [vmem:[#allocation7 + $0x20] sm:$0xff]  ;;  %v456_v12 = vld [vmem:[#allocation7 + $0x38] sm:$0xff]  ;;  %v9786_v27 = vmul.f32 %v9268_v20, %v9268_v20  ;;  %v9790_v37 = vmul.f32 %v9270_v41, %v9270_v41  ;;  %v9794_v5 = vmul.f32 %v9276_v7, %v9276_v7 }
  0xf1   :  { %18013 = vst [vmem:[#allocation162_spill] sm:$0xff] %v9754_v17  ;;  %18015 = vst [vmem:[#allocation165_spill] sm:$0xff] %v9762_v51  ;;  %v458_v51 = vld [vmem:[#allocation7 + $0x48] sm:$0xff]  ;;  %v459_v0 = vld [vmem:[#allocation7 + $0x50] sm:$0xff]  ;;  %v9798_v29 = vmul.f32 %v9278_v8, %v9278_v8  ;;  %v9802_v20 = vmul.f32 %v9280_v60, %v9280_v60  ;;  %v9806_v41 = vmul.f32 %v9286_v48, %v9286_v48 }
  0xf2   :  { %18016 = vst [vmem:[#allocation166_spill] sm:$0xff] %v9766_v57  ;;  %18017 = vst [vmem:[#allocation167_spill] sm:$0xff] %v9770_v36  ;;  %v457_v57 = vld [vmem:[#allocation7 + $0x40] sm:$0xff]  ;;  %v460_v17 = vld [vmem:[#allocation7 + $0x58] sm:$0xff]  ;;  %v9810_v7 = vmul.f32 %v9288_v39, %v9288_v39  ;;  %v9814_v8 = vmul.f32 %v9290_v24, %v9290_v24  ;;  %v9818_v60 = vmul.f32 %v9296_v4, %v9296_v4 }
  0xf3   :  { %18018 = vst [vmem:[#allocation168_spill] sm:$0xff] %v9774_v34  ;;  %18019 = vst [vmem:[#allocation169_spill] sm:$0xff] %v9778_v1  ;;  %v462_v1 = vld [vmem:[#allocation7 + $0x68] sm:$0xff]  ;;  %v463_v34 = vld [vmem:[#allocation7 + $0x70] sm:$0xff]  ;;  %v9822_v48 = vmul.f32 %v9298_v26, %v9298_v26  ;;  %v9826_v39 = vmul.f32 %v9300_v52, %v9300_v52  ;;  %v9830_v24 = vmul.f32 %v9306_v28, %v9306_v28 }
  0xf4   :  { %18020 = vst [vmem:[#allocation170_spill] sm:$0xff] %v9782_v30  ;;  %18021 = vst [vmem:[#allocation171_spill] sm:$0xff] %v9786_v27  ;;  %v461_v30 = vld [vmem:[#allocation7 + $0x60] sm:$0xff]  ;;  %v464_v36 = vld [vmem:[#allocation7 + $0x78] sm:$0xff]  ;;  %v9833_v56 = vmul.f32 %v18033_v31, %v449_v22  ;;  %v9842_v52 = vmul.f32 %v18039_v47, %v452_v45  ;;  %v9845_v55 = vmul.f32 %v18041_v38, %v453_v11 }
  0xf5   :  { %18022 = vst [vmem:[#allocation172_spill] sm:$0xff] %v9790_v37  ;;  %18023 = vst [vmem:[#allocation173_spill] sm:$0xff] %v9794_v5  ;;  %v466_v5 = vld [vmem:[#allocation7 + $0x88] sm:$0xff]  ;;  %v467_v37 = vld [vmem:[#allocation7 + $0x90] sm:$0xff]  ;;  %v9848_v19 = vmul.f32 %v18043_v46, %v454_v2 }
  0xf6   :  { %18024 = vst [vmem:[#allocation174_spill] sm:$0xff] %v9798_v29  ;;  %18025 = vst [vmem:[#allocation175_spill] sm:$0xff] %v9802_v20  ;;  %v465_v29 = vld [vmem:[#allocation7 + $0x80] sm:$0xff]  ;;  %v468_v27 = vld [vmem:[#allocation7 + $0x98] sm:$0xff] }
  0xf7   :  { %18026 = vst [vmem:[#allocation176_spill] sm:$0xff] %v9806_v41  ;;  %18027 = vst [vmem:[#allocation177_spill] sm:$0xff] %v9810_v7  ;;  %v470_v7 = vld [vmem:[#allocation7 + $0xa8] sm:$0xff]  ;;  %v471_v41 = vld [vmem:[#allocation7 + $0xb0] sm:$0xff] }
  0xf8   :  { %18028 = vst [vmem:[#allocation178_spill] sm:$0xff] %v9814_v8  ;;  %18029 = vst [vmem:[#allocation179_spill] sm:$0xff] %v9818_v60  ;;  %v469_v8 = vld [vmem:[#allocation7 + $0xa0] sm:$0xff]  ;;  %v472_v20 = vld [vmem:[#allocation7 + $0xb8] sm:$0xff] }
  0xf9   :  { %18030 = vst [vmem:[#allocation180_spill] sm:$0xff] %v9822_v48  ;;  %18031 = vst [vmem:[#allocation181_spill] sm:$0xff] %v9826_v39  ;;  %v18035_v4 = vld [vmem:[#allocation16_spill] sm:$0xff]  ;;  %v18037_v26 = vld [vmem:[#allocation17_spill] sm:$0xff] }
  0xfa   :  { %18032 = vst [vmem:[#allocation182_spill] sm:$0xff] %v9830_v24  ;;  %18034 = vst [vmem:[#allocation15_spill] sm:$0xff] %v9833_v56  ;;  %v9836_v60 = vmul.f32 %v18035_v4, %v450_v54  ;;  %v9839_v48 = vmul.f32 %v18037_v26, %v451_v13  ;;  %v473_v39 = vld [vmem:[#allocation7 + $0xc0] sm:$0xff]  ;;  %v475_v28 = vld [vmem:[#allocation7 + $0xd0] sm:$0xff] }
  0xfb   :  { %18040 = vst [vmem:[#allocation18_spill] sm:$0xff] %v9842_v52  ;;  %v476_v24 = vld [vmem:[#allocation7 + $0xd8] sm:$0xff]  ;;  %18042 = vst [vmem:[#allocation19_spill] sm:$0xff] %v9845_v55  ;;  %v18045_v31 = vld [vmem:[#allocation21_spill] sm:$0xff] }
  0xfc   :  { %18036 = vst [vmem:[#allocation16_spill] sm:$0xff] %v9836_v60  ;;  %18038 = vst [vmem:[#allocation17_spill] sm:$0xff] %v9839_v48  ;;  %v9851_v22 = vmul.f32 %v18045_v31, %v455_v21  ;;  %v18047_v54 = vld [vmem:[#allocation24_spill] sm:$0xff]  ;;  %v477_v13 = vld [vmem:[#allocation7 + $0xe0] sm:$0xff] }
  0xfd   :  { %18044 = vst [vmem:[#allocation20_spill] sm:$0xff] %v9848_v19  ;;  %v9854_v4 = vmul.f32 %v18047_v54, %v456_v12  ;;  %v478_v26 = vld [vmem:[#allocation7 + $0xe8] sm:$0xff]  ;;  %v479_v47 = vld [vmem:[#allocation7 + $0xf0] sm:$0xff]  ;;  %v480_v45 = vld [vmem:[#allocation7 + $0xf8] sm:$0xff] }
  0xfe   :  { %18046 = vst [vmem:[#allocation21_spill] sm:$0xff] %v9851_v22  ;;  %v18049_v52 = vld [vmem:[#allocation27_spill] sm:$0xff]  ;;  %v18051_v60 = vld [vmem:[#allocation30_spill] sm:$0xff]  ;;  %v18053_v38 = vld [vmem:[#allocation33_spill] sm:$0xff] }
  0xff   :  { %18048 = vst [vmem:[#allocation24_spill] sm:$0xff] %v9854_v4  ;;  %v9857_v48 = vmul.f32 %v18049_v52, %v457_v57  ;;  %v9860_v56 = vmul.f32 %v18051_v60, %v458_v51  ;;  %v9863_v11 = vmul.f32 %v18053_v38, %v459_v0  ;;  %v18055_v46 = vld [vmem:[#allocation36_spill] sm:$0xff]  ;;  %v481_v21 = vld [vmem:[#allocation7 + $0x100] sm:$0xff]  ;;  %v482_v31 = vld [vmem:[#allocation7 + $0x108] sm:$0xff] }
 0x100   :  { %v9866_v2 = vmul.f32 %v18055_v46, %v460_v17  ;;  %v483_v12 = vld [vmem:[#allocation7 + $0x110] sm:$0xff]  ;;  %v484_v54 = vld [vmem:[#allocation7 + $0x118] sm:$0xff]  ;;  %v18059_v19 = vld [vmem:[#allocation42_spill] sm:$0xff] }
 0x101   :  { %18050 = vst [vmem:[#allocation27_spill] sm:$0xff] %v9857_v48  ;;  %18052 = vst [vmem:[#allocation30_spill] sm:$0xff] %v9860_v56  ;;  %v18057_v4 = vld [vmem:[#allocation39_spill] sm:$0xff]  ;;  %v9872_v55 = vmul.f32 %v18059_v19, %v462_v1  ;;  %v18061_v57 = vld [vmem:[#allocation45_spill] sm:$0xff] }
 0x102   :  { %18054 = vst [vmem:[#allocation33_spill] sm:$0xff] %v9863_v11  ;;  %18056 = vst [vmem:[#allocation36_spill] sm:$0xff] %v9866_v2  ;;  %v9869_v22 = vmul.f32 %v18057_v4, %v461_v30  ;;  %v9875_v52 = vmul.f32 %v18061_v57, %v463_v34  ;;  %v18063_v51 = vld [vmem:[#allocation48_spill] sm:$0xff]  ;;  %v485_v0 = vld [vmem:[#allocation7 + $0x120] sm:$0xff] }
 0x103   :  { %18060 = vst [vmem:[#allocation42_spill] sm:$0xff] %v9872_v55  ;;  %v9878_v60 = vmul.f32 %v18063_v51, %v464_v36  ;;  %v486_v38 = vld [vmem:[#allocation7 + $0x128] sm:$0xff]  ;;  %v487_v17 = vld [vmem:[#allocation7 + $0x130] sm:$0xff]  ;;  %v488_v46 = vld [vmem:[#allocation7 + $0x138] sm:$0xff] }
 0x104   :  { %18058 = vst [vmem:[#allocation39_spill] sm:$0xff] %v9869_v22  ;;  %18062 = vst [vmem:[#allocation45_spill] sm:$0xff] %v9875_v52  ;;  %v18065_v2 = vld [vmem:[#allocation51_spill] sm:$0xff]  ;;  %v18067_v56 = vld [vmem:[#allocation54_spill] sm:$0xff] }
 0x105   :  { %18064 = vst [vmem:[#allocation48_spill] sm:$0xff] %v9878_v60  ;;  %v9881_v11 = vmul.f32 %v18065_v2, %v465_v29  ;;  %v9884_v48 = vmul.f32 %v18067_v56, %v466_v5  ;;  %v18069_v30 = vld [vmem:[#allocation57_spill] sm:$0xff]  ;;  %v18071_v19 = vld [vmem:[#allocation60_spill] sm:$0xff]  ;;  %v490_v57 = vld [vmem:[#allocation7 + $0x148] sm:$0xff] }
 0x106   :  { %v9887_v4 = vmul.f32 %v18069_v30, %v467_v37  ;;  %v9890_v1 = vmul.f32 %v18071_v19, %v468_v27  ;;  %v489_v34 = vld [vmem:[#allocation7 + $0x140] sm:$0xff]  ;;  %v491_v36 = vld [vmem:[#allocation7 + $0x150] sm:$0xff]  ;;  %v492_v51 = vld [vmem:[#allocation7 + $0x158] sm:$0xff] }
 0x107   :  { %18066 = vst [vmem:[#allocation51_spill] sm:$0xff] %v9881_v11  ;;  %18068 = vst [vmem:[#allocation54_spill] sm:$0xff] %v9884_v48  ;;  %v18073_v60 = vld [vmem:[#allocation63_spill] sm:$0xff]  ;;  %v18075_v55 = vld [vmem:[#allocation66_spill] sm:$0xff] }
 0x108   :  { %18070 = vst [vmem:[#allocation57_spill] sm:$0xff] %v9887_v4  ;;  %18072 = vst [vmem:[#allocation60_spill] sm:$0xff] %v9890_v1  ;;  %v9893_v52 = vmul.f32 %v18073_v60, %v469_v8  ;;  %v9896_v22 = vmul.f32 %v18075_v55, %v470_v7  ;;  %v18077_v29 = vld [vmem:[#allocation69_spill] sm:$0xff]  ;;  %v18079_v56 = vld [vmem:[#allocation72_spill] sm:$0xff] }
 0x109   :  { %v9899_v2 = vmul.f32 %v18077_v29, %v471_v41  ;;  %v9902_v5 = vmul.f32 %v18079_v56, %v472_v20  ;;  %v493_v37 = vld [vmem:[#allocation7 + $0x160] sm:$0xff]  ;;  %v494_v30 = vld [vmem:[#allocation7 + $0x168] sm:$0xff]  ;;  %v495_v27 = vld [vmem:[#allocation7 + $0x170] sm:$0xff] }
 0x10a   :  { %18074 = vst [vmem:[#allocation63_spill] sm:$0xff] %v9893_v52  ;;  %18076 = vst [vmem:[#allocation66_spill] sm:$0xff] %v9896_v22  ;;  %v496_v19 = vld [vmem:[#allocation7 + $0x178] sm:$0xff]  ;;  %v18081_v1 = vld [vmem:[#allocation75_spill] sm:$0xff] }
 0x10b   :  { %18078 = vst [vmem:[#allocation69_spill] sm:$0xff] %v9899_v2  ;;  %18080 = vst [vmem:[#allocation72_spill] sm:$0xff] %v9902_v5  ;;  %v9905_v4 = vmul.f32 %v18081_v1, %v473_v39  ;;  %v18083_v48 = vld [vmem:[#allocation78_spill] sm:$0xff]  ;;  %v18085_v8 = vld [vmem:[#allocation81_spill] sm:$0xff] }
 0x10c   :  { %v9908_v11 = vmul.f32 %v18083_v48, %v474_v40  ;;  %v9911_v60 = vmul.f32 %v18085_v8, %v475_v28  ;;  %v18087_v55 = vld [vmem:[#allocation84_spill] sm:$0xff]  ;;  %v497_v41 = vld [vmem:[#allocation7 + $0x180] sm:$0xff]  ;;  %v498_v29 = vld [vmem:[#allocation7 + $0x188] sm:$0xff] }
 0x10d   :  { %18082 = vst [vmem:[#allocation75_spill] sm:$0xff] %v9905_v4  ;;  %v9914_v7 = vmul.f32 %v18087_v55, %v476_v24  ;;  %v499_v20 = vld [vmem:[#allocation7 + $0x190] sm:$0xff]  ;;  %v500_v56 = vld [vmem:[#allocation7 + $0x198] sm:$0xff]  ;;  %v18093_v39 = vld [vmem:[#allocation22_spill] sm:$0xff] }
 0x10e   :  { %18084 = vst [vmem:[#allocation78_spill] sm:$0xff] %v9908_v11  ;;  %18086 = vst [vmem:[#allocation81_spill] sm:$0xff] %v9911_v60  ;;  %v18089_v5 = vld [vmem:[#allocation87_spill] sm:$0xff]  ;;  %v9923_v1 = vmul.f32 %v18093_v39, %v479_v47  ;;  %v501_v28 = vld [vmem:[#allocation7 + $0x1a0] sm:$0xff] }
 0x10f   :  { %18088 = vst [vmem:[#allocation84_spill] sm:$0xff] %v9914_v7  ;;  %v9917_v2 = vmul.f32 %v18089_v5, %v477_v13  ;;  %v18091_v22 = vld [vmem:[#allocation91_spill] sm:$0xff]  ;;  %v502_v8 = vld [vmem:[#allocation7 + $0x1a8] sm:$0xff]  ;;  %v504_v55 = vld [vmem:[#allocation7 + $0x1b8] sm:$0xff] }
 0x110   :  { %v9920_v52 = vmul.f32 %v18091_v22, %v478_v26  ;;  %18094 = vst [vmem:[#allocation22_spill] sm:$0xff] %v9923_v1  ;;  %v18095_v40 = vld [vmem:[#allocation23_spill] sm:$0xff]  ;;  %v18097_v7 = vld [vmem:[#allocation100_spill] sm:$0xff]  ;;  %v18099_v11 = vld [vmem:[#allocation25_spill] sm:$0xff] }
 0x111   :  { %18090 = vst [vmem:[#allocation87_spill] sm:$0xff] %v9917_v2  ;;  %v9926_v48 = vmul.f32 %v18095_v40, %v480_v45  ;;  %v503_v24 = vld [vmem:[#allocation7 + $0x1b0] sm:$0xff]  ;;  %v9929_v60 = vmul.f32 %v18097_v7, %v481_v21  ;;  %v9932_v4 = vmul.f32 %v18099_v11, %v482_v31  ;;  %v18101_v13 = vld [vmem:[#allocation26_spill] sm:$0xff]  ;;  %v18103_v22 = vld [vmem:[#allocation109_spill] sm:$0xff] }
 0x112   :  { %18092 = vst [vmem:[#allocation91_spill] sm:$0xff] %v9920_v52  ;;  %v9935_v5 = vmul.f32 %v18101_v13, %v483_v12  ;;  %v9938_v26 = vmul.f32 %v18103_v22, %v484_v54  ;;  %v505_v47 = vld [vmem:[#allocation7 + $0x1c0] sm:$0xff]  ;;  %v506_v39 = vld [vmem:[#allocation7 + $0x1c8] sm:$0xff]  ;;  %v507_v45 = vld [vmem:[#allocation7 + $0x1d0] sm:$0xff] }
 0x113   :  { %18096 = vst [vmem:[#allocation23_spill] sm:$0xff] %v9926_v48  ;;  %18098 = vst [vmem:[#allocation100_spill] sm:$0xff] %v9929_v60  ;;  %v508_v40 = vld [vmem:[#allocation7 + $0x1d8] sm:$0xff]  ;;  %v18107_v52 = vld [vmem:[#allocation29_spill] sm:$0xff] }
 0x114   :  { %18100 = vst [vmem:[#allocation25_spill] sm:$0xff] %v9932_v4  ;;  %18102 = vst [vmem:[#allocation26_spill] sm:$0xff] %v9935_v5  ;;  %v18105_v48 = vld [vmem:[#allocation28_spill] sm:$0xff]  ;;  %v9944_v2 = vmul.f32 %v18107_v52, %v486_v38  ;;  %v18109_v21 = vld [vmem:[#allocation118_spill] sm:$0xff] }
 0x115   :  { %18104 = vst [vmem:[#allocation109_spill] sm:$0xff] %v9938_v26  ;;  %v9941_v1 = vmul.f32 %v18105_v48, %v485_v0  ;;  %v9947_v7 = vmul.f32 %v18109_v21, %v487_v17  ;;  %v18111_v11 = vld [vmem:[#allocation31_spill] sm:$0xff]  ;;  %v509_v12 = vld [vmem:[#allocation7 + $0x1e0] sm:$0xff]  ;;  %v510_v13 = vld [vmem:[#allocation7 + $0x1e8] sm:$0xff] }
 0x116   :  { %18108 = vst [vmem:[#allocation29_spill] sm:$0xff] %v9944_v2  ;;  %v9950_v31 = vmul.f32 %v18111_v11, %v488_v46  ;;  %v511_v54 = vld [vmem:[#allocation7 + $0x1f0] sm:$0xff]  ;;  %v512_v22 = vld [vmem:[#allocation7 + $0x1f8] sm:$0xff]  ;;  %v18117_v0 = vld [vmem:[#allocation34_spill] sm:$0xff] }
 0x117   :  { %18106 = vst [vmem:[#allocation28_spill] sm:$0xff] %v9941_v1  ;;  %18110 = vst [vmem:[#allocation118_spill] sm:$0xff] %v9947_v7  ;;  %v18113_v26 = vld [vmem:[#allocation32_spill] sm:$0xff]  ;;  %v18115_v4 = vld [vmem:[#allocation127_spill] sm:$0xff]  ;;  %v9959_v48 = vmul.f32 %v18117_v0, %v491_v36 }
 0x118   :  { %18112 = vst [vmem:[#allocation31_spill] sm:$0xff] %v9950_v31  ;;  %v9953_v5 = vmul.f32 %v18113_v26, %v489_v34  ;;  %v9956_v60 = vmul.f32 %v18115_v4, %v490_v57  ;;  %v18119_v52 = vld [vmem:[#allocation35_spill] sm:$0xff]  ;;  %v513_v17 = vld [vmem:[#allocation7 + $0x200] sm:$0xff]  ;;  %v514_v21 = vld [vmem:[#allocation7 + $0x208] sm:$0xff] }
 0x119   :  { %18118 = vst [vmem:[#allocation34_spill] sm:$0xff] %v9959_v48  ;;  %v9962_v38 = vmul.f32 %v18119_v52, %v492_v51  ;;  %v515_v46 = vld [vmem:[#allocation7 + $0x210] sm:$0xff]  ;;  %v516_v11 = vld [vmem:[#allocation7 + $0x218] sm:$0xff]  ;;  %v18123_v2 = vld [vmem:[#allocation37_spill] sm:$0xff] }
 0x11a   :  { %18114 = vst [vmem:[#allocation32_spill] sm:$0xff] %v9953_v5  ;;  %18116 = vst [vmem:[#allocation127_spill] sm:$0xff] %v9956_v60  ;;  %v18121_v31 = vld [vmem:[#allocation136_spill] sm:$0xff]  ;;  %v9968_v1 = vmul.f32 %v18123_v2, %v494_v30  ;;  %v18125_v34 = vld [vmem:[#allocation38_spill] sm:$0xff] }
 0x11b   :  { %18120 = vst [vmem:[#allocation35_spill] sm:$0xff] %v9962_v38  ;;  %v9965_v7 = vmul.f32 %v18121_v31, %v493_v37  ;;  %v9971_v26 = vmul.f32 %v18125_v34, %v495_v27  ;;  %v18127_v4 = vld [vmem:[#allocation145_spill] sm:$0xff]  ;;  %v518_v0 = vld [vmem:[#allocation7 + $0x228] sm:$0xff]  ;;  %v519_v51 = vld [vmem:[#allocation7 + $0x230] sm:$0xff] }
 0x11c   :  { %18124 = vst [vmem:[#allocation37_spill] sm:$0xff] %v9968_v1  ;;  %v9974_v57 = vmul.f32 %v18127_v4, %v496_v19  ;;  %v517_v36 = vld [vmem:[#allocation7 + $0x220] sm:$0xff]  ;;  %v520_v52 = vld [vmem:[#allocation7 + $0x238] sm:$0xff]  ;;  %v18133_v37 = vld [vmem:[#allocation154_spill] sm:$0xff] }
 0x11d   :  { %18122 = vst [vmem:[#allocation136_spill] sm:$0xff] %v9965_v7  ;;  %18126 = vst [vmem:[#allocation38_spill] sm:$0xff] %v9971_v26  ;;  %v18129_v38 = vld [vmem:[#allocation40_spill] sm:$0xff]  ;;  %v18131_v60 = vld [vmem:[#allocation41_spill] sm:$0xff]  ;;  %v9983_v31 = vmul.f32 %v18133_v37, %v499_v20 }
 0x11e   :  { %18128 = vst [vmem:[#allocation145_spill] sm:$0xff] %v9974_v57  ;;  %v9977_v48 = vmul.f32 %v18129_v38, %v497_v41  ;;  %v9980_v5 = vmul.f32 %v18131_v60, %v498_v29  ;;  %v18135_v2 = vld [vmem:[#allocation43_spill] sm:$0xff]  ;;  %v521_v27 = vld [vmem:[#allocation7 + $0x240] sm:$0xff]  ;;  %v522_v34 = vld [vmem:[#allocation7 + $0x248] sm:$0xff] }
 0x11f   :  { %18134 = vst [vmem:[#allocation154_spill] sm:$0xff] %v9983_v31  ;;  %v9986_v30 = vmul.f32 %v18135_v2, %v500_v56  ;;  %v523_v19 = vld [vmem:[#allocation7 + $0x250] sm:$0xff]  ;;  %v524_v4 = vld [vmem:[#allocation7 + $0x258] sm:$0xff]  ;;  %v18141_v41 = vld [vmem:[#allocation46_spill] sm:$0xff]  ;;  %v10004_v31 = vmul.f32 %v9274_v44, %v506_v39  ;;  %v10022_v44 = vmul.f32 %v9318_v42, %v512_v22  ;;  %v10040_v22 = vmul.f32 %v9342_v35, %v518_v0 }
 0x120   :  { %18130 = vst [vmem:[#allocation40_spill] sm:$0xff] %v9977_v48  ;;  %18132 = vst [vmem:[#allocation41_spill] sm:$0xff] %v9980_v5  ;;  %v18137_v57 = vld [vmem:[#allocation44_spill] sm:$0xff]  ;;  %v18139_v1 = vld [vmem:[#allocation163_spill] sm:$0xff]  ;;  %v9995_v38 = vmul.f32 %v18141_v41, %v503_v24  ;;  %v10013_v41 = vmul.f32 %v9304_v61, %v509_v12  ;;  %v10031_v61 = vmul.f32 %v9330_v14, %v515_v46 }
 0x121   :  { %18136 = vst [vmem:[#allocation43_spill] sm:$0xff] %v9986_v30  ;;  %v9989_v26 = vmul.f32 %v18137_v57, %v501_v28  ;;  %v9992_v7 = vmul.f32 %v18139_v1, %v502_v8  ;;  %v18143_v60 = vld [vmem:[#allocation47_spill] sm:$0xff]  ;;  %v525_v20 = vld [vmem:[#allocation7 + $0x260] sm:$0xff]  ;;  %v526_v37 = vld [vmem:[#allocation7 + $0x268] sm:$0xff]  ;;  %v10001_v30 = vmul.f32 %v9264_v58, %v505_v47  ;;  %v10007_v28 = vmul.f32 %v9284_v9, %v507_v45 }
 0x122   :  { %18142 = vst [vmem:[#allocation46_spill] sm:$0xff] %v9995_v38  ;;  %v9998_v29 = vmul.f32 %v18143_v60, %v504_v55  ;;  %v527_v56 = vld [vmem:[#allocation7 + $0x270] sm:$0xff]  ;;  %v528_v2 = vld [vmem:[#allocation7 + $0x278] sm:$0xff]  ;;  %18146 = vst [vmem:[#allocation184_spill] sm:$0xff] %v10004_v31  ;;  %v10010_v1 = vmul.f32 %v9294_v10, %v508_v40  ;;  %v10016_v60 = vmul.f32 %v9310_v62, %v510_v13 }
 0x123   :  { %18138 = vst [vmem:[#allocation44_spill] sm:$0xff] %v9989_v26  ;;  %18140 = vst [vmem:[#allocation163_spill] sm:$0xff] %v9992_v7  ;;  %v529_v8 = vld [vmem:[#allocation7 + $0x280] sm:$0xff]  ;;  %v530_v24 = vld [vmem:[#allocation7 + $0x288] sm:$0xff]  ;;  %v10019_v58 = vmul.f32 %v9314_v6, %v511_v54  ;;  %v10025_v45 = vmul.f32 %v9322_v49, %v513_v17  ;;  %v10028_v40 = vmul.f32 %v9326_v33, %v514_v21 }
 0x124   :  { %18144 = vst [vmem:[#allocation47_spill] sm:$0xff] %v9998_v29  ;;  %18145 = vst [vmem:[#allocation183_spill] sm:$0xff] %v10001_v30  ;;  %v531_v55 = vld [vmem:[#allocation7 + $0x290] sm:$0xff]  ;;  %v532_v57 = vld [vmem:[#allocation7 + $0x298] sm:$0xff]  ;;  %v10034_v62 = vmul.f32 %v9334_v16, %v516_v11  ;;  %v10037_v54 = vmul.f32 %v9338_v23, %v517_v36  ;;  %v10043_v49 = vmul.f32 %v9346_v25, %v519_v51 }
 0x125   :  { %18147 = vst [vmem:[#allocation185_spill] sm:$0xff] %v10007_v28  ;;  %18148 = vst [vmem:[#allocation186_spill] sm:$0xff] %v10010_v1  ;;  %v533_v9 = vld [vmem:[#allocation7 + $0x2a0] sm:$0xff]  ;;  %v534_v47 = vld [vmem:[#allocation7 + $0x2a8] sm:$0xff]  ;;  %v10046_v33 = vmul.f32 %v9350_v43, %v520_v52  ;;  %v10049_v46 = vmul.f32 %v9354_v53, %v521_v27  ;;  %v10052_v11 = vmul.f32 %v9358_v32, %v522_v34 }
 0x126   :  { %18149 = vst [vmem:[#allocation187_spill] sm:$0xff] %v10013_v41  ;;  %18150 = vst [vmem:[#allocation188_spill] sm:$0xff] %v10016_v60  ;;  %v535_v10 = vld [vmem:[#allocation7 + $0x2b0] sm:$0xff]  ;;  %v536_v39 = vld [vmem:[#allocation7 + $0x2b8] sm:$0xff]  ;;  %v10055_v23 = vmul.f32 %v9362_v63, %v523_v19  ;;  %v10058_v35 = vmul.f32 %v9366_v15, %v524_v4 }
 0x127   :  { %18151 = vst [vmem:[#allocation189_spill] sm:$0xff] %v10019_v58  ;;  %18152 = vst [vmem:[#allocation190_spill] sm:$0xff] %v10022_v44  ;;  %v537_v6 = vld [vmem:[#allocation7 + $0x2c0] sm:$0xff]  ;;  %v538_v12 = vld [vmem:[#allocation7 + $0x2c8] sm:$0xff] }
 0x128   :  { %18153 = vst [vmem:[#allocation191_spill] sm:$0xff] %v10025_v45  ;;  %18154 = vst [vmem:[#allocation192_spill] sm:$0xff] %v10028_v40  ;;  %v539_v42 = vld [vmem:[#allocation7 + $0x2d0] sm:$0xff]  ;;  %v540_v13 = vld [vmem:[#allocation7 + $0x2d8] sm:$0xff] }
 0x129   :  { %18155 = vst [vmem:[#allocation193_spill] sm:$0xff] %v10031_v61  ;;  %18156 = vst [vmem:[#allocation194_spill] sm:$0xff] %v10034_v62  ;;  %v541_v14 = vld [vmem:[#allocation7 + $0x2e0] sm:$0xff]  ;;  %v542_v17 = vld [vmem:[#allocation7 + $0x2e8] sm:$0xff] }
 0x12a   :  { %18157 = vst [vmem:[#allocation195_spill] sm:$0xff] %v10037_v54  ;;  %18158 = vst [vmem:[#allocation196_spill] sm:$0xff] %v10040_v22  ;;  %v543_v16 = vld [vmem:[#allocation7 + $0x2f0] sm:$0xff]  ;;  %v544_v21 = vld [vmem:[#allocation7 + $0x2f8] sm:$0xff] }
 0x12b   :  { %18159 = vst [vmem:[#allocation197_spill] sm:$0xff] %v10043_v49  ;;  %18160 = vst [vmem:[#allocation198_spill] sm:$0xff] %v10046_v33  ;;  %v545_v25 = vld [vmem:[#allocation7 + $0x300] sm:$0xff]  ;;  %v546_v36 = vld [vmem:[#allocation7 + $0x308] sm:$0xff]  ;;  %v10064_v33 = vmul.f32 %v9374_v50, %v526_v37  ;;  %v10082_v50 = vmul.f32 %v9398_v59, %v532_v57 }
 0x12c   :  { %18161 = vst [vmem:[#allocation199_spill] sm:$0xff] %v10049_v46  ;;  %18162 = vst [vmem:[#allocation200_spill] sm:$0xff] %v10052_v11  ;;  %v547_v43 = vld [vmem:[#allocation7 + $0x310] sm:$0xff]  ;;  %v548_v0 = vld [vmem:[#allocation7 + $0x318] sm:$0xff] }
 0x12d   :  { %18163 = vst [vmem:[#allocation201_spill] sm:$0xff] %v10055_v23  ;;  %18164 = vst [vmem:[#allocation202_spill] sm:$0xff] %v10058_v35  ;;  %v18165_v51 = vld [vmem:[#allocation49_spill] sm:$0xff]  ;;  %v18168_v53 = vld [vmem:[#allocation50_spill] sm:$0xff]  ;;  %v10073_v35 = vmul.f32 %v9386_v3, %v529_v8  ;;  %v10091_v3 = vmul.f32 %v9410_v18, %v535_v10 }
 0x12e   :  { %v10061_v52 = vmul.f32 %v18165_v51, %v525_v20  ;;  %18167 = vst [vmem:[#allocation203_spill] sm:$0xff] %v10064_v33  ;;  %v10067_v27 = vmul.f32 %v18168_v53, %v527_v56  ;;  %v18170_v32 = vld [vmem:[#allocation52_spill] sm:$0xff]  ;;  %v549_v63 = vld [vmem:[#allocation7 + $0x320] sm:$0xff]  ;;  %v550_v19 = vld [vmem:[#allocation7 + $0x328] sm:$0xff] }
 0x12f   :  { %v10070_v34 = vmul.f32 %v18170_v32, %v528_v2  ;;  %v551_v15 = vld [vmem:[#allocation7 + $0x330] sm:$0xff]  ;;  %v552_v4 = vld [vmem:[#allocation7 + $0x338] sm:$0xff]  ;;  %18172 = vst [vmem:[#allocation204_spill] sm:$0xff] %v10073_v35  ;;  %v18173_v23 = vld [vmem:[#allocation53_spill] sm:$0xff] }
 0x130   :  { %18166 = vst [vmem:[#allocation49_spill] sm:$0xff] %v10061_v52  ;;  %18169 = vst [vmem:[#allocation50_spill] sm:$0xff] %v10067_v27  ;;  %v10076_v11 = vmul.f32 %v18173_v23, %v530_v24  ;;  %v18175_v20 = vld [vmem:[#allocation55_spill] sm:$0xff]  ;;  %v553_v37 = vld [vmem:[#allocation7 + $0x340] sm:$0xff] }
 0x131   :  { %18171 = vst [vmem:[#allocation52_spill] sm:$0xff] %v10070_v34  ;;  %v10079_v51 = vmul.f32 %v18175_v20, %v531_v55  ;;  %18177 = vst [vmem:[#allocation205_spill] sm:$0xff] %v10082_v50  ;;  %v554_v56 = vld [vmem:[#allocation7 + $0x348] sm:$0xff]  ;;  %v555_v2 = vld [vmem:[#allocation7 + $0x350] sm:$0xff] }
 0x132   :  { %18174 = vst [vmem:[#allocation53_spill] sm:$0xff] %v10076_v11  ;;  %v556_v53 = vld [vmem:[#allocation7 + $0x358] sm:$0xff]  ;;  %v18180_v27 = vld [vmem:[#allocation58_spill] sm:$0xff]  ;;  %18182 = vst [vmem:[#allocation206_spill] sm:$0xff] %v10091_v3 }
 0x133   :  { %18176 = vst [vmem:[#allocation55_spill] sm:$0xff] %v10079_v51  ;;  %v18178_v32 = vld [vmem:[#allocation56_spill] sm:$0xff]  ;;  %v10088_v33 = vmul.f32 %v18180_v27, %v534_v47  ;;  %v18183_v8 = vld [vmem:[#allocation59_spill] sm:$0xff]  ;;  %v557_v55 = vld [vmem:[#allocation7 + $0x360] sm:$0xff] }
 0x134   :  { %v10085_v34 = vmul.f32 %v18178_v32, %v533_v9  ;;  %v10094_v24 = vmul.f32 %v18183_v8, %v536_v39  ;;  %v558_v23 = vld [vmem:[#allocation7 + $0x368] sm:$0xff]  ;;  %v559_v59 = vld [vmem:[#allocation7 + $0x370] sm:$0xff]  ;;  %v560_v57 = vld [vmem:[#allocation7 + $0x378] sm:$0xff] }
 0x135   :  { %18181 = vst [vmem:[#allocation58_spill] sm:$0xff] %v10088_v33  ;;  %v18185_v20 = vld [vmem:[#allocation61_spill] sm:$0xff]  ;;  %v18187_v51 = vld [vmem:[#allocation62_spill] sm:$0xff]  ;;  %v18189_v9 = vld [vmem:[#allocation64_spill] sm:$0xff] }
 0x136   :  { %18179 = vst [vmem:[#allocation56_spill] sm:$0xff] %v10085_v34  ;;  %18184 = vst [vmem:[#allocation59_spill] sm:$0xff] %v10094_v24  ;;  %v10097_v50 = vmul.f32 %v18185_v20, %v537_v6  ;;  %v10100_v11 = vmul.f32 %v18187_v51, %v538_v12  ;;  %v10103_v32 = vmul.f32 %v18189_v9, %v539_v42  ;;  %v18191_v47 = vld [vmem:[#allocation65_spill] sm:$0xff]  ;;  %v562_v10 = vld [vmem:[#allocation7 + $0x388] sm:$0xff] }
 0x137   :  { %v10106_v27 = vmul.f32 %v18191_v47, %v540_v13  ;;  %v561_v18 = vld [vmem:[#allocation7 + $0x380] sm:$0xff]  ;;  %v563_v39 = vld [vmem:[#allocation7 + $0x390] sm:$0xff]  ;;  %v564_v8 = vld [vmem:[#allocation7 + $0x398] sm:$0xff] }
 0x138   :  { %18186 = vst [vmem:[#allocation61_spill] sm:$0xff] %v10097_v50  ;;  %18188 = vst [vmem:[#allocation62_spill] sm:$0xff] %v10100_v11  ;;  %v18193_v24 = vld [vmem:[#allocation67_spill] sm:$0xff]  ;;  %v18195_v33 = vld [vmem:[#allocation68_spill] sm:$0xff] }
 0x139   :  { %18190 = vst [vmem:[#allocation64_spill] sm:$0xff] %v10103_v32  ;;  %18192 = vst [vmem:[#allocation65_spill] sm:$0xff] %v10106_v27  ;;  %v10109_v3 = vmul.f32 %v18193_v24, %v541_v14  ;;  %v10112_v34 = vmul.f32 %v18195_v33, %v542_v17  ;;  %v18197_v6 = vld [vmem:[#allocation70_spill] sm:$0xff]  ;;  %v18199_v12 = vld [vmem:[#allocation71_spill] sm:$0xff] }
 0x13a   :  { %v10115_v20 = vmul.f32 %v18197_v6, %v543_v16  ;;  %v10118_v51 = vmul.f32 %v18199_v12, %v544_v21  ;;  %v565_v42 = vld [vmem:[#allocation7 + $0x3a0] sm:$0xff]  ;;  %v566_v9 = vld [vmem:[#allocation7 + $0x3a8] sm:$0xff]  ;;  %v567_v13 = vld [vmem:[#allocation7 + $0x3b0] sm:$0xff] }
 0x13b   :  { %18194 = vst [vmem:[#allocation67_spill] sm:$0xff] %v10109_v3  ;;  %18196 = vst [vmem:[#allocation68_spill] sm:$0xff] %v10112_v34  ;;  %v18201_v47 = vld [vmem:[#allocation73_spill] sm:$0xff]  ;;  %v18203_v32 = vld [vmem:[#allocation74_spill] sm:$0xff] }
 0x13c   :  { %18198 = vst [vmem:[#allocation70_spill] sm:$0xff] %v10115_v20  ;;  %18200 = vst [vmem:[#allocation71_spill] sm:$0xff] %v10118_v51  ;;  %v10121_v27 = vmul.f32 %v18201_v47, %v545_v25  ;;  %v10124_v11 = vmul.f32 %v18203_v32, %v546_v36  ;;  %v18205_v14 = vld [vmem:[#allocation76_spill] sm:$0xff]  ;;  %v18207_v33 = vld [vmem:[#allocation77_spill] sm:$0xff] }
 0x13d   :  { %v10127_v24 = vmul.f32 %v18205_v14, %v547_v43  ;;  %v10130_v17 = vmul.f32 %v18207_v33, %v548_v0  ;;  %v568_v16 = vld [vmem:[#allocation7 + $0x3b8] sm:$0xff]  ;;  %v569_v6 = vld [vmem:[#allocation7 + $0x3c0] sm:$0xff]  ;;  %v570_v20 = vld [vmem:[#allocation7 + $0x3c8] sm:$0xff] }
 0x13e   :  { %18202 = vst [vmem:[#allocation73_spill] sm:$0xff] %v10121_v27  ;;  %18204 = vst [vmem:[#allocation74_spill] sm:$0xff] %v10124_v11  ;;  %v18209_v21 = vld [vmem:[#allocation79_spill] sm:$0xff]  ;;  %v18211_v51 = vld [vmem:[#allocation80_spill] sm:$0xff] }
 0x13f   :  { %18206 = vst [vmem:[#allocation76_spill] sm:$0xff] %v10127_v24  ;;  %18208 = vst [vmem:[#allocation77_spill] sm:$0xff] %v10130_v17  ;;  %v10133_v12 = vmul.f32 %v18209_v21, %v549_v63  ;;  %v10136_v34 = vmul.f32 %v18211_v51, %v550_v19  ;;  %v18213_v25 = vld [vmem:[#allocation82_spill] sm:$0xff]  ;;  %v18215_v36 = vld [vmem:[#allocation83_spill] sm:$0xff] }
 0x140   :  { %v10139_v47 = vmul.f32 %v18213_v25, %v551_v15  ;;  %v10142_v32 = vmul.f32 %v18215_v36, %v552_v4  ;;  %v571_v43 = vld [vmem:[#allocation7 + $0x3d0] sm:$0xff]  ;;  %v572_v14 = vld [vmem:[#allocation7 + $0x3d8] sm:$0xff]  ;;  %v573_v24 = vld [vmem:[#allocation7 + $0x3e0] sm:$0xff] }
 0x141   :  { %18210 = vst [vmem:[#allocation79_spill] sm:$0xff] %v10133_v12  ;;  %18212 = vst [vmem:[#allocation80_spill] sm:$0xff] %v10136_v34  ;;  %v18217_v0 = vld [vmem:[#allocation85_spill] sm:$0xff]  ;;  %v18219_v17 = vld [vmem:[#allocation86_spill] sm:$0xff] }
 0x142   :  { %18214 = vst [vmem:[#allocation82_spill] sm:$0xff] %v10139_v47  ;;  %18216 = vst [vmem:[#allocation83_spill] sm:$0xff] %v10142_v32  ;;  %v10145_v33 = vmul.f32 %v18217_v0, %v553_v37  ;;  %v10148_v11 = vmul.f32 %v18219_v17, %v554_v56  ;;  %v18221_v63 = vld [vmem:[#allocation88_spill] sm:$0xff]  ;;  %v18223_v19 = vld [vmem:[#allocation89_spill] sm:$0xff] }
 0x143   :  { %v10151_v21 = vmul.f32 %v18221_v63, %v555_v2  ;;  %v10154_v51 = vmul.f32 %v18223_v19, %v556_v53  ;;  %v574_v15 = vld [vmem:[#allocation7 + $0x3e8] sm:$0xff]  ;;  %v575_v25 = vld [vmem:[#allocation7 + $0x3f0] sm:$0xff]  ;;  %v576_v47 = vld [vmem:[#allocation7 + $0x3f8] sm:$0xff] }
 0x144   :  { %18218 = vst [vmem:[#allocation85_spill] sm:$0xff] %v10145_v33  ;;  %18220 = vst [vmem:[#allocation86_spill] sm:$0xff] %v10148_v11  ;;  %v18225_v4 = vld [vmem:[#allocation90_spill] sm:$0xff]  ;;  %v18227_v32 = vld [vmem:[#allocation92_spill] sm:$0xff] }
 0x145   :  { %18222 = vst [vmem:[#allocation88_spill] sm:$0xff] %v10151_v21  ;;  %18224 = vst [vmem:[#allocation89_spill] sm:$0xff] %v10154_v51  ;;  %v10157_v36 = vmul.f32 %v18225_v4, %v557_v55  ;;  %v10160_v34 = vmul.f32 %v18227_v32, %v558_v23  ;;  %v18229_v37 = vld [vmem:[#allocation93_spill] sm:$0xff]  ;;  %v18231_v56 = vld [vmem:[#allocation94_spill] sm:$0xff] }
 0x146   :  { %v10163_v0 = vmul.f32 %v18229_v37, %v559_v59  ;;  %v10166_v17 = vmul.f32 %v18231_v56, %v560_v57  ;;  %v577_v2 = vld [vmem:[#allocation7 + $0x400] sm:$0xff]  ;;  %v578_v63 = vld [vmem:[#allocation7 + $0x408] sm:$0xff]  ;;  %v579_v21 = vld [vmem:[#allocation7 + $0x410] sm:$0xff] }
 0x147   :  { %18226 = vst [vmem:[#allocation90_spill] sm:$0xff] %v10157_v36  ;;  %18228 = vst [vmem:[#allocation92_spill] sm:$0xff] %v10160_v34  ;;  %v18233_v53 = vld [vmem:[#allocation95_spill] sm:$0xff]  ;;  %v18235_v51 = vld [vmem:[#allocation96_spill] sm:$0xff] }
 0x148   :  { %18230 = vst [vmem:[#allocation93_spill] sm:$0xff] %v10163_v0  ;;  %18232 = vst [vmem:[#allocation94_spill] sm:$0xff] %v10166_v17  ;;  %v10169_v19 = vmul.f32 %v18233_v53, %v561_v18  ;;  %v10172_v11 = vmul.f32 %v18235_v51, %v562_v10  ;;  %v18237_v55 = vld [vmem:[#allocation97_spill] sm:$0xff]  ;;  %v18239_v23 = vld [vmem:[#allocation98_spill] sm:$0xff] }
 0x149   :  { %v10175_v4 = vmul.f32 %v18237_v55, %v563_v39  ;;  %v10178_v32 = vmul.f32 %v18239_v23, %v564_v8  ;;  %v580_v59 = vld [vmem:[#allocation7 + $0x418] sm:$0xff]  ;;  %v581_v37 = vld [vmem:[#allocation7 + $0x420] sm:$0xff]  ;;  %v582_v0 = vld [vmem:[#allocation7 + $0x428] sm:$0xff] }
 0x14a   :  { %18234 = vst [vmem:[#allocation95_spill] sm:$0xff] %v10169_v19  ;;  %18236 = vst [vmem:[#allocation96_spill] sm:$0xff] %v10172_v11  ;;  %v18241_v57 = vld [vmem:[#allocation99_spill] sm:$0xff]  ;;  %v18243_v17 = vld [vmem:[#allocation101_spill] sm:$0xff] }
 0x14b   :  { %18238 = vst [vmem:[#allocation97_spill] sm:$0xff] %v10175_v4  ;;  %18240 = vst [vmem:[#allocation98_spill] sm:$0xff] %v10178_v32  ;;  %v10181_v56 = vmul.f32 %v18241_v57, %v565_v42  ;;  %v10184_v34 = vmul.f32 %v18243_v17, %v566_v9  ;;  %v18245_v18 = vld [vmem:[#allocation102_spill] sm:$0xff]  ;;  %v18247_v10 = vld [vmem:[#allocation103_spill] sm:$0xff] }
 0x14c   :  { %v10187_v53 = vmul.f32 %v18245_v18, %v567_v13  ;;  %v10190_v51 = vmul.f32 %v18247_v10, %v568_v16  ;;  %v583_v39 = vld [vmem:[#allocation7 + $0x430] sm:$0xff]  ;;  %v584_v55 = vld [vmem:[#allocation7 + $0x438] sm:$0xff]  ;;  %v585_v4 = vld [vmem:[#allocation7 + $0x440] sm:$0xff] }
 0x14d   :  { %18242 = vst [vmem:[#allocation99_spill] sm:$0xff] %v10181_v56  ;;  %18244 = vst [vmem:[#allocation101_spill] sm:$0xff] %v10184_v34  ;;  %v18249_v8 = vld [vmem:[#allocation104_spill] sm:$0xff]  ;;  %v18251_v32 = vld [vmem:[#allocation105_spill] sm:$0xff] }
 0x14e   :  { %18246 = vst [vmem:[#allocation102_spill] sm:$0xff] %v10187_v53  ;;  %18248 = vst [vmem:[#allocation103_spill] sm:$0xff] %v10190_v51  ;;  %v10193_v23 = vmul.f32 %v18249_v8, %v569_v6  ;;  %v10196_v11 = vmul.f32 %v18251_v32, %v570_v20  ;;  %v18253_v42 = vld [vmem:[#allocation106_spill] sm:$0xff]  ;;  %v18255_v9 = vld [vmem:[#allocation107_spill] sm:$0xff] }
 0x14f   :  { %v10199_v57 = vmul.f32 %v18253_v42, %v571_v43  ;;  %v10202_v17 = vmul.f32 %v18255_v9, %v572_v14  ;;  %v586_v13 = vld [vmem:[#allocation7 + $0x448] sm:$0xff]  ;;  %v587_v18 = vld [vmem:[#allocation7 + $0x450] sm:$0xff]  ;;  %v588_v53 = vld [vmem:[#allocation7 + $0x458] sm:$0xff] }
 0x150   :  { %18250 = vst [vmem:[#allocation104_spill] sm:$0xff] %v10193_v23  ;;  %18252 = vst [vmem:[#allocation105_spill] sm:$0xff] %v10196_v11  ;;  %v18257_v16 = vld [vmem:[#allocation108_spill] sm:$0xff]  ;;  %v18259_v51 = vld [vmem:[#allocation110_spill] sm:$0xff] }
 0x151   :  { %18254 = vst [vmem:[#allocation106_spill] sm:$0xff] %v10199_v57  ;;  %18256 = vst [vmem:[#allocation107_spill] sm:$0xff] %v10202_v17  ;;  %v10205_v10 = vmul.f32 %v18257_v16, %v573_v24  ;;  %v10208_v34 = vmul.f32 %v18259_v51, %v574_v15  ;;  %v18261_v6 = vld [vmem:[#allocation111_spill] sm:$0xff]  ;;  %v18263_v20 = vld [vmem:[#allocation112_spill] sm:$0xff] }
 0x152   :  { %v10211_v8 = vmul.f32 %v18261_v6, %v575_v25  ;;  %v10214_v32 = vmul.f32 %v18263_v20, %v576_v47  ;;  %v589_v43 = vld [vmem:[#allocation7 + $0x460] sm:$0xff]  ;;  %v590_v42 = vld [vmem:[#allocation7 + $0x468] sm:$0xff]  ;;  %v591_v57 = vld [vmem:[#allocation7 + $0x470] sm:$0xff] }
 0x153   :  { %18258 = vst [vmem:[#allocation108_spill] sm:$0xff] %v10205_v10  ;;  %18260 = vst [vmem:[#allocation110_spill] sm:$0xff] %v10208_v34  ;;  %v18265_v14 = vld [vmem:[#allocation113_spill] sm:$0xff]  ;;  %v18267_v17 = vld [vmem:[#allocation114_spill] sm:$0xff] }
 0x154   :  { %18262 = vst [vmem:[#allocation111_spill] sm:$0xff] %v10211_v8  ;;  %18264 = vst [vmem:[#allocation112_spill] sm:$0xff] %v10214_v32  ;;  %v10217_v9 = vmul.f32 %v18265_v14, %v577_v2  ;;  %v10220_v11 = vmul.f32 %v18267_v17, %v578_v63  ;;  %v18269_v24 = vld [vmem:[#allocation115_spill] sm:$0xff]  ;;  %v18271_v15 = vld [vmem:[#allocation116_spill] sm:$0xff] }
 0x155   :  { %v10223_v16 = vmul.f32 %v18269_v24, %v579_v21  ;;  %v10226_v51 = vmul.f32 %v18271_v15, %v580_v59  ;;  %v592_v25 = vld [vmem:[#allocation7 + $0x478] sm:$0xff]  ;;  %v18273_v6 = vld [vmem:[#allocation117_spill] sm:$0xff]  ;;  %v18275_v47 = vld [vmem:[#allocation119_spill] sm:$0xff] }
 0x156   :  { %18266 = vst [vmem:[#allocation113_spill] sm:$0xff] %v10217_v9  ;;  %18268 = vst [vmem:[#allocation114_spill] sm:$0xff] %v10220_v11  ;;  %v10229_v8 = vmul.f32 %v18273_v6, %v581_v37  ;;  %v10232_v20 = vmul.f32 %v18275_v47, %v582_v0  ;;  %v18277_v32 = vld [vmem:[#allocation120_spill] sm:$0xff]  ;;  %v18279_v2 = vld [vmem:[#allocation121_spill] sm:$0xff] }
 0x157   :  { %18270 = vst [vmem:[#allocation115_spill] sm:$0xff] %v10223_v16  ;;  %18272 = vst [vmem:[#allocation116_spill] sm:$0xff] %v10226_v51  ;;  %v10235_v34 = vmul.f32 %v18277_v32, %v583_v39  ;;  %v10238_v14 = vmul.f32 %v18279_v2, %v584_v55  ;;  %v593_v63 = vld [vmem:[#allocation7 + $0x480] sm:$0xff]  ;;  %v18281_v17 = vld [vmem:[#allocation122_spill] sm:$0xff] }
 0x158   :  { %18274 = vst [vmem:[#allocation117_spill] sm:$0xff] %v10229_v8  ;;  %18276 = vst [vmem:[#allocation119_spill] sm:$0xff] %v10232_v20  ;;  %v10241_v21 = vmul.f32 %v18281_v17, %v585_v4  ;;  %v18283_v24 = vld [vmem:[#allocation123_spill] sm:$0xff]  ;;  %v18285_v15 = vld [vmem:[#allocation124_spill] sm:$0xff] }
 0x159   :  { %18278 = vst [vmem:[#allocation120_spill] sm:$0xff] %v10235_v34  ;;  %18280 = vst [vmem:[#allocation121_spill] sm:$0xff] %v10238_v14  ;;  %v10244_v59 = vmul.f32 %v18283_v24, %v586_v13  ;;  %v10247_v51 = vmul.f32 %v18285_v15, %v587_v18  ;;  %v18287_v37 = vld [vmem:[#allocation125_spill] sm:$0xff]  ;;  %v594_v0 = vld [vmem:[#allocation7 + $0x488] sm:$0xff] }
 0x15a   :  { %18282 = vst [vmem:[#allocation122_spill] sm:$0xff] %v10241_v21  ;;  %v10250_v6 = vmul.f32 %v18287_v37, %v588_v53  ;;  %v595_v47 = vld [vmem:[#allocation7 + $0x490] sm:$0xff]  ;;  %v596_v39 = vld [vmem:[#allocation7 + $0x498] sm:$0xff]  ;;  %v18289_v32 = vld [vmem:[#allocation126_spill] sm:$0xff] }
 0x15b   :  { %18284 = vst [vmem:[#allocation123_spill] sm:$0xff] %v10244_v59  ;;  %18286 = vst [vmem:[#allocation124_spill] sm:$0xff] %v10247_v51  ;;  %v10253_v34 = vmul.f32 %v18289_v32, %v589_v43  ;;  %v18291_v55 = vld [vmem:[#allocation128_spill] sm:$0xff]  ;;  %v18293_v4 = vld [vmem:[#allocation129_spill] sm:$0xff] }
 0x15c   :  { %18288 = vst [vmem:[#allocation125_spill] sm:$0xff] %v10250_v6  ;;  %v10256_v2 = vmul.f32 %v18291_v55, %v590_v42  ;;  %v10259_v17 = vmul.f32 %v18293_v4, %v591_v57  ;;  %v18295_v13 = vld [vmem:[#allocation15_spill] sm:$0xff]  ;;  %v597_v18 = vld [vmem:[#allocation7 + $0x4a0] sm:$0xff]  ;;  %v18296_v15 = vld [vmem:[#allocation130_spill] sm:$0xff] }
 0x15d   :  { %18290 = vst [vmem:[#allocation126_spill] sm:$0xff] %v10253_v34  ;;  %v10262_v24 = vmax.f32 %v18295_v13, 1e-30  ;;  %v10265_v51 = vmul.f32 %v18296_v15, %v592_v25  ;;  %v18298_v53 = vld [vmem:[#allocation16_spill] sm:$0xff]  ;;  %v18299_v6 = vld [vmem:[#allocation17_spill] sm:$0xff]  ;;  %v18300_v43 = vld [vmem:[#allocation18_spill] sm:$0xff] }
 0x15e   :  { %18292 = vst [vmem:[#allocation128_spill] sm:$0xff] %v10256_v2  ;;  %18294 = vst [vmem:[#allocation129_spill] sm:$0xff] %v10259_v17  ;;  %v10268_v37 = vmax.f32 %v18298_v53, 1e-30  ;;  %v10271_v59 = vmax.f32 %v18299_v6, 1e-30 }
 0x15f   :  { %18297 = vst [vmem:[#allocation130_spill] sm:$0xff] %v10265_v51  ;;  %v10274_v32 = vmax.f32 %v18300_v43, 1e-30  ;;  %v598_v42 = vld [vmem:[#allocation7 + $0x4a8] sm:$0xff]  ;;  %v18301_v55 = vld [vmem:[#allocation131_spill] sm:$0xff]  ;;  %v18305_v17 = vld [vmem:[#allocation20_spill] sm:$0xff]  ;;  %vm2616_vm2 = vcmp.ne.f32.partialorder %v10262_v24, %v10262_v24 }
 0x160   :  { %v10277_v57 = vmul.f32 %v18301_v55, %v593_v63  ;;  %v18303_v4 = vld [vmem:[#allocation19_spill] sm:$0xff]  ;;  %v10283_v2 = vmax.f32 %v18305_v17, 1e-30  ;;  %v18307_v25 = vld [vmem:[#allocation21_spill] sm:$0xff]  ;;  %v18309_v51 = vld [vmem:[#allocation132_spill] sm:$0xff]  ;;  %vm2603_vm0 = vcmp.lt.f32.partialorder %v10262_v24, 0  ;;  %vm2642_vm7 = vcmp.ne.f32.partialorder %v10268_v37, %v10268_v37 }
 0x161   :  { %v10280_v13 = vmax.f32 %v18303_v4, 1e-30  ;;  %v10286_v15 = vmax.f32 %v18307_v25, 1e-30  ;;  %v599_v53 = vld [vmem:[#allocation7 + $0x4b0] sm:$0xff]  ;;  %v10289_v6 = vmul.f32 %v18309_v51, %v594_v0  ;;  %v18311_v34 = vld [vmem:[#allocation24_spill] sm:$0xff] }
 0x162   :  { %18302 = vst [vmem:[#allocation131_spill] sm:$0xff] %v10277_v57  ;;  %18306 = vst [vmem:[#allocation208_spill] sm:$0xff] %v10283_v2  ;;  %v10292_v43 = vmax.f32 %v18311_v34, 1e-30  ;;  %v18313_v21 = vld [vmem:[#allocation27_spill] sm:$0xff]  ;;  %v18315_v63 = vld [vmem:[#allocation30_spill] sm:$0xff] }
 0x163   :  { %18304 = vst [vmem:[#allocation207_spill] sm:$0xff] %v10280_v13  ;;  %18308 = vst [vmem:[#allocation209_spill] sm:$0xff] %v10286_v15  ;;  %v10295_v14 = vmax.f32 %v18313_v21, 1e-30  ;;  %v10298_v55 = vmax.f32 %v18315_v63, 1e-30 }
 0x164   :  { %18310 = vst [vmem:[#allocation132_spill] sm:$0xff] %v10289_v6  ;;  %18312 = vst [vmem:[#allocation210_spill] sm:$0xff] %v10292_v43  ;;  %v600_v4 = vld [vmem:[#allocation7 + $0x4b8] sm:$0xff]  ;;  %v18317_v57 = vld [vmem:[#allocation133_spill] sm:$0xff]  ;;  %vm2604_vm1 = vcmp.eq.f32.partialorder %v10262_v24, 0  ;;  %vm2629_vm3 = vcmp.lt.f32.partialorder %v10268_v37, 0 }
 0x165   :  { %18314 = vst [vmem:[#allocation211_spill] sm:$0xff] %v10295_v14  ;;  %18316 = vst [vmem:[#allocation212_spill] sm:$0xff] %v10298_v55  ;;  %v10301_v17 = vmul.f32 %v18317_v57, %v595_v47  ;;  %v18319_v2 = vld [vmem:[#allocation33_spill] sm:$0xff]  ;;  %v18321_v15 = vld [vmem:[#allocation36_spill] sm:$0xff]  ;;  %vm2630_vm4 = vcmp.eq.f32.partialorder %v10268_v37, 0  ;;  %vm2655_vm8 = vcmp.lt.f32.partialorder %v10271_v59, 0 }
 0x166   :  { %v10304_v25 = vmax.f32 %v18319_v2, 1e-30  ;;  %v10307_v13 = vmax.f32 %v18321_v15, 1e-30  ;;  %v18323_v51 = vld [vmem:[#allocation39_spill] sm:$0xff]  ;;  %v601_v34 = vld [vmem:[#allocation7 + $0x4c0] sm:$0xff] }
 0x167   :  { %18318 = vst [vmem:[#allocation133_spill] sm:$0xff] %v10301_v17  ;;  %v10310_v0 = vmax.f32 %v18323_v51, 1e-30  ;;  %v18325_v6 = vld [vmem:[#allocation134_spill] sm:$0xff]  ;;  %v18329_v55 = vld [vmem:[#allocation45_spill] sm:$0xff]  ;;  %v18331_v47 = vld [vmem:[#allocation48_spill] sm:$0xff] }
 0x168   :  { %18320 = vst [vmem:[#allocation213_spill] sm:$0xff] %v10304_v25  ;;  %18322 = vst [vmem:[#allocation214_spill] sm:$0xff] %v10307_v13  ;;  %v10313_v21 = vmul.f32 %v18325_v6, %v596_v39  ;;  %v18327_v14 = vld [vmem:[#allocation42_spill] sm:$0xff]  ;;  %v10319_v43 = vmax.f32 %v18329_v55, 1e-30  ;;  %v18333_v25 = vld [vmem:[#allocation135_spill] sm:$0xff] }
 0x169   :  { %18324 = vst [vmem:[#allocation215_spill] sm:$0xff] %v10310_v0  ;;  %v10316_v63 = vmax.f32 %v18327_v14, 1e-30  ;;  %v10322_v57 = vmax.f32 %v18331_v47, 1e-30  ;;  %v602_v2 = vld [vmem:[#allocation7 + $0x4c8] sm:$0xff]  ;;  %v10325_v15 = vmul.f32 %v18333_v25, %v597_v18 }
 0x16a   :  { %18326 = vst [vmem:[#allocation134_spill] sm:$0xff] %v10313_v21  ;;  %18330 = vst [vmem:[#allocation217_spill] sm:$0xff] %v10319_v43  ;;  %v18335_v13 = vld [vmem:[#allocation51_spill] sm:$0xff]  ;;  %v18337_v0 = vld [vmem:[#allocation54_spill] sm:$0xff]  ;;  %vm2656_vm9 = vcmp.eq.f32.partialorder %v10271_v59, 0  ;;  %vm2681_vm11 = vcmp.lt.f32.partialorder %v10274_v32, 0 }
 0x16b   :  { %18328 = vst [vmem:[#allocation216_spill] sm:$0xff] %v10316_v63  ;;  %18332 = vst [vmem:[#allocation218_spill] sm:$0xff] %v10322_v57  ;;  %v10328_v51 = vmax.f32 %v18335_v13, 1e-30  ;;  %v10331_v17 = vmax.f32 %v18337_v0, 1e-30 }
 0x16c   :  { %18334 = vst [vmem:[#allocation135_spill] sm:$0xff] %v10325_v15  ;;  %v18339_v6 = vld [vmem:[#allocation57_spill] sm:$0xff]  ;;  %v603_v14 = vld [vmem:[#allocation7 + $0x4d0] sm:$0xff]  ;;  %v18343_v43 = vld [vmem:[#allocation60_spill] sm:$0xff] }
 0x16d   :  { %18336 = vst [vmem:[#allocation219_spill] sm:$0xff] %v10328_v51  ;;  %18338 = vst [vmem:[#allocation220_spill] sm:$0xff] %v10331_v17  ;;  %v10334_v39 = vmax.f32 %v18339_v6, 1e-30  ;;  %v18341_v63 = vld [vmem:[#allocation137_spill] sm:$0xff]  ;;  %v18345_v57 = vld [vmem:[#allocation63_spill] sm:$0xff] }
 0x16e   :  { %v10337_v55 = vmul.f32 %v18341_v63, %v598_v42  ;;  %v10340_v47 = vmax.f32 %v18343_v43, 1e-30  ;;  %v10343_v21 = vmax.f32 %v18345_v57, 1e-30  ;;  %v18347_v18 = vld [vmem:[#allocation66_spill] sm:$0xff]  ;;  %v604_v13 = vld [vmem:[#allocation7 + $0x4d8] sm:$0xff] }
 0x16f   :  { %18340 = vst [vmem:[#allocation221_spill] sm:$0xff] %v10334_v39  ;;  %v10346_v25 = vmax.f32 %v18347_v18, 1e-30  ;;  %v18349_v51 = vld [vmem:[#allocation138_spill] sm:$0xff]  ;;  %v18351_v17 = vld [vmem:[#allocation69_spill] sm:$0xff]  ;;  %v18353_v39 = vld [vmem:[#allocation72_spill] sm:$0xff] }
 0x170   :  { %18342 = vst [vmem:[#allocation137_spill] sm:$0xff] %v10337_v55  ;;  %18344 = vst [vmem:[#allocation222_spill] sm:$0xff] %v10340_v47  ;;  %v10349_v0 = vmul.f32 %v18349_v51, %v599_v53  ;;  %v10352_v6 = vmax.f32 %v18351_v17, 1e-30  ;;  %v10355_v15 = vmax.f32 %v18353_v39, 1e-30 }
 0x171   :  { %18346 = vst [vmem:[#allocation223_spill] sm:$0xff] %v10343_v21  ;;  %18348 = vst [vmem:[#allocation224_spill] sm:$0xff] %v10346_v25  ;;  %v18355_v42 = vld [vmem:[#allocation75_spill] sm:$0xff]  ;;  %v605_v43 = vld [vmem:[#allocation7 + $0x4e0] sm:$0xff] }
 0x172   :  { %18350 = vst [vmem:[#allocation138_spill] sm:$0xff] %v10349_v0  ;;  %18352 = vst [vmem:[#allocation225_spill] sm:$0xff] %v10352_v6  ;;  %v10358_v63 = vmax.f32 %v18355_v42, 1e-30  ;;  %v18357_v47 = vld [vmem:[#allocation139_spill] sm:$0xff]  ;;  %v18359_v21 = vld [vmem:[#allocation78_spill] sm:$0xff] }
 0x173   :  { %18354 = vst [vmem:[#allocation226_spill] sm:$0xff] %v10355_v15  ;;  %v10361_v57 = vmul.f32 %v18357_v47, %v600_v4  ;;  %v10364_v18 = vmax.f32 %v18359_v21, 1e-30  ;;  %v18361_v25 = vld [vmem:[#allocation81_spill] sm:$0xff]  ;;  %v18363_v53 = vld [vmem:[#allocation84_spill] sm:$0xff]  ;;  %v606_v17 = vld [vmem:[#allocation7 + $0x4e8] sm:$0xff] }
 0x174   :  { %18356 = vst [vmem:[#allocation227_spill] sm:$0xff] %v10358_v63  ;;  %v10367_v55 = vmax.f32 %v18361_v25, 1e-30  ;;  %v10370_v51 = vmax.f32 %v18363_v53, 1e-30  ;;  %v18365_v6 = vld [vmem:[#allocation140_spill] sm:$0xff] }
 0x175   :  { %18358 = vst [vmem:[#allocation139_spill] sm:$0xff] %v10361_v57  ;;  %18360 = vst [vmem:[#allocation228_spill] sm:$0xff] %v10364_v18  ;;  %v10373_v39 = vmul.f32 %v18365_v6, %v601_v34  ;;  %v18367_v15 = vld [vmem:[#allocation87_spill] sm:$0xff]  ;;  %v18371_v4 = vld [vmem:[#allocation22_spill] sm:$0xff] }
 0x176   :  { %18362 = vst [vmem:[#allocation229_spill] sm:$0xff] %v10367_v55  ;;  %18364 = vst [vmem:[#allocation230_spill] sm:$0xff] %v10370_v51  ;;  %v10376_v42 = vmax.f32 %v18367_v15, 1e-30  ;;  %v18369_v63 = vld [vmem:[#allocation91_spill] sm:$0xff]  ;;  %v18373_v18 = vld [vmem:[#allocation141_spill] sm:$0xff] }
 0x177   :  { %18366 = vst [vmem:[#allocation140_spill] sm:$0xff] %v10373_v39  ;;  %v10379_v0 = vmax.f32 %v18369_v63, 1e-30  ;;  %v10382_v47 = vmax.f32 %v18371_v4, 1e-30  ;;  %v607_v21 = vld [vmem:[#allocation7 + $0x4f0] sm:$0xff]  ;;  %v10385_v25 = vmul.f32 %v18373_v18, %v602_v2 }
 0x178   :  { %18368 = vst [vmem:[#allocation231_spill] sm:$0xff] %v10376_v42  ;;  %v18375_v55 = vld [vmem:[#allocation23_spill] sm:$0xff]  ;;  %v18377_v51 = vld [vmem:[#allocation100_spill] sm:$0xff]  ;;  %v18379_v34 = vld [vmem:[#allocation25_spill] sm:$0xff] }
 0x179   :  { %18370 = vst [vmem:[#allocation232_spill] sm:$0xff] %v10379_v0  ;;  %18372 = vst [vmem:[#allocation233_spill] sm:$0xff] %v10382_v47  ;;  %v10388_v53 = vmax.f32 %v18375_v55, 1e-30  ;;  %v10391_v57 = vmax.f32 %v18377_v51, 1e-30 }
 0x17a   :  { %18374 = vst [vmem:[#allocation141_spill] sm:$0xff] %v10385_v25  ;;  %v10394_v6 = vmax.f32 %v18379_v34, 1e-30  ;;  %v608_v15 = vld [vmem:[#allocation7 + $0x4f8] sm:$0xff]  ;;  %v18381_v42 = vld [vmem:[#allocation142_spill] sm:$0xff]  ;;  %v18385_v47 = vld [vmem:[#allocation109_spill] sm:$0xff] }
 0x17b   :  { %18376 = vst [vmem:[#allocation234_spill] sm:$0xff] %v10388_v53  ;;  %18378 = vst [vmem:[#allocation235_spill] sm:$0xff] %v10391_v57  ;;  %v10397_v63 = vmul.f32 %v18381_v42, %v603_v14  ;;  %v18383_v0 = vld [vmem:[#allocation26_spill] sm:$0xff]  ;;  %v10403_v39 = vmax.f32 %v18385_v47, 1e-30  ;;  %v18387_v2 = vld [vmem:[#allocation28_spill] sm:$0xff] }
 0x17c   :  { %18380 = vst [vmem:[#allocation236_spill] sm:$0xff] %v10394_v6  ;;  %v10400_v4 = vmax.f32 %v18383_v0, 1e-30  ;;  %v10406_v18 = vmax.f32 %v18387_v2, 1e-30  ;;  %v609_v55 = vld [vmem:[#allocation7 + $0x500] sm:$0xff] }
 0x17d   :  { %18382 = vst [vmem:[#allocation142_spill] sm:$0xff] %v10397_v63  ;;  %18386 = vst [vmem:[#allocation238_spill] sm:$0xff] %v10403_v39  ;;  %v18389_v53 = vld [vmem:[#allocation143_spill] sm:$0xff]  ;;  %v18391_v57 = vld [vmem:[#allocation29_spill] sm:$0xff] }
 0x17e   :  { %18384 = vst [vmem:[#allocation237_spill] sm:$0xff] %v10400_v4  ;;  %18388 = vst [vmem:[#allocation239_spill] sm:$0xff] %v10406_v18  ;;  %v10409_v51 = vmul.f32 %v18389_v53, %v604_v13  ;;  %v10412_v34 = vmax.f32 %v18391_v57, 1e-30  ;;  %v18393_v6 = vld [vmem:[#allocation118_spill] sm:$0xff]  ;;  %v18395_v14 = vld [vmem:[#allocation31_spill] sm:$0xff] }
 0x17f   :  { %v10415_v25 = vmax.f32 %v18393_v6, 1e-30  ;;  %v10418_v42 = vmax.f32 %v18395_v14, 1e-30  ;;  %v610_v0 = vld [vmem:[#allocation7 + $0x508] sm:$0xff]  ;;  %v18397_v4 = vld [vmem:[#allocation144_spill] sm:$0xff] }
 0x180   :  { %18390 = vst [vmem:[#allocation143_spill] sm:$0xff] %v10409_v51  ;;  %18392 = vst [vmem:[#allocation240_spill] sm:$0xff] %v10412_v34  ;;  %v10421_v47 = vmul.f32 %v18397_v4, %v605_v43  ;;  %v18399_v39 = vld [vmem:[#allocation32_spill] sm:$0xff]  ;;  %v18401_v18 = vld [vmem:[#allocation127_spill] sm:$0xff] }
 0x181   :  { %18394 = vst [vmem:[#allocation241_spill] sm:$0xff] %v10415_v25  ;;  %18396 = vst [vmem:[#allocation242_spill] sm:$0xff] %v10418_v42  ;;  %v10424_v2 = vmax.f32 %v18399_v39, 1e-30  ;;  %v10427_v63 = vmax.f32 %v18401_v18, 1e-30 }
 0x182   :  { %18398 = vst [vmem:[#allocation144_spill] sm:$0xff] %v10421_v47  ;;  %v18403_v13 = vld [vmem:[#allocation34_spill] sm:$0xff]  ;;  %v611_v57 = vld [vmem:[#allocation7 + $0x510] sm:$0xff]  ;;  %v18408_v42 = vld [vmem:[#allocation136_spill] sm:$0xff] }
 0x183   :  { %18400 = vst [vmem:[#allocation243_spill] sm:$0xff] %v10424_v2  ;;  %18402 = vst [vmem:[#allocation244_spill] sm:$0xff] %v10427_v63  ;;  %v10430_v53 = vmax.f32 %v18403_v13, 1e-30  ;;  %v18405_v34 = vld [vmem:[#allocation146_spill] sm:$0xff]  ;;  %v18407_v25 = vld [vmem:[#allocation35_spill] sm:$0xff] }
 0x184   :  { %v10433_v6 = vmul.f32 %v18405_v34, %v606_v17  ;;  %v10436_v14 = vmax.f32 %v18407_v25, 1e-30  ;;  %v10439_v51 = vmax.f32 %v18408_v42, 1e-30  ;;  %v18410_v43 = vld [vmem:[#allocation37_spill] sm:$0xff]  ;;  %v612_v39 = vld [vmem:[#allocation7 + $0x518] sm:$0xff] }
 0x185   :  { %18404 = vst [vmem:[#allocation245_spill] sm:$0xff] %v10430_v53  ;;  %v10442_v4 = vmax.f32 %v18410_v43, 1e-30  ;;  %v18412_v2 = vld [vmem:[#allocation147_spill] sm:$0xff]  ;;  %v18414_v63 = vld [vmem:[#allocation38_spill] sm:$0xff]  ;;  %v18416_v53 = vld [vmem:[#allocation145_spill] sm:$0xff] }
 0x186   :  { %18406 = vst [vmem:[#allocation146_spill] sm:$0xff] %v10433_v6  ;;  %18409 = vst [vmem:[#allocation246_spill] sm:$0xff] %v10439_v51  ;;  %v10445_v18 = vmul.f32 %v18412_v2, %v607_v21  ;;  %v10448_v13 = vmax.f32 %v18414_v63, 1e-30  ;;  %v10451_v47 = vmax.f32 %v18416_v53, 1e-30 }
 0x187   :  { %18411 = vst [vmem:[#allocation247_spill] sm:$0xff] %v10442_v4  ;;  %v10454_v17 = vmax.f32 %v9977_v48, 1e-30  ;;  %v613_v34 = vld [vmem:[#allocation7 + $0x520] sm:$0xff]  ;;  %v18418_v25 = vld [vmem:[#allocation148_spill] sm:$0xff]  ;;  %v18420_v4 = vld [vmem:[#allocation154_spill] sm:$0xff] }
 0x188   :  { %18413 = vst [vmem:[#allocation147_spill] sm:$0xff] %v10445_v18  ;;  %18415 = vst [vmem:[#allocation248_spill] sm:$0xff] %v10448_v13  ;;  %v10457_v42 = vmul.f32 %v18418_v25, %v608_v15  ;;  %v10460_v43 = vmax.f32 %v9980_v5, 1e-30  ;;  %v10463_v51 = vmax.f32 %v18420_v4, 1e-30 }
 0x189   :  { %18417 = vst [vmem:[#allocation249_spill] sm:$0xff] %v10454_v17  ;;  %v18422_v21 = vld [vmem:[#allocation43_spill] sm:$0xff]  ;;  %v614_v63 = vld [vmem:[#allocation7 + $0x528] sm:$0xff]  ;;  %v18424_v13 = vld [vmem:[#allocation149_spill] sm:$0xff]  ;;  %v10472_v48 = vmax.f32 %v9989_v26, 1e-30 }
 0x18a   :  { %18419 = vst [vmem:[#allocation148_spill] sm:$0xff] %v10457_v42  ;;  %18421 = vst [vmem:[#allocation250_spill] sm:$0xff] %v10463_v51  ;;  %v10466_v2 = vmax.f32 %v18422_v21, 1e-30  ;;  %v10469_v53 = vmul.f32 %v18424_v13, %v609_v55  ;;  %v10475_v17 = vmax.f32 %v9992_v7, 1e-30 }
 0x18b   :  { %18426 = vst [vmem:[#allocation252_spill] sm:$0xff] %v10472_v48  ;;  %v10478_v15 = vmax.f32 %v9995_v38, 1e-30  ;;  %v615_v25 = vld [vmem:[#allocation7 + $0x530] sm:$0xff]  ;;  %v18429_v5 = vld [vmem:[#allocation150_spill] sm:$0xff]  ;;  %v616_v13 = vld [vmem:[#allocation7 + $0x538] sm:$0xff] }
 0x18c   :  { %18423 = vst [vmem:[#allocation251_spill] sm:$0xff] %v10466_v2  ;;  %18425 = vst [vmem:[#allocation149_spill] sm:$0xff] %v10469_v53  ;;  %v10481_v4 = vmul.f32 %v18429_v5, %v610_v0  ;;  %v10484_v21 = vmax.f32 %v9998_v29, 1e-30  ;;  %v10487_v2 = vmax.f32 %v10001_v30, 1e-30 }
 0x18d   :  { %18427 = vst [vmem:[#allocation253_spill] sm:$0xff] %v10475_v17  ;;  %18428 = vst [vmem:[#allocation254_spill] sm:$0xff] %v10478_v15  ;;  %v10490_v55 = vmax.f32 %v10004_v31, 1e-30  ;;  %v18434_v26 = vld [vmem:[#allocation151_spill] sm:$0xff]  ;;  %v617_v0 = vld [vmem:[#allocation7 + $0x540] sm:$0xff] }
 0x18e   :  { %18430 = vst [vmem:[#allocation150_spill] sm:$0xff] %v10481_v4  ;;  %18431 = vst [vmem:[#allocation255_spill] sm:$0xff] %v10484_v21  ;;  %v10493_v7 = vmul.f32 %v18434_v26, %v611_v57  ;;  %v10496_v38 = vmax.f32 %v10007_v28, 1e-30  ;;  %v10499_v15 = vmax.f32 %v10010_v1, 1e-30 }
 0x18f   :  { %18432 = vst [vmem:[#allocation256_spill] sm:$0xff] %v10487_v2  ;;  %18433 = vst [vmem:[#allocation257_spill] sm:$0xff] %v10490_v55  ;;  %v10502_v5 = vmax.f32 %v10013_v41, 1e-30  ;;  %v18439_v29 = vld [vmem:[#allocation152_spill] sm:$0xff]  ;;  %v618_v57 = vld [vmem:[#allocation7 + $0x548] sm:$0xff] }
 0x190   :  { %18435 = vst [vmem:[#allocation151_spill] sm:$0xff] %v10493_v7  ;;  %18436 = vst [vmem:[#allocation258_spill] sm:$0xff] %v10496_v38  ;;  %v10505_v30 = vmul.f32 %v18439_v29, %v612_v39  ;;  %v10508_v31 = vmax.f32 %v10016_v60, 1e-30  ;;  %v10511_v55 = vmax.f32 %v10019_v58, 1e-30 }
 0x191   :  { %18437 = vst [vmem:[#allocation259_spill] sm:$0xff] %v10499_v15  ;;  %18438 = vst [vmem:[#allocation260_spill] sm:$0xff] %v10502_v5  ;;  %v10514_v26 = vmax.f32 %v10022_v44, 1e-30  ;;  %v18444_v28 = vld [vmem:[#allocation153_spill] sm:$0xff]  ;;  %v619_v39 = vld [vmem:[#allocation7 + $0x550] sm:$0xff] }
 0x192   :  { %18440 = vst [vmem:[#allocation152_spill] sm:$0xff] %v10505_v30  ;;  %18441 = vst [vmem:[#allocation261_spill] sm:$0xff] %v10508_v31  ;;  %v10517_v1 = vmul.f32 %v18444_v28, %v613_v34  ;;  %v10520_v41 = vmax.f32 %v10025_v45, 1e-30  ;;  %v10523_v5 = vmax.f32 %v10028_v40, 1e-30 }
 0x193   :  { %18442 = vst [vmem:[#allocation262_spill] sm:$0xff] %v10511_v55  ;;  %18443 = vst [vmem:[#allocation263_spill] sm:$0xff] %v10514_v26  ;;  %v10526_v29 = vmax.f32 %v10031_v61, 1e-30  ;;  %v18449_v60 = vld [vmem:[#allocation155_spill] sm:$0xff]  ;;  %v620_v34 = vld [vmem:[#allocation7 + $0x558] sm:$0xff] }
 0x194   :  { %18445 = vst [vmem:[#allocation153_spill] sm:$0xff] %v10517_v1  ;;  %18446 = vst [vmem:[#allocation264_spill] sm:$0xff] %v10520_v41  ;;  %v10529_v58 = vmul.f32 %v18449_v60, %v614_v63  ;;  %v10532_v44 = vmax.f32 %v10034_v62, 1e-30  ;;  %v10535_v26 = vmax.f32 %v10037_v54, 1e-30 }
 0x195   :  { %18447 = vst [vmem:[#allocation265_spill] sm:$0xff] %v10523_v5  ;;  %18448 = vst [vmem:[#allocation266_spill] sm:$0xff] %v10526_v29  ;;  %v10538_v28 = vmax.f32 %v10040_v22, 1e-30  ;;  %v18454_v45 = vld [vmem:[#allocation156_spill] sm:$0xff]  ;;  %v18457_v29 = vld [vmem:[#allocation198_spill] sm:$0xff] }
 0x196   :  { %18450 = vst [vmem:[#allocation155_spill] sm:$0xff] %v10529_v58  ;;  %18451 = vst [vmem:[#allocation267_spill] sm:$0xff] %v10532_v44  ;;  %v10541_v40 = vmul.f32 %v18454_v45, %v615_v25  ;;  %v10544_v61 = vmax.f32 %v10043_v49, 1e-30  ;;  %v10547_v5 = vmax.f32 %v18457_v29, 1e-30 }
 0x197   :  { %18452 = vst [vmem:[#allocation268_spill] sm:$0xff] %v10535_v26  ;;  %18453 = vst [vmem:[#allocation269_spill] sm:$0xff] %v10538_v28  ;;  %v10550_v60 = vmax.f32 %v10049_v46, 1e-30  ;;  %v621_v63 = vld [vmem:[#allocation7 + $0x560] sm:$0xff]  ;;  %v18462_v26 = vld [vmem:[#allocation200_spill] sm:$0xff] }
 0x198   :  { %18455 = vst [vmem:[#allocation156_spill] sm:$0xff] %v10541_v40  ;;  %18456 = vst [vmem:[#allocation270_spill] sm:$0xff] %v10544_v61  ;;  %v18460_v62 = vld [vmem:[#allocation157_spill] sm:$0xff]  ;;  %v10556_v22 = vmax.f32 %v18462_v26, 1e-30  ;;  %v18466_v45 = vld [vmem:[#allocation202_spill] sm:$0xff] }
 0x199   :  { %18458 = vst [vmem:[#allocation271_spill] sm:$0xff] %v10547_v5  ;;  %18459 = vst [vmem:[#allocation272_spill] sm:$0xff] %v10550_v60  ;;  %v10553_v54 = vmul.f32 %v18460_v62, %v616_v13  ;;  %v18464_v28 = vld [vmem:[#allocation201_spill] sm:$0xff]  ;;  %v10562_v25 = vmax.f32 %v18466_v45, 1e-30  ;;  %v622_v49 = vld [vmem:[#allocation7 + $0x568] sm:$0xff] }
 0x19a   :  { %18463 = vst [vmem:[#allocation273_spill] sm:$0xff] %v10556_v22  ;;  %v10559_v44 = vmax.f32 %v18464_v28, 1e-30  ;;  %v18468_v61 = vld [vmem:[#allocation158_spill] sm:$0xff]  ;;  %v10568_v46 = vmax.f32 %v10061_v52, 1e-30 }
 0x19b   :  { %18461 = vst [vmem:[#allocation157_spill] sm:$0xff] %v10553_v54  ;;  %18467 = vst [vmem:[#allocation275_spill] sm:$0xff] %v10562_v25  ;;  %v10565_v29 = vmul.f32 %v18468_v61, %v617_v0  ;;  %v18471_v60 = vld [vmem:[#allocation203_spill] sm:$0xff]  ;;  %v18473_v62 = vld [vmem:[#allocation50_spill] sm:$0xff]  ;;  %v10583_v25 = vmax.f32 %v10073_v35, 1e-30 }
 0x19c   :  { %18465 = vst [vmem:[#allocation274_spill] sm:$0xff] %v10559_v44  ;;  %18470 = vst [vmem:[#allocation276_spill] sm:$0xff] %v10568_v46  ;;  %v10571_v5 = vmax.f32 %v18471_v60, 1e-30  ;;  %v10574_v13 = vmax.f32 %v18473_v62, 1e-30 }
 0x19d   :  { %18469 = vst [vmem:[#allocation158_spill] sm:$0xff] %v10565_v29  ;;  %v623_v26 = vld [vmem:[#allocation7 + $0x570] sm:$0xff]  ;;  %v18477_v44 = vld [vmem:[#allocation52_spill] sm:$0xff]  ;;  %18479 = vst [vmem:[#allocation280_spill] sm:$0xff] %v10583_v25 }
 0x19e   :  { %18472 = vst [vmem:[#allocation277_spill] sm:$0xff] %v10571_v5  ;;  %18474 = vst [vmem:[#allocation278_spill] sm:$0xff] %v10574_v13  ;;  %v18475_v22 = vld [vmem:[#allocation159_spill] sm:$0xff]  ;;  %v10580_v45 = vmax.f32 %v18477_v44, 1e-30  ;;  %v18480_v61 = vld [vmem:[#allocation53_spill] sm:$0xff] }
 0x19f   :  { %v10577_v28 = vmul.f32 %v18475_v22, %v618_v57  ;;  %v10586_v0 = vmax.f32 %v18480_v61, 1e-30  ;;  %v624_v52 = vld [vmem:[#allocation7 + $0x578] sm:$0xff]  ;;  %v18484_v5 = vld [vmem:[#allocation55_spill] sm:$0xff]  ;;  %v18486_v13 = vld [vmem:[#allocation205_spill] sm:$0xff] }
 0x1a0   :  { %18478 = vst [vmem:[#allocation279_spill] sm:$0xff] %v10580_v45  ;;  %v18482_v46 = vld [vmem:[#allocation160_spill] sm:$0xff]  ;;  %v10592_v62 = vmax.f32 %v18484_v5, 1e-30  ;;  %v10595_v41 = vmax.f32 %v18486_v13, 1e-30 }
 0x1a1   :  { %18476 = vst [vmem:[#allocation159_spill] sm:$0xff] %v10577_v28  ;;  %18481 = vst [vmem:[#allocation281_spill] sm:$0xff] %v10586_v0  ;;  %v10589_v60 = vmul.f32 %v18482_v46, %v619_v39  ;;  %v18488_v22 = vld [vmem:[#allocation56_spill] sm:$0xff]  ;;  %v625_v44 = vld [vmem:[#allocation7 + $0x580] sm:$0xff] }
 0x1a2   :  { %18485 = vst [vmem:[#allocation282_spill] sm:$0xff] %v10592_v62  ;;  %18487 = vst [vmem:[#allocation283_spill] sm:$0xff] %v10595_v41  ;;  %v10598_v57 = vmax.f32 %v18488_v22, 1e-30  ;;  %v18490_v45 = vld [vmem:[#allocation161_spill] sm:$0xff]  ;;  %v18492_v25 = vld [vmem:[#allocation58_spill] sm:$0xff] }
 0x1a3   :  { %18483 = vst [vmem:[#allocation160_spill] sm:$0xff] %v10589_v60  ;;  %v10601_v35 = vmul.f32 %v18490_v45, %v620_v34  ;;  %v10604_v61 = vmax.f32 %v18492_v25, 1e-30  ;;  %v18494_v0 = vld [vmem:[#allocation206_spill] sm:$0xff]  ;;  %v18496_v46 = vld [vmem:[#allocation59_spill] sm:$0xff]  ;;  %v18503_v34 = vld [vmem:[#allocation64_spill] sm:$0xff] }
 0x1a4   :  { %18489 = vst [vmem:[#allocation284_spill] sm:$0xff] %v10598_v57  ;;  %v10607_v55 = vmax.f32 %v18494_v0, 1e-30  ;;  %v10610_v39 = vmax.f32 %v18496_v46, 1e-30  ;;  %v626_v5 = vld [vmem:[#allocation7 + $0x588] sm:$0xff] }
 0x1a5   :  { %18491 = vst [vmem:[#allocation161_spill] sm:$0xff] %v10601_v35  ;;  %18493 = vst [vmem:[#allocation285_spill] sm:$0xff] %v10604_v61  ;;  %v18498_v62 = vld [vmem:[#allocation162_spill] sm:$0xff]  ;;  %v10616_v22 = vmax.f32 %v10097_v50, 1e-30  ;;  %v627_v25 = vld [vmem:[#allocation7 + $0x590] sm:$0xff] }
 0x1a6   :  { %18495 = vst [vmem:[#allocation286_spill] sm:$0xff] %v10607_v55  ;;  %18497 = vst [vmem:[#allocation287_spill] sm:$0xff] %v10610_v39  ;;  %v10613_v13 = vmul.f32 %v18498_v62, %v621_v63  ;;  %v18501_v57 = vld [vmem:[#allocation62_spill] sm:$0xff]  ;;  %v10622_v45 = vmax.f32 %v18503_v34, 1e-30  ;;  %v18505_v61 = vld [vmem:[#allocation164_spill] sm:$0xff] }
 0x1a7   :  { %18500 = vst [vmem:[#allocation288_spill] sm:$0xff] %v10616_v22  ;;  %v10619_v41 = vmax.f32 %v18501_v57, 1e-30  ;;  %v10625_v0 = vmul.f32 %v18505_v61, %v622_v49  ;;  %v18507_v55 = vld [vmem:[#allocation65_spill] sm:$0xff]  ;;  %v10631_v39 = vmax.f32 %v10109_v3, 1e-30 }
 0x1a8   :  { %18499 = vst [vmem:[#allocation162_spill] sm:$0xff] %v10613_v13  ;;  %18504 = vst [vmem:[#allocation290_spill] sm:$0xff] %v10622_v45  ;;  %v10628_v46 = vmax.f32 %v18507_v55, 1e-30  ;;  %v18510_v63 = vld [vmem:[#allocation68_spill] sm:$0xff]  ;;  %v18512_v22 = vld [vmem:[#allocation165_spill] sm:$0xff] }
 0x1a9   :  { %18502 = vst [vmem:[#allocation289_spill] sm:$0xff] %v10619_v41  ;;  %18506 = vst [vmem:[#allocation164_spill] sm:$0xff] %v10625_v0  ;;  %v10634_v62 = vmax.f32 %v18510_v63, 1e-30  ;;  %v628_v50 = vld [vmem:[#allocation7 + $0x598] sm:$0xff]  ;;  %v10637_v57 = vmul.f32 %v18512_v22, %v623_v26  ;;  %v18514_v41 = vld [vmem:[#allocation70_spill] sm:$0xff] }
 0x1aa   :  { %18508 = vst [vmem:[#allocation291_spill] sm:$0xff] %v10628_v46  ;;  %18509 = vst [vmem:[#allocation292_spill] sm:$0xff] %v10631_v39  ;;  %v10640_v34 = vmax.f32 %v18514_v41, 1e-30  ;;  %v18516_v45 = vld [vmem:[#allocation71_spill] sm:$0xff]  ;;  %v629_v61 = vld [vmem:[#allocation7 + $0x5a0] sm:$0xff] }
 0x1ab   :  { %18511 = vst [vmem:[#allocation293_spill] sm:$0xff] %v10634_v62  ;;  %18513 = vst [vmem:[#allocation165_spill] sm:$0xff] %v10637_v57  ;;  %v10643_v31 = vmax.f32 %v18516_v45, 1e-30  ;;  %v10646_v49 = vmax.f32 %v10121_v27, 1e-30 }
 0x1ac   :  { %18515 = vst [vmem:[#allocation294_spill] sm:$0xff] %v10640_v34  ;;  %v18519_v55 = vld [vmem:[#allocation166_spill] sm:$0xff]  ;;  %v18523_v62 = vld [vmem:[#allocation76_spill] sm:$0xff]  ;;  %v18525_v26 = vld [vmem:[#allocation77_spill] sm:$0xff]  ;;  %v10664_v27 = vmax.f32 %v10133_v12, 1e-30 }
 0x1ad   :  { %18517 = vst [vmem:[#allocation295_spill] sm:$0xff] %v10643_v31  ;;  %18518 = vst [vmem:[#allocation296_spill] sm:$0xff] %v10646_v49  ;;  %v10649_v3 = vmul.f32 %v18519_v55, %v624_v52  ;;  %v18521_v39 = vld [vmem:[#allocation74_spill] sm:$0xff]  ;;  %v10655_v46 = vmax.f32 %v18523_v62, 1e-30  ;;  %v18527_v34 = vld [vmem:[#allocation167_spill] sm:$0xff] }
 0x1ae   :  { %v10652_v63 = vmax.f32 %v18521_v39, 1e-30  ;;  %v10658_v22 = vmax.f32 %v18525_v26, 1e-30  ;;  %v630_v41 = vld [vmem:[#allocation7 + $0x5a8] sm:$0xff]  ;;  %v10661_v45 = vmul.f32 %v18527_v34, %v625_v44  ;;  %18529 = vst [vmem:[#allocation300_spill] sm:$0xff] %v10664_v27 }
 0x1af   :  { %18520 = vst [vmem:[#allocation166_spill] sm:$0xff] %v10649_v3  ;;  %18524 = vst [vmem:[#allocation298_spill] sm:$0xff] %v10655_v46  ;;  %v18530_v49 = vld [vmem:[#allocation80_spill] sm:$0xff]  ;;  %v18532_v52 = vld [vmem:[#allocation82_spill] sm:$0xff] }
 0x1b0   :  { %18522 = vst [vmem:[#allocation297_spill] sm:$0xff] %v10652_v63  ;;  %18526 = vst [vmem:[#allocation299_spill] sm:$0xff] %v10658_v22  ;;  %v10667_v31 = vmax.f32 %v18530_v49, 1e-30  ;;  %v10670_v55 = vmax.f32 %v18532_v52, 1e-30 }
 0x1b1   :  { %18528 = vst [vmem:[#allocation167_spill] sm:$0xff] %v10661_v45  ;;  %v631_v39 = vld [vmem:[#allocation7 + $0x5b0] sm:$0xff]  ;;  %v18534_v63 = vld [vmem:[#allocation168_spill] sm:$0xff]  ;;  %v10679_v22 = vmax.f32 %v10145_v33, 1e-30  ;;  %v18539_v44 = vld [vmem:[#allocation86_spill] sm:$0xff] }
 0x1b2   :  { %18531 = vst [vmem:[#allocation301_spill] sm:$0xff] %v10667_v31  ;;  %18533 = vst [vmem:[#allocation302_spill] sm:$0xff] %v10670_v55  ;;  %v10673_v62 = vmul.f32 %v18534_v63, %v626_v5  ;;  %v18536_v46 = vld [vmem:[#allocation83_spill] sm:$0xff]  ;;  %v10682_v34 = vmax.f32 %v18539_v44, 1e-30  ;;  %v18541_v12 = vld [vmem:[#allocation169_spill] sm:$0xff] }
 0x1b3   :  { %v10676_v26 = vmax.f32 %v18536_v46, 1e-30  ;;  %18538 = vst [vmem:[#allocation304_spill] sm:$0xff] %v10679_v22  ;;  %v10685_v27 = vmul.f32 %v18541_v12, %v627_v25  ;;  %v18543_v49 = vld [vmem:[#allocation88_spill] sm:$0xff]  ;;  %v18545_v52 = vld [vmem:[#allocation89_spill] sm:$0xff]  ;;  %v18548_v63 = vld [vmem:[#allocation170_spill] sm:$0xff] }
 0x1b4   :  { %18535 = vst [vmem:[#allocation168_spill] sm:$0xff] %v10673_v62  ;;  %18540 = vst [vmem:[#allocation305_spill] sm:$0xff] %v10682_v34  ;;  %v10688_v31 = vmax.f32 %v18543_v49, 1e-30  ;;  %v10691_v55 = vmax.f32 %v18545_v52, 1e-30  ;;  %v10697_v46 = vmul.f32 %v18548_v63, %v628_v50 }
 0x1b5   :  { %18537 = vst [vmem:[#allocation303_spill] sm:$0xff] %v10676_v26  ;;  %18542 = vst [vmem:[#allocation169_spill] sm:$0xff] %v10685_v27  ;;  %v10694_v5 = vmax.f32 %v10157_v36, 1e-30  ;;  %v18550_v33 = vld [vmem:[#allocation92_spill] sm:$0xff]  ;;  %v18552_v44 = vld [vmem:[#allocation93_spill] sm:$0xff] }
 0x1b6   :  { %18544 = vst [vmem:[#allocation306_spill] sm:$0xff] %v10688_v31  ;;  %18546 = vst [vmem:[#allocation307_spill] sm:$0xff] %v10691_v55  ;;  %v10700_v22 = vmax.f32 %v18550_v33, 1e-30  ;;  %v10703_v34 = vmax.f32 %v18552_v44, 1e-30 }
 0x1b7   :  { %18547 = vst [vmem:[#allocation308_spill] sm:$0xff] %v10694_v5  ;;  %18549 = vst [vmem:[#allocation170_spill] sm:$0xff] %v10697_v46  ;;  %v632_v25 = vld [vmem:[#allocation7 + $0x5b8] sm:$0xff]  ;;  %v18554_v49 = vld [vmem:[#allocation171_spill] sm:$0xff]  ;;  %v10713_v36 = vmax.f32 %v10169_v19, 1e-30 }
 0x1b8   :  { %18551 = vst [vmem:[#allocation309_spill] sm:$0xff] %v10700_v22  ;;  %18553 = vst [vmem:[#allocation310_spill] sm:$0xff] %v10703_v34  ;;  %v10707_v31 = vmul.f32 %v18554_v49, %v629_v61  ;;  %v18556_v52 = vld [vmem:[#allocation94_spill] sm:$0xff]  ;;  %v18559_v63 = vld [vmem:[#allocation172_spill] sm:$0xff]  ;;  %v10732_v19 = vmax.f32 %v10181_v56, 1e-30 }
 0x1b9   :  { %v10710_v55 = vmax.f32 %v18556_v52, 1e-30  ;;  %18558 = vst [vmem:[#allocation312_spill] sm:$0xff] %v10713_v36  ;;  %v10717_v33 = vmul.f32 %v18559_v63, %v630_v41  ;;  %v18561_v22 = vld [vmem:[#allocation96_spill] sm:$0xff]  ;;  %v18563_v34 = vld [vmem:[#allocation97_spill] sm:$0xff]  ;;  %v18565_v5 = vld [vmem:[#allocation98_spill] sm:$0xff] }
 0x1ba   :  { %18555 = vst [vmem:[#allocation171_spill] sm:$0xff] %v10707_v31  ;;  %v10720_v44 = vmax.f32 %v18561_v22, 1e-30  ;;  %v10723_v12 = vmax.f32 %v18563_v34, 1e-30  ;;  %v633_v61 = vld [vmem:[#allocation7 + $0x5c0] sm:$0xff] }
 0x1bb   :  { %18557 = vst [vmem:[#allocation311_spill] sm:$0xff] %v10710_v55  ;;  %18560 = vst [vmem:[#allocation172_spill] sm:$0xff] %v10717_v33  ;;  %v10726_v49 = vmax.f32 %v18565_v5, 1e-30  ;;  %v18567_v52 = vld [vmem:[#allocation173_spill] sm:$0xff]  ;;  %v634_v63 = vld [vmem:[#allocation7 + $0x5c8] sm:$0xff] }
 0x1bc   :  { %18562 = vst [vmem:[#allocation313_spill] sm:$0xff] %v10720_v44  ;;  %18564 = vst [vmem:[#allocation314_spill] sm:$0xff] %v10723_v12  ;;  %v10729_v55 = vmul.f32 %v18567_v52, %v631_v39  ;;  %v18570_v50 = vld [vmem:[#allocation101_spill] sm:$0xff]  ;;  %v18572_v22 = vld [vmem:[#allocation102_spill] sm:$0xff]  ;;  %v10745_v5 = vmax.f32 %v10193_v23, 1e-30 }
 0x1bd   :  { %18566 = vst [vmem:[#allocation315_spill] sm:$0xff] %v10726_v49  ;;  %18569 = vst [vmem:[#allocation316_spill] sm:$0xff] %v10732_v19  ;;  %v10735_v36 = vmax.f32 %v18570_v50, 1e-30  ;;  %v10739_v44 = vmax.f32 %v18572_v22, 1e-30 }
 0x1be   :  { %18568 = vst [vmem:[#allocation173_spill] sm:$0xff] %v10729_v55  ;;  %v18574_v34 = vld [vmem:[#allocation103_spill] sm:$0xff]  ;;  %18576 = vst [vmem:[#allocation320_spill] sm:$0xff] %v10745_v5  ;;  %v18577_v39 = vand.u32 2147483647, %v10262_v24  ;;  %v18578_v56 = vld [vmem:[#allocation105_spill] sm:$0xff] }
 0x1bf   :  { %18571 = vst [vmem:[#allocation317_spill] sm:$0xff] %v10735_v36  ;;  %18573 = vst [vmem:[#allocation318_spill] sm:$0xff] %v10739_v44  ;;  %v10742_v12 = vmax.f32 %v18574_v34, 1e-30  ;;  %v635_v52 = vld [vmem:[#allocation7 + $0x5d0] sm:$0xff]  ;;  %v18580_v50 = vld [vmem:[#allocation106_spill] sm:$0xff] }
 0x1c0   :  { %7595 = vlog2.f32 %v18577_v39  ;;  %v10750_v19 = vmax.f32 %v18578_v56, 1e-30  ;;  %v10753_v36 = vmax.f32 %v18580_v50, 1e-30  ;;  %v18582_v41 = vld [vmem:[#allocation107_spill] sm:$0xff]  ;;  %v636_v34 = vld [vmem:[#allocation7 + $0x5d8] sm:$0xff] }
 0x1c1   :  { %18575 = vst [vmem:[#allocation319_spill] sm:$0xff] %v10742_v12  ;;  %v10756_v49 = vmax.f32 %v18582_v41, 1e-30  ;;  %v18584_v22 = vand.u32 2147483647, %v10268_v37  ;;  %v18585_v12 = vld [vmem:[#allocation174_spill] sm:$0xff] }
 0x1c2   :  { %18579 = vst [vmem:[#allocation321_spill] sm:$0xff] %v10750_v19  ;;  %18581 = vst [vmem:[#allocation322_spill] sm:$0xff] %v10753_v36  ;;  %v10761_v23 = vmul.f32 %v18585_v12, %v632_v25  ;;  %v10764_v5 = vmax.f32 %v10205_v10, 1e-30  ;;  %v18588_v39 = vld [vmem:[#allocation110_spill] sm:$0xff]  ;;  %v18590_v56 = vld [vmem:[#allocation111_spill] sm:$0xff] }
 0x1c3   :  { %18583 = vst [vmem:[#allocation323_spill] sm:$0xff] %v10756_v49  ;;  %7597 = vlog2.f32 %v18584_v22  ;;  %v10767_v44 = vmax.f32 %v18588_v39, 1e-30  ;;  %v10770_v19 = vmax.f32 %v18590_v56, 1e-30  ;;  %v18592_v50 = vld [vmem:[#allocation112_spill] sm:$0xff] }
 0x1c4   :  { %18586 = vst [vmem:[#allocation174_spill] sm:$0xff] %v10761_v23  ;;  %18587 = vst [vmem:[#allocation324_spill] sm:$0xff] %v10764_v5  ;;  %v10773_v36 = vmax.f32 %v18592_v50, 1e-30  ;;  %v10776_v41 = vmax.f32 %v10217_v9, 1e-30 }
 0x1c5   :  { %18589 = vst [vmem:[#allocation325_spill] sm:$0xff] %v10767_v44  ;;  %18591 = vst [vmem:[#allocation326_spill] sm:$0xff] %v10770_v19  ;;  %v10779_v22 = vmax.f32 %v10220_v11, 1e-30  ;;  %v18596_v12 = vand.u32 2147483647, %v10271_v59 }
 0x1c6   :  { %18593 = vst [vmem:[#allocation327_spill] sm:$0xff] %v10773_v36  ;;  %18594 = vst [vmem:[#allocation328_spill] sm:$0xff] %v10776_v41  ;;  %v18597_v25 = vld [vmem:[#allocation175_spill] sm:$0xff]  ;;  %v10787_v39 = vmax.f32 %v10223_v16, 1e-30  ;;  %v18600_v56 = vld [vmem:[#allocation116_spill] sm:$0xff] }
 0x1c7   :  { %18595 = vst [vmem:[#allocation329_spill] sm:$0xff] %v10779_v22  ;;  %7599 = vlog2.f32 %v18596_v12  ;;  %v10784_v10 = vmul.f32 %v18597_v25, %v633_v61  ;;  %v10790_v19 = vmax.f32 %v18600_v56, 1e-30  ;;  %v18602_v36 = vld [vmem:[#allocation176_spill] sm:$0xff]  ;;  %v10797_v11 = vmax.f32 %v10229_v8, 1e-30 }
 0x1c8   :  { %18599 = vst [vmem:[#allocation330_spill] sm:$0xff] %v10787_v39  ;;  %v10794_v9 = vmul.f32 %v18602_v36, %v634_v63  ;;  %v10800_v22 = vmax.f32 %v10232_v20, 1e-30  ;;  %v18606_v12 = vld [vmem:[#allocation207_spill] sm:$0xff]  ;;  %v18607_v25 = vld [vmem:[#allocation177_spill] sm:$0xff]  ;;  %v18609_v16 = vld [vmem:[#allocation120_spill] sm:$0xff] }
 0x1c9   :  { %18598 = vst [vmem:[#allocation175_spill] sm:$0xff] %v10784_v10  ;;  %18601 = vst [vmem:[#allocation331_spill] sm:$0xff] %v10790_v19  ;;  %v10804_v41 = vmul.f32 %v18607_v25, %v635_v52  ;;  %v10807_v39 = vmax.f32 %v18609_v16, 1e-30  ;;  %v18611_v56 = vld [vmem:[#allocation121_spill] sm:$0xff]  ;;  %v18613_v50 = vld [vmem:[#allocation208_spill] sm:$0xff] }
 0x1ca   :  { %18603 = vst [vmem:[#allocation176_spill] sm:$0xff] %v10794_v9  ;;  %18604 = vst [vmem:[#allocation332_spill] sm:$0xff] %v10797_v11  ;;  %v10810_v19 = vmax.f32 %v18611_v56, 1e-30  ;;  %v18614_v63 = vld [vmem:[#allocation178_spill] sm:$0xff]  ;;  %v18618_v20 = vld [vmem:[#allocation123_spill] sm:$0xff] }
 0x1cb   :  { %18605 = vst [vmem:[#allocation333_spill] sm:$0xff] %v10800_v22  ;;  %18608 = vst [vmem:[#allocation207_spill] sm:$0xff] %v10804_v41  ;;  %v10814_v44 = vmul.f32 %v18614_v63, %v636_v34  ;;  %v18616_v8 = vld [vmem:[#allocation122_spill] sm:$0xff]  ;;  %v10820_v22 = vmax.f32 %v18618_v20, 1e-30  ;;  %v18620_v61 = vld [vmem:[#allocation209_spill] sm:$0xff] }
 0x1cc   :  { %18610 = vst [vmem:[#allocation177_spill] sm:$0xff] %v10807_v39  ;;  %18612 = vst [vmem:[#allocation334_spill] sm:$0xff] %v10810_v19  ;;  %v10817_v11 = vmax.f32 %v18616_v8, 1e-30  ;;  %v637_v25 = vld [vmem:[#allocation7 + $0x5e0] sm:$0xff]  ;;  %v18621_v5 = vld [vmem:[#allocation124_spill] sm:$0xff] }
 0x1cd   :  { %18615 = vst [vmem:[#allocation208_spill] sm:$0xff] %v10814_v44  ;;  %18619 = vst [vmem:[#allocation335_spill] sm:$0xff] %v10820_v22  ;;  %v10824_v16 = vmax.f32 %v18621_v5, 1e-30  ;;  %v18623_v39 = vld [vmem:[#allocation125_spill] sm:$0xff]  ;;  %v18626_v34 = vld [vmem:[#allocation210_spill] sm:$0xff] }
 0x1ce   :  { %18617 = vst [vmem:[#allocation178_spill] sm:$0xff] %v10817_v11  ;;  %v10827_v56 = vmax.f32 %v18623_v39, 1e-30  ;;  %v18625_v36 = vand.u32 2147483647, %v10274_v32  ;;  %v18627_v19 = vld [vmem:[#allocation126_spill] sm:$0xff]  ;;  %vm2798_vm13 = vcmp.ne.f32.partialorder %v18626_v34, %v18626_v34 }
 0x1cf   :  { %18622 = vst [vmem:[#allocation209_spill] sm:$0xff] %v10824_v16  ;;  %v10833_v8 = vmax.f32 %v18627_v19, 1e-30  ;;  %v18629_v11 = vld [vmem:[#allocation128_spill] sm:$0xff]  ;;  %v18631_v22 = vld [vmem:[#allocation129_spill] sm:$0xff]  ;;  %v18634_v16 = vld [vmem:[#allocation130_spill] sm:$0xff] }
 0x1d0   :  { %18624 = vst [vmem:[#allocation336_spill] sm:$0xff] %v10827_v56  ;;  %7601 = vlog2.f32 %v18625_v36  ;;  %v10836_v20 = vmax.f32 %v18629_v11, 1e-30  ;;  %v10839_v52 = vmax.f32 %v18631_v22, 1e-30  ;;  %v18636_v56 = vld [vmem:[#allocation131_spill] sm:$0xff] }
 0x1d1   :  { %18628 = vst [vmem:[#allocation210_spill] sm:$0xff] %v10833_v8  ;;  %v18633_v5 = vand.u32 2147483647, %v18606_v12  ;;  %v10844_v39 = vmax.f32 %v18634_v16, 1e-30  ;;  %v18639_v63 = vld [vmem:[#allocation211_spill] sm:$0xff] }
 0x1d2   :  { %18630 = vst [vmem:[#allocation337_spill] sm:$0xff] %v10836_v20  ;;  %18632 = vst [vmem:[#allocation338_spill] sm:$0xff] %v10839_v52  ;;  %v10847_v49 = vmax.f32 %v18636_v56, 1e-30  ;;  %v18638_v36 = vand.u32 2147483647, %v18613_v50 }
 0x1d3   :  { %7603 = vlog2.f32 %v18633_v5  ;;  %18635 = vst [vmem:[#allocation339_spill] sm:$0xff] %v10844_v39  ;;  %v638_v8 = vld [vmem:[#allocation7 + $0x5e8] sm:$0xff]  ;;  %v18640_v11 = vld [vmem:[#allocation132_spill] sm:$0xff]  ;;  %v18642_v22 = vld [vmem:[#allocation133_spill] sm:$0xff]  ;;  %v18644_v5 = vand.u32 2147483647, %v18620_v61 }
 0x1d4   :  { %18637 = vst [vmem:[#allocation340_spill] sm:$0xff] %v10847_v49  ;;  %7605 = vlog2.f32 %v18638_v36  ;;  %v10853_v20 = vmax.f32 %v18640_v11, 1e-30  ;;  %v10856_v52 = vmax.f32 %v18642_v22, 1e-30  ;;  %v18645_v16 = vld [vmem:[#allocation212_spill] sm:$0xff] }
 0x1d5   :  { %7607 = vlog2.f32 %v18644_v5  ;;  %v18646_v26 = vld [vmem:[#allocation134_spill] sm:$0xff]  ;;  %v18648_v49 = vld [vmem:[#allocation135_spill] sm:$0xff]  ;;  %v18650_v36 = vld [vmem:[#allocation137_spill] sm:$0xff]  ;;  %v18652_v11 = vand.u32 2147483647, %v18626_v34  ;;  %vm2707_vm15 = vcmp.lt.f32.partialorder %v18606_v12, 0 }
 0x1d6   :  { %18641 = vst [vmem:[#allocation211_spill] sm:$0xff] %v10853_v20  ;;  %18643 = vst [vmem:[#allocation341_spill] sm:$0xff] %v10856_v52  ;;  %v10862_v56 = vmax.f32 %v18646_v26, 1e-30  ;;  %v10865_v15 = vmax.f32 %v18648_v49, 1e-30  ;;  %v7596_v20 = vpop.eup %7595 }
 0x1d7   :  { %v10868_v19 = vmax.f32 %v18650_v36, 1e-30  ;;  %7609 = vlog2.f32 %v18652_v11  ;;  %v639_v22 = vld [vmem:[#allocation7 + $0x5f0] sm:$0xff]  ;;  %v18655_v5 = vld [vmem:[#allocation138_spill] sm:$0xff]  ;;  %v640_v21 = vld [vmem:[#allocation7 + $0x5f8] sm:$0xff]  ;;  %vm2733_vm12 = vcmp.lt.f32.partialorder %v18613_v50, 0 }
 0x1d8   :  { %18647 = vst [vmem:[#allocation212_spill] sm:$0xff] %v10862_v56  ;;  %18649 = vst [vmem:[#allocation342_spill] sm:$0xff] %v10865_v15  ;;  %v18653_v52 = vld [vmem:[#allocation179_spill] sm:$0xff]  ;;  %v10876_v2 = vmax.f32 %v18655_v5, 1e-30  ;;  %v18659_v56 = vld [vmem:[#allocation213_spill] sm:$0xff]  ;;  %v7598_v15 = vpop.eup %7597 }
 0x1d9   :  { %18651 = vst [vmem:[#allocation343_spill] sm:$0xff] %v10868_v19  ;;  %v10873_v38 = vmul.f32 %v18653_v52, %v637_v25  ;;  %v18657_v39 = vld [vmem:[#allocation139_spill] sm:$0xff]  ;;  %v18660_v36 = vld [vmem:[#allocation140_spill] sm:$0xff]  ;;  %v18662_v17 = vld [vmem:[#allocation141_spill] sm:$0xff]  ;;  %v18666_v52 = vand.u32 2147483647, %v18639_v63 }
 0x1da   :  { %18656 = vst [vmem:[#allocation344_spill] sm:$0xff] %v10876_v2  ;;  %v10879_v26 = vmax.f32 %v18657_v39, 1e-30  ;;  %v10883_v19 = vmax.f32 %v18660_v36, 1e-30  ;;  %v18664_v48 = vld [vmem:[#allocation142_spill] sm:$0xff] }
 0x1db   :  { %18654 = vst [vmem:[#allocation179_spill] sm:$0xff] %v10873_v38  ;;  %v10886_v11 = vmax.f32 %v18662_v17, 1e-30  ;;  %v10889_v51 = vmax.f32 %v18664_v48, 1e-30  ;;  %7611 = vlog2.f32 %v18666_v52  ;;  %v18667_v25 = vld [vmem:[#allocation143_spill] sm:$0xff]  ;;  %v7600_v17 = vpop.eup %7599 }
 0x1dc   :  { %18658 = vst [vmem:[#allocation345_spill] sm:$0xff] %v10879_v26  ;;  %18661 = vst [vmem:[#allocation213_spill] sm:$0xff] %v10883_v19  ;;  %v10894_v5 = vmax.f32 %v18667_v25, 1e-30  ;;  %v18669_v39 = vld [vmem:[#allocation144_spill] sm:$0xff] }
 0x1dd   :  { %18663 = vst [vmem:[#allocation346_spill] sm:$0xff] %v10886_v11  ;;  %18665 = vst [vmem:[#allocation347_spill] sm:$0xff] %v10889_v51  ;;  %v10897_v26 = vmax.f32 %v18669_v39, 1e-30  ;;  %v10900_v49 = vmax.f32 %v10433_v6, 1e-30 }
 0x1de   :  { %18668 = vst [vmem:[#allocation348_spill] sm:$0xff] %v10894_v5  ;;  %v18672_v36 = vand.u32 2147483647, %v18645_v16  ;;  %v18673_v11 = vld [vmem:[#allocation180_spill] sm:$0xff]  ;;  %v10908_v48 = vmax.f32 %v10445_v18, 1e-30  ;;  %v7602_v18 = vpop.eup %7601 }
 0x1df   :  { %18670 = vst [vmem:[#allocation349_spill] sm:$0xff] %v10897_v26  ;;  %18671 = vst [vmem:[#allocation350_spill] sm:$0xff] %v10900_v49  ;;  %v10905_v19 = vmul.f32 %v18673_v11, %v638_v8  ;;  %v10911_v52 = vmax.f32 %v10457_v42, 1e-30  ;;  %v2601_v25 = vmul.f32 0.1, %v7596_v20 }
 0x1e0   :  { %7613 = vlog2.f32 %v18672_v36  ;;  %18675 = vst [vmem:[#allocation351_spill] sm:$0xff] %v10908_v48  ;;  %v10914_v39 = vmax.f32 %v10469_v53, 1e-30  ;;  %v10917_v6 = vmax.f32 %v10481_v4, 1e-30  ;;  %v18680_v26 = vld [vmem:[#allocation181_spill] sm:$0xff] }
 0x1e1   :  { %18674 = vst [vmem:[#allocation180_spill] sm:$0xff] %v10905_v19  ;;  %18676 = vst [vmem:[#allocation352_spill] sm:$0xff] %v10911_v52  ;;  %v2627_v49 = vmul.f32 0.1, %v7598_v15  ;;  %v18679_v36 = vand.u32 2147483647, %v18659_v56  ;;  %v10922_v8 = vmul.f32 %v18680_v26, %v639_v22 }
 0x1e2   :  { %18677 = vst [vmem:[#allocation353_spill] sm:$0xff] %v10914_v39  ;;  %18678 = vst [vmem:[#allocation354_spill] sm:$0xff] %v10917_v6  ;;  %v10925_v11 = vmax.f32 %v10493_v7, 1e-30  ;;  %v10928_v42 = vmax.f32 %v10505_v30, 1e-30 }
 0x1e3   :  { %7615 = vlog2.f32 %v18679_v36  ;;  %18681 = vst [vmem:[#allocation181_spill] sm:$0xff] %v10922_v8  ;;  %v18684_v20 = vld [vmem:[#allocation214_spill] sm:$0xff]  ;;  %v10935_v4 = vmax.f32 %v10517_v1, 1e-30  ;;  %v10938_v15 = vmax.f32 %v10529_v58, 1e-30 }
 0x1e4   :  { %18682 = vst [vmem:[#allocation355_spill] sm:$0xff] %v10925_v11  ;;  %18683 = vst [vmem:[#allocation356_spill] sm:$0xff] %v10928_v42  ;;  %v18685_v53 = vld [vmem:[#allocation182_spill] sm:$0xff]  ;;  %v2653_v36 = vmul.f32 0.1, %v7600_v17  ;;  %7617 = vpow2.f32 %v2601_v25  ;;  %v18691_v30 = vld [vmem:[#allocation215_spill] sm:$0xff]  ;;  %v7604_v17 = vpop.eup %7603 }
 0x1e5   :  { %v10932_v39 = vmul.f32 %v18685_v53, %v640_v21  ;;  %18687 = vst [vmem:[#allocation182_spill] sm:$0xff] %v10935_v4  ;;  %18688 = vst [vmem:[#allocation357_spill] sm:$0xff] %v10938_v15  ;;  %v10941_v26 = vmax.f32 %v10541_v40, 1e-30  ;;  %v10944_v22 = vmax.f32 %v10553_v54, 1e-30  ;;  %7619 = vpow2.f32 %v2627_v49 }
 0x1e6   :  { %v10948_v53 = vmax.f32 %v10565_v29, 1e-30  ;;  %v10951_v21 = vmax.f32 %v10577_v28, 1e-30  ;;  %v18694_v58 = vld [vmem:[#allocation216_spill] sm:$0xff]  ;;  %v18698_v7 = vld [vmem:[#allocation217_spill] sm:$0xff]  ;;  %v7606_v29 = vpop.eup %7605 }
 0x1e7   :  { %18686 = vst [vmem:[#allocation214_spill] sm:$0xff] %v10932_v39  ;;  %18689 = vst [vmem:[#allocation358_spill] sm:$0xff] %v10941_v26  ;;  %v10955_v40 = vmax.f32 %v10589_v60, 1e-30  ;;  %v10958_v54 = vmax.f32 %v10601_v35, 1e-30  ;;  %v7608_v60 = vpop.eup %7607 }
 0x1e8   :  { %18690 = vst [vmem:[#allocation359_spill] sm:$0xff] %v10944_v22  ;;  %18692 = vst [vmem:[#allocation215_spill] sm:$0xff] %v10948_v53  ;;  %v18697_v25 = vand.u32 2147483647, %v18684_v20  ;;  %v10964_v53 = vmax.f32 %v10613_v13, 1e-30 }
 0x1e9   :  { %18693 = vst [vmem:[#allocation360_spill] sm:$0xff] %v10951_v21  ;;  %18695 = vst [vmem:[#allocation216_spill] sm:$0xff] %v10955_v40  ;;  %v10967_v49 = vmax.f32 %v10625_v0, 1e-30  ;;  %v18701_v1 = vld [vmem:[#allocation218_spill] sm:$0xff] }
 0x1ea   :  { %18696 = vst [vmem:[#allocation361_spill] sm:$0xff] %v10958_v54  ;;  %7621 = vlog2.f32 %v18697_v25  ;;  %18699 = vst [vmem:[#allocation217_spill] sm:$0xff] %v10964_v53  ;;  %v10971_v40 = vmax.f32 %v10637_v57, 1e-30  ;;  %v10974_v35 = vmax.f32 %v10649_v3, 1e-30  ;;  %v7610_v54 = vpop.eup %7609 }
 0x1eb   :  { %18700 = vst [vmem:[#allocation362_spill] sm:$0xff] %v10967_v49  ;;  %7623 = vpow2.f32 %v2653_v36  ;;  %v2679_v25 = vmul.f32 0.1, %v7602_v18  ;;  %v18704_v22 = vand.u32 2147483647, %v18691_v30 }
 0x1ec   :  { %18702 = vst [vmem:[#allocation218_spill] sm:$0xff] %v10971_v40  ;;  %18703 = vst [vmem:[#allocation363_spill] sm:$0xff] %v10974_v35  ;;  %v10979_v13 = vmax.f32 %v10661_v45, 1e-30  ;;  %v10982_v0 = vmax.f32 %v10673_v62, 1e-30  ;;  %v7612_v35 = vpop.eup %7611 }
 0x1ed   :  { %7625 = vlog2.f32 %v18704_v22  ;;  %v2705_v36 = vmul.f32 0.1, %v7604_v17  ;;  %v18707_v28 = vand.u32 2147483647, %v18694_v58  ;;  %v10987_v57 = vmax.f32 %v10685_v27, 1e-30  ;;  %v7614_v27 = vpop.eup %7613 }
 0x1ee   :  { %18705 = vst [vmem:[#allocation364_spill] sm:$0xff] %v10979_v13  ;;  %18706 = vst [vmem:[#allocation365_spill] sm:$0xff] %v10982_v0  ;;  %v10990_v3 = vmax.f32 %v10697_v46, 1e-30  ;;  %v2731_v18 = vmul.f32 0.1, %v7606_v29 }
 0x1ef   :  { %7627 = vlog2.f32 %v18707_v28  ;;  %18708 = vst [vmem:[#allocation366_spill] sm:$0xff] %v10987_v57  ;;  %v18710_v22 = vand.u32 2147483647, %v18698_v7  ;;  %v10995_v45 = vmax.f32 %v10707_v31, 1e-30 }
 0x1f0   :  { %18709 = vst [vmem:[#allocation367_spill] sm:$0xff] %v10990_v3  ;;  %v10998_v62 = vmax.f32 %v10717_v33, 1e-30  ;;  %v2757_v17 = vmul.f32 0.1, %v7608_v60  ;;  %v18718_v60 = vld [vmem:[#allocation219_spill] sm:$0xff] }
 0x1f1   :  { %7629 = vlog2.f32 %v18710_v22  ;;  %18711 = vst [vmem:[#allocation368_spill] sm:$0xff] %v10995_v45  ;;  %v18713_v28 = vand.u32 2147483647, %v18701_v1  ;;  %v11003_v57 = vmax.f32 %v10729_v55, 1e-30 }
 0x1f2   :  { %18712 = vst [vmem:[#allocation369_spill] sm:$0xff] %v10998_v62  ;;  %v11006_v29 = vmax.f32 %v10761_v23, 1e-30  ;;  %v2783_v22 = vmul.f32 0.1, %v7610_v54  ;;  %v7616_v62 = vpop.eup %7615 }
 0x1f3   :  { %7631 = vlog2.f32 %v18713_v28  ;;  %18714 = vst [vmem:[#allocation370_spill] sm:$0xff] %v11003_v57  ;;  %v11009_v46 = vmax.f32 %v10784_v10, 1e-30  ;;  %v11012_v31 = vmax.f32 %v10794_v9, 1e-30  ;;  %v7618_v10 = vpop.eup %7617 }
 0x1f4   :  { %18715 = vst [vmem:[#allocation371_spill] sm:$0xff] %v11006_v29  ;;  %7633 = vpow2.f32 %v2679_v25  ;;  %v11016_v28 = vmax.f32 %v10804_v41, 1e-30  ;;  %v11019_v55 = vmax.f32 %v10814_v44, 1e-30  ;;  %v18725_v41 = vld [vmem:[#allocation220_spill] sm:$0xff] }
 0x1f5   :  { %18716 = vst [vmem:[#allocation372_spill] sm:$0xff] %v11009_v46  ;;  %18717 = vst [vmem:[#allocation373_spill] sm:$0xff] %v11012_v31  ;;  %7635 = vpow2.f32 %v2705_v36  ;;  %v2809_v23 = vmul.f32 0.1, %v7612_v35  ;;  %v11022_v54 = vmax.f32 %v10873_v38, 1e-30 }
 0x1f6   :  { %18719 = vst [vmem:[#allocation219_spill] sm:$0xff] %v11016_v28  ;;  %18720 = vst [vmem:[#allocation374_spill] sm:$0xff] %v11019_v55  ;;  %7637 = vpow2.f32 %v2731_v18  ;;  %v11025_v25 = vmax.f32 %v10905_v19, 1e-30  ;;  %v2835_v9 = vmul.f32 0.1, %v7614_v27 }
 0x1f7   :  { %18721 = vst [vmem:[#allocation375_spill] sm:$0xff] %v11022_v54  ;;  %7639 = vpow2.f32 %v2757_v17  ;;  %v11028_v36 = vmax.f32 %v10922_v8, 1e-30  ;;  %v11031_v33 = vmax.f32 %v10932_v39, 1e-30  ;;  %v7620_v17 = vpop.eup %7619  ;;  %v18727_v27 = vld [vmem:[#allocation221_spill] sm:$0xff] }
 0x1f8   :  { %18722 = vst [vmem:[#allocation376_spill] sm:$0xff] %v11025_v25  ;;  %7641 = vpow2.f32 %v2783_v22  ;;  %v2861_v35 = vmul.f32 0.1, %v7616_v62  ;;  %v18726_v18 = vand.u32 2147483647, %v18718_v60  ;;  %v7622_v44 = vpop.eup %7621  ;;  %v2609_v22 = vsel %vm2603_vm0, 2143289344, %v7618_v10 }
 0x1f9   :  { %18723 = vst [vmem:[#allocation377_spill] sm:$0xff] %v11028_v36  ;;  %18724 = vst [vmem:[#allocation378_spill] sm:$0xff] %v11031_v33  ;;  %v18728_v39 = vand.u32 2147483647, %v10262_v24  ;;  %v18731_v62 = vand.u32 2147483647, %v10268_v37 }
 0x1fa   :  { %7643 = vlog2.f32 %v18726_v18  ;;  %v2635_v33 = vsel %vm2629_vm3, 2143289344, %v7620_v17  ;;  %v2610_v17 = vsel %vm2604_vm1, 0, %v2609_v22  ;;  %v18740_v54 = vand.u32 2147483647, %v10274_v32 }
 0x1fb   :  { %7645 = vpow2.f32 %v2809_v23  ;;  %vm11045_vm5 = vcmp.eq.f32.partialorder %v18728_v39, 2139095040  ;;  %vm11051_vm6 = vcmp.eq.f32.partialorder %v18731_v62, 2139095040  ;;  %v7624_v23 = vpop.eup %7623  ;;  %v18734_v39 = vand.u32 2147483647, %v10271_v59 }
 0x1fc   :  { %7647 = vpow2.f32 %v2835_v9  ;;  %v18737_v62 = vand.u32 2147483647, %v18725_v41  ;;  %v7626_v38 = vpop.eup %7625  ;;  %v2887_v9 = vmul.f32 0.1, %v7622_v44  ;;  %v2636_v44 = vsel %vm2630_vm4, 0, %v2635_v33 }
 0x1fd   :  { %vm11063_vm10 = vcmp.eq.f32.partialorder %v18734_v39, 2139095040  ;;  %v7628_v10 = vpop.eup %7627  ;;  %v18738_v39 = vand.u32 2147483647, %v18727_v27  ;;  %vm11092_vm14 = vcmp.eq.f32.partialorder %v18740_v54, 2139095040  ;;  %v18743_v55 = vand.u32 2147483647, %v18606_v12 }
 0x1fe   :  { %7649 = vlog2.f32 %v18737_v62  ;;  %v7630_v62 = vpop.eup %7629  ;;  %v2913_v36 = vmul.f32 0.1, %v7626_v38  ;;  %vm2760_vm4 = vcmp.eq.f32.partialorder %v18620_v61, 0  ;;  %v2939_v33 = vmul.f32 0.1, %v7628_v10 }
 0x1ff   :  { %7651 = vpow2.f32 %v2861_v35  ;;  %v18739_v35 = vld [vmem:[#allocation222_spill] sm:$0xff]  ;;  %vm11098_vm1 = vcmp.eq.f32.partialorder %v18743_v55, 2139095040  ;;  %v18746_v55 = vand.u32 2147483647, %v18613_v50  ;;  %v2965_v38 = vmul.f32 0.1, %v7630_v62 }
 0x200   :  { %7653 = vlog2.f32 %v18738_v39  ;;  %v7632_v25 = vpop.eup %7631  ;;  %v2661_v39 = vsel %vm2655_vm8, 2143289344, %v7624_v23  ;;  %vm2785_vm8 = vcmp.lt.f32.partialorder %v18626_v34, 0  ;;  %v2615_v23 = vsel %vm11045_vm5, 2139095040, %v2610_v17 }
 0x201   :  { %v7634_v31 = vpop.eup %7633  ;;  %vm11110_vm0 = vcmp.eq.f32.partialorder %v18746_v55, 2139095040  ;;  %7655 = vpow2.f32 %v2887_v9  ;;  %v2641_v57 = vsel %vm11051_vm6, 2139095040, %v2636_v44  ;;  %v2662_v10 = vsel %vm2656_vm9, 0, %v2661_v39  ;;  %v18753_v9 = vld [vmem:[#allocation223_spill] sm:$0xff] }
 0x202   :  { %v7636_v54 = vpop.eup %7635  ;;  %v18749_v8 = vand.u32 2147483647, %v18620_v61  ;;  %v2991_v55 = vmul.f32 0.1, %v7632_v25  ;;  %v18752_v45 = vand.u32 2147483647, %v18739_v35 }
 0x203   :  { %v7638_v29 = vpop.eup %7637  ;;  %v2687_v18 = vsel %vm2681_vm11, 2143289344, %v7634_v31  ;;  %vm2863_vm3 = vcmp.lt.f32.partialorder %v18659_v56, 0  ;;  %v2713_v31 = vsel %vm2707_vm15, 2143289344, %v7636_v54  ;;  %v18754_v25 = vld [vmem:[#allocation224_spill] sm:$0xff]  ;;  %vm18756_vm9 = vcmp.eq.f32.partialorder %v10274_v32, 0  ;;  %v18763_v54 = vld [vmem:[#allocation226_spill] sm:$0xff] }
 0x204   :  { %vm11121_vm5 = vcmp.eq.f32.partialorder %v18749_v8, 2139095040  ;;  %7657 = vlog2.f32 %v18752_v45  ;;  %v7640_v3 = vpop.eup %7639  ;;  %v2619_v45 = vsel %vm2616_vm2, 2143289344, %v2615_v23  ;;  %v2645_v8 = vsel %vm2642_vm7, 2143289344, %v2641_v57 }
 0x205   :  { %7659 = vpow2.f32 %v2913_v36  ;;  %v7642_v44 = vpop.eup %7641  ;;  %v2667_v23 = vsel %vm11063_vm10, 2139095040, %v2662_v10  ;;  %v11158_v62 = vsel %vm18756_vm9, 0, %v2687_v18  ;;  %v2739_v19 = vsel %vm2733_vm12, 2143289344, %v7638_v29 }
 0x206   :  { %7661 = vpow2.f32 %v2939_v33  ;;  %v18755_v33 = vld [vmem:[#allocation225_spill] sm:$0xff]  ;;  %v18757_v57 = vand.u32 2147483647, %v18626_v34  ;;  %v18760_v0 = vand.u32 2147483647, %v18639_v63  ;;  %vm18764_vm9 = vcmp.eq.f32.partialorder %v18606_v12, 0 }
 0x207   :  { %v7644_v39 = vpop.eup %7643  ;;  %7663 = vpow2.f32 %v2965_v38  ;;  %v2714_v40 = vsel %vm18764_vm9, 0, %v2713_v31  ;;  %vm18765_vm12 = vcmp.lt.f32.partialorder %v18620_v61, 0  ;;  %vm18771_vm2 = vcmp.eq.f32.partialorder %v10262_v24, 1065353216 }
 0x208   :  { %v7646_v36 = vpop.eup %7645  ;;  %vm11164_vm7 = vcmp.eq.f32.partialorder %v18757_v57, 2139095040  ;;  %vm11170_vm10 = vcmp.eq.f32.partialorder %v18760_v0, 2139095040  ;;  %7665 = vpow2.f32 %v2991_v55  ;;  %v2765_v29 = vsel %vm18765_vm12, 2143289344, %v7640_v3  ;;  %v18770_v55 = vld [vmem:[#allocation227_spill] sm:$0xff] }
 0x209   :  { %v7648_v18 = vpop.eup %7647  ;;  %v18766_v57 = vand.u32 2147483647, %v18645_v16  ;;  %v18769_v0 = vand.u32 2147483647, %v18753_v9  ;;  %v11191_v31 = vsel %vm18771_vm2, 1065353216, %v2619_v45  ;;  %vm18772_vm9 = vcmp.eq.f32.partialorder %v10268_v37, 1065353216 }
 0x20a   :  { %v11195_v3 = vsel %vm18772_vm9, 1065353216, %v2645_v8  ;;  %v3017_v13 = vmul.f32 0.1, %v7644_v39  ;;  %v18776_v24 = vand.u32 2147483647, %v18754_v25  ;;  %vm18777_vm2 = vcmp.ne.f32.partialorder %v10271_v59, %v10271_v59 }
 0x20b   :  { %vm11181_vm11 = vcmp.eq.f32.partialorder %v18766_v57, 2139095040  ;;  %7667 = vlog2.f32 %v18769_v0  ;;  %v7650_v53 = vpop.eup %7649  ;;  %v18773_v57 = vand.u32 2147483647, %v18659_v56  ;;  %v2671_v37 = vsel %vm18777_vm2, 2143289344, %v2667_v23 }
 0x20c   :  { %7669 = vlog2.f32 %v18776_v24  ;;  %v7652_v45 = vpop.eup %7651  ;;  %vm18778_vm9 = vcmp.eq.f32.partialorder %v18613_v50, 0  ;;  %vm2761_vm15 = vcmp.eq.f32.partialorder %v18620_v61, 1065353216  ;;  %v18779_v39 = vand.u32 2147483647, %v18755_v33 }
 0x20d   :  { %vm11202_vm6 = vcmp.eq.f32.partialorder %v18773_v57, 2139095040  ;;  %v2740_v8 = vsel %vm18778_vm9, 0, %v2739_v19  ;;  %v18780_v57 = vld [vmem:[#allocation228_spill] sm:$0xff]  ;;  %v7654_v21 = vpop.eup %7653  ;;  %v2693_v23 = vsel %vm11092_vm14, 2139095040, %v11158_v62  ;;  %v2719_v19 = vsel %vm11098_vm1, 2139095040, %v2714_v40 }
 0x20e   :  { %7671 = vlog2.f32 %v18779_v39  ;;  %v2766_v26 = vsel %vm2760_vm4, 0, %v2765_v29  ;;  %vm2850_vm2 = vcmp.ne.f32.partialorder %v18645_v16, %v18645_v16  ;;  %v18781_v39 = vand.u32 2147483647, %v18763_v54 }
 0x20f   :  { %v2791_v24 = vsel %vm2785_vm8, 2143289344, %v7642_v44  ;;  %vm18782_vm12 = vcmp.lt.f32.partialorder %v18639_v63, 0  ;;  %vm2876_vm14 = vcmp.ne.f32.partialorder %v18659_v56, %v18659_v56  ;;  %v3043_v40 = vmul.f32 0.1, %v7650_v53 }
 0x210   :  { %7673 = vlog2.f32 %v18781_v39  ;;  %v2817_v22 = vsel %vm18782_vm12, 2143289344, %v7646_v36  ;;  %v18783_v28 = vand.u32 2147483647, %v18770_v55  ;;  %v2745_v62 = vsel %vm11110_vm0, 2139095040, %v2740_v8  ;;  %v18785_v36 = vld [vmem:[#allocation229_spill] sm:$0xff] }
 0x211   :  { %vm18784_vm8 = vcmp.lt.f32.partialorder %v18645_v16, 0  ;;  %v2771_v53 = vsel %vm11121_vm5, 2139095040, %v2766_v26  ;;  %v2869_v46 = vsel %vm2863_vm3, 2143289344, %v7652_v45  ;;  %v18786_v8 = vand.u32 2147483647, %v18684_v20 }
 0x212   :  { %7675 = vlog2.f32 %v18783_v28  ;;  %v2843_v44 = vsel %vm18784_vm8, 2143289344, %v7648_v18  ;;  %v3069_v18 = vmul.f32 0.1, %v7654_v21  ;;  %v18789_v28 = vand.u32 2147483647, %v18780_v57 }
 0x213   :  { %7677 = vpow2.f32 %v3017_v13  ;;  %vm11257_vm0 = vcmp.eq.f32.partialorder %v18786_v8, 2139095040  ;;  %v7656_v13 = vpop.eup %7655  ;;  %vm18790_vm8 = vcmp.eq.f32.partialorder %v10271_v59, 1065353216  ;;  %vm18791_vm5 = vcmp.eq.f32.partialorder %v18626_v34, 0  ;;  %v18793_v8 = vld [vmem:[#allocation230_spill] sm:$0xff] }
 0x214   :  { %7679 = vlog2.f32 %v18789_v28  ;;  %v11265_v17 = vsel %vm18790_vm8, 1065353216, %v2671_v37  ;;  %v2792_v26 = vsel %vm18791_vm5, 0, %v2791_v24  ;;  %vm18792_vm3 = vcmp.eq.f32.partialorder %v18639_v63, 0  ;;  %v7658_v29 = vpop.eup %7657 }
 0x215   :  { %v2818_v45 = vsel %vm18792_vm3, 0, %v2817_v22  ;;  %vm18794_vm9 = vcmp.ne.f32.partialorder %v10274_v32, %v10274_v32  ;;  %vm18795_vm8 = vcmp.ne.f32.partialorder %v18606_v12, %v18606_v12  ;;  %vm18796_vm5 = vcmp.eq.f32.partialorder %v18645_v16, 0  ;;  %v7660_v24 = vpop.eup %7659 }
 0x216   :  { %v2697_v28 = vsel %vm18794_vm9, 2143289344, %v2693_v23  ;;  %v2723_v59 = vsel %vm18795_vm8, 2143289344, %v2719_v19  ;;  %v2844_v37 = vsel %vm18796_vm5, 0, %v2843_v44  ;;  %vm2942_vm3 = vcmp.eq.f32.partialorder %v18694_v58, 0 }
 0x217   :  { %vm2967_vm1 = vcmp.lt.f32.partialorder %v18698_v7, 0  ;;  %7681 = vpow2.f32 %v3043_v40  ;;  %vm18797_vm12 = vcmp.ne.f32.partialorder %v18613_v50, %v18613_v50  ;;  %vm18798_vm9 = vcmp.ne.f32.partialorder %v18620_v61, %v18620_v61  ;;  %v7662_v40 = vpop.eup %7661 }
 0x218   :  { %v2749_v22 = vsel %vm18797_vm12, 2143289344, %v2745_v62  ;;  %v2775_v23 = vsel %vm18798_vm9, 2143289344, %v2771_v53  ;;  %vm18799_vm4 = vcmp.eq.f32.partialorder %v18659_v56, 0  ;;  %vm2902_vm8 = vcmp.ne.f32.partialorder %v18684_v20, %v18684_v20  ;;  %v7664_v42 = vpop.eup %7663 }
 0x219   :  { %v2870_v19 = vsel %vm18799_vm4, 0, %v2869_v46  ;;  %vm2993_vm5 = vcmp.lt.f32.partialorder %v18701_v1, 0  ;;  %v18800_v44 = vand.u32 2147483647, %v18785_v36  ;;  %v2797_v21 = vsel %vm11164_vm7, 2139095040, %v2792_v26  ;;  %v18804_v46 = vld [vmem:[#allocation231_spill] sm:$0xff] }
 0x21a   :  { %v2823_v62 = vsel %vm11170_vm10, 2139095040, %v2818_v45  ;;  %v18801_v53 = vand.u32 2147483647, %v18691_v30  ;;  %v17587_v4 = vand.u32 2147483647, %v18804_v46  ;;  %vm18805_vm7 = vcmp.lt.f32.partialorder %v18684_v20, 0 }
 0x21b   :  { %7683 = vlog2.f32 %v18800_v44  ;;  %v2849_v44 = vsel %vm11181_vm11, 2139095040, %v2844_v37  ;;  %v2895_v10 = vsel %vm18805_vm7, 2143289344, %v7656_v13  ;;  %v18806_v38 = vand.u32 2147483647, %v18694_v58  ;;  %v18846_v26 = vld [vmem:[#allocation236_spill] sm:$0xff] }
 0x21c   :  { %vm11303_vm12 = vcmp.eq.f32.partialorder %v18801_v53, 2139095040  ;;  %7685 = vpow2.f32 %v3069_v18  ;;  %v3095_v45 = vmul.f32 0.1, %v7658_v29  ;;  %v18809_v18 = vand.u32 2147483647, %v18793_v8  ;;  %v7666_v53 = vpop.eup %7665 }
 0x21d   :  { %vm11315_vm10 = vcmp.eq.f32.partialorder %v18806_v38, 2139095040  ;;  %vm18810_vm4 = vcmp.eq.f32.partialorder %v10274_v32, 1065353216  ;;  %vm18811_vm11 = vcmp.eq.f32.partialorder %v18606_v12, 1065353216  ;;  %vm18812_vm7 = vcmp.eq.f32.partialorder %v18613_v50, 1065353216  ;;  %v7668_v29 = vpop.eup %7667  ;;  %v18814_v12 = vld [vmem:[#allocation232_spill] sm:$0xff] }
 0x21e   :  { %7687 = vlog2.f32 %v18809_v18  ;;  %v11324_v49 = vsel %vm18810_vm4, 1065353216, %v2697_v28  ;;  %v11328_v13 = vsel %vm18811_vm11, 1065353216, %v2723_v59  ;;  %v11332_v37 = vsel %vm18812_vm7, 1065353216, %v2749_v22  ;;  %v7670_v61 = vpop.eup %7669 }
 0x21f   :  { %v2875_v38 = vsel %vm11202_vm6, 2139095040, %v2870_v19  ;;  %vm2994_vm9 = vcmp.eq.f32.partialorder %v18701_v1, 0  ;;  %v11339_v18 = vsel %vm2761_vm15, 1065353216, %v2775_v23  ;;  %v2801_v32 = vsel %vm2798_vm13, 2143289344, %v2797_v21  ;;  %v18819_v23 = vld [vmem:[#allocation233_spill] sm:$0xff] }
 0x220   :  { %vm18813_vm4 = vcmp.ne.f32.partialorder %v18639_v63, %v18639_v63  ;;  %v2853_v28 = vsel %vm2850_vm2, 2143289344, %v2849_v44  ;;  %vm18815_vm13 = vcmp.eq.f32.partialorder %v18684_v20, 0  ;;  %v18816_v59 = vand.u32 2147483647, %v18698_v7 }
 0x221   :  { %v2827_v50 = vsel %vm18813_vm4, 2143289344, %v2823_v62  ;;  %v2896_v21 = vsel %vm18815_vm13, 0, %v2895_v10  ;;  %7689 = vlog2.f32 %v17587_v4  ;;  %v7672_v62 = vpop.eup %7671  ;;  %v2879_v44 = vsel %vm2876_vm14, 2143289344, %v2875_v38  ;;  %v18824_v4 = vld [vmem:[#allocation234_spill] sm:$0xff] }
 0x222   :  { %vm11361_vm4 = vcmp.eq.f32.partialorder %v18816_v59, 2139095040  ;;  %vm18820_vm2 = vcmp.lt.f32.partialorder %v18691_v30, 0  ;;  %v18821_v0 = vand.u32 2147483647, %v18701_v1  ;;  %7691 = vpow2.f32 %v3095_v45  ;;  %v7674_v19 = vpop.eup %7673 }
 0x223   :  { %v2921_v10 = vsel %vm18820_vm2, 2143289344, %v7660_v24  ;;  %vm18825_vm7 = vcmp.eq.f32.partialorder %v18626_v34, 1065353216  ;;  %vm18826_vm14 = vcmp.eq.f32.partialorder %v18639_v63, 1065353216  ;;  %vm18827_vm2 = vcmp.lt.f32.partialorder %v18694_v58, 0  ;;  %v7676_v11 = vpop.eup %7675 }
 0x224   :  { %vm11375_vm13 = vcmp.eq.f32.partialorder %v18821_v0, 2139095040  ;;  %v11383_v6 = vsel %vm18825_vm7, 1065353216, %v2801_v32  ;;  %v11387_v38 = vsel %vm18826_vm14, 1065353216, %v2827_v50  ;;  %v2947_v24 = vsel %vm18827_vm2, 2143289344, %v7662_v40 }
 0x225   :  { %v18828_v0 = vand.u32 2147483647, %v18718_v60  ;;  %v3121_v45 = vmul.f32 0.1, %v7668_v29  ;;  %vm18831_vm7 = vcmp.eq.f32.partialorder %v18645_v16, 1065353216  ;;  %v2901_v63 = vsel %vm11257_vm0, 2139095040, %v2896_v21  ;;  %v7678_v29 = vpop.eup %7677 }
 0x226   :  { %v11400_v34 = vsel %vm18831_vm7, 1065353216, %v2853_v28  ;;  %vm2917_vm14 = vcmp.eq.f32.partialorder %v18691_v30, 1065353216  ;;  %vm2980_vm11 = vcmp.ne.f32.partialorder %v18698_v7, %v18698_v7  ;;  %v3147_v40 = vmul.f32 0.1, %v7670_v61  ;;  %v7680_v61 = vpop.eup %7679 }
 0x227   :  { %vm11393_vm6 = vcmp.eq.f32.partialorder %v18828_v0, 2139095040  ;;  %v18832_v32 = vand.u32 2147483647, %v18814_v12  ;;  %vm18833_vm15 = vcmp.eq.f32.partialorder %v18659_v56, 1065353216  ;;  %vm18834_vm7 = vcmp.eq.f32.partialorder %v18691_v30, 0  ;;  %v7682_v0 = vpop.eup %7681 }
 0x228   :  { %v11412_v16 = vsel %vm18833_vm15, 1065353216, %v2879_v44  ;;  %v2922_v39 = vsel %vm18834_vm7, 0, %v2921_v10  ;;  %vm3006_vm0 = vcmp.ne.f32.partialorder %v18701_v1, %v18701_v1  ;;  %v3173_v50 = vmul.f32 0.1, %v7672_v62 }
 0x229   :  { %7693 = vlog2.f32 %v18832_v32  ;;  %v18835_v28 = vand.u32 2147483647, %v18819_v23  ;;  %v2948_v21 = vsel %vm2942_vm3, 0, %v2947_v24  ;;  %v2973_v56 = vsel %vm2967_vm1, 2143289344, %v7664_v42 }
 0x22a   :  { %vm3032_vm15 = vcmp.ne.f32.partialorder %v18718_v60, %v18718_v60  ;;  %v3199_v44 = vmul.f32 0.1, %v7674_v19  ;;  %v18836_v10 = vand.u32 2147483647, %v18824_v4  ;;  %v2905_v62 = vsel %vm2902_vm8, 2143289344, %v2901_v63 }
 0x22b   :  { %7695 = vlog2.f32 %v18835_v28  ;;  %vm2969_vm2 = vcmp.eq.f32.partialorder %v18698_v7, 1065353216  ;;  %v2999_v24 = vsel %vm2993_vm5, 2143289344, %v7666_v53  ;;  %v3225_v42 = vmul.f32 0.1, %v7676_v11  ;;  %v18841_v53 = vld [vmem:[#allocation235_spill] sm:$0xff] }
 0x22c   :  { %7697 = vlog2.f32 %v18836_v10  ;;  %v2927_v19 = vsel %vm11303_vm12, 2139095040, %v2922_v39  ;;  %vm18837_vm7 = vcmp.lt.f32.partialorder %v18718_v60, 0  ;;  %v18838_v63 = vand.u32 2147483647, %v18725_v41 }
 0x22d   :  { %7699 = vpow2.f32 %v3121_v45  ;;  %v3025_v32 = vsel %vm18837_vm7, 2143289344, %v7678_v29  ;;  %v7684_v45 = vpop.eup %7683  ;;  %v2953_v11 = vsel %vm11315_vm10, 2139095040, %v2948_v21  ;;  %vm18842_vm5 = vcmp.eq.f32.partialorder %v18698_v7, 0 }
 0x22e   :  { %vm11444_vm8 = vcmp.eq.f32.partialorder %v18838_v63, 2139095040  ;;  %7701 = vpow2.f32 %v3147_v40  ;;  %v2974_v15 = vsel %vm18842_vm5, 0, %v2973_v56  ;;  %v18843_v29 = vand.u32 2147483647, %v18727_v27  ;;  %v7686_v40 = vpop.eup %7685 }
 0x22f   :  { %7703 = vpow2.f32 %v3173_v50  ;;  %v3251_v63 = vmul.f32 0.1, %v7680_v61  ;;  %v3000_v10 = vsel %vm2994_vm9, 0, %v2999_v24  ;;  %v17592_v21 = vand.u32 2147483647, %v18846_v26  ;;  %v7688_v56 = vpop.eup %7687 }
 0x230   :  { %vm11456_vm7 = vcmp.eq.f32.partialorder %v18843_v29, 2139095040  ;;  %7705 = vpow2.f32 %v3199_v44  ;;  %vm18847_vm10 = vcmp.eq.f32.partialorder %v18684_v20, 1065353216  ;;  %vm18848_vm5 = vcmp.ne.f32.partialorder %v18691_v30, %v18691_v30 }
 0x231   :  { %v11466_v48 = vsel %vm18847_vm10, 1065353216, %v2905_v62  ;;  %v2931_v29 = vsel %vm18848_vm5, 2143289344, %v2927_v19  ;;  %vm18849_vm12 = vcmp.eq.f32.partialorder %v18718_v60, 0  ;;  %vm3058_vm9 = vcmp.ne.f32.partialorder %v18725_v41, %v18725_v41 }
 0x232   :  { %v3026_v50 = vsel %vm18849_vm12, 0, %v3025_v32  ;;  %7707 = vpow2.f32 %v3225_v42  ;;  %vm18850_vm3 = vcmp.ne.f32.partialorder %v18694_v58, %v18694_v58  ;;  %v2979_v20 = vsel %vm11361_vm4, 2139095040, %v2974_v15  ;;  %v18856_v32 = vld [vmem:[#allocation237_spill] sm:$0xff] }
 0x233   :  { %v2957_v61 = vsel %vm18850_vm3, 2143289344, %v2953_v11  ;;  %vm3084_vm10 = vcmp.ne.f32.partialorder %v18727_v27, %v18727_v27  ;;  %vm3123_vm1 = vcmp.lt.f32.partialorder %v18753_v9, 0  ;;  %v3277_v44 = vmul.f32 0.1, %v7684_v45  ;;  %v7690_v11 = vpop.eup %7689 }
 0x234   :  { %v18851_v62 = vand.u32 2147483647, %v18841_v53  ;;  %v3005_v24 = vsel %vm11375_vm13, 2139095040, %v3000_v10  ;;  %vm18852_vm12 = vcmp.lt.f32.partialorder %v18725_v41, 0  ;;  %v18853_v19 = vand.u32 2147483647, %v18739_v35  ;;  %v7692_v10 = vpop.eup %7691 }
 0x235   :  { %v3051_v42 = vsel %vm18852_vm12, 2143289344, %v7682_v0  ;;  %v17593_v45 = vand.u32 2147483647, %v18856_v32  ;;  %v3031_v15 = vsel %vm11393_vm6, 2139095040, %v3026_v50  ;;  %vm3047_vm13 = vcmp.eq.f32.partialorder %v18725_v41, 1065353216 }
 0x236   :  { %7709 = vlog2.f32 %v18851_v62  ;;  %vm11491_vm3 = vcmp.eq.f32.partialorder %v18853_v19, 2139095040  ;;  %vm18857_vm5 = vcmp.lt.f32.partialorder %v18727_v27, 0  ;;  %v3303_v0 = vmul.f32 0.1, %v7688_v56 }
 0x237   :  { %7711 = vpow2.f32 %v3251_v63  ;;  %v3077_v59 = vsel %vm18857_vm5, 2143289344, %v7686_v40  ;;  %v11507_v63 = vsel %vm2917_vm14, 1065353216, %v2931_v29  ;;  %vm18858_vm4 = vcmp.eq.f32.partialorder %v18694_v58, 1065353216  ;;  %v18860_v40 = vld [vmem:[#allocation238_spill] sm:$0xff]  ;;  %v18862_v58 = vld [vmem:[#allocation239_spill] sm:$0xff] }
 0x238   :  { %7713 = vlog2.f32 %v17592_v21  ;;  %v11511_v52 = vsel %vm18858_vm4, 1065353216, %v2957_v61  ;;  %v2983_v50 = vsel %vm2980_vm11, 2143289344, %v2979_v20  ;;  %vm3073_vm6 = vcmp.eq.f32.partialorder %v18727_v27, 1065353216  ;;  %v7694_v20 = vpop.eup %7693 }
 0x239   :  { %18859 = vst [vmem:[#allocation220_spill] sm:$0xff] %v11511_v52  ;;  %vm3124_vm5 = vcmp.eq.f32.partialorder %v18753_v9, 0  ;;  %v17594_v56 = vand.u32 2147483647, %v18860_v40  ;;  %v3009_v30 = vsel %vm3006_vm0, 2143289344, %v3005_v24  ;;  %vm18861_vm14 = vcmp.eq.f32.partialorder %v18725_v41, 0 }
 0x23a   :  { %v3052_v29 = vsel %vm18861_vm14, 0, %v3051_v42  ;;  %7715 = vpow2.f32 %v3277_v44  ;;  %v3035_v62 = vsel %vm3032_vm15, 2143289344, %v3031_v15  ;;  %vm18863_vm11 = vcmp.eq.f32.partialorder %v18727_v27, 0  ;;  %v7696_v42 = vpop.eup %7695 }
 0x23b   :  { %v3078_v19 = vsel %vm18863_vm11, 0, %v3077_v59  ;;  %v3329_v24 = vmul.f32 0.1, %v7690_v11  ;;  %7717 = vlog2.f32 %v17593_v45  ;;  %v11539_v44 = vsel %vm2969_vm2, 1065353216, %v2983_v50  ;;  %v7698_v11 = vpop.eup %7697 }
 0x23c   :  { %18864 = vst [vmem:[#allocation221_spill] sm:$0xff] %v11539_v44  ;;  %vm18865_vm12 = vcmp.lt.f32.partialorder %v18739_v35, 0  ;;  %v18866_v15 = vand.u32 2147483647, %v18753_v9  ;;  %7719 = vpow2.f32 %v3303_v0  ;;  %vm18869_vm14 = vcmp.eq.f32.partialorder %v18701_v1, 1065353216  ;;  %v18874_v0 = vld [vmem:[#allocation240_spill] sm:$0xff]  ;;  %v7700_v61 = vpop.eup %7699 }
 0x23d   :  { %v3103_v21 = vsel %vm18865_vm12, 2143289344, %v7692_v10  ;;  %v11552_v45 = vsel %vm18869_vm14, 1065353216, %v3009_v30  ;;  %v3057_v7 = vsel %vm11444_vm8, 2139095040, %v3052_v29  ;;  %v18871_v10 = vand.u32 2147483647, %v18754_v25 }
 0x23e   :  { %vm11545_vm15 = vcmp.eq.f32.partialorder %v18866_v15, 2139095040  ;;  %18870 = vst [vmem:[#allocation222_spill] sm:$0xff] %v11552_v45  ;;  %7721 = vlog2.f32 %v17594_v56  ;;  %vm18875_vm14 = vcmp.eq.f32.partialorder %v18718_v60, 1065353216  ;;  %v3083_v28 = vsel %vm11456_vm7, 2139095040, %v3078_v19  ;;  %v7702_v15 = vpop.eup %7701 }
 0x23f   :  { %vm11559_vm12 = vcmp.eq.f32.partialorder %v18871_v10, 2139095040  ;;  %v11568_v1 = vsel %vm18875_vm14, 1065353216, %v3035_v62  ;;  %v18877_v30 = vand.u32 2147483647, %v18755_v33  ;;  %v3355_v10 = vmul.f32 0.1, %v7694_v20  ;;  %v7704_v62 = vpop.eup %7703 }
 0x240   :  { %18876 = vst [vmem:[#allocation223_spill] sm:$0xff] %v11568_v1  ;;  %v18880_v56 = vand.u32 2147483647, %v18862_v58  ;;  %vm18881_vm11 = vcmp.eq.f32.partialorder %v18739_v35, 0  ;;  %vm3136_vm14 = vcmp.ne.f32.partialorder %v18753_v9, %v18753_v9  ;;  %vm3253_vm0 = vcmp.lt.f32.partialorder %v18780_v57, 0 }
 0x241   :  { %vm11574_vm8 = vcmp.eq.f32.partialorder %v18877_v30, 2139095040  ;;  %v3104_v60 = vsel %vm18881_vm11, 0, %v3103_v21  ;;  %v3381_v39 = vmul.f32 0.1, %v7696_v42  ;;  %v3061_v20 = vsel %vm3058_vm9, 2143289344, %v3057_v7 }
 0x242   :  { %7723 = vlog2.f32 %v18880_v56  ;;  %v3407_v21 = vmul.f32 0.1, %v7698_v11  ;;  %v7706_v56 = vpop.eup %7705  ;;  %v3087_v19 = vsel %vm3084_vm10, 2143289344, %v3083_v28  ;;  %v18882_v42 = vand.u32 2147483647, %v18763_v54  ;;  %v18886_v11 = vld [vmem:[#allocation241_spill] sm:$0xff] }
 0x243   :  { %7725 = vpow2.f32 %v3329_v24  ;;  %v3129_v24 = vsel %vm3123_vm1, 2143289344, %v7700_v61  ;;  %v18885_v30 = vand.u32 2147483647, %v18874_v0  ;;  %v7708_v51 = vpop.eup %7707  ;;  %v3109_v28 = vsel %vm11491_vm3, 2139095040, %v3104_v60 }
 0x244   :  { %vm11603_vm9 = vcmp.eq.f32.partialorder %v18882_v42, 2139095040  ;;  %vm18887_vm1 = vcmp.lt.f32.partialorder %v18754_v25, 0  ;;  %v18888_v2 = vand.u32 2147483647, %v18770_v55  ;;  %v18891_v42 = vand.u32 2147483647, %v18780_v57  ;;  %v7710_v22 = vpop.eup %7709 }
 0x245   :  { %7727 = vlog2.f32 %v18885_v30  ;;  %v3155_v61 = vsel %vm18887_vm1, 2143289344, %v7702_v15  ;;  %v18894_v30 = vld [vmem:[#allocation242_spill] sm:$0xff]  ;;  %v11629_v60 = vsel %vm3047_vm13, 1065353216, %v3061_v20  ;;  %vm18896_vm1 = vcmp.lt.f32.partialorder %v18755_v33, 0  ;;  %v7712_v15 = vpop.eup %7711 }
 0x246   :  { %vm11616_vm10 = vcmp.eq.f32.partialorder %v18888_v2, 2139095040  ;;  %vm11622_vm7 = vcmp.eq.f32.partialorder %v18891_v42, 2139095040  ;;  %7729 = vpow2.f32 %v3355_v10  ;;  %18895 = vst [vmem:[#allocation224_spill] sm:$0xff] %v11629_v60  ;;  %v3181_v2 = vsel %vm18896_vm1, 2143289344, %v7704_v62  ;;  %v18898_v62 = vld [vmem:[#allocation243_spill] sm:$0xff]  ;;  %v7714_v42 = vpop.eup %7713 }
 0x247   :  { %vm3280_vm11 = vcmp.eq.f32.partialorder %v18785_v36, 0  ;;  %vm3305_vm2 = vcmp.lt.f32.partialorder %v18793_v8, 0  ;;  %7731 = vpow2.f32 %v3381_v39  ;;  %v11638_v10 = vsel %vm3073_vm6, 1065353216, %v3087_v19  ;;  %v18902_v19 = vld [vmem:[#allocation244_spill] sm:$0xff] }
 0x248   :  { %18897 = vst [vmem:[#allocation225_spill] sm:$0xff] %v11638_v10  ;;  %v3130_v41 = vsel %vm3124_vm5, 0, %v3129_v24  ;;  %7733 = vpow2.f32 %v3407_v21  ;;  %vm18899_vm1 = vcmp.ne.f32.partialorder %v18739_v35, %v18739_v35  ;;  %vm18900_vm6 = vcmp.eq.f32.partialorder %v18754_v25, 0 }
 0x249   :  { %v3113_v39 = vsel %vm18899_vm1, 2143289344, %v3109_v28  ;;  %v3156_v27 = vsel %vm18900_vm6, 0, %v3155_v61  ;;  %vm3214_vm5 = vcmp.ne.f32.partialorder %v18763_v54, %v18763_v54  ;;  %v18901_v21 = vand.u32 2147483647, %v18886_v11 }
 0x24a   :  { %vm18903_vm3 = vcmp.eq.f32.partialorder %v18755_v33, 0  ;;  %vm18904_vm1 = vcmp.lt.f32.partialorder %v18763_v54, 0  ;;  %v18905_v20 = vand.u32 2147483647, %v18785_v36  ;;  %v3433_v10 = vmul.f32 0.1, %v7710_v22 }
 0x24b   :  { %7735 = vlog2.f32 %v18901_v21  ;;  %v3182_v28 = vsel %vm18903_vm3, 0, %v3181_v2  ;;  %v3207_v61 = vsel %vm18904_vm1, 2143289344, %v7706_v56  ;;  %v18908_v60 = vand.u32 2147483647, %v18894_v30  ;;  %v7716_v21 = vpop.eup %7715 }
 0x24c   :  { %vm11666_vm6 = vcmp.eq.f32.partialorder %v18905_v20, 2139095040  ;;  %v3135_v24 = vsel %vm11545_vm15, 2139095040, %v3130_v41  ;;  %vm18909_vm3 = vcmp.lt.f32.partialorder %v18770_v55, 0  ;;  %v3259_v56 = vsel %vm3253_vm0, 2143289344, %v7712_v15  ;;  %v18910_v20 = vld [vmem:[#allocation245_spill] sm:$0xff]  ;;  %v7718_v22 = vpop.eup %7717 }
 0x24d   :  { %7737 = vlog2.f32 %v18908_v60  ;;  %v3233_v2 = vsel %vm18909_vm3, 2143289344, %v7708_v51  ;;  %vm3332_vm1 = vcmp.eq.f32.partialorder %v18804_v46, 0  ;;  %vm3357_vm4 = vcmp.lt.f32.partialorder %v18814_v12, 0  ;;  %v7720_v41 = vpop.eup %7719 }
 0x24e   :  { %vm18911_vm13 = vcmp.eq.f32.partialorder %v18739_v35, 1065353216  ;;  %v3161_v59 = vsel %vm11559_vm12, 2139095040, %v3156_v27  ;;  %v3459_v51 = vmul.f32 0.1, %v7714_v42  ;;  %v18913_v15 = vand.u32 2147483647, %v18898_v62  ;;  %v7722_v27 = vpop.eup %7721 }
 0x24f   :  { %v11684_v60 = vsel %vm18911_vm13, 1065353216, %v3113_v39  ;;  %v3187_v44 = vsel %vm11574_vm8, 2139095040, %v3182_v28  ;;  %vm18914_vm0 = vcmp.eq.f32.partialorder %v18763_v54, 0  ;;  %v18915_v50 = vand.u32 2147483647, %v18793_v8 }
 0x250   :  { %18912 = vst [vmem:[#allocation226_spill] sm:$0xff] %v11684_v60  ;;  %7739 = vlog2.f32 %v18913_v15  ;;  %v3208_v35 = vsel %vm18914_vm0, 0, %v3207_v61  ;;  %v18918_v42 = vand.u32 2147483647, %v18902_v19  ;;  %v3139_v28 = vsel %vm3136_vm14, 2143289344, %v3135_v24 }
 0x251   :  { %vm11701_vm15 = vcmp.eq.f32.partialorder %v18915_v50, 2139095040  ;;  %vm18919_vm8 = vcmp.eq.f32.partialorder %v18770_v55, 0  ;;  %vm18920_vm0 = vcmp.eq.f32.partialorder %v18780_v57, 0  ;;  %v18921_v50 = vand.u32 2147483647, %v18804_v46 }
 0x252   :  { %7741 = vlog2.f32 %v18918_v42  ;;  %v3234_v61 = vsel %vm18919_vm8, 0, %v3233_v2  ;;  %v3260_v15 = vsel %vm18920_vm0, 0, %v3259_v56  ;;  %v7724_v42 = vpop.eup %7723  ;;  %vm18924_vm3 = vcmp.ne.f32.partialorder %v18754_v25, %v18754_v25 }
 0x253   :  { %vm11717_vm12 = vcmp.eq.f32.partialorder %v18921_v50, 2139095040  ;;  %7743 = vpow2.f32 %v3433_v10  ;;  %v3165_v24 = vsel %vm18924_vm3, 2143289344, %v3161_v59  ;;  %vm18925_vm14 = vcmp.lt.f32.partialorder %v18785_v36, 0  ;;  %v7726_v29 = vpop.eup %7725 }
 0x254   :  { %v3285_v2 = vsel %vm18925_vm14, 2143289344, %v7716_v21  ;;  %vm3383_vm8 = vcmp.lt.f32.partialorder %v18819_v23, 0  ;;  %vm3409_vm0 = vcmp.lt.f32.partialorder %v18824_v4, 0  ;;  %v3485_v56 = vmul.f32 0.1, %v7718_v22  ;;  %v18928_v21 = vld [vmem:[#allocation246_spill] sm:$0xff]  ;;  %v7728_v59 = vpop.eup %7727 }
 0x255   :  { %v18926_v50 = vand.u32 2147483647, %v18910_v20  ;;  %vm18927_vm13 = vcmp.ne.f32.partialorder %v18755_v33, %v18755_v33  ;;  %v3213_v52 = vsel %vm11603_vm9, 2139095040, %v3208_v35  ;;  %v3239_v22 = vsel %vm11616_vm10, 2139095040, %v3234_v61 }
 0x256   :  { %v3191_v10 = vsel %vm18927_vm13, 2143289344, %v3187_v44  ;;  %v18929_v44 = vand.u32 2147483647, %v18814_v12  ;;  %v3511_v35 = vmul.f32 0.1, %v7722_v27  ;;  %vm18933_vm14 = vcmp.eq.f32.partialorder %v18753_v9, 1065353216  ;;  %v7730_v27 = vpop.eup %7729 }
 0x257   :  { %7745 = vlog2.f32 %v18926_v50  ;;  %v3265_v50 = vsel %vm11622_vm7, 2139095040, %v3260_v15  ;;  %v11756_v1 = vsel %vm18933_vm14, 1065353216, %v3139_v28  ;;  %v3286_v45 = vsel %vm3280_vm11, 0, %v3285_v2 }
 0x258   :  { %7747 = vpow2.f32 %v3459_v51  ;;  %vm11748_vm9 = vcmp.eq.f32.partialorder %v18929_v44, 2139095040  ;;  %v18932_v51 = vand.u32 2147483647, %v10436_v14  ;;  %v3311_v61 = vsel %vm3305_vm2, 2143289344, %v7720_v41  ;;  %v7732_v41 = vpop.eup %7731 }
 0x259   :  { %vm3384_vm7 = vcmp.eq.f32.partialorder %v18819_v23, 0  ;;  %vm3410_vm10 = vcmp.eq.f32.partialorder %v18824_v4, 0  ;;  %v3537_v15 = vmul.f32 0.1, %v7724_v42  ;;  %vm18934_vm13 = vcmp.eq.f32.partialorder %v18754_v25, 1065353216 }
 0x25a   :  { %7749 = vlog2.f32 %v18932_v51  ;;  %v11766_v44 = vsel %vm18934_vm13, 1065353216, %v3165_v24  ;;  %vm18936_vm3 = vcmp.eq.f32.partialorder %v18755_v33, 1065353216  ;;  %vm18938_vm11 = vcmp.lt.f32.partialorder %v18804_v46, 0  ;;  %v7734_v24 = vpop.eup %7733 }
 0x25b   :  { %18935 = vst [vmem:[#allocation227_spill] sm:$0xff] %v11766_v44  ;;  %v11770_v9 = vsel %vm18936_vm3, 1065353216, %v3191_v10  ;;  %v3337_v28 = vsel %vm18938_vm11, 2143289344, %v7726_v29  ;;  %vm3435_vm2 = vcmp.lt.f32.partialorder %v18841_v53, 0  ;;  %7751 = vpow2.f32 %v3485_v56 }
 0x25c   :  { %18937 = vst [vmem:[#allocation228_spill] sm:$0xff] %v11770_v9  ;;  %v3217_v42 = vsel %vm3214_vm5, 2143289344, %v3213_v52  ;;  %vm18939_vm13 = vcmp.ne.f32.partialorder %v18770_v55, %v18770_v55  ;;  %vm18940_vm3 = vcmp.ne.f32.partialorder %v18780_v57, %v18780_v57  ;;  %v18941_v29 = vand.u32 2147483647, %v18928_v21 }
 0x25d   :  { %v3243_v25 = vsel %vm18939_vm13, 2143289344, %v3239_v22  ;;  %v3269_v33 = vsel %vm18940_vm3, 2143289344, %v3265_v50  ;;  %v3291_v52 = vsel %vm11666_vm6, 2139095040, %v3286_v45  ;;  %vm18942_vm5 = vcmp.eq.f32.partialorder %v18793_v8, 0 }
 0x25e   :  { %7753 = vlog2.f32 %v18941_v29  ;;  %v3312_v2 = vsel %vm18942_vm5, 0, %v3311_v61  ;;  %v18943_v56 = vand.u32 2147483647, %v18819_v23  ;;  %v18946_v22 = vand.u32 2147483647, %v18824_v4  ;;  %v7736_v29 = vpop.eup %7735  ;;  %v18949_v61 = vld [vmem:[#allocation247_spill] sm:$0xff] }
 0x25f   :  { %7755 = vpow2.f32 %v3511_v35  ;;  %v3563_v51 = vmul.f32 0.1, %v7728_v59  ;;  %v3338_v5 = vsel %vm3332_vm1, 0, %v3337_v28  ;;  %v3363_v45 = vsel %vm3357_vm4, 2143289344, %v7730_v27  ;;  %v7738_v9 = vpop.eup %7737  ;;  %v18954_v35 = vld [vmem:[#allocation248_spill] sm:$0xff] }
 0x260   :  { %vm11796_vm13 = vcmp.eq.f32.partialorder %v18943_v56, 2139095040  ;;  %vm11802_vm3 = vcmp.eq.f32.partialorder %v18946_v22, 2139095040  ;;  %7757 = vpow2.f32 %v3537_v15  ;;  %v17599_v56 = vand.u32 2147483647, %v18949_v61 }
 0x261   :  { %vm18950_vm5 = vcmp.eq.f32.partialorder %v18763_v54, 1065353216  ;;  %vm18952_vm11 = vcmp.eq.f32.partialorder %v18770_v55, 1065353216  ;;  %vm3359_vm14 = vcmp.eq.f32.partialorder %v18814_v12, 1065353216  ;;  %vm3461_vm1 = vcmp.lt.f32.partialorder %v18846_v26, 0 }
 0x262   :  { %v11814_v22 = vsel %vm18950_vm5, 1065353216, %v3217_v42  ;;  %v11818_v59 = vsel %vm18952_vm11, 1065353216, %v3243_v25  ;;  %v17598_v27 = vand.u32 2147483647, %v18954_v35  ;;  %vm18955_vm4 = vcmp.eq.f32.partialorder %v18780_v57, 1065353216  ;;  %v7740_v42 = vpop.eup %7739 }
 0x263   :  { %18951 = vst [vmem:[#allocation229_spill] sm:$0xff] %v11814_v22  ;;  %18953 = vst [vmem:[#allocation230_spill] sm:$0xff] %v11818_v59  ;;  %v11825_v15 = vsel %vm18955_vm4, 1065353216, %v3269_v33  ;;  %vm18957_vm6 = vcmp.ne.f32.partialorder %v18785_v36, %v18785_v36  ;;  %v3317_v28 = vsel %vm11701_vm15, 2139095040, %v3312_v2  ;;  %vm3396_vm11 = vcmp.ne.f32.partialorder %v18819_v23, %v18819_v23  ;;  %v7742_v2 = vpop.eup %7741 }
 0x264   :  { %18956 = vst [vmem:[#allocation231_spill] sm:$0xff] %v11825_v15  ;;  %v3295_v54 = vsel %vm18957_vm6, 2143289344, %v3291_v52  ;;  %v3343_v57 = vsel %vm11717_vm12, 2139095040, %v3338_v5  ;;  %vm18958_vm4 = vcmp.eq.f32.partialorder %v18814_v12, 0  ;;  %v18959_v33 = vand.u32 2147483647, %v18841_v53 }
 0x265   :  { %v3364_v25 = vsel %vm18958_vm4, 0, %v3363_v45  ;;  %7759 = vpow2.f32 %v3563_v51  ;;  %v3589_v52 = vmul.f32 0.1, %v7736_v29  ;;  %v3389_v55 = vsel %vm3383_vm8, 2143289344, %v7732_v41  ;;  %v7744_v45 = vpop.eup %7743 }
 0x266   :  { %vm11843_vm6 = vcmp.eq.f32.partialorder %v18959_v33, 2139095040  ;;  %v3415_v60 = vsel %vm3409_vm0, 2143289344, %v7734_v24  ;;  %vm3513_vm4 = vcmp.lt.f32.partialorder %v18860_v40, 0  ;;  %v3615_v5 = vmul.f32 0.1, %v7738_v9  ;;  %v18965_v9 = vld [vmem:[#allocation249_spill] sm:$0xff]  ;;  %v7746_v29 = vpop.eup %7745 }
 0x267   :  { %7761 = vlog2.f32 %v17599_v56  ;;  %vm18962_vm15 = vcmp.eq.f32.partialorder %v18785_v36, 1065353216  ;;  %vm18964_vm5 = vcmp.ne.f32.partialorder %v18793_v8, %v18793_v8  ;;  %vm3385_vm8 = vcmp.eq.f32.partialorder %v18819_v23, 1065353216  ;;  %v7748_v24 = vpop.eup %7747 }
 0x268   :  { %v11858_v51 = vsel %vm18962_vm15, 1065353216, %v3295_v54  ;;  %v3321_v41 = vsel %vm18964_vm5, 2143289344, %v3317_v28  ;;  %7763 = vlog2.f32 %v17598_v27  ;;  %vm18966_vm15 = vcmp.ne.f32.partialorder %v18804_v46, %v18804_v46 }
 0x269   :  { %18963 = vst [vmem:[#allocation232_spill] sm:$0xff] %v11858_v51  ;;  %v3347_v36 = vsel %vm18966_vm15, 2143289344, %v3343_v57  ;;  %v3369_v54 = vsel %vm11748_vm9, 2139095040, %v3364_v25  ;;  %v18967_v28 = vand.u32 2147483647, %v18846_v26  ;;  %v3390_v57 = vsel %vm3384_vm7, 0, %v3389_v55 }
 0x26a   :  { %v3641_v27 = vmul.f32 0.1, %v7740_v42  ;;  %v18970_v56 = vand.u32 2147483647, %v10451_v47  ;;  %v3416_v7 = vsel %vm3410_vm10, 0, %v3415_v60  ;;  %vm3488_vm9 = vcmp.eq.f32.partialorder %v18856_v32, 0 }
 0x26b   :  { %vm11878_vm0 = vcmp.eq.f32.partialorder %v18967_v28, 2139095040  ;;  %v3667_v25 = vmul.f32 0.1, %v7742_v2  ;;  %v7750_v28 = vpop.eup %7749  ;;  %vm18971_vm5 = vcmp.eq.f32.partialorder %v18793_v8, 1065353216  ;;  %vm3540_vm12 = vcmp.eq.f32.partialorder %v18862_v58, 0 }
 0x26c   :  { %7765 = vlog2.f32 %v18970_v56  ;;  %v11892_v42 = vsel %vm18971_vm5, 1065353216, %v3321_v41  ;;  %v3441_v56 = vsel %vm3435_vm2, 2143289344, %v7744_v45  ;;  %vm3565_vm7 = vcmp.lt.f32.partialorder %v18874_v0, 0 }
 0x26d   :  { %7767 = vpow2.f32 %v3589_v52  ;;  %18972 = vst [vmem:[#allocation233_spill] sm:$0xff] %v11892_v42  ;;  %vm18973_vm10 = vcmp.eq.f32.partialorder %v18804_v46, 1065353216  ;;  %vm18975_vm15 = vcmp.ne.f32.partialorder %v18814_v12, %v18814_v12  ;;  %vm3437_vm5 = vcmp.eq.f32.partialorder %v18841_v53, 1065353216 }
 0x26e   :  { %7769 = vpow2.f32 %v3615_v5  ;;  %v11901_v60 = vsel %vm18973_vm10, 1065353216, %v3347_v36  ;;  %v3373_v8 = vsel %vm18975_vm15, 2143289344, %v3369_v54  ;;  %v3693_v52 = vmul.f32 0.1, %v7746_v29  ;;  %v7752_v5 = vpop.eup %7751 }
 0x26f   :  { %18974 = vst [vmem:[#allocation234_spill] sm:$0xff] %v11901_v60  ;;  %v18976_v2 = vand.u32 2147483647, %v18965_v9  ;;  %v3395_v45 = vsel %vm11796_vm13, 2139095040, %v3390_v57  ;;  %v3421_v46 = vsel %vm11802_vm3, 2139095040, %v3416_v7  ;;  %v7754_v10 = vpop.eup %7753  ;;  %vm18984_vm13 = vcmp.eq.f32.partialorder %v18841_v53, 0 }
 0x270   :  { %v18977_v41 = vand.u32 2147483647, %v18856_v32  ;;  %v18980_v54 = vand.u32 2147483647, %v18860_v40  ;;  %v3442_v50 = vsel %vm18984_vm13, 0, %v3441_v56  ;;  %v3467_v57 = vsel %vm3461_vm1, 2143289344, %v7748_v24  ;;  %v7756_v60 = vpop.eup %7755 }
 0x271   :  { %7771 = vlog2.f32 %v18976_v2  ;;  %v18983_v2 = vld [vmem:[#allocation250_spill] sm:$0xff]  ;;  %v18985_v7 = vand.u32 2147483647, %v18862_v58  ;;  %v18989_v56 = vand.u32 2147483647, %v10460_v43  ;;  %v18990_v24 = vld [vmem:[#allocation251_spill] sm:$0xff]  ;;  %vm18991_vm1 = vcmp.ne.f32.partialorder %v18824_v4, %v18824_v4 }
 0x272   :  { %vm11917_vm10 = vcmp.eq.f32.partialorder %v18977_v41, 2139095040  ;;  %vm11923_vm15 = vcmp.eq.f32.partialorder %v18980_v54, 2139095040  ;;  %7773 = vpow2.f32 %v3641_v27  ;;  %v3719_v54 = vmul.f32 0.1, %v7750_v28  ;;  %v18992_v28 = vld [vmem:[#allocation252_spill] sm:$0xff]  ;;  %v19019_v41 = vld [vmem:[#allocation254_spill] sm:$0xff] }
 0x273   :  { %vm11934_vm3 = vcmp.eq.f32.partialorder %v18985_v7, 2139095040  ;;  %7775 = vpow2.f32 %v3667_v25  ;;  %v11940_v27 = vsel %vm3359_vm14, 1065353216, %v3373_v8  ;;  %v7758_v7 = vpop.eup %7757  ;;  %v3399_v25 = vsel %vm3396_vm11, 2143289344, %v3395_v45 }
 0x274   :  { %18988 = vst [vmem:[#allocation235_spill] sm:$0xff] %v11940_v27  ;;  %7777 = vlog2.f32 %v18989_v56  ;;  %v3425_v12 = vsel %vm18991_vm1, 2143289344, %v3421_v46  ;;  %vm3500_vm14 = vcmp.ne.f32.partialorder %v18856_v32, %v18856_v32  ;;  %v3447_v56 = vsel %vm11843_vm6, 2139095040, %v3442_v50  ;;  %v7760_v42 = vpop.eup %7759 }
 0x275   :  { %7779 = vpow2.f32 %v3693_v52  ;;  %vm18993_vm13 = vcmp.eq.f32.partialorder %v18846_v26, 0  ;;  %v18994_v45 = vand.u32 2147483647, %v18874_v0  ;;  %v3745_v27 = vmul.f32 0.1, %v7754_v10 }
 0x276   :  { %v3468_v55 = vsel %vm18993_vm13, 0, %v3467_v57  ;;  %v18997_v52 = vand.u32 2147483647, %v18983_v2  ;;  %vm18998_vm2 = vcmp.lt.f32.partialorder %v18856_v32, 0  ;;  %v3519_v50 = vsel %vm3513_vm4, 2143289344, %v7756_v60  ;;  %v18999_v57 = vld [vmem:[#allocation253_spill] sm:$0xff] }
 0x277   :  { %vm11966_vm1 = vcmp.eq.f32.partialorder %v18994_v45, 2139095040  ;;  %v3493_v39 = vsel %vm18998_vm2, 2143289344, %v7752_v5  ;;  %v17600_v8 = vand.u32 2147483647, %v18999_v57  ;;  %v11979_v45 = vsel %vm3385_vm8, 1065353216, %v3399_v25 }
 0x278   :  { %7781 = vlog2.f32 %v18997_v52  ;;  %19000 = vst [vmem:[#allocation236_spill] sm:$0xff] %v11979_v45  ;;  %vm19001_vm6 = vcmp.eq.f32.partialorder %v18824_v4, 1065353216  ;;  %vm3489_vm13 = vcmp.eq.f32.partialorder %v18856_v32, 1065353216  ;;  %vm19003_vm2 = vcmp.lt.f32.partialorder %v18862_v58, 0 }
 0x279   :  { %7783 = vpow2.f32 %v3719_v54  ;;  %v11983_v10 = vsel %vm19001_vm6, 1065353216, %v3425_v12  ;;  %v3545_v5 = vsel %vm19003_vm2, 2143289344, %v7758_v7  ;;  %v19004_v60 = vand.u32 2147483647, %v18990_v24  ;;  %v7762_v54 = vpop.eup %7761 }
 0x27a   :  { %19002 = vst [vmem:[#allocation237_spill] sm:$0xff] %v11983_v10  ;;  %vm19005_vm4 = vcmp.ne.f32.partialorder %v18841_v53, %v18841_v53  ;;  %v3473_v4 = vsel %vm11878_vm0, 2139095040, %v3468_v55  ;;  %vm3541_vm8 = vcmp.eq.f32.partialorder %v18862_v58, 1065353216  ;;  %vm3591_vm11 = vcmp.lt.f32.partialorder %v18886_v11, 0  ;;  %v7764_v25 = vpop.eup %7763 }
 0x27b   :  { %7785 = vlog2.f32 %v19004_v60  ;;  %v3451_v23 = vsel %vm19005_vm4, 2143289344, %v3447_v56  ;;  %v19006_v7 = vand.u32 2147483647, %v18992_v28  ;;  %v3494_v12 = vsel %vm3488_vm9, 0, %v3493_v39  ;;  %v7766_v33 = vpop.eup %7765 }
 0x27c   :  { %vm19007_vm2 = vcmp.eq.f32.partialorder %v18860_v40, 0  ;;  %vm3617_vm0 = vcmp.lt.f32.partialorder %v18894_v30, 0  ;;  %v3546_v55 = vsel %vm3540_vm12, 0, %v3545_v5  ;;  %v3571_v52 = vsel %vm3565_vm7, 2143289344, %v7760_v42  ;;  %v7768_v39 = vpop.eup %7767 }
 0x27d   :  { %7787 = vlog2.f32 %v19006_v7  ;;  %v3520_v56 = vsel %vm19007_vm2, 0, %v3519_v50  ;;  %v12017_v50 = vsel %vm3437_vm5, 1065353216, %v3451_v23  ;;  %vm19009_vm9 = vcmp.ne.f32.partialorder %v18846_v26, %v18846_v26  ;;  %v7770_v42 = vpop.eup %7769 }
 0x27e   :  { %7789 = vpow2.f32 %v3745_v27  ;;  %19008 = vst [vmem:[#allocation238_spill] sm:$0xff] %v12017_v50  ;;  %v3477_v27 = vsel %vm19009_vm9, 2143289344, %v3473_v4  ;;  %v3771_v5 = vmul.f32 0.1, %v7762_v54  ;;  %v3499_v60 = vsel %vm11917_vm10, 2139095040, %v3494_v12  ;;  %v7772_v36 = vpop.eup %7771 }
 0x27f   :  { %7791 = vlog2.f32 %v17600_v8  ;;  %v3525_v7 = vsel %vm11923_vm15, 2139095040, %v3520_v56  ;;  %v19010_v53 = vand.u32 2147483647, %v18886_v11  ;;  %v19013_v4 = vand.u32 2147483647, %v18894_v30 }
 0x280   :  { %v3797_v54 = vmul.f32 0.1, %v7764_v25  ;;  %v3551_v29 = vsel %vm11934_vm3, 2139095040, %v3546_v55  ;;  %vm19016_vm10 = vcmp.eq.f32.partialorder %v18874_v0, 0  ;;  %vm3644_vm15 = vcmp.eq.f32.partialorder %v18898_v62, 0 }
 0x281   :  { %vm12030_vm7 = vcmp.eq.f32.partialorder %v19010_v53, 2139095040  ;;  %vm12036_vm5 = vcmp.eq.f32.partialorder %v19013_v4, 2139095040  ;;  %v3572_v12 = vsel %vm19016_vm10, 0, %v3571_v52  ;;  %vm3695_vm12 = vcmp.lt.f32.partialorder %v18910_v20, 0  ;;  %v7774_v53 = vpop.eup %7773 }
 0x282   :  { %v3823_v56 = vmul.f32 0.1, %v7766_v33  ;;  %vm19017_vm6 = vcmp.eq.f32.partialorder %v18846_v26, 1065353216  ;;  %vm3721_vm4 = vcmp.lt.f32.partialorder %v10436_v14, 0  ;;  %v7776_v55 = vpop.eup %7775  ;;  %v3503_v52 = vsel %vm3500_vm14, 2143289344, %v3499_v60  ;;  %v19021_v26 = vld [vmem:[#allocation255_spill] sm:$0xff] }
 0x283   :  { %v12050_v4 = vsel %vm19017_vm6, 1065353216, %v3477_v27  ;;  %vm19020_vm10 = vcmp.ne.f32.partialorder %v18860_v40, %v18860_v40  ;;  %vm3604_vm6 = vcmp.ne.f32.partialorder %v18886_v11, %v18886_v11  ;;  %7793 = vpow2.f32 %v3771_v5  ;;  %v7778_v25 = vpop.eup %7777 }
 0x284   :  { %19018 = vst [vmem:[#allocation239_spill] sm:$0xff] %v12050_v4  ;;  %v3529_v33 = vsel %vm19020_vm10, 2143289344, %v3525_v7  ;;  %vm19022_vm3 = vcmp.ne.f32.partialorder %v18862_v58, %v18862_v58  ;;  %v3577_v4 = vsel %vm11966_vm1, 2139095040, %v3572_v12  ;;  %v19023_v7 = vand.u32 2147483647, %v18898_v62  ;;  %v7780_v45 = vpop.eup %7779 }
 0x285   :  { %v3555_v60 = vsel %vm19022_vm3, 2143289344, %v3551_v29  ;;  %v19026_v10 = vand.u32 2147483647, %v18902_v19  ;;  %7795 = vpow2.f32 %v3797_v54  ;;  %v3849_v27 = vmul.f32 0.1, %v7772_v36  ;;  %v19035_v54 = vld [vmem:[#allocation256_spill] sm:$0xff]  ;;  %v7782_v15 = vpop.eup %7781 }
 0x286   :  { %vm12075_vm14 = vcmp.eq.f32.partialorder %v19023_v7, 2139095040  ;;  %v3597_v29 = vsel %vm3591_vm11, 2143289344, %v7768_v39  ;;  %v3623_v46 = vsel %vm3617_vm0, 2143289344, %v7770_v42  ;;  %v19029_v12 = vand.u32 2147483647, %v18910_v20  ;;  %v7784_v59 = vpop.eup %7783 }
 0x287   :  { %vm12081_vm10 = vcmp.eq.f32.partialorder %v19026_v10, 2139095040  ;;  %v19032_v10 = vand.u32 2147483647, %v10436_v14  ;;  %7797 = vpow2.f32 %v3823_v56  ;;  %v12104_v39 = vsel %vm3489_vm13, 1065353216, %v3503_v52 }
 0x288   :  { %vm12091_vm1 = vcmp.eq.f32.partialorder %v19029_v12, 2139095040  ;;  %19036 = vst [vmem:[#allocation240_spill] sm:$0xff] %v12104_v39  ;;  %vm19037_vm11 = vcmp.eq.f32.partialorder %v18860_v40, 1065353216  ;;  %v19039_v12 = vand.u32 2147483647, %v19019_v41  ;;  %v12117_v36 = vsel %vm3541_vm8, 1065353216, %v3555_v60 }
 0x289   :  { %vm12097_vm3 = vcmp.eq.f32.partialorder %v19032_v10, 2139095040  ;;  %v12108_v42 = vsel %vm19037_vm11, 1065353216, %v3529_v33  ;;  %v19040_v10 = vld [vmem:[#allocation257_spill] sm:$0xff]  ;;  %19041 = vst [vmem:[#allocation242_spill] sm:$0xff] %v12117_v36  ;;  %vm19042_vm13 = vcmp.ne.f32.partialorder %v18874_v0, %v18874_v0  ;;  %v3875_v40 = vmul.f32 0.1, %v7778_v25  ;;  %v7786_v33 = vpop.eup %7785 }
 0x28a   :  { %19038 = vst [vmem:[#allocation241_spill] sm:$0xff] %v12108_v42  ;;  %7799 = vlog2.f32 %v19039_v12  ;;  %v3581_v32 = vsel %vm19042_vm13, 2143289344, %v3577_v4  ;;  %v19043_v52 = vand.u32 2147483647, %v19021_v26  ;;  %vm19044_vm2 = vcmp.eq.f32.partialorder %v18886_v11, 0  ;;  %v19046_v4 = vld [vmem:[#allocation258_spill] sm:$0xff]  ;;  %v7788_v60 = vpop.eup %7787 }
 0x28b   :  { %v3598_v12 = vsel %vm19044_vm2, 0, %v3597_v29  ;;  %vm19045_vm8 = vcmp.eq.f32.partialorder %v18894_v30, 0  ;;  %vm3682_vm9 = vcmp.ne.f32.partialorder %v18902_v19, %v18902_v19  ;;  %vm19047_vm11 = vcmp.lt.f32.partialorder %v18898_v62, 0  ;;  %v7790_v25 = vpop.eup %7789 }
 0x28c   :  { %7801 = vlog2.f32 %v19043_v52  ;;  %v3624_v58 = vsel %vm19045_vm8, 0, %v3623_v46  ;;  %v3649_v52 = vsel %vm19047_vm11, 2143289344, %v7774_v53  ;;  %vm19048_vm2 = vcmp.lt.f32.partialorder %v18902_v19, 0 }
 0x28d   :  { %7803 = vpow2.f32 %v3849_v27  ;;  %v3675_v29 = vsel %vm19048_vm2, 2143289344, %v7776_v55  ;;  %v19049_v46 = vand.u32 2147483647, %v18928_v21  ;;  %v3901_v36 = vmul.f32 0.1, %v7782_v15 }
 0x28e   :  { %v19052_v27 = vand.u32 2147483647, %v19035_v54  ;;  %vm19053_vm0 = vcmp.eq.f32.partialorder %v18874_v0, 1065353216  ;;  %vm3645_vm11 = vcmp.eq.f32.partialorder %v18898_v62, 1065353216  ;;  %v3701_v53 = vsel %vm3695_vm12, 2143289344, %v7780_v45 }
 0x28f   :  { %vm12144_vm8 = vcmp.eq.f32.partialorder %v19049_v46, 2139095040  ;;  %v12153_v42 = vsel %vm19053_vm0, 1065353216, %v3581_v32  ;;  %v3727_v55 = vsel %vm3721_vm4, 2143289344, %v7784_v59  ;;  %v19055_v15 = vand.u32 2147483647, %v19040_v10  ;;  %v7792_v46 = vpop.eup %7791 }
 0x290   :  { %7805 = vlog2.f32 %v19052_v27  ;;  %19054 = vst [vmem:[#allocation243_spill] sm:$0xff] %v12153_v42  ;;  %v3603_v0 = vsel %vm12030_vm7, 2139095040, %v3598_v12  ;;  %v3629_v32 = vsel %vm12036_vm5, 2139095040, %v3624_v58  ;;  %vm3671_vm0 = vcmp.eq.f32.partialorder %v18902_v19, 1065353216  ;;  %v19060_v12 = vld [vmem:[#allocation259_spill] sm:$0xff] }
 0x291   :  { %7807 = vlog2.f32 %v19055_v15  ;;  %v3927_v59 = vmul.f32 0.1, %v7786_v33  ;;  %v3650_v45 = vsel %vm3644_vm15, 0, %v3649_v52  ;;  %vm19056_vm4 = vcmp.eq.f32.partialorder %v18902_v19, 0 }
 0x292   :  { %7809 = vpow2.f32 %v3875_v40  ;;  %v3676_v27 = vsel %vm19056_vm4, 0, %v3675_v29  ;;  %vm3723_vm13 = vcmp.eq.f32.partialorder %v10436_v14, 1065353216  ;;  %vm3760_vm7 = vcmp.ne.f32.partialorder %v18928_v21, %v18928_v21 }
 0x293   :  { %v3953_v8 = vmul.f32 0.1, %v7788_v60  ;;  %v19057_v23 = vand.u32 2147483647, %v19046_v4  ;;  %vm19058_vm5 = vcmp.eq.f32.partialorder %v18910_v20, 0  ;;  %vm19059_vm12 = vcmp.eq.f32.partialorder %v10436_v14, 0 }
 0x294   :  { %v3702_v40 = vsel %vm19058_vm5, 0, %v3701_v53  ;;  %v3728_v33 = vsel %vm19059_vm12, 0, %v3727_v55  ;;  %vm3800_vm15 = vcmp.eq.f32.partialorder %v18954_v35, 0  ;;  %v17601_v58 = vand.u32 2147483647, %v19060_v12 }
 0x295   :  { %7811 = vlog2.f32 %v19057_v23  ;;  %v3607_v60 = vsel %vm3604_vm6, 2143289344, %v3603_v0  ;;  %vm19061_vm2 = vcmp.ne.f32.partialorder %v18894_v30, %v18894_v30  ;;  %vm19062_vm5 = vcmp.lt.f32.partialorder %v18928_v21, 0  ;;  %v7794_v23 = vpop.eup %7793 }
 0x296   :  { %7813 = vpow2.f32 %v3901_v36  ;;  %v3633_v52 = vsel %vm19061_vm2, 2143289344, %v3629_v32  ;;  %v3753_v29 = vsel %vm19062_vm5, 2143289344, %v7790_v25  ;;  %v3979_v53 = vmul.f32 0.1, %v7792_v46  ;;  %v19066_v32 = vld [vmem:[#allocation260_spill] sm:$0xff]  ;;  %v7796_v7 = vpop.eup %7795 }
 0x297   :  { %v3655_v55 = vsel %vm12075_vm14, 2139095040, %v3650_v45  ;;  %v3681_v36 = vsel %vm12081_vm10, 2139095040, %v3676_v27  ;;  %v19063_v15 = vand.u32 2147483647, %v18949_v61  ;;  %7815 = vpow2.f32 %v3927_v59  ;;  %v19073_v59 = vld [vmem:[#allocation261_spill] sm:$0xff] }
 0x298   :  { %v3707_v46 = vsel %vm12091_vm1, 2139095040, %v3702_v40  ;;  %v3733_v50 = vsel %vm12097_vm3, 2139095040, %v3728_v33  ;;  %v19067_v5 = vand.u32 2147483647, %v18954_v35  ;;  %v19070_v27 = vand.u32 2147483647, %v10451_v47  ;;  %v7798_v33 = vpop.eup %7797 }
 0x299   :  { %vm12203_vm6 = vcmp.eq.f32.partialorder %v19063_v15, 2139095040  ;;  %7817 = vpow2.f32 %v3953_v8  ;;  %v17602_v25 = vand.u32 2147483647, %v19073_v59  ;;  %vm19074_vm1 = vcmp.eq.f32.partialorder %v18886_v11, 1065353216 }
 0x29a   :  { %vm12214_vm14 = vcmp.eq.f32.partialorder %v19067_v5, 2139095040  ;;  %vm12220_vm10 = vcmp.eq.f32.partialorder %v19070_v27, 2139095040  ;;  %v12227_v51 = vsel %vm19074_vm1, 1065353216, %v3607_v60  ;;  %vm19076_vm3 = vcmp.eq.f32.partialorder %v18928_v21, 0  ;;  %v19080_v60 = vld [vmem:[#allocation262_spill] sm:$0xff]  ;;  %v7800_v5 = vpop.eup %7799 }
 0x29b   :  { %19075 = vst [vmem:[#allocation244_spill] sm:$0xff] %v12227_v51  ;;  %v3754_v40 = vsel %vm19076_vm3, 0, %v3753_v29  ;;  %vm3852_vm2 = vcmp.eq.f32.partialorder %v18965_v9, 0  ;;  %vm3877_vm5 = vcmp.lt.f32.partialorder %v10460_v43, 0  ;;  %7819 = vlog2.f32 %v17601_v58  ;;  %v19088_v29 = vld [vmem:[#allocation263_spill] sm:$0xff] }
 0x29c   :  { %vm19077_vm4 = vcmp.eq.f32.partialorder %v18894_v30, 1065353216  ;;  %vm19079_vm12 = vcmp.ne.f32.partialorder %v18898_v62, %v18898_v62  ;;  %7821 = vpow2.f32 %v3979_v53  ;;  %v3685_v27 = vsel %vm3682_vm9, 2143289344, %v3681_v36 }
 0x29d   :  { %v12237_v8 = vsel %vm19077_vm4, 1065353216, %v3633_v52  ;;  %v3659_v11 = vsel %vm19079_vm12, 2143289344, %v3655_v55  ;;  %vm19081_vm4 = vcmp.ne.f32.partialorder %v18910_v20, %v18910_v20  ;;  %vm19082_vm12 = vcmp.ne.f32.partialorder %v10436_v14, %v10436_v14  ;;  %v7802_v55 = vpop.eup %7801 }
 0x29e   :  { %19078 = vst [vmem:[#allocation245_spill] sm:$0xff] %v12237_v8  ;;  %v3711_v30 = vsel %vm19081_vm4, 2143289344, %v3707_v46  ;;  %v3737_v52 = vsel %vm19082_vm12, 2143289344, %v3733_v50  ;;  %vm3812_vm1 = vcmp.ne.f32.partialorder %v18954_v35, %v18954_v35  ;;  %v19083_v53 = vand.u32 2147483647, %v19066_v32  ;;  %v7804_v8 = vpop.eup %7803 }
 0x29f   :  { %v3759_v36 = vsel %vm12144_vm8, 2139095040, %v3754_v40  ;;  %vm19084_vm9 = vcmp.lt.f32.partialorder %v18949_v61, 0  ;;  %v19085_v58 = vand.u32 2147483647, %v18965_v9  ;;  %v12277_v56 = vsel %vm3645_vm11, 1065353216, %v3659_v11  ;;  %v19092_v40 = vld [vmem:[#allocation264_spill] sm:$0xff] }
 0x2a0   :  { %7823 = vlog2.f32 %v19083_v53  ;;  %v3779_v46 = vsel %vm19084_vm9, 2143289344, %v7794_v23  ;;  %19089 = vst [vmem:[#allocation246_spill] sm:$0xff] %v12277_v56  ;;  %vm19090_vm9 = vcmp.lt.f32.partialorder %v18954_v35, 0  ;;  %vm19091_vm3 = vcmp.lt.f32.partialorder %v10451_v47, 0 }
 0x2a1   :  { %vm12267_vm4 = vcmp.eq.f32.partialorder %v19085_v58, 2139095040  ;;  %7825 = vlog2.f32 %v17602_v25  ;;  %v3805_v58 = vsel %vm19090_vm9, 2143289344, %v7796_v7  ;;  %v3831_v23 = vsel %vm19091_vm3, 2143289344, %v7798_v33  ;;  %v7806_v25 = vpop.eup %7805 }
 0x2a2   :  { %vm3904_vm12 = vcmp.eq.f32.partialorder %v18983_v2, 0  ;;  %v12288_v53 = vsel %vm3671_vm0, 1065353216, %v3685_v27  ;;  %vm19094_vm11 = vcmp.eq.f32.partialorder %v18910_v20, 1065353216  ;;  %vm3801_vm8 = vcmp.eq.f32.partialorder %v18954_v35, 1065353216  ;;  %v7808_v11 = vpop.eup %7807 }
 0x2a3   :  { %19093 = vst [vmem:[#allocation247_spill] sm:$0xff] %v12288_v53  ;;  %v12292_v62 = vsel %vm19094_vm11, 1065353216, %v3711_v30  ;;  %v4005_v7 = vmul.f32 0.1, %v7800_v5  ;;  %v19096_v33 = vand.u32 2147483647, %v19080_v60  ;;  %v7810_v30 = vpop.eup %7809  ;;  %vm3890_vm3 = vcmp.ne.f32.partialorder %v10460_v43, %v10460_v43 }
 0x2a4   :  { %19095 = vst [vmem:[#allocation248_spill] sm:$0xff] %v12292_v62  ;;  %v12300_v51 = vsel %vm3723_vm13, 1065353216, %v3737_v52  ;;  %v3763_v19 = vsel %vm3760_vm7, 2143289344, %v3759_v36  ;;  %vm19098_vm0 = vcmp.eq.f32.partialorder %v18949_v61, 0  ;;  %v19099_v5 = vand.u32 2147483647, %v10460_v43  ;;  %v7812_v53 = vpop.eup %7811 }
 0x2a5   :  { %7827 = vlog2.f32 %v19096_v33  ;;  %19097 = vst [vmem:[#allocation249_spill] sm:$0xff] %v12300_v51  ;;  %v3780_v20 = vsel %vm19098_vm0, 0, %v3779_v46  ;;  %v4031_v14 = vmul.f32 0.1, %v7802_v55  ;;  %v3806_v52 = vsel %vm3800_vm15, 0, %v3805_v58  ;;  %v19107_v51 = vld [vmem:[#allocation265_spill] sm:$0xff] }
 0x2a6   :  { %vm12312_vm9 = vcmp.eq.f32.partialorder %v19099_v5, 2139095040  ;;  %vm19102_vm7 = vcmp.eq.f32.partialorder %v10451_v47, 0  ;;  %v19103_v46 = vand.u32 2147483647, %v18983_v2  ;;  %v19106_v5 = vand.u32 2147483647, %v19088_v29 }
 0x2a7   :  { %v3832_v36 = vsel %vm19102_vm7, 0, %v3831_v23  ;;  %v17603_v62 = vand.u32 2147483647, %v19107_v51  ;;  %vm19108_vm13 = vcmp.lt.f32.partialorder %v18965_v9, 0  ;;  %vm3981_vm11 = vcmp.lt.f32.partialorder %v18999_v57, 0 }
 0x2a8   :  { %vm12323_vm0 = vcmp.eq.f32.partialorder %v19103_v46, 2139095040  ;;  %7829 = vlog2.f32 %v19106_v5  ;;  %v3857_v55 = vsel %vm19108_vm13, 2143289344, %v7804_v8  ;;  %v4057_v58 = vmul.f32 0.1, %v7806_v25  ;;  %v7814_v46 = vpop.eup %7813 }
 0x2a9   :  { %v19109_v23 = vand.u32 2147483647, %v19092_v40  ;;  %vm19110_vm7 = vcmp.eq.f32.partialorder %v18928_v21, 1065353216  ;;  %v3785_v5 = vsel %vm12203_vm6, 2139095040, %v3780_v20  ;;  %vm3956_vm13 = vcmp.eq.f32.partialorder %v18992_v28, 0  ;;  %v19112_v21 = vld [vmem:[#allocation266_spill] sm:$0xff] }
 0x2aa   :  { %v12338_v56 = vsel %vm19110_vm7, 1065353216, %v3763_v19  ;;  %v4083_v8 = vmul.f32 0.1, %v7808_v11  ;;  %v3811_v25 = vsel %vm12214_vm14, 2139095040, %v3806_v52  ;;  %vm3853_vm15 = vcmp.eq.f32.partialorder %v18965_v9, 1065353216  ;;  %v7816_v19 = vpop.eup %7815 }
 0x2ab   :  { %7831 = vlog2.f32 %v19109_v23  ;;  %19111 = vst [vmem:[#allocation250_spill] sm:$0xff] %v12338_v56  ;;  %v3837_v23 = vsel %vm12220_vm10, 2139095040, %v3832_v36  ;;  %v3883_v45 = vsel %vm3877_vm5, 2143289344, %v7810_v30  ;;  %v19113_v15 = vand.u32 2147483647, %v18990_v24 }
 0x2ac   :  { %7833 = vpow2.f32 %v4005_v7  ;;  %v3858_v7 = vsel %vm3852_vm2, 0, %v3857_v55  ;;  %v4109_v20 = vmul.f32 0.1, %v7812_v53  ;;  %vm19116_vm10 = vcmp.ne.f32.partialorder %v18949_v61, %v18949_v61  ;;  %v19121_v53 = vld [vmem:[#allocation267_spill] sm:$0xff] }
 0x2ad   :  { %7835 = vpow2.f32 %v4031_v14  ;;  %vm12360_vm14 = vcmp.eq.f32.partialorder %v19113_v15, 2139095040  ;;  %v7818_v14 = vpop.eup %7817  ;;  %v3789_v52 = vsel %vm19116_vm10, 2143289344, %v3785_v5  ;;  %vm19117_vm6 = vcmp.lt.f32.partialorder %v18983_v2, 0 }
 0x2ae   :  { %7837 = vlog2.f32 %v17603_v62  ;;  %v3909_v30 = vsel %vm19117_vm6, 2143289344, %v7814_v46  ;;  %v19118_v36 = vand.u32 2147483647, %v18992_v28  ;;  %v7820_v62 = vpop.eup %7819  ;;  %v3815_v0 = vsel %vm3812_vm1, 2143289344, %v3811_v25 }
 0x2af   :  { %7839 = vpow2.f32 %v4057_v58  ;;  %vm19122_vm10 = vcmp.ne.f32.partialorder %v10451_v47, %v10451_v47  ;;  %v19123_v46 = vand.u32 2147483647, %v18999_v57  ;;  %v7822_v58 = vpop.eup %7821  ;;  %v3863_v15 = vsel %vm12267_vm4, 2139095040, %v3858_v7  ;;  %v19131_v7 = vld [vmem:[#allocation269_spill] sm:$0xff] }
 0x2b0   :  { %vm12374_vm5 = vcmp.eq.f32.partialorder %v19118_v36, 2139095040  ;;  %v3841_v5 = vsel %vm19122_vm10, 2143289344, %v3837_v23  ;;  %7841 = vpow2.f32 %v4083_v8  ;;  %vm19126_vm7 = vcmp.eq.f32.partialorder %v10460_v43, 0  ;;  %v7824_v42 = vpop.eup %7823 }
 0x2b1   :  { %vm12388_vm2 = vcmp.eq.f32.partialorder %v19123_v46, 2139095040  ;;  %v3884_v25 = vsel %vm19126_vm7, 0, %v3883_v45  ;;  %vm3942_vm1 = vcmp.ne.f32.partialorder %v18990_v24, %v18990_v24  ;;  %v19127_v23 = vand.u32 2147483647, %v19112_v21  ;;  %v19128_v46 = vld [vmem:[#allocation268_spill] sm:$0xff]  ;;  %v7826_v39 = vpop.eup %7825 }
 0x2b2   :  { %v17605_v56 = vand.u32 2147483647, %v19128_v46  ;;  %vm19129_vm6 = vcmp.eq.f32.partialorder %v18949_v61, 1065353216  ;;  %v3910_v50 = vsel %vm3904_vm12, 0, %v3909_v30  ;;  %vm3968_vm4 = vcmp.ne.f32.partialorder %v18992_v28, %v18992_v28 }
 0x2b3   :  { %7843 = vlog2.f32 %v19127_v23  ;;  %v12404_v8 = vsel %vm19129_vm6, 1065353216, %v3789_v52  ;;  %v17604_v45 = vand.u32 2147483647, %v19131_v7  ;;  %v12414_v23 = vsel %vm3801_vm8, 1065353216, %v3815_v0 }
 0x2b4   :  { %19130 = vst [vmem:[#allocation251_spill] sm:$0xff] %v12404_v8  ;;  %7845 = vpow2.f32 %v4109_v20  ;;  %19132 = vst [vmem:[#allocation252_spill] sm:$0xff] %v12414_v23  ;;  %vm19133_vm10 = vcmp.lt.f32.partialorder %v18990_v24, 0  ;;  %v4135_v52 = vmul.f32 0.1, %v7820_v62  ;;  %vm19135_vm12 = vcmp.eq.f32.partialorder %v10451_v47, 1065353216  ;;  %v7828_v62 = vpop.eup %7827 }
 0x2b5   :  { %v3935_v61 = vsel %vm19133_vm10, 2143289344, %v7816_v19  ;;  %v19134_v30 = vand.u32 2147483647, %v19121_v53  ;;  %v12424_v20 = vsel %vm19135_vm12, 1065353216, %v3841_v5  ;;  %vm19137_vm7 = vcmp.ne.f32.partialorder %v18965_v9, %v18965_v9 }
 0x2b6   :  { %19136 = vst [vmem:[#allocation253_spill] sm:$0xff] %v12424_v20  ;;  %v3867_v35 = vsel %vm19137_vm7, 2143289344, %v3863_v15  ;;  %v3889_v0 = vsel %vm12312_vm9, 2139095040, %v3884_v25  ;;  %vm3931_vm8 = vcmp.eq.f32.partialorder %v18990_v24, 1065353216  ;;  %vm19138_vm10 = vcmp.lt.f32.partialorder %v18992_v28, 0  ;;  %v7830_v15 = vpop.eup %7829 }
 0x2b7   :  { %7847 = vlog2.f32 %v19134_v30  ;;  %v3961_v19 = vsel %vm19138_vm10, 2143289344, %v7818_v14  ;;  %v3915_v47 = vsel %vm12323_vm0, 2139095040, %v3910_v50  ;;  %vm3957_vm12 = vcmp.eq.f32.partialorder %v18992_v28, 1065353216 }
 0x2b8   :  { %v3987_v5 = vsel %vm3981_vm11, 2143289344, %v7822_v58  ;;  %vm4034_vm7 = vcmp.eq.f32.partialorder %v19021_v26, 0  ;;  %vm4059_vm9 = vcmp.lt.f32.partialorder %v19035_v54, 0  ;;  %v4161_v27 = vmul.f32 0.1, %v7824_v42  ;;  %v7832_v30 = vpop.eup %7831 }
 0x2b9   :  { %7849 = vlog2.f32 %v17605_v56  ;;  %vm19139_vm10 = vcmp.eq.f32.partialorder %v18990_v24, 0  ;;  %vm3983_vm6 = vcmp.eq.f32.partialorder %v18999_v57, 1065353216  ;;  %v4187_v33 = vmul.f32 0.1, %v7826_v39  ;;  %v7834_v39 = vpop.eup %7833 }
 0x2ba   :  { %v3936_v14 = vsel %vm19139_vm10, 0, %v3935_v61  ;;  %7851 = vlog2.f32 %v17604_v45  ;;  %v3893_v58 = vsel %vm3890_vm3, 2143289344, %v3889_v0  ;;  %v3962_v42 = vsel %vm3956_vm13, 0, %v3961_v19  ;;  %v19143_v61 = vld [vmem:[#allocation270_spill] sm:$0xff] }
 0x2bb   :  { %v19140_v25 = vand.u32 2147483647, %v19019_v41  ;;  %7853 = vpow2.f32 %v4135_v52  ;;  %v12464_v45 = vsel %vm3853_vm15, 1065353216, %v3867_v35  ;;  %vm19145_vm3 = vcmp.ne.f32.partialorder %v18983_v2, %v18983_v2  ;;  %v19150_v35 = vld [vmem:[#allocation271_spill] sm:$0xff] }
 0x2bc   :  { %19144 = vst [vmem:[#allocation254_spill] sm:$0xff] %v12464_v45  ;;  %v3919_v0 = vsel %vm19145_vm3, 2143289344, %v3915_v47  ;;  %vm19146_vm13 = vcmp.eq.f32.partialorder %v18999_v57, 0  ;;  %v4213_v52 = vmul.f32 0.1, %v7828_v62  ;;  %v3941_v9 = vsel %vm12360_vm14, 2139095040, %v3936_v14 }
 0x2bd   :  { %vm12457_vm11 = vcmp.eq.f32.partialorder %v19140_v25, 2139095040  ;;  %v3988_v19 = vsel %vm19146_vm13, 0, %v3987_v5  ;;  %v19147_v25 = vand.u32 2147483647, %v19021_v26  ;;  %7855 = vpow2.f32 %v4161_v27  ;;  %v7836_v5 = vpop.eup %7835 }
 0x2be   :  { %v17606_v47 = vand.u32 2147483647, %v19150_v35  ;;  %vm19151_vm13 = vcmp.eq.f32.partialorder %v10460_v43, 1065353216  ;;  %v3967_v45 = vsel %vm12374_vm5, 2139095040, %v3962_v42  ;;  %7857 = vpow2.f32 %v4187_v33  ;;  %v7838_v62 = vpop.eup %7837 }
 0x2bf   :  { %vm12473_vm10 = vcmp.eq.f32.partialorder %v19147_v25, 2139095040  ;;  %v12485_v25 = vsel %vm19151_vm13, 1065353216, %v3893_v58  ;;  %v4239_v11 = vmul.f32 0.1, %v7830_v15  ;;  %vm19153_vm15 = vcmp.eq.f32.partialorder %v18983_v2, 1065353216  ;;  %v7840_v15 = vpop.eup %7839 }
 0x2c0   :  { %19152 = vst [vmem:[#allocation255_spill] sm:$0xff] %v12485_v25  ;;  %v12494_v27 = vsel %vm19153_vm15, 1065353216, %v3919_v0  ;;  %v3993_v43 = vsel %vm12388_vm2, 2139095040, %v3988_v19  ;;  %v19155_v55 = vand.u32 2147483647, %v19035_v54  ;;  %v3945_v2 = vsel %vm3942_vm1, 2143289344, %v3941_v9 }
 0x2c1   :  { %19154 = vst [vmem:[#allocation256_spill] sm:$0xff] %v12494_v27  ;;  %v4265_v58 = vmul.f32 0.1, %v7832_v30  ;;  %v19158_v33 = vand.u32 2147483647, %v19143_v61  ;;  %vm19159_vm2 = vcmp.lt.f32.partialorder %v19019_v41, 0  ;;  %v7842_v30 = vpop.eup %7841  ;;  %vm4072_vm14 = vcmp.ne.f32.partialorder %v19035_v54, %v19035_v54 }
 0x2c2   :  { %vm12502_vm5 = vcmp.eq.f32.partialorder %v19155_v55, 2139095040  ;;  %v4013_v36 = vsel %vm19159_vm2, 2143289344, %v7834_v39  ;;  %v19160_v42 = vand.u32 2147483647, %v19040_v10  ;;  %v3971_v19 = vsel %vm3968_vm4, 2143289344, %v3967_v45 }
 0x2c3   :  { %7859 = vlog2.f32 %v19158_v33  ;;  %vm19163_vm1 = vcmp.lt.f32.partialorder %v19021_v26, 0  ;;  %v19164_v39 = vand.u32 2147483647, %v19046_v4  ;;  %vm19168_vm4 = vcmp.ne.f32.partialorder %v18999_v57, %v18999_v57 }
 0x2c4   :  { %vm12515_vm15 = vcmp.eq.f32.partialorder %v19160_v42, 2139095040  ;;  %7861 = vpow2.f32 %v4213_v52  ;;  %v4039_v9 = vsel %vm19163_vm1, 2143289344, %v7836_v5  ;;  %v19167_v52 = vld [vmem:[#allocation272_spill] sm:$0xff]  ;;  %v7844_v42 = vpop.eup %7843  ;;  %v3997_v45 = vsel %vm19168_vm4, 2143289344, %v3993_v43  ;;  %v19171_v43 = vld [vmem:[#allocation273_spill] sm:$0xff] }
 0x2c5   :  { %vm12528_vm2 = vcmp.eq.f32.partialorder %v19164_v39, 2139095040  ;;  %7863 = vlog2.f32 %v17606_v47  ;;  %vm4163_vm1 = vcmp.lt.f32.partialorder %v19066_v32, 0  ;;  %v4291_v5 = vmul.f32 0.1, %v7838_v62  ;;  %v7846_v39 = vpop.eup %7845 }
 0x2c6   :  { %7865 = vpow2.f32 %v4239_v11  ;;  %v12543_v27 = vsel %vm3931_vm8, 1065353216, %v3945_v2  ;;  %vm19170_vm13 = vcmp.eq.f32.partialorder %v19019_v41, 0  ;;  %vm4035_vm0 = vcmp.eq.f32.partialorder %v19021_v26, 1065353216  ;;  %v7848_v11 = vpop.eup %7847 }
 0x2c7   :  { %19169 = vst [vmem:[#allocation257_spill] sm:$0xff] %v12543_v27  ;;  %v4014_v47 = vsel %vm19170_vm13, 0, %v4013_v36  ;;  %vm4098_vm4 = vcmp.ne.f32.partialorder %v19040_v10, %v19040_v10  ;;  %7867 = vpow2.f32 %v4265_v58  ;;  %v12554_v62 = vsel %vm3957_vm12, 1065353216, %v3971_v19  ;;  %v19173_v36 = vld [vmem:[#allocation274_spill] sm:$0xff] }
 0x2c8   :  { %19172 = vst [vmem:[#allocation258_spill] sm:$0xff] %v12554_v62  ;;  %v4040_v24 = vsel %vm4034_vm7, 0, %v4039_v9  ;;  %v4065_v2 = vsel %vm4059_vm9, 2143289344, %v7840_v15  ;;  %vm4124_vm8 = vcmp.ne.f32.partialorder %v19046_v4, %v19046_v4  ;;  %vm4189_vm13 = vcmp.lt.f32.partialorder %v19073_v59, 0  ;;  %v7850_v9 = vpop.eup %7849 }
 0x2c9   :  { %v12566_v33 = vsel %vm3983_vm6, 1065353216, %v3997_v45  ;;  %vm19175_vm3 = vcmp.lt.f32.partialorder %v19040_v10, 0  ;;  %v4317_v19 = vmul.f32 0.1, %v7844_v42  ;;  %v19176_v15 = vand.u32 2147483647, %v19167_v52 }
 0x2ca   :  { %19174 = vst [vmem:[#allocation259_spill] sm:$0xff] %v12566_v33  ;;  %v4091_v28 = vsel %vm19175_vm3, 2143289344, %v7842_v30  ;;  %v4019_v62 = vsel %vm12457_vm11, 2139095040, %v4014_v47  ;;  %vm19177_vm6 = vcmp.lt.f32.partialorder %v19046_v4, 0  ;;  %v19178_v45 = vand.u32 2147483647, %v19060_v12 }
 0x2cb   :  { %7869 = vlog2.f32 %v19176_v15  ;;  %v4117_v57 = vsel %vm19177_vm6, 2143289344, %v7846_v39  ;;  %v19181_v30 = vld [vmem:[#allocation275_spill] sm:$0xff]  ;;  %v7852_v15 = vpop.eup %7851  ;;  %v4045_v50 = vsel %vm12473_vm10, 2139095040, %v4040_v24  ;;  %vm19182_vm11 = vcmp.eq.f32.partialorder %v19035_v54, 0  ;;  %v19189_v33 = vld [vmem:[#allocation276_spill] sm:$0xff]  ;;  %v19235_v24 = vld [vmem:[#allocation282_spill] sm:$0xff] }
 0x2cc   :  { %vm12581_vm12 = vcmp.eq.f32.partialorder %v19178_v45, 2139095040  ;;  %7871 = vpow2.f32 %v4291_v5  ;;  %v4066_v47 = vsel %vm19182_vm11, 0, %v4065_v2  ;;  %v4343_v39 = vmul.f32 0.1, %v7848_v11  ;;  %v7854_v5 = vpop.eup %7853 }
 0x2cd   :  { %v19183_v45 = vand.u32 2147483647, %v19171_v43  ;;  %vm19184_vm3 = vcmp.eq.f32.partialorder %v19040_v10, 0  ;;  %v19185_v56 = vand.u32 2147483647, %v19066_v32  ;;  %vm19190_vm7 = vcmp.ne.f32.partialorder %v19019_v41, %v19019_v41  ;;  %v7856_v27 = vpop.eup %7855 }
 0x2ce   :  { %v4092_v42 = vsel %vm19184_vm3, 0, %v4091_v28  ;;  %v19188_v2 = vand.u32 2147483647, %v19173_v36  ;;  %vm19191_vm9 = vcmp.eq.f32.partialorder %v19046_v4, 0  ;;  %vm4150_vm3 = vcmp.ne.f32.partialorder %v19060_v12, %v19060_v12 }
 0x2cf   :  { %7873 = vlog2.f32 %v19183_v45  ;;  %vm12600_vm10 = vcmp.eq.f32.partialorder %v19185_v56, 2139095040  ;;  %v4023_v45 = vsel %vm19190_vm7, 2143289344, %v4019_v62  ;;  %v4118_v28 = vsel %vm19191_vm9, 0, %v4117_v57 }
 0x2d0   :  { %7875 = vlog2.f32 %v19188_v2  ;;  %v4369_v56 = vmul.f32 0.1, %v7850_v9  ;;  %vm19192_vm11 = vcmp.ne.f32.partialorder %v19021_v26, %v19021_v26  ;;  %v4071_v11 = vsel %vm12502_vm5, 2139095040, %v4066_v47  ;;  %v7858_v9 = vpop.eup %7857 }
 0x2d1   :  { %7877 = vpow2.f32 %v4317_v19  ;;  %v4049_v2 = vsel %vm19192_vm11, 2143289344, %v4045_v50  ;;  %v19193_v62 = vand.u32 2147483647, %v19073_v59  ;;  %v4395_v57 = vmul.f32 0.1, %v7852_v15  ;;  %v19198_v50 = vld [vmem:[#allocation277_spill] sm:$0xff] }
 0x2d2   :  { %v19196_v19 = vand.u32 2147483647, %v19181_v30  ;;  %v4097_v20 = vsel %vm12515_vm15, 2139095040, %v4092_v42  ;;  %vm19197_vm11 = vcmp.lt.f32.partialorder %v19060_v12, 0  ;;  %vm4176_vm5 = vcmp.ne.f32.partialorder %v19066_v32, %v19066_v32 }
 0x2d3   :  { %vm12623_vm7 = vcmp.eq.f32.partialorder %v19193_v62, 2139095040  ;;  %v4143_v14 = vsel %vm19197_vm11, 2143289344, %v7854_v5  ;;  %vm4268_vm6 = vcmp.eq.f32.partialorder %v19092_v40, 0  ;;  %v7860_v62 = vpop.eup %7859  ;;  %vm19199_vm9 = vcmp.eq.f32.partialorder %v19019_v41, 1065353216 }
 0x2d4   :  { %7879 = vlog2.f32 %v19196_v19  ;;  %v12640_v15 = vsel %vm19199_vm9, 1065353216, %v4023_v45  ;;  %v4123_v0 = vsel %vm12528_vm2, 2139095040, %v4118_v28  ;;  %v19201_v42 = vand.u32 2147483647, %v19080_v60  ;;  %v7862_v47 = vpop.eup %7861 }
 0x2d5   :  { %7881 = vpow2.f32 %v4343_v39  ;;  %19200 = vst [vmem:[#allocation260_spill] sm:$0xff] %v12640_v15  ;;  %v19204_v19 = vand.u32 2147483647, %v19189_v33  ;;  %v19205_v39 = vld [vmem:[#allocation278_spill] sm:$0xff]  ;;  %v4075_v41 = vsel %vm4072_vm14, 2143289344, %v4071_v11  ;;  %v4169_v55 = vsel %vm4163_vm1, 2143289344, %v7856_v27 }
 0x2d6   :  { %vm12646_vm15 = vcmp.eq.f32.partialorder %v19201_v42, 2139095040  ;;  %v19206_v45 = vand.u32 2147483647, %v19088_v29  ;;  %v7864_v42 = vpop.eup %7863  ;;  %v4101_v27 = vsel %vm4098_vm4, 2143289344, %v4097_v20  ;;  %vm4139_vm14 = vcmp.eq.f32.partialorder %v19060_v12, 1065353216  ;;  %v19241_v15 = vld [vmem:[#allocation283_spill] sm:$0xff] }
 0x2d7   :  { %7883 = vlog2.f32 %v19204_v19  ;;  %v12669_v19 = vsel %vm4035_vm0, 1065353216, %v4049_v2  ;;  %vm19210_vm1 = vcmp.eq.f32.partialorder %v19060_v12, 0  ;;  %v7866_v26 = vpop.eup %7865  ;;  %v4127_v2 = vsel %vm4124_vm8, 2143289344, %v4123_v0 }
 0x2d8   :  { %vm12662_vm9 = vcmp.eq.f32.partialorder %v19206_v45, 2139095040  ;;  %7885 = vpow2.f32 %v4369_v56  ;;  %19209 = vst [vmem:[#allocation261_spill] sm:$0xff] %v12669_v19  ;;  %v4144_v11 = vsel %vm19210_vm1, 0, %v4143_v14  ;;  %v19211_v45 = vand.u32 2147483647, %v19092_v40  ;;  %v7868_v23 = vpop.eup %7867 }
 0x2d9   :  { %7887 = vpow2.f32 %v4395_v57  ;;  %v4195_v20 = vsel %vm4189_vm13, 2143289344, %v7858_v9  ;;  %v4421_v14 = vmul.f32 0.1, %v7860_v62  ;;  %vm19215_vm1 = vcmp.eq.f32.partialorder %v19035_v54, 1065353216  ;;  %v19219_v62 = vld [vmem:[#allocation279_spill] sm:$0xff]  ;;  %v7870_v19 = vpop.eup %7869 }
 0x2da   :  { %vm12680_vm11 = vcmp.eq.f32.partialorder %v19211_v45, 2139095040  ;;  %v19214_v45 = vand.u32 2147483647, %v19198_v50  ;;  %v12696_v57 = vsel %vm19215_vm1, 1065353216, %v4075_v41  ;;  %vm19217_vm2 = vcmp.eq.f32.partialorder %v19066_v32, 0 }
 0x2db   :  { %19216 = vst [vmem:[#allocation262_spill] sm:$0xff] %v12696_v57  ;;  %v4170_v0 = vsel %vm19217_vm2, 0, %v4169_v55  ;;  %v19218_v9 = vand.u32 2147483647, %v19205_v39  ;;  %vm19220_vm4 = vcmp.eq.f32.partialorder %v19040_v10, 1065353216  ;;  %v4149_v41 = vsel %vm12581_vm12, 2139095040, %v4144_v11  ;;  %v7872_v11 = vpop.eup %7871 }
 0x2dc   :  { %7889 = vlog2.f32 %v19214_v45  ;;  %v12709_v54 = vsel %vm19220_vm4, 1065353216, %v4101_v27  ;;  %vm19222_vm2 = vcmp.lt.f32.partialorder %v19080_v60, 0  ;;  %vm4280_vm1 = vcmp.ne.f32.partialorder %v19092_v40, %v19092_v40  ;;  %v7874_v45 = vpop.eup %7873 }
 0x2dd   :  { %7891 = vlog2.f32 %v19218_v9  ;;  %19221 = vst [vmem:[#allocation263_spill] sm:$0xff] %v12709_v54  ;;  %v4221_v55 = vsel %vm19222_vm2, 2143289344, %v7862_v47  ;;  %v4447_v57 = vmul.f32 0.1, %v7864_v42  ;;  %vm19223_vm13 = vcmp.eq.f32.partialorder %v19046_v4, 1065353216  ;;  %v19230_v42 = vld [vmem:[#allocation280_spill] sm:$0xff] }
 0x2de   :  { %v12720_v9 = vsel %vm19223_vm13, 1065353216, %v4127_v2  ;;  %vm19225_vm4 = vcmp.eq.f32.partialorder %v19073_v59, 0  ;;  %vm19226_vm12 = vcmp.lt.f32.partialorder %v19088_v29, 0  ;;  %v19227_v47 = vand.u32 2147483647, %v19107_v51 }
 0x2df   :  { %19224 = vst [vmem:[#allocation264_spill] sm:$0xff] %v12720_v9  ;;  %v4196_v10 = vsel %vm19225_vm4, 0, %v4195_v20  ;;  %v4247_v58 = vsel %vm19226_vm12, 2143289344, %v7866_v26  ;;  %v4175_v2 = vsel %vm12600_vm10, 2139095040, %v4170_v0  ;;  %vm19231_vm4 = vcmp.lt.f32.partialorder %v19092_v40, 0  ;;  %v19232_v26 = vld [vmem:[#allocation281_spill] sm:$0xff]  ;;  %v7876_v0 = vpop.eup %7875 }
 0x2e0   :  { %vm12729_vm2 = vcmp.eq.f32.partialorder %v19227_v47, 2139095040  ;;  %v4273_v20 = vsel %vm19231_vm4, 2143289344, %v7868_v23  ;;  %vm4320_vm12 = vcmp.eq.f32.partialorder %v19112_v21, 0  ;;  %7893 = vpow2.f32 %v4421_v14  ;;  %v7878_v54 = vpop.eup %7877 }
 0x2e1   :  { %v4153_v9 = vsel %vm4150_vm3, 2143289344, %v4149_v41  ;;  %vm19233_vm0 = vcmp.eq.f32.partialorder %v19080_v60, 0  ;;  %vm4269_vm10 = vcmp.eq.f32.partialorder %v19092_v40, 1065353216  ;;  %vm4346_vm13 = vcmp.eq.f32.partialorder %v19121_v53, 0 }
 0x2e2   :  { %v4222_v4 = vsel %vm19233_vm0, 0, %v4221_v55  ;;  %vm4397_vm8 = vcmp.lt.f32.partialorder %v19131_v7, 0  ;;  %v19234_v23 = vand.u32 2147483647, %v19219_v62  ;;  %v4201_v47 = vsel %vm12623_vm7, 2139095040, %v4196_v10 }
 0x2e3   :  { %vm19236_vm3 = vcmp.eq.f32.partialorder %v19088_v29, 0  ;;  %v4473_v55 = vmul.f32 0.1, %v7870_v19  ;;  %v4274_v14 = vsel %vm4268_vm6, 0, %v4273_v20  ;;  %v19237_v25 = vand.u32 2147483647, %v19112_v21  ;;  %v7880_v19 = vpop.eup %7879 }
 0x2e4   :  { %7895 = vlog2.f32 %v19234_v23  ;;  %v4248_v41 = vsel %vm19236_vm3, 0, %v4247_v58  ;;  %v4179_v23 = vsel %vm4176_vm5, 2143289344, %v4175_v2  ;;  %v19240_v58 = vand.u32 2147483647, %v19230_v42 }
 0x2e5   :  { %7897 = vpow2.f32 %v4447_v57  ;;  %vm12767_vm7 = vcmp.eq.f32.partialorder %v19237_v25, 2139095040  ;;  %v4227_v8 = vsel %vm12646_vm15, 2139095040, %v4222_v4  ;;  %vm19242_vm5 = vcmp.lt.f32.partialorder %v19107_v51, 0  ;;  %v7882_v57 = vpop.eup %7881 }
 0x2e6   :  { %7899 = vlog2.f32 %v19240_v58  ;;  %v4299_v2 = vsel %vm19242_vm5, 2143289344, %v7872_v11  ;;  %v19243_v20 = vand.u32 2147483647, %v19121_v53  ;;  %v4499_v25 = vmul.f32 0.1, %v7874_v45  ;;  %v7884_v44 = vpop.eup %7883 }
 0x2e7   :  { %v19246_v58 = vand.u32 2147483647, %v19232_v26  ;;  %vm19247_vm4 = vcmp.ne.f32.partialorder %v19073_v59, %v19073_v59  ;;  %v4253_v4 = vsel %vm12662_vm9, 2139095040, %v4248_v41  ;;  %v19248_v11 = vand.u32 2147483647, %v19128_v46 }
 0x2e8   :  { %vm12780_vm6 = vcmp.eq.f32.partialorder %v19243_v20, 2139095040  ;;  %v4205_v5 = vsel %vm19247_vm4, 2143289344, %v4201_v47  ;;  %v4525_v45 = vmul.f32 0.1, %v7876_v0  ;;  %v12804_v47 = vsel %vm4139_vm14, 1065353216, %v4153_v9  ;;  %v7886_v0 = vpop.eup %7885 }
 0x2e9   :  { %7901 = vlog2.f32 %v19246_v58  ;;  %vm12795_vm5 = vcmp.eq.f32.partialorder %v19248_v11, 2139095040  ;;  %v19251_v58 = vand.u32 2147483647, %v19235_v24  ;;  %19252 = vst [vmem:[#allocation265_spill] sm:$0xff] %v12804_v47  ;;  %vm19253_vm9 = vcmp.eq.f32.partialorder %v19066_v32, 1065353216 }
 0x2ea   :  { %v12808_v28 = vsel %vm19253_vm9, 1065353216, %v4179_v23  ;;  %v4279_v41 = vsel %vm12680_vm11, 2139095040, %v4274_v14  ;;  %vm19255_vm3 = vcmp.ne.f32.partialorder %v19080_v60, %v19080_v60  ;;  %vm19256_vm15 = vcmp.eq.f32.partialorder %v19107_v51, 0 }
 0x2eb   :  { %7903 = vlog2.f32 %v19251_v58  ;;  %19254 = vst [vmem:[#allocation266_spill] sm:$0xff] %v12808_v28  ;;  %v4231_v11 = vsel %vm19255_vm3, 2143289344, %v4227_v8  ;;  %v4300_v12 = vsel %vm19256_vm15, 0, %v4299_v2  ;;  %v19257_v32 = vand.u32 2147483647, %v19131_v7 }
 0x2ec   :  { %7905 = vpow2.f32 %v4473_v55  ;;  %v4551_v9 = vmul.f32 0.1, %v7880_v19  ;;  %v19260_v14 = vand.u32 2147483647, %v19241_v15  ;;  %v7888_v55 = vpop.eup %7887  ;;  %vm19261_vm11 = vcmp.eq.f32.partialorder %v19073_v59, 1065353216 }
 0x2ed   :  { %vm12823_vm9 = vcmp.eq.f32.partialorder %v19257_v32, 2139095040  ;;  %v12831_v8 = vsel %vm19261_vm11, 1065353216, %v4205_v5  ;;  %vm19263_vm3 = vcmp.ne.f32.partialorder %v19088_v29, %v19088_v29  ;;  %vm19264_vm15 = vcmp.lt.f32.partialorder %v19112_v21, 0  ;;  %v7890_v19 = vpop.eup %7889 }
 0x2ee   :  { %7907 = vlog2.f32 %v19260_v14  ;;  %19262 = vst [vmem:[#allocation267_spill] sm:$0xff] %v12831_v8  ;;  %v4257_v23 = vsel %vm19263_vm3, 2143289344, %v4253_v4  ;;  %v4325_v2 = vsel %vm19264_vm15, 2143289344, %v7878_v54  ;;  %vm4384_vm14 = vcmp.ne.f32.partialorder %v19128_v46, %v19128_v46  ;;  %v7892_v4 = vpop.eup %7891 }
 0x2ef   :  { %7909 = vpow2.f32 %v4499_v25  ;;  %v4283_v59 = vsel %vm4280_vm1, 2143289344, %v4279_v41  ;;  %vm4321_vm11 = vcmp.eq.f32.partialorder %v19112_v21, 1065353216  ;;  %vm19265_vm0 = vcmp.lt.f32.partialorder %v19121_v53, 0 }
 0x2f0   :  { %v4351_v5 = vsel %vm19265_vm0, 2143289344, %v7882_v57  ;;  %7911 = vpow2.f32 %v4525_v45  ;;  %v4577_v54 = vmul.f32 0.1, %v7884_v44  ;;  %vm19266_vm15 = vcmp.eq.f32.partialorder %v19080_v60, 1065353216  ;;  %v19269_v57 = vld [vmem:[#allocation284_spill] sm:$0xff] }
 0x2f1   :  { %v12850_v58 = vsel %vm19266_vm15, 1065353216, %v4231_v11  ;;  %v4305_v25 = vsel %vm12729_vm2, 2139095040, %v4300_v12  ;;  %vm4347_vm4 = vcmp.eq.f32.partialorder %v19121_v53, 1065353216  ;;  %vm19268_vm1 = vcmp.lt.f32.partialorder %v19128_v46, 0 }
 0x2f2   :  { %19267 = vst [vmem:[#allocation268_spill] sm:$0xff] %v12850_v58  ;;  %v4377_v41 = vsel %vm19268_vm1, 2143289344, %v7886_v0  ;;  %vm4410_vm0 = vcmp.ne.f32.partialorder %v19131_v7, %v19131_v7  ;;  %v17607_v32 = vand.u32 2147483647, %v19269_v57  ;;  %vm19270_vm3 = vcmp.eq.f32.partialorder %v19088_v29, 1065353216  ;;  %v19275_v0 = vld [vmem:[#allocation285_spill] sm:$0xff] }
 0x2f3   :  { %v12862_v44 = vsel %vm19270_vm3, 1065353216, %v4257_v23  ;;  %v4326_v60 = vsel %vm4320_vm12, 0, %v4325_v2  ;;  %v19272_v27 = vand.u32 2147483647, %v19143_v61  ;;  %7913 = vpow2.f32 %v4551_v9  ;;  %v7894_v2 = vpop.eup %7893 }
 0x2f4   :  { %19271 = vst [vmem:[#allocation269_spill] sm:$0xff] %v12862_v44  ;;  %v17608_v11 = vand.u32 2147483647, %v19275_v0  ;;  %v12876_v12 = vsel %vm4269_vm10, 1065353216, %v4283_v59  ;;  %v4352_v29 = vsel %vm4346_vm13, 0, %v4351_v5  ;;  %v4403_v14 = vsel %vm4397_vm8, 2143289344, %v7888_v55  ;;  %v7896_v55 = vpop.eup %7895 }
 0x2f5   :  { %vm12869_vm2 = vcmp.eq.f32.partialorder %v19272_v27, 2139095040  ;;  %19276 = vst [vmem:[#allocation270_spill] sm:$0xff] %v12876_v12  ;;  %vm4450_vm12 = vcmp.eq.f32.partialorder %v19150_v35, 0  ;;  %v4603_v23 = vmul.f32 0.1, %v7890_v19  ;;  %vm19277_vm1 = vcmp.ne.f32.partialorder %v19107_v51, %v19107_v51  ;;  %v19279_v19 = vld [vmem:[#allocation286_spill] sm:$0xff] }
 0x2f6   :  { %v4309_v9 = vsel %vm19277_vm1, 2143289344, %v4305_v25  ;;  %vm19278_vm15 = vcmp.eq.f32.partialorder %v19128_v46, 0  ;;  %vm4399_vm10 = vcmp.eq.f32.partialorder %v19131_v7, 1065353216  ;;  %7915 = vpow2.f32 %v4577_v54 }
 0x2f7   :  { %v4378_v40 = vsel %vm19278_vm15, 0, %v4377_v41  ;;  %v4629_v59 = vmul.f32 0.1, %v7892_v4  ;;  %v4331_v5 = vsel %vm12767_vm7, 2139095040, %v4326_v60  ;;  %7917 = vlog2.f32 %v17607_v32  ;;  %v7898_v41 = vpop.eup %7897  ;;  %v19284_v60 = vld [vmem:[#allocation287_spill] sm:$0xff] }
 0x2f8   :  { %v4357_v27 = vsel %vm12780_vm6, 2139095040, %v4352_v29  ;;  %vm19280_vm15 = vcmp.eq.f32.partialorder %v19131_v7, 0  ;;  %v19281_v10 = vand.u32 2147483647, %v19150_v35  ;;  %7919 = vlog2.f32 %v17608_v11  ;;  %v7900_v25 = vpop.eup %7899 }
 0x2f9   :  { %v4404_v54 = vsel %vm19280_vm15, 0, %v4403_v14  ;;  %vm19285_vm3 = vcmp.eq.f32.partialorder %v19107_v51, 1065353216  ;;  %v4383_v29 = vsel %vm12795_vm5, 2139095040, %v4378_v40  ;;  %vm19287_vm6 = vcmp.lt.f32.partialorder %v19143_v61, 0 }
 0x2fa   :  { %vm12905_vm7 = vcmp.eq.f32.partialorder %v19281_v10, 2139095040  ;;  %v12915_v22 = vsel %vm19285_vm3, 1065353216, %v4309_v9  ;;  %v4429_v14 = vsel %vm19287_vm6, 2143289344, %v7894_v2  ;;  %vm4502_vm15 = vcmp.eq.f32.partialorder %v19171_v43, 0  ;;  %v7902_v10 = vpop.eup %7901 }
 0x2fb   :  { %19286 = vst [vmem:[#allocation271_spill] sm:$0xff] %v12915_v22  ;;  %7921 = vpow2.f32 %v4603_v23  ;;  %vm19288_vm1 = vcmp.ne.f32.partialorder %v19112_v21, %v19112_v21  ;;  %vm4425_vm8 = vcmp.eq.f32.partialorder %v19143_v61, 1065353216  ;;  %vm4553_vm3 = vcmp.lt.f32.partialorder %v19181_v30, 0  ;;  %v7904_v20 = vpop.eup %7903 }
 0x2fc   :  { %v4335_v11 = vsel %vm19288_vm1, 2143289344, %v4331_v5  ;;  %7923 = vpow2.f32 %v4629_v59  ;;  %v4655_v51 = vmul.f32 0.1, %v7896_v55  ;;  %vm19289_vm5 = vcmp.ne.f32.partialorder %v19121_v53, %v19121_v53  ;;  %v19294_v55 = vld [vmem:[#allocation288_spill] sm:$0xff]  ;;  %v7906_v32 = vpop.eup %7905 }
 0x2fd   :  { %v4361_v2 = vsel %vm19289_vm5, 2143289344, %v4357_v27  ;;  %v4409_v23 = vsel %vm12823_vm9, 2139095040, %v4404_v54  ;;  %v19290_v9 = vand.u32 2147483647, %v19167_v52  ;;  %v19293_v59 = vand.u32 2147483647, %v19279_v19  ;;  %v7908_v5 = vpop.eup %7907 }
 0x2fe   :  { %v4387_v56 = vsel %vm4384_vm14, 2143289344, %v4383_v29  ;;  %vm19295_vm9 = vcmp.eq.f32.partialorder %v19143_v61, 0  ;;  %v19296_v54 = vand.u32 2147483647, %v19171_v43  ;;  %v4681_v22 = vmul.f32 0.1, %v7900_v25  ;;  %v7910_v44 = vpop.eup %7909 }
 0x2ff   :  { %vm12937_vm1 = vcmp.eq.f32.partialorder %v19290_v9, 2139095040  ;;  %7925 = vlog2.f32 %v19293_v59  ;;  %v4430_v27 = vsel %vm19295_vm9, 0, %v4429_v14  ;;  %v19299_v59 = vand.u32 2147483647, %v19284_v60 }
 0x300   :  { %vm12951_vm5 = vcmp.eq.f32.partialorder %v19296_v54, 2139095040  ;;  %v12960_v12 = vsel %vm4321_vm11, 1065353216, %v4335_v11  ;;  %vm19301_vm14 = vcmp.lt.f32.partialorder %v19150_v35, 0  ;;  %v19302_v14 = vand.u32 2147483647, %v19173_v36 }
 0x301   :  { %7927 = vlog2.f32 %v19299_v59  ;;  %19300 = vst [vmem:[#allocation272_spill] sm:$0xff] %v12960_v12  ;;  %v4455_v29 = vsel %vm19301_vm14, 2143289344, %v7898_v41  ;;  %vm4579_vm6 = vcmp.lt.f32.partialorder %v19189_v33, 0  ;;  %v4707_v25 = vmul.f32 0.1, %v7902_v10  ;;  %v7912_v41 = vpop.eup %7911 }
 0x302   :  { %vm12966_vm9 = vcmp.eq.f32.partialorder %v19302_v14, 2139095040  ;;  %v12973_v59 = vsel %vm4347_vm4, 1065353216, %v4361_v2  ;;  %v4413_v21 = vsel %vm4410_vm0, 2143289344, %v4409_v23  ;;  %7929 = vpow2.f32 %v4655_v51 }
 0x303   :  { %19305 = vst [vmem:[#allocation273_spill] sm:$0xff] %v12973_v59  ;;  %v4733_v11 = vmul.f32 0.1, %v7904_v20  ;;  %vm19306_vm13 = vcmp.eq.f32.partialorder %v19128_v46, 1065353216  ;;  %v4435_v53 = vsel %vm12869_vm2, 2139095040, %v4430_v27  ;;  %v19312_v46 = vld [vmem:[#allocation289_spill] sm:$0xff]  ;;  %v7914_v27 = vpop.eup %7913 }
 0x304   :  { %v12982_v14 = vsel %vm19306_vm13, 1065353216, %v4387_v56  ;;  %v19308_v10 = vand.u32 2147483647, %v19181_v30  ;;  %v19311_v51 = vand.u32 2147483647, %v19294_v55  ;;  %v4456_v45 = vsel %vm4450_vm12, 0, %v4455_v29 }
 0x305   :  { %19307 = vst [vmem:[#allocation274_spill] sm:$0xff] %v12982_v14  ;;  %v17609_v20 = vand.u32 2147483647, %v19312_v46  ;;  %vm19313_vm2 = vcmp.lt.f32.partialorder %v19167_v52, 0  ;;  %v4759_v56 = vmul.f32 0.1, %v7908_v5 }
 0x306   :  { %vm12992_vm11 = vcmp.eq.f32.partialorder %v19308_v10, 2139095040  ;;  %7931 = vlog2.f32 %v19311_v51  ;;  %v4481_v23 = vsel %vm19313_vm2, 2143289344, %v7906_v32  ;;  %v13008_v10 = vsel %vm4399_vm10, 1065353216, %v4413_v21  ;;  %v19316_v32 = vld [vmem:[#allocation290_spill] sm:$0xff]  ;;  %v7916_v21 = vpop.eup %7915  ;;  %v19368_v14 = vld [vmem:[#allocation297_spill] sm:$0xff] }
 0x307   :  { %7933 = vpow2.f32 %v4681_v22  ;;  %19314 = vst [vmem:[#allocation275_spill] sm:$0xff] %v13008_v10  ;;  %vm19315_vm4 = vcmp.lt.f32.partialorder %v19171_v43, 0  ;;  %vm4606_vm12 = vcmp.eq.f32.partialorder %v19198_v50, 0  ;;  %vm4631_vm14 = vcmp.lt.f32.partialorder %v19205_v39, 0  ;;  %v7918_v4 = vpop.eup %7917 }
 0x308   :  { %v4507_v51 = vsel %vm19315_vm4, 2143289344, %v7910_v44  ;;  %7935 = vpow2.f32 %v4707_v25  ;;  %vm19317_vm2 = vcmp.ne.f32.partialorder %v19143_v61, %v19143_v61  ;;  %vm19318_vm13 = vcmp.lt.f32.partialorder %v19173_v36, 0  ;;  %v19319_v44 = vld [vmem:[#allocation291_spill] sm:$0xff]  ;;  %v7920_v59 = vpop.eup %7919 }
 0x309   :  { %v4439_v22 = vsel %vm19317_vm2, 2143289344, %v4435_v53  ;;  %v4533_v7 = vsel %vm19318_vm13, 2143289344, %v7912_v41  ;;  %vm4566_vm10 = vcmp.ne.f32.partialorder %v19181_v30, %v19181_v30  ;;  %7937 = vpow2.f32 %v4733_v11  ;;  %v19324_v11 = vld [vmem:[#allocation292_spill] sm:$0xff] }
 0x30a   :  { %v4461_v25 = vsel %vm12905_vm7, 2139095040, %v4456_v45  ;;  %vm19320_vm4 = vcmp.eq.f32.partialorder %v19167_v52, 0  ;;  %vm4503_vm2 = vcmp.eq.f32.partialorder %v19171_v43, 1065353216  ;;  %v19321_v53 = vand.u32 2147483647, %v19189_v33 }
 0x30b   :  { %v4482_v29 = vsel %vm19320_vm4, 0, %v4481_v23  ;;  %7939 = vlog2.f32 %v17609_v20  ;;  %v4508_v45 = vsel %vm4502_vm15, 0, %v4507_v51  ;;  %v4559_v23 = vsel %vm4553_vm3, 2143289344, %v7914_v27 }
 0x30c   :  { %vm13032_vm13 = vcmp.eq.f32.partialorder %v19321_v53, 2139095040  ;;  %v19325_v10 = vand.u32 2147483647, %v19198_v50  ;;  %7941 = vpow2.f32 %v4759_v56  ;;  %v19328_v53 = vld [vmem:[#allocation293_spill] sm:$0xff]  ;;  %v13053_v5 = vsel %vm4425_vm8, 1065353216, %v4439_v22 }
 0x30d   :  { %19329 = vst [vmem:[#allocation276_spill] sm:$0xff] %v13053_v5  ;;  %vm19330_vm15 = vcmp.eq.f32.partialorder %v19173_v36, 0  ;;  %vm4555_vm3 = vcmp.eq.f32.partialorder %v19181_v30, 1065353216  ;;  %v19331_v27 = vand.u32 2147483647, %v19316_v32  ;;  %vm19332_vm4 = vcmp.ne.f32.partialorder %v19150_v35, %v19150_v35 }
 0x30e   :  { %vm13045_vm7 = vcmp.eq.f32.partialorder %v19325_v10, 2139095040  ;;  %v4534_v51 = vsel %vm19330_vm15, 0, %v4533_v7  ;;  %v7922_v10 = vpop.eup %7921  ;;  %v4465_v56 = vsel %vm19332_vm4, 2143289344, %v4461_v25  ;;  %v4487_v61 = vsel %vm12937_vm1, 2139095040, %v4482_v29  ;;  %v19334_v7 = vld [vmem:[#allocation294_spill] sm:$0xff] }
 0x30f   :  { %7943 = vlog2.f32 %v19331_v27  ;;  %v19333_v22 = vand.u32 2147483647, %v19319_v44  ;;  %v7924_v5 = vpop.eup %7923  ;;  %v4513_v27 = vsel %vm12951_vm5, 2139095040, %v4508_v45  ;;  %vm19335_vm0 = vcmp.eq.f32.partialorder %v19181_v30, 0 }
 0x310   :  { %v4560_v25 = vsel %vm19335_vm0, 0, %v4559_v23  ;;  %v19336_v40 = vand.u32 2147483647, %v19205_v39  ;;  %v4785_v12 = vmul.f32 0.1, %v7918_v4  ;;  %v7926_v20 = vpop.eup %7925  ;;  %v4539_v9 = vsel %vm12966_vm9, 2139095040, %v4534_v51 }
 0x311   :  { %7945 = vlog2.f32 %v19333_v22  ;;  %v19339_v22 = vand.u32 2147483647, %v19324_v11  ;;  %v4585_v45 = vsel %vm4579_vm6, 2143289344, %v7916_v21  ;;  %v4811_v23 = vmul.f32 0.1, %v7920_v59 }
 0x312   :  { %vm13080_vm4 = vcmp.eq.f32.partialorder %v19336_v40, 2139095040  ;;  %v19340_v58 = vand.u32 2147483647, %v19328_v53  ;;  %v7928_v40 = vpop.eup %7927  ;;  %vm19341_vm0 = vcmp.eq.f32.partialorder %v19150_v35, 1065353216  ;;  %vm4581_vm1 = vcmp.eq.f32.partialorder %v19189_v33, 1065353216 }
 0x313   :  { %7947 = vlog2.f32 %v19339_v22  ;;  %v13095_v4 = vsel %vm19341_vm0, 1065353216, %v4465_v56  ;;  %vm19343_vm15 = vcmp.lt.f32.partialorder %v19198_v50, 0  ;;  %vm4709_vm6 = vcmp.lt.f32.partialorder %v19232_v26, 0  ;;  %v7930_v51 = vpop.eup %7929 }
 0x314   :  { %7949 = vlog2.f32 %v19340_v58  ;;  %19342 = vst [vmem:[#allocation277_spill] sm:$0xff] %v13095_v4  ;;  %v4611_v54 = vsel %vm19343_vm15, 2143289344, %v7922_v10  ;;  %vm19344_vm5 = vcmp.ne.f32.partialorder %v19167_v52, %v19167_v52  ;;  %vm19345_vm8 = vcmp.ne.f32.partialorder %v19171_v43, %v19171_v43 }
 0x315   :  { %v4491_v59 = vsel %vm19344_vm5, 2143289344, %v4487_v61  ;;  %v4517_v58 = vsel %vm19345_vm8, 2143289344, %v4513_v27  ;;  %v4565_v35 = vsel %vm12992_vm11, 2139095040, %v4560_v25  ;;  %vm4607_vm0 = vcmp.eq.f32.partialorder %v19198_v50, 1065353216  ;;  %v7932_v25 = vpop.eup %7931 }
 0x316   :  { %vm4644_vm15 = vcmp.ne.f32.partialorder %v19205_v39, %v19205_v39  ;;  %v19346_v21 = vand.u32 2147483647, %v19334_v7  ;;  %vm19347_vm9 = vcmp.ne.f32.partialorder %v19173_v36, %v19173_v36  ;;  %vm19348_vm5 = vcmp.eq.f32.partialorder %v19189_v33, 0  ;;  %v7934_v4 = vpop.eup %7933 }
 0x317   :  { %v4543_v10 = vsel %vm19347_vm9, 2143289344, %v4539_v9  ;;  %v4586_v56 = vsel %vm19348_vm5, 0, %v4585_v45  ;;  %v19349_v61 = vand.u32 2147483647, %v19219_v62  ;;  %v4837_v27 = vmul.f32 0.1, %v7926_v20 }
 0x318   :  { %7951 = vlog2.f32 %v19346_v21  ;;  %v4612_v22 = vsel %vm4606_vm12, 0, %v4611_v54  ;;  %v4637_v9 = vsel %vm4631_vm14, 2143289344, %v7924_v5  ;;  %v19352_v21 = vand.u32 2147483647, %v19230_v42  ;;  %v19357_v5 = vld [vmem:[#allocation295_spill] sm:$0xff]  ;;  %v19364_v54 = vld [vmem:[#allocation296_spill] sm:$0xff] }
 0x319   :  { %vm13122_vm8 = vcmp.eq.f32.partialorder %v19349_v61, 2139095040  ;;  %7953 = vpow2.f32 %v4785_v12  ;;  %v4863_v61 = vmul.f32 0.1, %v7928_v40  ;;  %vm19355_vm11 = vcmp.eq.f32.partialorder %v19167_v52, 1065353216 }
 0x31a   :  { %vm13133_vm9 = vcmp.eq.f32.partialorder %v19352_v21, 2139095040  ;;  %7955 = vpow2.f32 %v4811_v23  ;;  %v13140_v12 = vsel %vm19355_vm11, 1065353216, %v4491_v59  ;;  %v4569_v20 = vsel %vm4566_vm10, 2143289344, %v4565_v35  ;;  %v7936_v21 = vpop.eup %7935 }
 0x31b   :  { %19356 = vst [vmem:[#allocation278_spill] sm:$0xff] %v13140_v12  ;;  %vm4633_vm14 = vcmp.eq.f32.partialorder %v19205_v39, 1065353216  ;;  %v13150_v23 = vsel %vm4503_vm2, 1065353216, %v4517_v58  ;;  %vm19359_vm5 = vcmp.eq.f32.partialorder %v19173_v36, 1065353216  ;;  %v4591_v40 = vsel %vm13032_vm13, 2139095040, %v4586_v56  ;;  %v7938_v58 = vpop.eup %7937 }
 0x31c   :  { %19358 = vst [vmem:[#allocation279_spill] sm:$0xff] %v13150_v23  ;;  %v13154_v52 = vsel %vm19359_vm5, 1065353216, %v4543_v10  ;;  %v19361_v59 = vand.u32 2147483647, %v19232_v26  ;;  %v4617_v36 = vsel %vm13045_vm7, 2139095040, %v4612_v22  ;;  %vm19365_vm2 = vcmp.eq.f32.partialorder %v19205_v39, 0  ;;  %v7940_v56 = vpop.eup %7939 }
 0x31d   :  { %19360 = vst [vmem:[#allocation280_spill] sm:$0xff] %v13154_v52  ;;  %v4638_v10 = vsel %vm19365_vm2, 0, %v4637_v9  ;;  %vm4696_vm13 = vcmp.ne.f32.partialorder %v19230_v42, %v19230_v42  ;;  %7957 = vpow2.f32 %v4837_v27  ;;  %v4889_v41 = vmul.f32 0.1, %v7932_v25  ;;  %v7942_v9 = vpop.eup %7941  ;;  %v19372_v25 = vld [vmem:[#allocation298_spill] sm:$0xff] }
 0x31e   :  { %vm13162_vm11 = vcmp.eq.f32.partialorder %v19361_v59, 2139095040  ;;  %v13176_v59 = vsel %vm4555_vm3, 1065353216, %v4569_v20  ;;  %vm19367_vm10 = vcmp.lt.f32.partialorder %v19219_v62, 0  ;;  %vm4762_vm7 = vcmp.eq.f32.partialorder %v19241_v15, 0  ;;  %v7944_v20 = vpop.eup %7943 }
 0x31f   :  { %19366 = vst [vmem:[#allocation281_spill] sm:$0xff] %v13176_v59  ;;  %v4663_v43 = vsel %vm19367_vm10, 2143289344, %v7930_v51  ;;  %7959 = vpow2.f32 %v4863_v61  ;;  %vm19369_vm2 = vcmp.ne.f32.partialorder %v19189_v33, %v19189_v33  ;;  %vm19370_vm5 = vcmp.lt.f32.partialorder %v19230_v42, 0  ;;  %v7946_v61 = vpop.eup %7945 }
 0x320   :  { %v4595_v27 = vsel %vm19369_vm2, 2143289344, %v4591_v40  ;;  %v4689_v30 = vsel %vm19370_vm5, 2143289344, %v7934_v4  ;;  %v19371_v51 = vand.u32 2147483647, %v19357_v5  ;;  %vm19373_vm12 = vcmp.ne.f32.partialorder %v19198_v50, %v19198_v50  ;;  %v7948_v23 = vpop.eup %7947 }
 0x321   :  { %v4621_v22 = vsel %vm19373_vm12, 2143289344, %v4617_v36  ;;  %v4643_v40 = vsel %vm13080_vm4, 2139095040, %v4638_v10  ;;  %v19374_v4 = vand.u32 2147483647, %v19235_v24  ;;  %v19377_v52 = vand.u32 2147483647, %v19364_v54 }
 0x322   :  { %7961 = vlog2.f32 %v19371_v51  ;;  %v19378_v51 = vld [vmem:[#allocation299_spill] sm:$0xff]  ;;  %vm19379_vm10 = vcmp.eq.f32.partialorder %v19219_v62, 0  ;;  %v4715_v29 = vsel %vm4709_vm6, 2143289344, %v7936_v21  ;;  %v19380_v10 = vand.u32 2147483647, %v19241_v15 }
 0x323   :  { %vm13201_vm5 = vcmp.eq.f32.partialorder %v19374_v4, 2139095040  ;;  %7963 = vlog2.f32 %v19377_v52  ;;  %v4664_v36 = vsel %vm19379_vm10, 0, %v4663_v43  ;;  %vm4788_vm12 = vcmp.eq.f32.partialorder %v19269_v57, 0 }
 0x324   :  { %vm13215_vm4 = vcmp.eq.f32.partialorder %v19380_v10, 2139095040  ;;  %7965 = vpow2.f32 %v4889_v41  ;;  %v4915_v52 = vmul.f32 0.1, %v7940_v56  ;;  %v13222_v12 = vsel %vm4581_vm1, 1065353216, %v4595_v27  ;;  %v7950_v10 = vpop.eup %7949 }
 0x325   :  { %19383 = vst [vmem:[#allocation282_spill] sm:$0xff] %v13222_v12  ;;  %vm4685_vm10 = vcmp.eq.f32.partialorder %v19230_v42, 1065353216  ;;  %vm19384_vm2 = vcmp.eq.f32.partialorder %v19230_v42, 0  ;;  %vm4711_vm6 = vcmp.eq.f32.partialorder %v19232_v26, 1065353216  ;;  %v19385_v43 = vand.u32 2147483647, %v19368_v14 }
 0x326   :  { %v4690_v21 = vsel %vm19384_vm2, 0, %v4689_v30  ;;  %v13233_v41 = vsel %vm4607_vm0, 1065353216, %v4621_v22  ;;  %v4647_v33 = vsel %vm4644_vm15, 2143289344, %v4643_v40  ;;  %v4941_v56 = vmul.f32 0.1, %v7944_v20 }
 0x327   :  { %7967 = vlog2.f32 %v19385_v43  ;;  %19386 = vst [vmem:[#allocation283_spill] sm:$0xff] %v13233_v41  ;;  %v19387_v27 = vand.u32 2147483647, %v19372_v25  ;;  %v4669_v30 = vsel %vm13122_vm8, 2139095040, %v4664_v36  ;;  %vm19388_vm3 = vcmp.eq.f32.partialorder %v19232_v26, 0 }
 0x328   :  { %v4716_v50 = vsel %vm19388_vm3, 0, %v4715_v29  ;;  %v19389_v22 = vand.u32 2147483647, %v19269_v57  ;;  %v4967_v43 = vmul.f32 0.1, %v7946_v61  ;;  %v4695_v2 = vsel %vm13133_vm9, 2139095040, %v4690_v21 }
 0x329   :  { %7969 = vlog2.f32 %v19387_v27  ;;  %v19392_v20 = vand.u32 2147483647, %v19378_v51  ;;  %v7952_v27 = vpop.eup %7951  ;;  %vm19393_vm8 = vcmp.lt.f32.partialorder %v19235_v24, 0  ;;  %v19394_v29 = vand.u32 2147483647, %v19275_v0 }
 0x32a   :  { %vm13251_vm15 = vcmp.eq.f32.partialorder %v19389_v22, 2139095040  ;;  %v4741_v36 = vsel %vm19393_vm8, 2143289344, %v7938_v58  ;;  %v4993_v22 = vmul.f32 0.1, %v7948_v23  ;;  %v7954_v12 = vpop.eup %7953  ;;  %v13269_v61 = vsel %vm4633_vm14, 1065353216, %v4647_v33 }
 0x32b   :  { %7971 = vlog2.f32 %v19392_v20  ;;  %vm13263_vm3 = vcmp.eq.f32.partialorder %v19394_v29, 2139095040  ;;  %19397 = vst [vmem:[#allocation284_spill] sm:$0xff] %v13269_v61  ;;  %vm19398_vm9 = vcmp.lt.f32.partialorder %v19241_v15, 0  ;;  %vm4840_vm8 = vcmp.eq.f32.partialorder %v19279_v19, 0  ;;  %v7956_v21 = vpop.eup %7955 }
 0x32c   :  { %7973 = vpow2.f32 %v4915_v52  ;;  %v4767_v45 = vsel %vm19398_vm9, 2143289344, %v7942_v9  ;;  %vm4865_vm2 = vcmp.lt.f32.partialorder %v19284_v60, 0  ;;  %v5019_v58 = vmul.f32 0.1, %v7950_v10  ;;  %v19400_v9 = vld [vmem:[#allocation300_spill] sm:$0xff]  ;;  %v7958_v29 = vpop.eup %7957 }
 0x32d   :  { %vm19399_vm1 = vcmp.ne.f32.partialorder %v19219_v62, %v19219_v62  ;;  %v4721_v39 = vsel %vm13162_vm11, 2139095040, %v4716_v50  ;;  %7975 = vpow2.f32 %v4941_v56  ;;  %v4699_v10 = vsel %vm4696_vm13, 2143289344, %v4695_v2  ;;  %v19406_v2 = vld [vmem:[#allocation301_spill] sm:$0xff] }
 0x32e   :  { %v4673_v23 = vsel %vm19399_vm1, 2143289344, %v4669_v30  ;;  %vm19401_vm9 = vcmp.eq.f32.partialorder %v19235_v24, 0  ;;  %vm4826_vm1 = vcmp.ne.f32.partialorder %v19275_v0, %v19275_v0  ;;  %7977 = vpow2.f32 %v4967_v43 }
 0x32f   :  { %v4742_v33 = vsel %vm19401_vm9, 0, %v4741_v36  ;;  %v5045_v35 = vmul.f32 0.1, %v7952_v27  ;;  %v4768_v30 = vsel %vm4762_vm7, 0, %v4767_v45  ;;  %vm19402_vm0 = vcmp.lt.f32.partialorder %v19269_v57, 0  ;;  %v19409_v27 = vld [vmem:[#allocation302_spill] sm:$0xff] }
 0x330   :  { %v4793_v56 = vsel %vm19402_vm0, 2143289344, %v7954_v12  ;;  %v19403_v50 = vand.u32 2147483647, %v19279_v19  ;;  %7979 = vpow2.f32 %v4993_v22  ;;  %vm19407_vm9 = vcmp.ne.f32.partialorder %v19232_v26, %v19232_v26  ;;  %v19458_v36 = vld [vmem:[#allocation308_spill] sm:$0xff] }
 0x331   :  { %v4725_v43 = vsel %vm19407_vm9, 2143289344, %v4721_v39  ;;  %vm4789_vm7 = vcmp.eq.f32.partialorder %v19269_v57, 1065353216  ;;  %vm19408_vm0 = vcmp.lt.f32.partialorder %v19275_v0, 0  ;;  %7981 = vpow2.f32 %v5019_v58  ;;  %v19414_v58 = vld [vmem:[#allocation303_spill] sm:$0xff] }
 0x332   :  { %vm13299_vm14 = vcmp.eq.f32.partialorder %v19403_v50, 2139095040  ;;  %v4819_v12 = vsel %vm19408_vm0, 2143289344, %v7956_v21  ;;  %v7960_v50 = vpop.eup %7959  ;;  %v4747_v52 = vsel %vm13201_vm5, 2139095040, %v4742_v33  ;;  %v19410_v22 = vand.u32 2147483647, %v19284_v60 }
 0x333   :  { %vm4917_vm9 = vcmp.lt.f32.partialorder %v19312_v46, 0  ;;  %v19413_v39 = vand.u32 2147483647, %v19400_v9  ;;  %v7962_v45 = vpop.eup %7961  ;;  %vm19415_vm0 = vcmp.eq.f32.partialorder %v19219_v62, 1065353216  ;;  %v4773_v33 = vsel %vm13215_vm4, 2139095040, %v4768_v30  ;;  %v19424_v30 = vld [vmem:[#allocation304_spill] sm:$0xff] }
 0x334   :  { %vm13317_vm11 = vcmp.eq.f32.partialorder %v19410_v22, 2139095040  ;;  %v13327_v59 = vsel %vm19415_vm0, 1065353216, %v4673_v23  ;;  %v4794_v22 = vsel %vm4788_vm12, 0, %v4793_v56  ;;  %vm4852_vm5 = vcmp.ne.f32.partialorder %v19279_v19, %v19279_v19 }
 0x335   :  { %7983 = vlog2.f32 %v19413_v39  ;;  %19416 = vst [vmem:[#allocation285_spill] sm:$0xff] %v13327_v59  ;;  %v7964_v39 = vpop.eup %7963  ;;  %v13338_v21 = vsel %vm4685_vm10, 1065353216, %v4699_v10  ;;  %v13342_v62 = vsel %vm4711_vm6, 1065353216, %v4725_v43  ;;  %vm19419_vm4 = vcmp.eq.f32.partialorder %v19275_v0, 0 }
 0x336   :  { %7985 = vpow2.f32 %v5045_v35  ;;  %19417 = vst [vmem:[#allocation286_spill] sm:$0xff] %v13338_v21  ;;  %19418 = vst [vmem:[#allocation287_spill] sm:$0xff] %v13342_v62  ;;  %v4820_v4 = vsel %vm19419_vm4, 0, %v4819_v12  ;;  %v19420_v23 = vand.u32 2147483647, %v19406_v2  ;;  %v7966_v35 = vpop.eup %7965  ;;  %vm19421_vm13 = vcmp.ne.f32.partialorder %v19235_v24, %v19235_v24 }
 0x337   :  { %v4751_v42 = vsel %vm19421_vm13, 2143289344, %v4747_v52  ;;  %vm19422_vm10 = vcmp.lt.f32.partialorder %v19279_v19, 0  ;;  %v19423_v10 = vand.u32 2147483647, %v19409_v27  ;;  %v7968_v43 = vpop.eup %7967  ;;  %vm19425_vm4 = vcmp.ne.f32.partialorder %v19241_v15, %v19241_v15 }
 0x338   :  { %7987 = vlog2.f32 %v19420_v23  ;;  %v4845_v26 = vsel %vm19422_vm10, 2143289344, %v7958_v29  ;;  %v4777_v12 = vsel %vm19425_vm4, 2143289344, %v4773_v33  ;;  %v4799_v23 = vsel %vm13251_vm15, 2139095040, %v4794_v22 }
 0x339   :  { %7989 = vlog2.f32 %v19423_v10  ;;  %v19426_v52 = vand.u32 2147483647, %v19294_v55  ;;  %v5071_v62 = vmul.f32 0.1, %v7962_v45  ;;  %v19429_v21 = vand.u32 2147483647, %v19414_v58  ;;  %v7970_v10 = vpop.eup %7969 }
 0x33a   :  { %v4825_v56 = vsel %vm13263_vm3, 2139095040, %v4820_v4  ;;  %v4871_v33 = vsel %vm4865_vm2, 2143289344, %v7960_v50  ;;  %v19430_v40 = vand.u32 2147483647, %v19312_v46  ;;  %vm4969_vm4 = vcmp.lt.f32.partialorder %v19319_v44, 0  ;;  %v19435_v50 = vld [vmem:[#allocation305_spill] sm:$0xff] }
 0x33b   :  { %vm13367_vm13 = vcmp.eq.f32.partialorder %v19426_v52, 2139095040  ;;  %7991 = vlog2.f32 %v19429_v21  ;;  %v5097_v45 = vmul.f32 0.1, %v7964_v39  ;;  %v7972_v52 = vpop.eup %7971  ;;  %vm19433_vm6 = vcmp.eq.f32.partialorder %v19235_v24, 1065353216 }
 0x33c   :  { %vm13379_vm15 = vcmp.eq.f32.partialorder %v19430_v40, 2139095040  ;;  %v13387_v21 = vsel %vm19433_vm6, 1065353216, %v4751_v42  ;;  %vm4841_vm3 = vcmp.eq.f32.partialorder %v19279_v19, 1065353216  ;;  %v4846_v41 = vsel %vm4840_vm8, 0, %v4845_v26  ;;  %v7974_v40 = vpop.eup %7973 }
 0x33d   :  { %19434 = vst [vmem:[#allocation288_spill] sm:$0xff] %v13387_v21  ;;  %vm4995_vm12 = vcmp.lt.f32.partialorder %v19324_v11, 0  ;;  %vm19436_vm10 = vcmp.eq.f32.partialorder %v19241_v15, 1065353216  ;;  %vm19438_vm6 = vcmp.ne.f32.partialorder %v19269_v57, %v19269_v57  ;;  %vm4904_vm8 = vcmp.ne.f32.partialorder %v19294_v55, %v19294_v55  ;;  %v19485_v21 = vld [vmem:[#allocation311_spill] sm:$0xff] }
 0x33e   :  { %v13398_v39 = vsel %vm19436_vm10, 1065353216, %v4777_v12  ;;  %v4803_v24 = vsel %vm19438_vm6, 2143289344, %v4799_v23  ;;  %v5123_v42 = vmul.f32 0.1, %v7968_v43  ;;  %v19439_v26 = vand.u32 2147483647, %v19424_v30 }
 0x33f   :  { %19437 = vst [vmem:[#allocation289_spill] sm:$0xff] %v13398_v39  ;;  %v4829_v4 = vsel %vm4826_vm1, 2143289344, %v4825_v56  ;;  %vm19440_vm10 = vcmp.eq.f32.partialorder %v19284_v60, 0  ;;  %v19441_v12 = vand.u32 2147483647, %v19316_v32  ;;  %vm5021_vm2 = vcmp.lt.f32.partialorder %v19328_v53, 0 }
 0x340   :  { %7993 = vlog2.f32 %v19439_v26  ;;  %v4872_v15 = vsel %vm19440_vm10, 0, %v4871_v33  ;;  %v5149_v43 = vmul.f32 0.1, %v7970_v10  ;;  %v7976_v26 = vpop.eup %7975  ;;  %v4851_v56 = vsel %vm13299_vm14, 2139095040, %v4846_v41 }
 0x341   :  { %vm13417_vm6 = vcmp.eq.f32.partialorder %v19441_v12, 2139095040  ;;  %7995 = vpow2.f32 %v5071_v62  ;;  %vm19444_vm1 = vcmp.lt.f32.partialorder %v19294_v55, 0  ;;  %v19445_v39 = vand.u32 2147483647, %v19319_v44  ;;  %v7978_v59 = vpop.eup %7977 }
 0x342   :  { %v4897_v33 = vsel %vm19444_vm1, 2143289344, %v7966_v35  ;;  %7997 = vpow2.f32 %v5097_v45  ;;  %v5175_v12 = vmul.f32 0.1, %v7972_v52  ;;  %v13435_v62 = vsel %vm4789_vm7, 1065353216, %v4803_v24  ;;  %v19453_v45 = vld [vmem:[#allocation306_spill] sm:$0xff] }
 0x343   :  { %vm13428_vm10 = vcmp.eq.f32.partialorder %v19445_v39, 2139095040  ;;  %19448 = vst [vmem:[#allocation290_spill] sm:$0xff] %v13435_v62  ;;  %v4923_v20 = vsel %vm4917_vm9, 2143289344, %v7974_v40  ;;  %v19449_v35 = vand.u32 2147483647, %v19324_v11  ;;  %v7980_v39 = vpop.eup %7979  ;;  %vm19454_vm7 = vcmp.eq.f32.partialorder %v19275_v0, 1065353216 }
 0x344   :  { %v19452_v41 = vand.u32 2147483647, %v19435_v50  ;;  %v13451_v57 = vsel %vm19454_vm7, 1065353216, %v4829_v4  ;;  %v4877_v24 = vsel %vm13317_vm11, 2139095040, %v4872_v15  ;;  %v19456_v40 = vld [vmem:[#allocation307_spill] sm:$0xff]  ;;  %v4855_v0 = vsel %vm4852_vm5, 2143289344, %v4851_v56 }
 0x345   :  { %vm13442_vm1 = vcmp.eq.f32.partialorder %v19449_v35, 2139095040  ;;  %19455 = vst [vmem:[#allocation291_spill] sm:$0xff] %v13451_v57  ;;  %vm19457_vm7 = vcmp.eq.f32.partialorder %v19294_v55, 0  ;;  %vm4982_vm11 = vcmp.ne.f32.partialorder %v19319_v44, %v19319_v44  ;;  %vm19459_vm0 = vcmp.eq.f32.partialorder %v19312_v46, 0  ;;  %v19461_v56 = vld [vmem:[#allocation309_spill] sm:$0xff] }
 0x346   :  { %7999 = vlog2.f32 %v19452_v41  ;;  %v7982_v41 = vpop.eup %7981  ;;  %v4898_v4 = vsel %vm19457_vm7, 0, %v4897_v33  ;;  %vm19460_vm14 = vcmp.lt.f32.partialorder %v19316_v32, 0  ;;  %vm5008_vm5 = vcmp.ne.f32.partialorder %v19324_v11, %v19324_v11  ;;  %v19467_v33 = vld [vmem:[#allocation310_spill] sm:$0xff] }
 0x347   :  { %8001 = vpow2.f32 %v5123_v42  ;;  %v7984_v52 = vpop.eup %7983  ;;  %v4924_v42 = vsel %vm19459_vm0, 0, %v4923_v20  ;;  %v4949_v35 = vsel %vm19460_vm14, 2143289344, %v7976_v26  ;;  %vm19462_vm7 = vcmp.ne.f32.partialorder %v19284_v60, %v19284_v60 }
 0x348   :  { %8003 = vpow2.f32 %v5149_v43  ;;  %v7986_v57 = vpop.eup %7985  ;;  %v4881_v43 = vsel %vm19462_vm7, 2143289344, %v4877_v24  ;;  %v4975_v15 = vsel %vm4969_vm4, 2143289344, %v7978_v59  ;;  %v19463_v20 = vand.u32 2147483647, %v19328_v53 }
 0x349   :  { %8005 = vpow2.f32 %v5175_v12  ;;  %v19466_v12 = vand.u32 2147483647, %v19453_v45  ;;  %v7988_v61 = vpop.eup %7987  ;;  %v4903_v24 = vsel %vm13367_vm13, 2139095040, %v4898_v4  ;;  %v5001_v59 = vsel %vm4995_vm12, 2143289344, %v7980_v39 }
 0x34a   :  { %vm13484_vm0 = vcmp.eq.f32.partialorder %v19463_v20, 2139095040  ;;  %v19468_v8 = vand.u32 2147483647, %v19334_v7  ;;  %vm5073_vm7 = vcmp.lt.f32.partialorder %v19357_v5, 0  ;;  %v7990_v62 = vpop.eup %7989  ;;  %v4929_v29 = vsel %vm13379_vm15, 2139095040, %v4924_v42 }
 0x34b   :  { %8007 = vlog2.f32 %v19466_v12  ;;  %v19471_v12 = vand.u32 2147483647, %v19456_v40  ;;  %vm19472_vm13 = vcmp.eq.f32.partialorder %v19316_v32, 0  ;;  %vm4997_vm12 = vcmp.eq.f32.partialorder %v19324_v11, 1065353216  ;;  %v7992_v28 = vpop.eup %7991 }
 0x34c   :  { %vm13498_vm4 = vcmp.eq.f32.partialorder %v19468_v8, 2139095040  ;;  %v4950_v4 = vsel %vm19472_vm13, 0, %v4949_v35  ;;  %v5201_v8 = vmul.f32 0.1, %v7984_v52  ;;  %v19473_v39 = vand.u32 2147483647, %v19458_v36 }
 0x34d   :  { %8009 = vlog2.f32 %v19471_v12  ;;  %v13515_v47 = vsel %vm4841_vm3, 1065353216, %v4855_v0  ;;  %vm19474_vm9 = vcmp.eq.f32.partialorder %v19284_v60, 1065353216  ;;  %vm19475_vm15 = vcmp.eq.f32.partialorder %v19319_v44, 0 }
 0x34e   :  { %8011 = vlog2.f32 %v19473_v39  ;;  %v13519_v22 = vsel %vm19474_vm9, 1065353216, %v4881_v43  ;;  %v4976_v35 = vsel %vm19475_vm15, 0, %v4975_v15  ;;  %vm5034_vm13 = vcmp.ne.f32.partialorder %v19328_v53, %v19328_v53  ;;  %v7994_v39 = vpop.eup %7993 }
 0x34f   :  { %v19476_v52 = vand.u32 2147483647, %v19461_v56  ;;  %v4907_v19 = vsel %vm4904_vm8, 2143289344, %v4903_v24  ;;  %vm19477_vm3 = vcmp.eq.f32.partialorder %v19324_v11, 0  ;;  %vm5060_vm9 = vcmp.ne.f32.partialorder %v19334_v7, %v19334_v7 }
 0x350   :  { %v5002_v60 = vsel %vm19477_vm3, 0, %v5001_v59  ;;  %v5227_v0 = vmul.f32 0.1, %v7988_v61  ;;  %v19478_v15 = vand.u32 2147483647, %v19467_v33  ;;  %vm19479_vm14 = vcmp.ne.f32.partialorder %v19312_v46, %v19312_v46 }
 0x351   :  { %8013 = vlog2.f32 %v19476_v52  ;;  %v4933_v42 = vsel %vm19479_vm14, 2143289344, %v4929_v29  ;;  %v4955_v43 = vsel %vm13417_vm6, 2139095040, %v4950_v4  ;;  %v5027_v24 = vsel %vm5021_vm2, 2143289344, %v7982_v41  ;;  %v7996_v29 = vpop.eup %7995 }
 0x352   :  { %8015 = vlog2.f32 %v19478_v15  ;;  %v19480_v59 = vand.u32 2147483647, %v19357_v5  ;;  %v5253_v61 = vmul.f32 0.1, %v7990_v62  ;;  %v4981_v52 = vsel %vm13428_vm10, 2139095040, %v4976_v35  ;;  %v7998_v35 = vpop.eup %7997 }
 0x353   :  { %vm19483_vm14 = vcmp.lt.f32.partialorder %v19334_v7, 0  ;;  %8017 = vpow2.f32 %v5201_v8  ;;  %v5279_v41 = vmul.f32 0.1, %v7992_v28  ;;  %vm19484_vm2 = vcmp.eq.f32.partialorder %v19294_v55, 1065353216  ;;  %v8000_v8 = vpop.eup %7999 }
 0x354   :  { %vm13547_vm8 = vcmp.eq.f32.partialorder %v19480_v59, 2139095040  ;;  %v5053_v23 = vsel %vm19483_vm14, 2143289344, %v7986_v57  ;;  %v13559_v4 = vsel %vm19484_vm2, 1065353216, %v4907_v19  ;;  %v5007_v62 = vsel %vm13442_vm1, 2139095040, %v5002_v60 }
 0x355   :  { %vm5049_vm15 = vcmp.eq.f32.partialorder %v19334_v7, 1065353216  ;;  %vm5151_vm3 = vcmp.lt.f32.partialorder %v19372_v25, 0  ;;  %vm19486_vm14 = vcmp.eq.f32.partialorder %v19312_v46, 1065353216  ;;  %vm19488_vm2 = vcmp.ne.f32.partialorder %v19316_v32, %v19316_v32 }
 0x356   :  { %v13569_v28 = vsel %vm19486_vm14, 1065353216, %v4933_v42  ;;  %v4959_v55 = vsel %vm19488_vm2, 2143289344, %v4955_v43  ;;  %vm19489_vm6 = vcmp.eq.f32.partialorder %v19328_v53, 0  ;;  %vm5086_vm1 = vcmp.ne.f32.partialorder %v19357_v5, %v19357_v5  ;;  %v8002_v43 = vpop.eup %8001 }
 0x357   :  { %19487 = vst [vmem:[#allocation292_spill] sm:$0xff] %v13569_v28  ;;  %v5028_v10 = vsel %vm19489_vm6, 0, %v5027_v24  ;;  %8019 = vpow2.f32 %v5227_v0  ;;  %v4985_v46 = vsel %vm4982_vm11, 2143289344, %v4981_v52  ;;  %vm19490_vm14 = vcmp.eq.f32.partialorder %v19334_v7, 0  ;;  %v8004_v57 = vpop.eup %8003 }
 0x358   :  { %v5054_v19 = vsel %vm19490_vm14, 0, %v5053_v23  ;;  %v19491_v60 = vand.u32 2147483647, %v19364_v54  ;;  %8021 = vpow2.f32 %v5253_v61  ;;  %v5305_v42 = vmul.f32 0.1, %v7994_v39  ;;  %v19497_v23 = vld [vmem:[#allocation312_spill] sm:$0xff]  ;;  %v8006_v28 = vpop.eup %8005 }
 0x359   :  { %v5011_v0 = vsel %vm5008_vm5, 2143289344, %v5007_v62  ;;  %v5079_v24 = vsel %vm5073_vm7, 2143289344, %v7996_v29  ;;  %v19494_v59 = vand.u32 2147483647, %v19368_v14  ;;  %8023 = vpow2.f32 %v5279_v41 }
 0x35a   :  { %vm13586_vm2 = vcmp.eq.f32.partialorder %v19491_v60, 2139095040  ;;  %vm19498_vm14 = vcmp.eq.f32.partialorder %v19316_v32, 1065353216  ;;  %v5033_v39 = vsel %vm13484_vm0, 2139095040, %v5028_v10  ;;  %v19500_v29 = vand.u32 2147483647, %v19372_v25  ;;  %v8008_v10 = vpop.eup %8007 }
 0x35b   :  { %vm13598_vm11 = vcmp.eq.f32.partialorder %v19494_v59, 2139095040  ;;  %v13605_v61 = vsel %vm19498_vm14, 1065353216, %v4959_v55  ;;  %v19503_v41 = vand.u32 2147483647, %v19485_v21  ;;  %v19504_v59 = vld [vmem:[#allocation313_spill] sm:$0xff]  ;;  %vm19505_vm14 = vcmp.eq.f32.partialorder %v19319_v44, 1065353216  ;;  %v8010_v20 = vpop.eup %8009 }
 0x35c   :  { %19499 = vst [vmem:[#allocation293_spill] sm:$0xff] %v13605_v61  ;;  %vm13612_vm7 = vcmp.eq.f32.partialorder %v19500_v29, 2139095040  ;;  %v17610_v60 = vand.u32 2147483647, %v19504_v59  ;;  %v13621_v32 = vsel %vm19505_vm14, 1065353216, %v4985_v46  ;;  %v5059_v26 = vsel %vm13498_vm4, 2139095040, %v5054_v19 }
 0x35d   :  { %8025 = vlog2.f32 %v19503_v41  ;;  %19506 = vst [vmem:[#allocation294_spill] sm:$0xff] %v13621_v32  ;;  %vm5203_vm6 = vcmp.lt.f32.partialorder %v19400_v9, 0  ;;  %v5331_v55 = vmul.f32 0.1, %v8000_v8  ;;  %v13631_v29 = vsel %vm4997_vm12, 1065353216, %v5011_v0  ;;  %v19511_v19 = vld [vmem:[#allocation314_spill] sm:$0xff] }
 0x35e   :  { %19507 = vst [vmem:[#allocation295_spill] sm:$0xff] %v13631_v29  ;;  %vm19508_vm10 = vcmp.eq.f32.partialorder %v19357_v5, 0  ;;  %vm5138_vm14 = vcmp.ne.f32.partialorder %v19368_v14, %v19368_v14  ;;  %vm5229_vm4 = vcmp.lt.f32.partialorder %v19406_v2, 0  ;;  %8027 = vpow2.f32 %v5305_v42 }
 0x35f   :  { %v5080_v44 = vsel %vm19508_vm10, 0, %v5079_v24  ;;  %v5037_v46 = vsel %vm5034_vm13, 2143289344, %v5033_v39  ;;  %vm19509_vm5 = vcmp.lt.f32.partialorder %v19364_v54, 0  ;;  %v19510_v11 = vand.u32 2147483647, %v19497_v23  ;;  %v8012_v24 = vpop.eup %8011 }
 0x360   :  { %v5105_v8 = vsel %vm19509_vm5, 2143289344, %v7998_v35  ;;  %v5063_v42 = vsel %vm5060_vm9, 2143289344, %v5059_v26  ;;  %vm19512_vm10 = vcmp.lt.f32.partialorder %v19368_v14, 0  ;;  %v19513_v39 = vand.u32 2147483647, %v19378_v51  ;;  %v8014_v29 = vpop.eup %8013 }
 0x361   :  { %8029 = vlog2.f32 %v19510_v11  ;;  %v5131_v35 = vsel %vm19512_vm10, 2143289344, %v8002_v43  ;;  %v19516_v11 = vld [vmem:[#allocation315_spill] sm:$0xff]  ;;  %v5085_v26 = vsel %vm13547_vm8, 2139095040, %v5080_v44  ;;  %vm5127_vm9 = vcmp.eq.f32.partialorder %v19368_v14, 1065353216  ;;  %v8016_v32 = vpop.eup %8015 }
 0x362   :  { %vm13657_vm5 = vcmp.eq.f32.partialorder %v19513_v39, 2139095040  ;;  %8031 = vlog2.f32 %v17610_v60  ;;  %v17611_v0 = vand.u32 2147483647, %v19516_v11  ;;  %v5157_v43 = vsel %vm5151_vm3, 2143289344, %v8004_v57 }
 0x363   :  { %vm5230_vm10 = vcmp.eq.f32.partialorder %v19406_v2, 0  ;;  %8033 = vpow2.f32 %v5331_v55  ;;  %v5357_v39 = vmul.f32 0.1, %v8008_v10  ;;  %vm19517_vm0 = vcmp.eq.f32.partialorder %v19328_v53, 1065353216 }
 0x364   :  { %v13673_v61 = vsel %vm19517_vm0, 1065353216, %v5037_v46  ;;  %vm19518_vm13 = vcmp.eq.f32.partialorder %v19364_v54, 0  ;;  %v19519_v12 = vand.u32 2147483647, %v19400_v9  ;;  %vm5281_vm3 = vcmp.lt.f32.partialorder %v19414_v58, 0 }
 0x365   :  { %v5106_v60 = vsel %vm19518_vm13, 0, %v5105_v8  ;;  %v5383_v57 = vmul.f32 0.1, %v8010_v20  ;;  %v13687_v55 = vsel %vm5049_vm15, 1065353216, %v5063_v42  ;;  %vm19523_vm0 = vcmp.eq.f32.partialorder %v19368_v14, 0  ;;  %v8018_v8 = vpop.eup %8017 }
 0x366   :  { %vm13680_vm8 = vcmp.eq.f32.partialorder %v19519_v12, 2139095040  ;;  %19522 = vst [vmem:[#allocation296_spill] sm:$0xff] %v13687_v55  ;;  %v5132_v53 = vsel %vm19523_vm0, 0, %v5131_v35  ;;  %v5409_v10 = vmul.f32 0.1, %v8012_v24  ;;  %v5089_v20 = vsel %vm5086_vm1, 2143289344, %v5085_v26 }
 0x367   :  { %v19524_v46 = vand.u32 2147483647, %v19511_v19  ;;  %vm19525_vm15 = vcmp.eq.f32.partialorder %v19372_v25, 0  ;;  %v19526_v42 = vand.u32 2147483647, %v19406_v2  ;;  %v5111_v12 = vsel %vm13586_vm2, 2139095040, %v5106_v60 }
 0x368   :  { %v5158_v7 = vsel %vm19525_vm15, 0, %v5157_v43  ;;  %v5435_v24 = vmul.f32 0.1, %v8014_v29  ;;  %vm19529_vm1 = vcmp.lt.f32.partialorder %v19378_v51, 0  ;;  %vm5216_vm15 = vcmp.ne.f32.partialorder %v19400_v9, %v19400_v9 }
 0x369   :  { %8035 = vlog2.f32 %v19524_v46  ;;  %vm13703_vm0 = vcmp.eq.f32.partialorder %v19526_v42, 2139095040  ;;  %v5183_v26 = vsel %vm19529_vm1, 2143289344, %v8006_v28  ;;  %v5461_v43 = vmul.f32 0.1, %v8016_v32  ;;  %v8020_v46 = vpop.eup %8019  ;;  %v19533_v28 = vld [vmem:[#allocation316_spill] sm:$0xff] }
 0x36a   :  { %8037 = vlog2.f32 %v17611_v0  ;;  %v5137_v42 = vsel %vm13598_vm11, 2139095040, %v5132_v53  ;;  %v19530_v29 = vand.u32 2147483647, %v19409_v27  ;;  %v17612_v15 = vand.u32 2147483647, %v19533_v28  ;;  %v8022_v60 = vpop.eup %8021  ;;  %v19566_v0 = vld [vmem:[#allocation320_spill] sm:$0xff] }
 0x36b   :  { %8039 = vpow2.f32 %v5357_v39  ;;  %vm19534_vm1 = vcmp.eq.f32.partialorder %v19357_v5, 1065353216  ;;  %v5163_v52 = vsel %vm13612_vm7, 2139095040, %v5158_v7  ;;  %v5209_v39 = vsel %vm5203_vm6, 2143289344, %v8018_v8  ;;  %v19541_v7 = vld [vmem:[#allocation317_spill] sm:$0xff] }
 0x36c   :  { %vm13721_vm13 = vcmp.eq.f32.partialorder %v19530_v29, 2139095040  ;;  %8041 = vpow2.f32 %v5383_v57  ;;  %v13729_v32 = vsel %vm19534_vm1, 1065353216, %v5089_v20  ;;  %v19536_v53 = vand.u32 2147483647, %v19414_v58  ;;  %v8024_v29 = vpop.eup %8023 }
 0x36d   :  { %19535 = vst [vmem:[#allocation297_spill] sm:$0xff] %v13729_v32  ;;  %8043 = vpow2.f32 %v5409_v10  ;;  %vm19539_vm1 = vcmp.ne.f32.partialorder %v19364_v54, %v19364_v54  ;;  %vm19540_vm7 = vcmp.eq.f32.partialorder %v19378_v51, 0  ;;  %vm5333_vm11 = vcmp.lt.f32.partialorder %v19435_v50, 0  ;;  %v8026_v8 = vpop.eup %8025 }
 0x36e   :  { %vm13739_vm12 = vcmp.eq.f32.partialorder %v19536_v53, 2139095040  ;;  %v5115_v5 = vsel %vm19539_vm1, 2143289344, %v5111_v12  ;;  %v5184_v62 = vsel %vm19540_vm7, 0, %v5183_v26  ;;  %8045 = vpow2.f32 %v5435_v24 }
 0x36f   :  { %v5141_v10 = vsel %vm5138_vm14, 2143289344, %v5137_v42  ;;  %v5235_v20 = vsel %vm5229_vm4, 2143289344, %v8020_v46  ;;  %vm5268_vm1 = vcmp.ne.f32.partialorder %v19409_v27, %v19409_v27  ;;  %8047 = vpow2.f32 %v5461_v43  ;;  %v19544_v46 = vld [vmem:[#allocation318_spill] sm:$0xff]  ;;  %v8028_v43 = vpop.eup %8027 }
 0x370   :  { %vm19542_vm2 = vcmp.ne.f32.partialorder %v19372_v25, %v19372_v25  ;;  %vm19543_vm6 = vcmp.eq.f32.partialorder %v19400_v9, 0  ;;  %vm5231_vm14 = vcmp.eq.f32.partialorder %v19406_v2, 1065353216  ;;  %vm5294_vm4 = vcmp.ne.f32.partialorder %v19414_v58, %v19414_v58  ;;  %v8030_v42 = vpop.eup %8029 }
 0x371   :  { %v5167_v24 = vsel %vm19542_vm2, 2143289344, %v5163_v52  ;;  %v5210_v26 = vsel %vm19543_vm6, 0, %v5209_v39  ;;  %8049 = vlog2.f32 %v17612_v15  ;;  %vm19545_vm7 = vcmp.eq.f32.partialorder %v19364_v54, 1065353216  ;;  %v19550_v15 = vld [vmem:[#allocation319_spill] sm:$0xff]  ;;  %v8032_v55 = vpop.eup %8031 }
 0x372   :  { %v13773_v53 = vsel %vm19545_vm7, 1065353216, %v5115_v5  ;;  %v5189_v52 = vsel %vm13657_vm5, 2139095040, %v5184_v62  ;;  %vm19546_vm2 = vcmp.lt.f32.partialorder %v19409_v27, 0  ;;  %v19547_v12 = vand.u32 2147483647, %v19424_v30 }
 0x373   :  { %v5261_v39 = vsel %vm19546_vm2, 2143289344, %v8022_v60  ;;  %v13788_v54 = vsel %vm5127_vm9, 1065353216, %v5141_v10  ;;  %v5236_v41 = vsel %vm5230_vm10, 0, %v5235_v20  ;;  %v5287_v60 = vsel %vm5281_vm3, 2143289344, %v8024_v29  ;;  %v8034_v20 = vpop.eup %8033 }
 0x374   :  { %vm13781_vm6 = vcmp.eq.f32.partialorder %v19547_v12, 2139095040  ;;  %v19551_v5 = vand.u32 2147483647, %v19435_v50  ;;  %v5487_v12 = vmul.f32 0.1, %v8026_v8  ;;  %vm19554_vm2 = vcmp.eq.f32.partialorder %v19372_v25, 1065353216 }
 0x375   :  { %v13803_v14 = vsel %vm19554_vm2, 1065353216, %v5167_v24  ;;  %v5215_v10 = vsel %vm13680_vm8, 2139095040, %v5210_v26  ;;  %v19556_v29 = vand.u32 2147483647, %v19541_v7  ;;  %vm19557_vm5 = vcmp.ne.f32.partialorder %v19378_v51, %v19378_v51 }
 0x376   :  { %vm13797_vm7 = vcmp.eq.f32.partialorder %v19551_v5, 2139095040  ;;  %19555 = vst [vmem:[#allocation298_spill] sm:$0xff] %v13803_v14  ;;  %v5193_v8 = vsel %vm19557_vm5, 2143289344, %v5189_v52  ;;  %vm19558_vm2 = vcmp.eq.f32.partialorder %v19409_v27, 0  ;;  %vm5320_vm8 = vcmp.ne.f32.partialorder %v19424_v30, %v19424_v30  ;;  %v8036_v5 = vpop.eup %8035 }
 0x377   :  { %8051 = vlog2.f32 %v19556_v29  ;;  %v5262_v25 = vsel %vm19558_vm2, 0, %v5261_v39  ;;  %vm5411_vm9 = vcmp.lt.f32.partialorder %v19458_v36, 0  ;;  %v19559_v44 = vand.u32 2147483647, %v19544_v46 }
 0x378   :  { %v5241_v24 = vsel %vm13703_vm0, 2139095040, %v5236_v41  ;;  %vm19560_vm3 = vcmp.eq.f32.partialorder %v19414_v58, 0  ;;  %v5513_v52 = vmul.f32 0.1, %v8030_v42  ;;  %v19561_v39 = vand.u32 2147483647, %v19550_v15  ;;  %v8038_v41 = vpop.eup %8037 }
 0x379   :  { %8053 = vlog2.f32 %v19559_v44  ;;  %v5288_v26 = vsel %vm19560_vm3, 0, %v5287_v60  ;;  %v5219_v29 = vsel %vm5216_vm15, 2143289344, %v5215_v10  ;;  %vm19562_vm2 = vcmp.lt.f32.partialorder %v19424_v30, 0 }
 0x37a   :  { %8055 = vlog2.f32 %v19561_v39  ;;  %v5313_v44 = vsel %vm19562_vm2, 2143289344, %v8028_v43  ;;  %vm5360_vm0 = vcmp.eq.f32.partialorder %v19453_v45, 0  ;;  %v5539_v35 = vmul.f32 0.1, %v8032_v55  ;;  %v8040_v43 = vpop.eup %8039 }
 0x37b   :  { %8057 = vpow2.f32 %v5487_v12  ;;  %vm19563_vm3 = vcmp.eq.f32.partialorder %v19378_v51, 1065353216  ;;  %v5267_v60 = vsel %vm13721_vm13, 2139095040, %v5262_v25  ;;  %vm5309_vm5 = vcmp.eq.f32.partialorder %v19424_v30, 1065353216 }
 0x37c   :  { %v13840_v42 = vsel %vm19563_vm3, 1065353216, %v5193_v8  ;;  %v5339_v10 = vsel %vm5333_vm11, 2143289344, %v8034_v20  ;;  %vm19565_vm10 = vcmp.ne.f32.partialorder %v19406_v2, %v19406_v2  ;;  %v5293_v51 = vsel %vm13739_vm12, 2139095040, %v5288_v26  ;;  %v8042_v8 = vpop.eup %8041 }
 0x37d   :  { %19564 = vst [vmem:[#allocation299_spill] sm:$0xff] %v13840_v42  ;;  %v5245_v55 = vsel %vm19565_vm10, 2143289344, %v5241_v24  ;;  %vm5463_vm13 = vcmp.lt.f32.partialorder %v19467_v33, 0  ;;  %vm19567_vm11 = vcmp.eq.f32.partialorder %v19400_v9, 1065353216  ;;  %vm19569_vm2 = vcmp.eq.f32.partialorder %v19424_v30, 0  ;;  %v8044_v9 = vpop.eup %8043 }
 0x37e   :  { %v13859_v20 = vsel %vm19567_vm11, 1065353216, %v5219_v29  ;;  %v5314_v25 = vsel %vm19569_vm2, 0, %v5313_v44  ;;  %v19570_v39 = vand.u32 2147483647, %v19453_v45  ;;  %v19573_v57 = vand.u32 2147483647, %v19456_v40 }
 0x37f   :  { %19568 = vst [vmem:[#allocation300_spill] sm:$0xff] %v13859_v20  ;;  %8059 = vpow2.f32 %v5513_v52  ;;  %v5565_v12 = vmul.f32 0.1, %v8036_v5  ;;  %v5271_v29 = vsel %vm5268_vm1, 2143289344, %v5267_v60  ;;  %vm19576_vm2 = vcmp.eq.f32.partialorder %v19435_v50, 0  ;;  %v8046_v5 = vpop.eup %8045 }
 0x380   :  { %vm13865_vm10 = vcmp.eq.f32.partialorder %v19570_v39, 2139095040  ;;  %vm13871_vm12 = vcmp.eq.f32.partialorder %v19573_v57, 2139095040  ;;  %v5340_v44 = vsel %vm19576_vm2, 0, %v5339_v10  ;;  %v19577_v39 = vand.u32 2147483647, %v19458_v36  ;;  %v8048_v14 = vpop.eup %8047 }
 0x381   :  { %v19580_v57 = vand.u32 2147483647, %v19461_v56  ;;  %8061 = vpow2.f32 %v5539_v35  ;;  %v5591_v52 = vmul.f32 0.1, %v8038_v41  ;;  %v13894_v60 = vsel %vm5231_vm14, 1065353216, %v5245_v55  ;;  %v19588_v41 = vld [vmem:[#allocation321_spill] sm:$0xff] }
 0x382   :  { %vm13882_vm11 = vcmp.eq.f32.partialorder %v19577_v39, 2139095040  ;;  %19583 = vst [vmem:[#allocation301_spill] sm:$0xff] %v13894_v60  ;;  %v5297_v10 = vsel %vm5294_vm4, 2143289344, %v5293_v51  ;;  %v19584_v39 = vand.u32 2147483647, %v19467_v33  ;;  %v5319_v35 = vsel %vm13781_vm6, 2139095040, %v5314_v25  ;;  %v8050_v51 = vpop.eup %8049 }
 0x383   :  { %vm13888_vm3 = vcmp.eq.f32.partialorder %v19580_v57, 2139095040  ;;  %v19587_v2 = vand.u32 2147483647, %v19566_v0  ;;  %v17613_v55 = vand.u32 2147483647, %v19588_v41  ;;  %vm19589_vm1 = vcmp.eq.f32.partialorder %v19409_v27, 1065353216 }
 0x384   :  { %vm13902_vm2 = vcmp.eq.f32.partialorder %v19584_v39, 2139095040  ;;  %v13918_v39 = vsel %vm19589_vm1, 1065353216, %v5271_v29  ;;  %v5345_v32 = vsel %vm13797_vm7, 2139095040, %v5340_v44  ;;  %v19591_v25 = vld [vmem:[#allocation322_spill] sm:$0xff]  ;;  %vm19592_vm14 = vcmp.eq.f32.partialorder %v19414_v58, 1065353216  ;;  %v19620_v57 = vld [vmem:[#allocation325_spill] sm:$0xff] }
 0x385   :  { %8063 = vlog2.f32 %v19587_v2  ;;  %19590 = vst [vmem:[#allocation302_spill] sm:$0xff] %v13918_v39  ;;  %v17614_v60 = vand.u32 2147483647, %v19591_v25  ;;  %v13929_v2 = vsel %vm19592_vm14, 1065353216, %v5297_v10  ;;  %vm19594_vm4 = vcmp.lt.f32.partialorder %v19453_v45, 0 }
 0x386   :  { %8065 = vpow2.f32 %v5565_v12  ;;  %19593 = vst [vmem:[#allocation303_spill] sm:$0xff] %v13929_v2  ;;  %v5365_v27 = vsel %vm19594_vm4, 2143289344, %v8040_v43  ;;  %vm19595_vm1 = vcmp.lt.f32.partialorder %v19456_v40, 0  ;;  %v5323_v12 = vsel %vm5320_vm8, 2143289344, %v5319_v35 }
 0x387   :  { %v5391_v62 = vsel %vm19595_vm1, 2143289344, %v8042_v8  ;;  %8067 = vpow2.f32 %v5591_v52  ;;  %v5417_v58 = vsel %vm5411_vm9, 2143289344, %v8044_v9  ;;  %vm19596_vm14 = vcmp.lt.f32.partialorder %v19461_v56, 0  ;;  %v8052_v8 = vpop.eup %8051 }
 0x388   :  { %v5443_v43 = vsel %vm19596_vm14, 2143289344, %v8046_v5  ;;  %vm5515_vm4 = vcmp.lt.f32.partialorder %v19497_v23, 0  ;;  %vm5541_vm1 = vcmp.lt.f32.partialorder %v19504_v59, 0  ;;  %vm19597_vm6 = vcmp.ne.f32.partialorder %v19435_v50, %v19435_v50  ;;  %v8054_v52 = vpop.eup %8053 }
 0x389   :  { %v5349_v29 = vsel %vm19597_vm6, 2143289344, %v5345_v32  ;;  %v5469_v9 = vsel %vm5463_vm13, 2143289344, %v8048_v14  ;;  %v5617_v44 = vmul.f32 0.1, %v8050_v51  ;;  %8069 = vlog2.f32 %v17613_v55  ;;  %v19602_v14 = vld [vmem:[#allocation323_spill] sm:$0xff]  ;;  %v8056_v55 = vpop.eup %8055 }
 0x38a   :  { %v5366_v5 = vsel %vm5360_vm0, 0, %v5365_v27  ;;  %vm19598_vm9 = vcmp.eq.f32.partialorder %v19456_v40, 0  ;;  %v19599_v35 = vand.u32 2147483647, %v19485_v21  ;;  %8071 = vlog2.f32 %v17614_v60 }
 0x38b   :  { %v5392_v10 = vsel %vm19598_vm9, 0, %v5391_v62  ;;  %v13974_v27 = vsel %vm5309_vm5, 1065353216, %v5323_v12  ;;  %vm19604_vm0 = vcmp.eq.f32.partialorder %v19458_v36, 0  ;;  %vm19605_vm13 = vcmp.eq.f32.partialorder %v19461_v56, 0 }
 0x38c   :  { %vm13965_vm14 = vcmp.eq.f32.partialorder %v19599_v35, 2139095040  ;;  %19603 = vst [vmem:[#allocation304_spill] sm:$0xff] %v13974_v27  ;;  %v5418_v62 = vsel %vm19604_vm0, 0, %v5417_v58  ;;  %v5444_v2 = vsel %vm19605_vm13, 0, %v5443_v43  ;;  %vm5516_vm9 = vcmp.eq.f32.partialorder %v19497_v23, 0  ;;  %v8058_v35 = vpop.eup %8057 }
 0x38d   :  { %vm5542_vm6 = vcmp.eq.f32.partialorder %v19504_v59, 0  ;;  %vm19606_vm15 = vcmp.eq.f32.partialorder %v19435_v50, 1065353216  ;;  %vm19608_vm8 = vcmp.eq.f32.partialorder %v19467_v33, 0  ;;  %vm5567_vm5 = vcmp.lt.f32.partialorder %v19511_v19, 0  ;;  %v8060_v20 = vpop.eup %8059 }
 0x38e   :  { %v13984_v60 = vsel %vm19606_vm15, 1065353216, %v5349_v29  ;;  %v5470_v30 = vsel %vm19608_vm8, 0, %v5469_v9  ;;  %vm5593_vm7 = vcmp.lt.f32.partialorder %v19516_v11, 0  ;;  %v5643_v12 = vmul.f32 0.1, %v8052_v8 }
 0x38f   :  { %19607 = vst [vmem:[#allocation305_spill] sm:$0xff] %v13984_v60  ;;  %v5371_v58 = vsel %vm13865_vm10, 2139095040, %v5366_v5  ;;  %v5397_v43 = vsel %vm13871_vm12, 2139095040, %v5392_v10  ;;  %vm5502_vm0 = vcmp.ne.f32.partialorder %v19485_v21, %v19485_v21  ;;  %8073 = vpow2.f32 %v5617_v44  ;;  %v19617_v5 = vld [vmem:[#allocation324_spill] sm:$0xff] }
 0x390   :  { %v5669_v50 = vmul.f32 0.1, %v8054_v52  ;;  %v5423_v29 = vsel %vm13882_vm11, 2139095040, %v5418_v62  ;;  %v5449_v9 = vsel %vm13888_vm3, 2139095040, %v5444_v2  ;;  %v19609_v51 = vand.u32 2147483647, %v19497_v23 }
 0x391   :  { %v19612_v24 = vand.u32 2147483647, %v19504_v59  ;;  %v5695_v44 = vmul.f32 0.1, %v8056_v55  ;;  %v19615_v52 = vand.u32 2147483647, %v19602_v14  ;;  %vm19618_vm8 = vcmp.ne.f32.partialorder %v19453_v45, %v19453_v45 }
 0x392   :  { %vm14002_vm15 = vcmp.eq.f32.partialorder %v19609_v51, 2139095040  ;;  %v5475_v42 = vsel %vm13902_vm2, 2139095040, %v5470_v30  ;;  %vm19616_vm3 = vcmp.lt.f32.partialorder %v19485_v21, 0  ;;  %vm5568_vm12 = vcmp.eq.f32.partialorder %v19511_v19, 0  ;;  %v8062_v51 = vpop.eup %8061 }
 0x393   :  { %vm14008_vm10 = vcmp.eq.f32.partialorder %v19612_v24, 2139095040  ;;  %8075 = vlog2.f32 %v19615_v52  ;;  %v5495_v2 = vsel %vm19616_vm3, 2143289344, %v8058_v35  ;;  %v5375_v55 = vsel %vm19618_vm8, 2143289344, %v5371_v58  ;;  %v19623_v58 = vld [vmem:[#allocation326_spill] sm:$0xff] }
 0x394   :  { %vm19619_vm13 = vcmp.ne.f32.partialorder %v19456_v40, %v19456_v40  ;;  %8077 = vpow2.f32 %v5643_v12  ;;  %vm19621_vm2 = vcmp.ne.f32.partialorder %v19458_v36, %v19458_v36  ;;  %vm19622_vm3 = vcmp.ne.f32.partialorder %v19461_v56, %v19461_v56  ;;  %v8064_v12 = vpop.eup %8063 }
 0x395   :  { %v5401_v62 = vsel %vm19619_vm13, 2143289344, %v5397_v43  ;;  %v5427_v35 = vsel %vm19621_vm2, 2143289344, %v5423_v29  ;;  %v5453_v24 = vsel %vm19622_vm3, 2143289344, %v5449_v9  ;;  %8079 = vpow2.f32 %v5669_v50  ;;  %v19632_v43 = vld [vmem:[#allocation327_spill] sm:$0xff]  ;;  %v8066_v60 = vpop.eup %8065 }
 0x396   :  { %vm19624_vm13 = vcmp.ne.f32.partialorder %v19467_v33, %v19467_v33  ;;  %vm19625_vm2 = vcmp.eq.f32.partialorder %v19485_v21, 0  ;;  %v19626_v30 = vand.u32 2147483647, %v19511_v19  ;;  %v19629_v10 = vand.u32 2147483647, %v19516_v11  ;;  %v8068_v39 = vpop.eup %8067 }
 0x397   :  { %v5479_v52 = vsel %vm19624_vm13, 2143289344, %v5475_v42  ;;  %v5496_v29 = vsel %vm19625_vm2, 0, %v5495_v2  ;;  %8081 = vpow2.f32 %v5695_v44  ;;  %vm19633_vm13 = vcmp.eq.f32.partialorder %v19453_v45, 1065353216 }
 0x398   :  { %vm14046_vm3 = vcmp.eq.f32.partialorder %v19626_v30, 2139095040  ;;  %vm14052_vm8 = vcmp.eq.f32.partialorder %v19629_v10, 2139095040  ;;  %v14060_v2 = vsel %vm19633_vm13, 1065353216, %v5375_v55  ;;  %v5521_v30 = vsel %vm5515_vm4, 2143289344, %v8060_v20  ;;  %v8070_v55 = vpop.eup %8069 }
 0x399   :  { %v5547_v27 = vsel %vm5541_vm1, 2143289344, %v8062_v51  ;;  %v19634_v10 = vand.u32 2147483647, %v19617_v5  ;;  %vm19635_vm2 = vcmp.eq.f32.partialorder %v19456_v40, 1065353216  ;;  %vm19637_vm11 = vcmp.eq.f32.partialorder %v19458_v36, 1065353216 }
 0x39a   :  { %v14070_v44 = vsel %vm19635_vm2, 1065353216, %v5401_v62  ;;  %v14074_v42 = vsel %vm19637_vm11, 1065353216, %v5427_v35  ;;  %vm19639_vm13 = vcmp.eq.f32.partialorder %v19461_v56, 1065353216  ;;  %v19641_v20 = vand.u32 2147483647, %v19620_v57  ;;  %v19646_v35 = vld [vmem:[#allocation328_spill] sm:$0xff] }
 0x39b   :  { %8083 = vlog2.f32 %v19634_v10  ;;  %19636 = vst [vmem:[#allocation306_spill] sm:$0xff] %v14070_v44  ;;  %19638 = vst [vmem:[#allocation307_spill] sm:$0xff] %v14074_v42  ;;  %v14078_v45 = vsel %vm19639_vm13, 1065353216, %v5453_v24  ;;  %vm19642_vm4 = vcmp.eq.f32.partialorder %v19467_v33, 1065353216  ;;  %vm5491_vm1 = vcmp.eq.f32.partialorder %v19485_v21, 1065353216  ;;  %v19649_v24 = vld [vmem:[#allocation16_spill] sm:$0xff] }
 0x39c   :  { %19640 = vst [vmem:[#allocation308_spill] sm:$0xff] %v14078_v45  ;;  %8085 = vlog2.f32 %v19641_v20  ;;  %v14084_v51 = vsel %vm19642_vm4, 1065353216, %v5479_v52  ;;  %v5501_v40 = vsel %vm13965_vm14, 2139095040, %v5496_v29  ;;  %vm5517_vm2 = vcmp.eq.f32.partialorder %v19497_v23, 1065353216  ;;  %v19647_v20 = vld [vmem:[#allocation329_spill] sm:$0xff] }
 0x39d   :  { %19643 = vst [vmem:[#allocation309_spill] sm:$0xff] %v14084_v51  ;;  %v5721_v36 = vmul.f32 0.1, %v8064_v12  ;;  %v19644_v56 = vand.u32 2147483647, %v19623_v58  ;;  %v5522_v33 = vsel %vm5516_vm9, 0, %v5521_v30  ;;  %vm5606_vm14 = vcmp.ne.f32.partialorder %v19516_v11, %v19516_v11  ;;  %v8072_v12 = vpop.eup %8071 }
 0x39e   :  { %vm5543_vm13 = vcmp.eq.f32.partialorder %v19504_v59, 1065353216  ;;  %v5548_v62 = vsel %vm5542_vm6, 0, %v5547_v27  ;;  %vm5620_vm4 = vcmp.eq.f32.partialorder %v19533_v28, 0  ;;  %v19645_v32 = vand.u32 2147483647, %v19632_v43 }
 0x39f   :  { %8087 = vlog2.f32 %v19644_v56  ;;  %v5573_v52 = vsel %vm5567_vm5, 2143289344, %v8066_v60  ;;  %v5599_v29 = vsel %vm5593_vm7, 2143289344, %v8068_v39  ;;  %v1601_v27 = vmul.f32 219.71211, %v11191_v31  ;;  %v8074_v56 = vpop.eup %8073 }
 0x3a0   :  { %8089 = vlog2.f32 %v19645_v32  ;;  %v1602_v30 = vmul.f32 219.71211, %v11195_v3  ;;  %v5505_v10 = vsel %vm5502_vm0, 2143289344, %v5501_v40  ;;  %vm5569_vm6 = vcmp.eq.f32.partialorder %v19511_v19, 1065353216  ;;  %v19648_v32 = vld [vmem:[#allocation15_spill] sm:$0xff] }
 0x3a1   :  { %vm1793_vm9 = vcmp.gt.f32.partialorder %v19648_v32, 400.0  ;;  %vm1794_vm11 = vcmp.gt.f32.partialorder %v19649_v24, 400.0  ;;  %v5527_v60 = vsel %vm14002_vm15, 2139095040, %v5522_v33  ;;  %v5553_v31 = vsel %vm14008_vm10, 2139095040, %v5548_v62  ;;  %v8076_v62 = vpop.eup %8075 }
 0x3a2   :  { %v19650_v3 = vand.u32 2147483647, %v19533_v28  ;;  %8091 = vpow2.f32 %v5721_v36  ;;  %v5747_v40 = vmul.f32 0.1, %v8070_v55  ;;  %v5574_v51 = vsel %vm5568_vm12, 0, %v5573_v52  ;;  %v19655_v36 = vld [vmem:[#allocation330_spill] sm:$0xff]  ;;  %v8078_v45 = vpop.eup %8077 }
 0x3a3   :  { %vm19653_vm0 = vcmp.eq.f32.partialorder %v19516_v11, 0  ;;  %vm5646_vm15 = vcmp.eq.f32.partialorder %v19541_v7, 0  ;;  %vm5671_vm10 = vcmp.lt.f32.partialorder %v19544_v46, 0  ;;  %v5773_v26 = vmul.f32 0.1, %v8072_v12 }
 0x3a4   :  { %vm14126_vm5 = vcmp.eq.f32.partialorder %v19650_v3, 2139095040  ;;  %v5600_v8 = vsel %vm19653_vm0, 0, %v5599_v29  ;;  %v19654_v33 = vand.u32 2147483647, %v19646_v35  ;;  %v1603_v3 = vmul.f32 219.71211, %v11265_v17 }
 0x3a5   :  { %v1985_v52 = vsel %vm1793_vm9, %v1601_v27, %v19648_v32  ;;  %v1986_v29 = vsel %vm1794_vm11, %v1602_v30, %v19649_v24  ;;  %vm19656_vm12 = vcmp.ne.f32.partialorder %v19497_v23, %v19497_v23  ;;  %vm19657_vm0 = vcmp.ne.f32.partialorder %v19504_v59, %v19504_v59  ;;  %v19659_v17 = vld [vmem:[#allocation17_spill] sm:$0xff] }
 0x3a6   :  { %8093 = vlog2.f32 %v19654_v33  ;;  %v5531_v12 = vsel %vm19656_vm12, 2143289344, %v5527_v60  ;;  %v5557_v33 = vsel %vm19657_vm0, 2143289344, %v5553_v31  ;;  %v19658_v55 = vand.u32 2147483647, %v19647_v20  ;;  %v8080_v31 = vpop.eup %8079 }
 0x3a7   :  { %vm1795_vm7 = vcmp.gt.f32.partialorder %v19659_v17, 400.0  ;;  %v5579_v27 = vsel %vm14046_vm3, 2139095040, %v5574_v51  ;;  %v5605_v24 = vsel %vm14052_vm8, 2139095040, %v5600_v8  ;;  %vm19660_vm11 = vcmp.lt.f32.partialorder %v19533_v28, 0  ;;  %v8363_v51 = vld [vmem:[#allocation7] sm:$0xff] }
 0x3a8   :  { %8095 = vlog2.f32 %v19658_v55  ;;  %v5625_v30 = vsel %vm19660_vm11, 2143289344, %v8074_v56  ;;  %vm5632_vm9 = vcmp.ne.f32.partialorder %v19533_v28, %v19533_v28  ;;  %v19661_v32 = vand.u32 2147483647, %v19541_v7  ;;  %v8364_v56 = vld [vmem:[#allocation7 + $0x8] sm:$0xff]  ;;  %v8082_v55 = vpop.eup %8081 }
 0x3a9   :  { %8097 = vpow2.f32 %v5747_v40  ;;  %vm5672_vm0 = vcmp.eq.f32.partialorder %v19544_v46, 0  ;;  %vm5698_vm3 = vcmp.eq.f32.partialorder %v19550_v15, 0  ;;  %v5799_v9 = vmul.f32 0.1, %v8076_v62  ;;  %v8084_v44 = vpop.eup %8083 }
 0x3aa   :  { %vm14166_vm12 = vcmp.eq.f32.partialorder %v19661_v32, 2139095040  ;;  %8099 = vpow2.f32 %v5773_v26  ;;  %v2178_v50 = vadd.f32 %v1986_v29, %v1985_v52  ;;  %v2372_v8 = vadd.f32 %v8364_v56, %v8363_v51  ;;  %v19667_v29 = vld [vmem:[#allocation18_spill] sm:$0xff] }
 0x3ab   :  { %v19664_v32 = vand.u32 2147483647, %v19655_v36  ;;  %v1604_v42 = vmul.f32 219.71211, %v11324_v49  ;;  %v1987_v40 = vsel %vm1795_vm7, %v1603_v3, %v19659_v17  ;;  %v14181_v26 = vsel %vm5491_vm1, 1065353216, %v5505_v10  ;;  %v8086_v49 = vpop.eup %8085 }
 0x3ac   :  { %v14185_v62 = vsel %vm5517_vm2, 1065353216, %v5531_v12  ;;  %vm19666_vm11 = vcmp.ne.f32.partialorder %v19511_v19, %v19511_v19  ;;  %vm1796_vm8 = vcmp.gt.f32.partialorder %v19667_v29, 400.0  ;;  %v14193_v51 = vsel %vm5543_vm13, 1065353216, %v5557_v33  ;;  %v8088_v3 = vpop.eup %8087  ;;  %v19679_v19 = vld [vmem:[#allocation19_spill] sm:$0xff] }
 0x3ad   :  { %8101 = vlog2.f32 %v19664_v32  ;;  %19665 = vst [vmem:[#allocation310_spill] sm:$0xff] %v14185_v62  ;;  %v5583_v52 = vsel %vm19666_vm11, 2143289344, %v5579_v27  ;;  %19668 = vst [vmem:[#allocation311_spill] sm:$0xff] %v14193_v51  ;;  %v5609_v21 = vsel %vm5606_vm14, 2143289344, %v5605_v24  ;;  %vm5621_vm1 = vcmp.eq.f32.partialorder %v19533_v28, 1065353216  ;;  %v8090_v32 = vpop.eup %8089 }
 0x3ae   :  { %v5626_v23 = vsel %vm5620_vm4, 0, %v5625_v30  ;;  %vm19669_vm2 = vcmp.lt.f32.partialorder %v19541_v7, 0  ;;  %vm5658_vm7 = vcmp.ne.f32.partialorder %v19541_v7, %v19541_v7  ;;  %v19670_v59 = vand.u32 2147483647, %v19544_v46  ;;  %v8365_v30 = vld [vmem:[#allocation7 + $0x10] sm:$0xff] }
 0x3af   :  { %v5651_v10 = vsel %vm19669_vm2, 2143289344, %v8078_v45  ;;  %v19673_v33 = vand.u32 2147483647, %v19550_v15  ;;  %8103 = vpow2.f32 %v5799_v9  ;;  %v19676_v45 = vld [vmem:[#allocation331_spill] sm:$0xff]  ;;  %v2179_v24 = vadd.f32 %v2178_v50, %v1987_v40  ;;  %v8092_v40 = vpop.eup %8091 }
 0x3b0   :  { %vm14207_vm13 = vcmp.eq.f32.partialorder %v19670_v59, 2139095040  ;;  %v17615_v27 = vand.u32 2147483647, %v19676_v45  ;;  %v2373_v56 = vadd.f32 %v8365_v30, %v2372_v8  ;;  %v14222_v59 = vsel %vm5569_vm6, 1065353216, %v5583_v52 }
 0x3b1   :  { %vm14213_vm14 = vcmp.eq.f32.partialorder %v19673_v33, 2139095040  ;;  %vm5775_vm2 = vcmp.lt.f32.partialorder %v19591_v25, 0  ;;  %v5825_v33 = vmul.f32 0.1, %v8084_v44  ;;  %v1605_v51 = vmul.f32 219.71211, %v11328_v13 }
 0x3b2   :  { %v1988_v62 = vsel %vm1796_vm8, %v1604_v42, %v19667_v29  ;;  %vm19677_vm11 = vcmp.eq.f32.partialorder %v19516_v11, 1065353216  ;;  %v5631_v50 = vsel %vm14126_vm5, 2139095040, %v5626_v23  ;;  %v5851_v8 = vmul.f32 0.1, %v8086_v49  ;;  %v8366_v29 = vld [vmem:[#allocation7 + $0x18] sm:$0xff] }
 0x3b3   :  { %v14231_v9 = vsel %vm19677_vm11, 1065353216, %v5609_v21  ;;  %vm1797_vm6 = vcmp.gt.f32.partialorder %v19679_v19, 400.0  ;;  %v5652_v44 = vsel %vm5646_vm15, 0, %v5651_v10  ;;  %v5677_v13 = vsel %vm5671_vm10, 2143289344, %v8080_v31  ;;  %v8094_v21 = vpop.eup %8093  ;;  %v19684_v23 = vld [vmem:[#allocation332_spill] sm:$0xff] }
 0x3b4   :  { %19678 = vst [vmem:[#allocation312_spill] sm:$0xff] %v14231_v9  ;;  %vm19680_vm8 = vcmp.lt.f32.partialorder %v19550_v15, 0  ;;  %v5877_v11 = vmul.f32 0.1, %v8088_v3  ;;  %vm5684_vm11 = vcmp.ne.f32.partialorder %v19544_v46, %v19544_v46  ;;  %vm5710_vm5 = vcmp.ne.f32.partialorder %v19550_v15, %v19550_v15 }
 0x3b5   :  { %v5703_v42 = vsel %vm19680_vm8, 2143289344, %v8082_v55  ;;  %v19681_v39 = vand.u32 2147483647, %v19566_v0  ;;  %vm5750_vm15 = vcmp.eq.f32.partialorder %v19588_v41, 0  ;;  %v5903_v31 = vmul.f32 0.1, %v8090_v32  ;;  %v8096_v32 = vpop.eup %8095 }
 0x3b6   :  { %8105 = vlog2.f32 %v17615_v27  ;;  %v2180_v55 = vadd.f32 %v2179_v24, %v1988_v62  ;;  %v2374_v49 = vadd.f32 %v8366_v29, %v2373_v56  ;;  %v6031_v10 = vand.u32 2147483647, %v19684_v23  ;;  %v19685_v56 = vld [vmem:[#allocation20_spill] sm:$0xff]  ;;  %v8098_v60 = vpop.eup %8097  ;;  %v19693_v29 = vld [vmem:[#allocation333_spill] sm:$0xff] }
 0x3b7   :  { %vm14249_vm4 = vcmp.eq.f32.partialorder %v19681_v39, 2139095040  ;;  %8107 = vpow2.f32 %v5825_v33  ;;  %v1606_v3 = vmul.f32 219.71211, %v11332_v37  ;;  %v1989_v30 = vsel %vm1797_vm6, %v1605_v51, %v19679_v19  ;;  %v8100_v39 = vpop.eup %8099 }
 0x3b8   :  { %v5635_v62 = vsel %vm5632_vm9, 2143289344, %v5631_v50  ;;  %v5657_v24 = vsel %vm14166_vm12, 2139095040, %v5652_v44  ;;  %8109 = vpow2.f32 %v5851_v8  ;;  %vm1798_vm10 = vcmp.gt.f32.partialorder %v19685_v56, 400.0 }
 0x3b9   :  { %vm5673_vm8 = vcmp.eq.f32.partialorder %v19544_v46, 1065353216  ;;  %v5678_v37 = vsel %vm5672_vm0, 0, %v5677_v13  ;;  %v5704_v33 = vsel %vm5698_vm3, 0, %v5703_v42  ;;  %vm19686_vm6 = vcmp.lt.f32.partialorder %v19566_v0, 0 }
 0x3ba   :  { %v5729_v51 = vsel %vm19686_vm6, 2143289344, %v8092_v40  ;;  %8111 = vpow2.f32 %v5877_v11  ;;  %v19687_v50 = vand.u32 2147483647, %v19588_v41  ;;  %v19690_v19 = vand.u32 2147483647, %v19591_v25  ;;  %v8367_v40 = vld [vmem:[#allocation7 + $0x20] sm:$0xff]  ;;  %v8102_v9 = vpop.eup %8101 }
 0x3bb   :  { %8113 = vpow2.f32 %v5903_v31  ;;  %v5929_v13 = vmul.f32 0.1, %v8094_v21  ;;  %v2181_v42 = vadd.f32 %v2180_v55, %v1989_v30  ;;  %v2375_v11 = vadd.f32 %v8367_v40, %v2374_v49  ;;  %v19694_v21 = vld [vmem:[#allocation21_spill] sm:$0xff] }
 0x3bc   :  { %vm14280_vm12 = vcmp.eq.f32.partialorder %v19687_v50, 2139095040  ;;  %vm14286_vm0 = vcmp.eq.f32.partialorder %v19690_v19, 2139095040  ;;  %8115 = vlog2.f32 %v6031_v10  ;;  %v17618_v50 = vand.u32 2147483647, %v19693_v29 }
 0x3bd   :  { %v1607_v19 = vmul.f32 219.71211, %v11339_v18  ;;  %v1990_v27 = vsel %vm1798_vm10, %v1606_v3, %v19685_v56  ;;  %v14301_v31 = vsel %vm5621_vm1, 1065353216, %v5635_v62  ;;  %v5661_v55 = vsel %vm5658_vm7, 2143289344, %v5657_v24  ;;  %v8368_v56 = vld [vmem:[#allocation7 + $0x28] sm:$0xff] }
 0x3be   :  { %v5955_v49 = vmul.f32 0.1, %v8096_v32  ;;  %vm1799_vm3 = vcmp.gt.f32.partialorder %v19694_v21, 400.0  ;;  %v5683_v18 = vsel %vm14207_vm13, 2139095040, %v5678_v37  ;;  %v5709_v3 = vsel %vm14213_vm14, 2139095040, %v5704_v33  ;;  %v8104_v37 = vpop.eup %8103 }
 0x3bf   :  { %vm19695_vm10 = vcmp.eq.f32.partialorder %v19566_v0, 0  ;;  %vm19696_vm1 = vcmp.lt.f32.partialorder %v19588_v41, 0  ;;  %vm5762_vm7 = vcmp.ne.f32.partialorder %v19588_v41, %v19588_v41  ;;  %vm5788_vm6 = vcmp.ne.f32.partialorder %v19591_v25, %v19591_v25 }
 0x3c0   :  { %v5730_v28 = vsel %vm19695_vm10, 0, %v5729_v51  ;;  %v5755_v30 = vsel %vm19696_vm1, 2143289344, %v8098_v60  ;;  %v19697_v62 = vand.u32 2147483647, %v19602_v14  ;;  %v5781_v17 = vsel %vm5775_vm2, 2143289344, %v8100_v39  ;;  %v8369_v39 = vld [vmem:[#allocation7 + $0x30] sm:$0xff] }
 0x3c1   :  { %vm5827_vm13 = vcmp.lt.f32.partialorder %v19617_v5, 0  ;;  %8117 = vpow2.f32 %v5929_v13  ;;  %v2182_v24 = vadd.f32 %v2181_v42, %v1990_v27  ;;  %v2376_v32 = vadd.f32 %v8368_v56, %v2375_v11  ;;  %v19701_v27 = vld [vmem:[#allocation24_spill] sm:$0xff] }
 0x3c2   :  { %vm14322_vm9 = vcmp.eq.f32.partialorder %v19697_v62, 2139095040  ;;  %v5981_v33 = vmul.f32 0.1, %v8102_v9  ;;  %8119 = vlog2.f32 %v17618_v50  ;;  %v1608_v51 = vmul.f32 219.71211, %v11383_v6 }
 0x3c3   :  { %v1991_v60 = vsel %vm1799_vm3, %v1607_v19, %v19694_v21  ;;  %vm19700_vm2 = vcmp.eq.f32.partialorder %v19541_v7, 1065353216  ;;  %8121 = vpow2.f32 %v5955_v49  ;;  %vm1800_vm10 = vcmp.gt.f32.partialorder %v19701_v27, 400.0  ;;  %v19704_v49 = vld [vmem:[#allocation177_spill] sm:$0xff] }
 0x3c4   :  { %v14339_v40 = vsel %vm19700_vm2, 1065353216, %v5661_v55  ;;  %v5687_v9 = vsel %vm5684_vm11, 2143289344, %v5683_v18  ;;  %v5713_v6 = vsel %vm5710_vm5, 2143289344, %v5709_v3  ;;  %v5735_v13 = vsel %vm14249_vm4, 2139095040, %v5730_v28  ;;  %v8106_v55 = vpop.eup %8105 }
 0x3c5   :  { %v5756_v7 = vsel %vm5750_vm15, 0, %v5755_v30  ;;  %vm5777_vm2 = vcmp.eq.f32.partialorder %v19591_v25, 1065353216  ;;  %vm19702_vm1 = vcmp.eq.f32.partialorder %v19591_v25, 0  ;;  %vm19703_vm14 = vcmp.lt.f32.partialorder %v19602_v14, 0  ;;  %v8108_v28 = vpop.eup %8107 }
 0x3c6   :  { %v5782_v42 = vsel %vm19702_vm1, 0, %v5781_v17  ;;  %v5807_v11 = vsel %vm19703_vm14, 2143289344, %v8104_v37  ;;  %vm5814_vm11 = vcmp.ne.f32.partialorder %v19602_v14, %v19602_v14  ;;  %vm5828_vm5 = vcmp.eq.f32.partialorder %v19617_v5, 0  ;;  %v19706_v17 = vld [vmem:[#allocation27_spill] sm:$0xff] }
 0x3c7   :  { %vm5854_vm4 = vcmp.eq.f32.partialorder %v19620_v57, 0  ;;  %v2183_v52 = vadd.f32 %v2182_v24, %v1991_v60  ;;  %v2377_v19 = vadd.f32 %v8369_v39, %v2376_v32  ;;  %8123 = vpow2.f32 %v5981_v33  ;;  %v8110_v24 = vpop.eup %8109  ;;  %v19708_v32 = vld [vmem:[#allocation334_spill] sm:$0xff] }
 0x3c8   :  { %v17617_v21 = vand.u32 2147483647, %v19704_v49  ;;  %v1609_v18 = vmul.f32 219.71211, %v11387_v38  ;;  %v1992_v3 = vsel %vm1800_vm10, %v1608_v51, %v19701_v27  ;;  %v14372_v30 = vsel %vm5673_vm8, 1065353216, %v5687_v9  ;;  %v8112_v33 = vpop.eup %8111  ;;  %v8373_v27 = vld [vmem:[#allocation7 + $0x50] sm:$0xff] }
 0x3c9   :  { %vm19705_vm14 = vcmp.ne.f32.partialorder %v19566_v0, %v19566_v0  ;;  %vm1801_vm15 = vcmp.gt.f32.partialorder %v19706_v17, 400.0  ;;  %v5761_v38 = vsel %vm14280_vm12, 2139095040, %v5756_v7  ;;  %v5787_v56 = vsel %vm14286_vm0, 2139095040, %v5782_v42  ;;  %v8370_v7 = vld [vmem:[#allocation7 + $0x38] sm:$0xff] }
 0x3ca   :  { %v5739_v62 = vsel %vm19705_vm14, 2143289344, %v5735_v13  ;;  %vm19707_vm8 = vcmp.eq.f32.partialorder %v19602_v14, 0  ;;  %v17616_v37 = vand.u32 2147483647, %v19708_v32  ;;  %vm19709_vm14 = vcmp.eq.f32.partialorder %v19550_v15, 1065353216 }
 0x3cb   :  { %v5808_v46 = vsel %vm19707_vm8, 0, %v5807_v11  ;;  %v14390_v51 = vsel %vm19709_vm14, 1065353216, %v5713_v6  ;;  %v19710_v8 = vand.u32 2147483647, %v19617_v5  ;;  %v19713_v44 = vand.u32 2147483647, %v19620_v57  ;;  %v8114_v11 = vpop.eup %8113 }
 0x3cc   :  { %v19716_v9 = vand.u32 2147483647, %v19623_v58  ;;  %v6007_v15 = vmul.f32 0.1, %v8106_v55  ;;  %v2184_v6 = vadd.f32 %v2183_v52, %v1992_v3  ;;  %v2378_v42 = vadd.f32 %v8370_v7, %v2377_v19 }
 0x3cd   :  { %vm14394_vm12 = vcmp.eq.f32.partialorder %v19710_v8, 2139095040  ;;  %vm14400_vm0 = vcmp.eq.f32.partialorder %v19713_v44, 2139095040  ;;  %vm19719_vm14 = vcmp.eq.f32.partialorder %v19566_v0, 1065353216  ;;  %v19720_v8 = vand.u32 2147483647, %v19632_v43  ;;  %v8116_v0 = vpop.eup %8115 }
 0x3ce   :  { %vm14406_vm8 = vcmp.eq.f32.partialorder %v19716_v9, 2139095040  ;;  %v14412_v39 = vsel %vm19719_vm14, 1065353216, %v5739_v62  ;;  %8125 = vlog2.f32 %v17617_v21  ;;  %v1610_v52 = vmul.f32 219.71211, %v11400_v34  ;;  %v19723_v34 = vld [vmem:[#allocation30_spill] sm:$0xff]  ;;  %v8118_v7 = vpop.eup %8117 }
 0x3cf   :  { %vm14416_vm3 = vcmp.eq.f32.partialorder %v19720_v8, 2139095040  ;;  %v1993_v19 = vsel %vm1801_vm15, %v1609_v18, %v19706_v17  ;;  %v5765_v55 = vsel %vm5762_vm7, 2143289344, %v5761_v38  ;;  %v5791_v3 = vsel %vm5788_vm6, 2143289344, %v5787_v56 }
 0x3d0   :  { %v5813_v62 = vsel %vm14322_vm9, 2139095040, %v5808_v46  ;;  %vm5958_vm14 = vcmp.eq.f32.partialorder %v19647_v20, 0  ;;  %vm1802_vm1 = vcmp.gt.f32.partialorder %v19723_v34, 400.0  ;;  %v5833_v18 = vsel %vm5827_vm13, 2143289344, %v8108_v28 }
 0x3d1   :  { %vm19724_vm7 = vcmp.lt.f32.partialorder %v19620_v57, 0  ;;  %vm19725_vm9 = vcmp.lt.f32.partialorder %v19623_v58, 0  ;;  %8127 = vlog2.f32 %v17616_v37  ;;  %v19726_v28 = vand.u32 2147483647, %v19646_v35 }
 0x3d2   :  { %v5859_v17 = vsel %vm19724_vm7, 2143289344, %v8110_v24  ;;  %v5885_v12 = vsel %vm19725_vm9, 2143289344, %v8112_v33  ;;  %8129 = vpow2.f32 %v6007_v15  ;;  %v19729_v24 = vld [vmem:[#allocation178_spill] sm:$0xff]  ;;  %v2185_v46 = vadd.f32 %v2184_v6, %v1993_v19  ;;  %v8371_v33 = vld [vmem:[#allocation7 + $0x40] sm:$0xff]  ;;  %v8120_v6 = vpop.eup %8119 }
 0x3d3   :  { %vm14456_vm15 = vcmp.eq.f32.partialorder %v19726_v28, 2139095040  ;;  %v6135_v56 = vand.u32 2147483647, %v19729_v24  ;;  %v2379_v9 = vadd.f32 %v8371_v33, %v2378_v42  ;;  %vm19730_vm7 = vcmp.lt.f32.partialorder %v19632_v43, 0 }
 0x3d4   :  { %v5911_v8 = vsel %vm19730_vm7, 2143289344, %v8114_v11  ;;  %v19731_v37 = vand.u32 2147483647, %v19647_v20  ;;  %v6033_v28 = vmul.f32 0.1, %v8116_v0  ;;  %v1994_v15 = vsel %vm1802_vm1, %v1610_v52, %v19723_v34  ;;  %v8372_v34 = vld [vmem:[#allocation7 + $0x48] sm:$0xff] }
 0x3d5   :  { %v1611_v50 = vmul.f32 219.71211, %v11412_v16  ;;  %vm19734_vm13 = vcmp.eq.f32.partialorder %v19588_v41, 1065353216  ;;  %v14479_v11 = vsel %vm5777_vm2, 1065353216, %v5791_v3  ;;  %v8122_v16 = vpop.eup %8121  ;;  %v5817_v52 = vsel %vm5814_vm11, 2143289344, %v5813_v62 }
 0x3d6   :  { %vm14465_vm9 = vcmp.eq.f32.partialorder %v19731_v37, 2139095040  ;;  %v14475_v42 = vsel %vm19734_vm13, 1065353216, %v5765_v55  ;;  %v19735_v37 = vld [vmem:[#allocation33_spill] sm:$0xff]  ;;  %v5834_v41 = vsel %vm5828_vm5, 0, %v5833_v18  ;;  %v5860_v25 = vsel %vm5854_vm4, 0, %v5859_v17 }
 0x3d7   :  { %vm1803_vm6 = vcmp.gt.f32.partialorder %v19735_v37, 400.0  ;;  %vm19736_vm2 = vcmp.eq.f32.partialorder %v19623_v58, 0  ;;  %vm5944_vm13 = vcmp.ne.f32.partialorder %v19646_v35, %v19646_v35  ;;  %vm5881_vm7 = vcmp.eq.f32.partialorder %v19623_v58, 1065353216 }
 0x3d8   :  { %v5886_v19 = vsel %vm19736_vm2, 0, %v5885_v12  ;;  %vm19737_vm11 = vcmp.eq.f32.partialorder %v19632_v43, 0  ;;  %v19738_v55 = vand.u32 2147483647, %v19655_v36  ;;  %8131 = vlog2.f32 %v6135_v56 }
 0x3d9   :  { %v5912_v0 = vsel %vm19737_vm11, 0, %v5911_v8  ;;  %v2186_v62 = vadd.f32 %v2185_v46, %v1994_v15  ;;  %v2380_v18 = vadd.f32 %v8372_v34, %v2379_v9  ;;  %vm19741_vm4 = vcmp.lt.f32.partialorder %v19646_v35, 0  ;;  %v8124_v8 = vpop.eup %8123 }
 0x3da   :  { %vm14504_vm1 = vcmp.eq.f32.partialorder %v19738_v55, 2139095040  ;;  %v5937_v17 = vsel %vm19741_vm4, 2143289344, %v8118_v7  ;;  %vm6009_vm2 = vcmp.lt.f32.partialorder %v19676_v45, 0  ;;  %8133 = vpow2.f32 %v6033_v28  ;;  %v19744_v7 = vld [vmem:[#allocation36_spill] sm:$0xff] }
 0x3db   :  { %v1612_v12 = vmul.f32 219.71211, %v11466_v48  ;;  %v1995_v33 = vsel %vm1803_vm6, %v1611_v50, %v19735_v37  ;;  %vm19742_vm11 = vcmp.eq.f32.partialorder %v19602_v14, 1065353216  ;;  %vm5933_vm5 = vcmp.eq.f32.partialorder %v19646_v35, 1065353216  ;;  %v19745_v14 = vld [vmem:[#allocation335_spill] sm:$0xff] }
 0x3dc   :  { %v14519_v55 = vsel %vm19742_vm11, 1065353216, %v5817_v52  ;;  %vm19743_vm10 = vcmp.lt.f32.partialorder %v19647_v20, 0  ;;  %v6059_v9 = vmul.f32 0.1, %v8120_v6  ;;  %vm1804_vm4 = vcmp.gt.f32.partialorder %v19744_v7, 400.0 }
 0x3dd   :  { %v5963_v46 = vsel %vm19743_vm10, 2143289344, %v8122_v16  ;;  %v5839_v48 = vsel %vm14394_vm12, 2139095040, %v5834_v41  ;;  %v5865_v28 = vsel %vm14400_vm0, 2139095040, %v5860_v25  ;;  %v5891_v50 = vsel %vm14406_vm8, 2139095040, %v5886_v19  ;;  %v8126_v25 = vpop.eup %8125 }
 0x3de   :  { %vm5959_vm6 = vcmp.eq.f32.partialorder %v19647_v20, 1065353216  ;;  %v17624_v15 = vand.u32 2147483647, %v19745_v14  ;;  %v5917_v37 = vsel %vm14416_vm3, 2139095040, %v5912_v0  ;;  %vm19746_vm10 = vcmp.eq.f32.partialorder %v19646_v35, 0  ;;  %v19767_v35 = vld [vmem:[#allocation336_spill] sm:$0xff] }
 0x3df   :  { %v5938_v6 = vsel %vm19746_vm10, 0, %v5937_v17  ;;  %vm5996_vm11 = vcmp.ne.f32.partialorder %v19655_v36, %v19655_v36  ;;  %vm6010_vm12 = vcmp.eq.f32.partialorder %v19676_v45, 0  ;;  %v2187_v60 = vadd.f32 %v2186_v62, %v1995_v33  ;;  %v19750_v62 = vld [vmem:[#allocation39_spill] sm:$0xff]  ;;  %v8128_v33 = vpop.eup %8127 }
 0x3e0   :  { %v2381_v16 = vadd.f32 %v8373_v27, %v2380_v18  ;;  %v5964_v13 = vsel %vm5958_vm14, 0, %v5963_v46  ;;  %vm19747_vm0 = vcmp.lt.f32.partialorder %v19655_v36, 0  ;;  %v1613_v44 = vmul.f32 219.71211, %v11507_v63 }
 0x3e1   :  { %v5989_v52 = vsel %vm19747_vm0, 2143289344, %v8124_v8  ;;  %v1996_v41 = vsel %vm1804_vm4, %v1612_v12, %v19744_v7  ;;  %vm19748_vm3 = vcmp.ne.f32.partialorder %v19617_v5, %v19617_v5  ;;  %vm19749_vm8 = vcmp.ne.f32.partialorder %v19620_v57, %v19620_v57 }
 0x3e2   :  { %v5843_v19 = vsel %vm19748_vm3, 2143289344, %v5839_v48  ;;  %v5869_v0 = vsel %vm19749_vm8, 2143289344, %v5865_v28  ;;  %vm6035_vm14 = vcmp.lt.f32.partialorder %v19684_v23, 0  ;;  %8135 = vpow2.f32 %v6059_v9  ;;  %v8374_v9 = vld [vmem:[#allocation7 + $0x58] sm:$0xff]  ;;  %v8130_v48 = vpop.eup %8129 }
 0x3e3   :  { %vm1805_vm10 = vcmp.gt.f32.partialorder %v19750_v62, 400.0  ;;  %vm19751_vm0 = vcmp.ne.f32.partialorder %v19623_v58, %v19623_v58  ;;  %vm19752_vm4 = vcmp.ne.f32.partialorder %v19632_v43, %v19632_v43  ;;  %v5943_v18 = vsel %vm14456_vm15, 2139095040, %v5938_v6  ;;  %v19786_v58 = vld [vmem:[#allocation60_spill] sm:$0xff] }
 0x3e4   :  { %v5895_v63 = vsel %vm19751_vm0, 2143289344, %v5891_v50  ;;  %v5921_v34 = vsel %vm19752_vm4, 2143289344, %v5917_v37  ;;  %vm5985_vm3 = vcmp.eq.f32.partialorder %v19655_v36, 1065353216  ;;  %v19753_v17 = vand.u32 2147483647, %v19676_v45  ;;  %v19758_v37 = vld [vmem:[#allocation220_spill] sm:$0xff] }
 0x3e5   :  { %8137 = vlog2.f32 %v17624_v15  ;;  %v5969_v8 = vsel %vm14465_vm9, 2139095040, %v5964_v13  ;;  %vm19756_vm0 = vcmp.eq.f32.partialorder %v19655_v36, 0  ;;  %v2188_v38 = vadd.f32 %v2187_v60, %v1996_v41  ;;  %v19761_v13 = vld [vmem:[#allocation42_spill] sm:$0xff] }
 0x3e6   :  { %vm14567_vm8 = vcmp.eq.f32.partialorder %v19753_v17, 2139095040  ;;  %v5990_v46 = vsel %vm19756_vm0, 0, %v5989_v52  ;;  %v2382_v7 = vadd.f32 %v8374_v9, %v2381_v16  ;;  %vm19757_vm15 = vcmp.eq.f32.partialorder %v19617_v5, 1065353216  ;;  %v19760_v5 = vld [vmem:[#allocation209_spill] sm:$0xff] }
 0x3e7   :  { %v14579_v28 = vsel %vm19757_vm15, 1065353216, %v5843_v19  ;;  %vm6036_vm4 = vcmp.eq.f32.partialorder %v19684_v23, 0  ;;  %v6085_v50 = vmul.f32 0.1, %v8126_v25  ;;  %v1614_v6 = vmul.f32 219.71211, %v19758_v37 }
 0x3e8   :  { %v1997_v21 = vsel %vm1805_vm10, %v1613_v44, %v19750_v62  ;;  %vm19759_vm9 = vcmp.eq.f32.partialorder %v19620_v57, 1065353216  ;;  %v5947_v60 = vsel %vm5944_vm13, 2143289344, %v5943_v18  ;;  %vm6022_vm0 = vcmp.ne.f32.partialorder %v19676_v45, %v19676_v45  ;;  %v19771_v37 = vld [vmem:[#allocation48_spill] sm:$0xff] }
 0x3e9   :  { %v14588_v27 = vsel %vm19759_vm9, 1065353216, %v5869_v0  ;;  %v17623_v16 = vand.u32 2147483647, %v19760_v5  ;;  %vm1806_vm15 = vcmp.gt.f32.partialorder %v19761_v13, 400.0  ;;  %v14599_v52 = vsel %vm5881_vm7, 1065353216, %v5895_v63  ;;  %v8375_v0 = vld [vmem:[#allocation7 + $0x60] sm:$0xff]  ;;  %v8132_v63 = vpop.eup %8131 }
 0x3ea   :  { %vm19762_vm10 = vcmp.eq.f32.partialorder %v19632_v43, 1065353216  ;;  %vm19763_vm9 = vcmp.ne.f32.partialorder %v19647_v20, %v19647_v20  ;;  %v5995_v41 = vsel %vm14504_vm1, 2139095040, %v5990_v46  ;;  %vm6061_vm13 = vcmp.lt.f32.partialorder %v19693_v29, 0  ;;  %v19768_v46 = vld [vmem:[#allocation45_spill] sm:$0xff]  ;;  %v19769_v20 = vld [vmem:[#allocation210_spill] sm:$0xff] }
 0x3eb   :  { %v14603_v57 = vsel %vm19762_vm10, 1065353216, %v5921_v34  ;;  %v5973_v44 = vsel %vm19763_vm9, 2143289344, %v5969_v8  ;;  %v6015_v25 = vsel %vm6009_vm2, 2143289344, %v8130_v48  ;;  %vm14615_vm7 = vcmp.eq.f32.partialorder %v6031_v10, 2139095040  ;;  %v19766_v34 = vld [vmem:[#allocation221_spill] sm:$0xff]  ;;  %v8134_v10 = vpop.eup %8133  ;;  %v19770_v48 = vld [vmem:[#allocation222_spill] sm:$0xff] }
 0x3ec   :  { %v6111_v43 = vmul.f32 0.1, %v8128_v33  ;;  %v2189_v19 = vadd.f32 %v2188_v38, %v1997_v21  ;;  %v2383_v62 = vadd.f32 %v8375_v0, %v2382_v7  ;;  %v14621_v3 = vsel %vm5933_vm5, 1065353216, %v5947_v60  ;;  %v8376_v21 = vld [vmem:[#allocation7 + $0x68] sm:$0xff]  ;;  %v19775_v0 = vld [vmem:[#allocation223_spill] sm:$0xff] }
 0x3ed   :  { %8139 = vpow2.f32 %v6085_v50  ;;  %v1615_v18 = vmul.f32 219.71211, %v19766_v34  ;;  %v1998_v17 = vsel %vm1806_vm15, %v1614_v6, %v19761_v13  ;;  %v14629_v8 = vsel %vm5959_vm6, 1065353216, %v5973_v44 }
 0x3ee   :  { %vm6062_vm1 = vcmp.eq.f32.partialorder %v19693_v29, 0  ;;  %8141 = vlog2.f32 %v17623_v16  ;;  %v17620_v33 = vand.u32 2147483647, %v19767_v35  ;;  %vm1807_vm5 = vcmp.gt.f32.partialorder %v19768_v46, 400.0  ;;  %v19799_v16 = vld [vmem:[#allocation230_spill] sm:$0xff] }
 0x3ef   :  { %v5999_v38 = vsel %vm5996_vm11, 2143289344, %v5995_v41  ;;  %v6016_v9 = vsel %vm6010_vm12, 0, %v6015_v25  ;;  %vm6048_vm2 = vcmp.ne.f32.partialorder %v19684_v23, %v19684_v23  ;;  %v17619_v7 = vand.u32 2147483647, %v19769_v20  ;;  %v19794_v41 = vld [vmem:[#allocation228_spill] sm:$0xff] }
 0x3f0   :  { %v1616_v50 = vmul.f32 219.71211, %v19770_v48  ;;  %vm6011_vm6 = vcmp.eq.f32.partialorder %v19676_v45, 1065353216  ;;  %8143 = vpow2.f32 %v6111_v43  ;;  %vm1808_vm15 = vcmp.gt.f32.partialorder %v19771_v37, 400.0  ;;  %v19779_v48 = vld [vmem:[#allocation54_spill] sm:$0xff] }
 0x3f1   :  { %v2190_v6 = vadd.f32 %v2189_v19, %v1998_v17  ;;  %v2384_v60 = vadd.f32 %v8376_v21, %v2383_v62  ;;  %v6041_v13 = vsel %vm6035_vm14, 2143289344, %v8134_v10  ;;  %v19772_v44 = vand.u32 2147483647, %v19693_v29  ;;  %v8136_v17 = vpop.eup %8135  ;;  %v19778_v10 = vld [vmem:[#allocation224_spill] sm:$0xff]  ;;  %v19793_v45 = vld [vmem:[#allocation66_spill] sm:$0xff] }
 0x3f2   :  { %v6137_v25 = vmul.f32 0.1, %v8132_v63  ;;  %v1617_v34 = vmul.f32 219.71211, %v19775_v0  ;;  %v1999_v43 = vsel %vm1807_vm5, %v1615_v18, %v19768_v46  ;;  %v14661_v19 = vsel %vm5985_vm3, 1065353216, %v5999_v38  ;;  %v19776_v63 = vld [vmem:[#allocation51_spill] sm:$0xff]  ;;  %v8138_v38 = vpop.eup %8137 }
 0x3f3   :  { %vm14651_vm11 = vcmp.eq.f32.partialorder %v19772_v44, 2139095040  ;;  %v6021_v62 = vsel %vm14567_vm8, 2139095040, %v6016_v9  ;;  %vm6037_vm12 = vcmp.eq.f32.partialorder %v19684_v23, 1065353216  ;;  %vm6087_vm14 = vcmp.lt.f32.partialorder %v19704_v49, 0  ;;  %v19777_v18 = vld [vmem:[#allocation337_spill] sm:$0xff]  ;;  %v8377_v44 = vld [vmem:[#allocation7 + $0x70] sm:$0xff] }
 0x3f4   :  { %8145 = vlog2.f32 %v17620_v33  ;;  %vm1809_vm10 = vcmp.gt.f32.partialorder %v19776_v63, 400.0  ;;  %v17621_v36 = vand.u32 2147483647, %v19777_v18  ;;  %v1618_v46 = vmul.f32 219.71211, %v19778_v10 }
 0x3f5   :  { %8147 = vlog2.f32 %v17619_v7  ;;  %v2000_v12 = vsel %vm1808_vm15, %v1616_v50, %v19771_v37  ;;  %v6042_v9 = vsel %vm6036_vm4, 0, %v6041_v13  ;;  %vm6074_vm3 = vcmp.ne.f32.partialorder %v19693_v29, %v19693_v29  ;;  %v19780_v50 = vld [vmem:[#allocation225_spill] sm:$0xff] }
 0x3f6   :  { %vm1810_vm8 = vcmp.gt.f32.partialorder %v19779_v48, 400.0  ;;  %v2191_v21 = vadd.f32 %v2190_v6, %v1999_v43  ;;  %v2385_v0 = vadd.f32 %v8377_v44, %v2384_v60  ;;  %v6025_v10 = vsel %vm6022_vm0, 2143289344, %v6021_v62  ;;  %v19781_v6 = vld [vmem:[#allocation57_spill] sm:$0xff]  ;;  %v8378_v43 = vld [vmem:[#allocation7 + $0x78] sm:$0xff] }
 0x3f7   :  { %vm6088_vm9 = vcmp.eq.f32.partialorder %v19704_v49, 0  ;;  %8149 = vpow2.f32 %v6137_v25  ;;  %v1619_v37 = vmul.f32 219.71211, %v19780_v50  ;;  %v2001_v13 = vsel %vm1809_vm10, %v1617_v34, %v19776_v63  ;;  %v19782_v50 = vld [vmem:[#allocation226_spill] sm:$0xff] }
 0x3f8   :  { %v6067_v7 = vsel %vm6061_vm13, 2143289344, %v8136_v17  ;;  %vm6113_vm4 = vcmp.lt.f32.partialorder %v19708_v32, 0  ;;  %vm1811_vm5 = vcmp.gt.f32.partialorder %v19781_v6, 400.0  ;;  %v2192_v60 = vadd.f32 %v2191_v21, %v2000_v12  ;;  %v19805_v17 = vld [vmem:[#allocation78_spill] sm:$0xff] }
 0x3f9   :  { %v2386_v44 = vadd.f32 %v8378_v43, %v2385_v0  ;;  %v6047_v62 = vsel %vm14615_vm7, 2139095040, %v6042_v9  ;;  %vm6063_vm0 = vcmp.eq.f32.partialorder %v19693_v29, 1065353216  ;;  %v6163_v25 = vmul.f32 0.1, %v8138_v38  ;;  %v8379_v9 = vld [vmem:[#allocation7 + $0x80] sm:$0xff]  ;;  %v19804_v29 = vld [vmem:[#allocation231_spill] sm:$0xff] }
 0x3fa   :  { %v1620_v33 = vmul.f32 219.71211, %v19782_v50  ;;  %v2002_v34 = vsel %vm1810_vm8, %v1618_v46, %v19779_v48  ;;  %v19783_v63 = vand.u32 2147483647, %v19704_v49  ;;  %8151 = vlog2.f32 %v17621_v36  ;;  %v19787_v46 = vld [vmem:[#allocation338_spill] sm:$0xff]  ;;  %v8140_v50 = vpop.eup %8139 }
 0x3fb   :  { %vm1812_vm7 = vcmp.gt.f32.partialorder %v19786_v58, 400.0  ;;  %v2193_v12 = vadd.f32 %v2192_v60, %v2001_v13  ;;  %v2387_v38 = vadd.f32 %v8379_v9, %v2386_v44  ;;  %v6068_v21 = vsel %vm6062_vm1, 0, %v6067_v7  ;;  %v19788_v60 = vld [vmem:[#allocation63_spill] sm:$0xff]  ;;  %v8142_v9 = vpop.eup %8141 }
 0x3fc   :  { %vm14703_vm13 = vcmp.eq.f32.partialorder %v19783_v63, 2139095040  ;;  %vm6114_vm15 = vcmp.eq.f32.partialorder %v19708_v32, 0  ;;  %v17622_v48 = vand.u32 2147483647, %v19787_v46  ;;  %v1621_v0 = vmul.f32 219.71211, %v11756_v1 }
 0x3fd   :  { %v2003_v43 = vsel %vm1811_vm5, %v1619_v37, %v19781_v6  ;;  %v6051_v13 = vsel %vm6048_vm2, 2143289344, %v6047_v62  ;;  %vm1813_vm10 = vcmp.gt.f32.partialorder %v19788_v60, 400.0  ;;  %v2194_v44 = vadd.f32 %v2193_v12, %v2002_v34  ;;  %v8380_v63 = vld [vmem:[#allocation7 + $0x88] sm:$0xff]  ;;  %v19789_v1 = vld [vmem:[#allocation227_spill] sm:$0xff] }
 0x3fe   :  { %v2388_v7 = vadd.f32 %v8380_v63, %v2387_v38  ;;  %v14724_v36 = vsel %vm6011_vm6, 1065353216, %v6025_v10  ;;  %vm6100_vm1 = vcmp.ne.f32.partialorder %v19704_v49, %v19704_v49  ;;  %8153 = vpow2.f32 %v6163_v25  ;;  %v8381_v38 = vld [vmem:[#allocation7 + $0x90] sm:$0xff]  ;;  %v8144_v63 = vpop.eup %8143 }
 0x3ff   :  { %v1622_v37 = vmul.f32 219.71211, %v19789_v1  ;;  %v2004_v6 = vsel %vm1812_vm7, %v1620_v33, %v19786_v58  ;;  %v6073_v62 = vsel %vm14651_vm11, 2139095040, %v6068_v21  ;;  %v19790_v34 = vand.u32 2147483647, %v19708_v32 }
 0x400   :  { %vm1814_vm6 = vcmp.gt.f32.partialorder %v19793_v45, 400.0  ;;  %v2195_v10 = vadd.f32 %v2194_v44, %v2003_v43  ;;  %v2389_v25 = vadd.f32 %v8381_v38, %v2388_v7  ;;  %v14743_v1 = vsel %vm6037_vm12, 1065353216, %v6051_v13  ;;  %v19795_v43 = vld [vmem:[#allocation69_spill] sm:$0xff]  ;;  %v8382_v13 = vld [vmem:[#allocation7 + $0x98] sm:$0xff] }
 0x401   :  { %vm14736_vm2 = vcmp.eq.f32.partialorder %v19790_v34, 2139095040  ;;  %v6093_v33 = vsel %vm6087_vm14, 2143289344, %v8140_v50  ;;  %vm6139_vm11 = vcmp.lt.f32.partialorder %v19729_v24, 0  ;;  %v1623_v58 = vmul.f32 219.71211, %v19794_v41  ;;  %v8146_v7 = vpop.eup %8145 }
 0x402   :  { %v2005_v21 = vsel %vm1813_vm10, %v1621_v0, %v19788_v60  ;;  %vm6089_vm8 = vcmp.eq.f32.partialorder %v19704_v49, 1065353216  ;;  %8155 = vlog2.f32 %v17622_v48  ;;  %vm1815_vm5 = vcmp.gt.f32.partialorder %v19795_v43, 400.0  ;;  %v19796_v0 = vld [vmem:[#allocation229_spill] sm:$0xff]  ;;  %v14765_v41 = vpop.eup %8147  ;;  %v19816_v49 = vld [vmem:[#allocation87_spill] sm:$0xff] }
 0x403   :  { %v2196_v23 = vadd.f32 %v2195_v10, %v2004_v6  ;;  %v2390_v44 = vadd.f32 %v8382_v13, %v2389_v25  ;;  %v6077_v50 = vsel %vm6074_vm3, 2143289344, %v6073_v62  ;;  %vm6126_vm12 = vcmp.ne.f32.partialorder %v19708_v32, %v19708_v32  ;;  %v19797_v10 = vld [vmem:[#allocation72_spill] sm:$0xff]  ;;  %v8383_v25 = vld [vmem:[#allocation7 + $0xa0] sm:$0xff] }
 0x404   :  { %v6189_v34 = vmul.f32 0.1, %v8142_v9  ;;  %v1624_v60 = vmul.f32 219.71211, %v19796_v0  ;;  %v2006_v38 = vsel %vm1814_vm6, %v1622_v37, %v19793_v45  ;;  %v6094_v6 = vsel %vm6088_vm9, 0, %v6093_v33  ;;  %v19798_v0 = vld [vmem:[#allocation339_spill] sm:$0xff]  ;;  %v8150_v45 = vpop.eup %8149 }
 0x405   :  { %vm6140_vm14 = vcmp.eq.f32.partialorder %v19729_v24, 0  ;;  %vm1816_vm7 = vcmp.gt.f32.partialorder %v19797_v10, 400.0  ;;  %v2197_v62 = vadd.f32 %v2196_v23, %v2005_v21  ;;  %v2391_v13 = vadd.f32 %v8383_v25, %v2390_v44  ;;  %v19801_v21 = vld [vmem:[#allocation75_spill] sm:$0xff]  ;;  %v8384_v44 = vld [vmem:[#allocation7 + $0xa8] sm:$0xff] }
 0x406   :  { %v6119_v9 = vsel %vm6113_vm4, 2143289344, %v8144_v63  ;;  %v17625_v48 = vand.u32 2147483647, %v19798_v0  ;;  %v1625_v15 = vmul.f32 219.71211, %v19799_v16  ;;  %v2007_v37 = vsel %vm1815_vm5, %v1623_v58, %v19795_v43 }
 0x407   :  { %v14780_v33 = vsel %vm6063_vm0, 1065353216, %v6077_v50  ;;  %vm6115_vm3 = vcmp.eq.f32.partialorder %v19708_v32, 1065353216  ;;  %vm1817_vm9 = vcmp.gt.f32.partialorder %v19801_v21, 400.0  ;;  %v2198_v23 = vadd.f32 %v2197_v62, %v2006_v38  ;;  %v8152_v62 = vpop.eup %8151  ;;  %v8390_v32 = vld [vmem:[#allocation7 + $0xd8] sm:$0xff] }
 0x408   :  { %19800 = vst [vmem:[#allocation313_spill] sm:$0xff] %v14780_v33  ;;  %v2392_v63 = vadd.f32 %v8384_v44, %v2391_v13  ;;  %v6099_v25 = vsel %vm14703_vm13, 2139095040, %v6094_v6  ;;  %vm14788_vm4 = vcmp.eq.f32.partialorder %v6135_v56, 2139095040  ;;  %8157 = vpow2.f32 %v6189_v34  ;;  %v8385_v6 = vld [vmem:[#allocation7 + $0xb0] sm:$0xff]  ;;  %v19806_v34 = vld [vmem:[#allocation232_spill] sm:$0xff] }
 0x409   :  { %v1626_v58 = vmul.f32 219.71211, %v19804_v29  ;;  %v2008_v43 = vsel %vm1816_vm7, %v1624_v60, %v19797_v10  ;;  %v6120_v50 = vsel %vm6114_vm15, 0, %v6119_v9  ;;  %vm6165_vm0 = vcmp.lt.f32.partialorder %v19745_v14, 0  ;;  %v19807_v9 = vld [vmem:[#allocation81_spill] sm:$0xff]  ;;  %v19808_v29 = vld [vmem:[#allocation340_spill] sm:$0xff] }
 0x40a   :  { %vm1818_vm13 = vcmp.gt.f32.partialorder %v19805_v17, 400.0  ;;  %v2199_v38 = vadd.f32 %v2198_v23, %v2007_v37  ;;  %v2393_v56 = vadd.f32 %v8385_v6, %v2392_v63  ;;  %v6215_v13 = vmul.f32 0.1, %v8146_v7  ;;  %v8386_v7 = vld [vmem:[#allocation7 + $0xb8] sm:$0xff] }
 0x40b   :  { %8159 = vlog2.f32 %v17625_v48  ;;  %v1627_v44 = vmul.f32 219.71211, %v19806_v34  ;;  %v2009_v60 = vsel %vm1817_vm9, %v1625_v15, %v19801_v21  ;;  %v6103_v10 = vsel %vm6100_vm1, 2143289344, %v6099_v25  ;;  %v19809_v15 = vld [vmem:[#allocation233_spill] sm:$0xff]  ;;  %v8154_v34 = vpop.eup %8153 }
 0x40c   :  { %vm6152_vm15 = vcmp.ne.f32.partialorder %v19729_v24, %v19729_v24  ;;  %vm1819_vm10 = vcmp.gt.f32.partialorder %v19807_v9, 400.0  ;;  %v2200_v37 = vadd.f32 %v2199_v38, %v2008_v43  ;;  %v2394_v23 = vadd.f32 %v8386_v7, %v2393_v56  ;;  %v19810_v43 = vld [vmem:[#allocation84_spill] sm:$0xff]  ;;  %v8387_v56 = vld [vmem:[#allocation7 + $0xc0] sm:$0xff]  ;;  %v19812_v7 = vld [vmem:[#allocation234_spill] sm:$0xff] }
 0x40d   :  { %v6125_v63 = vsel %vm14736_vm2, 2139095040, %v6120_v50  ;;  %vm6166_vm6 = vcmp.eq.f32.partialorder %v19745_v14, 0  ;;  %v17626_v6 = vand.u32 2147483647, %v19808_v29  ;;  %v1628_v21 = vmul.f32 219.71211, %v19809_v15 }
 0x40e   :  { %v2010_v25 = vsel %vm1818_vm13, %v1626_v58, %v19805_v17  ;;  %v6145_v48 = vsel %vm6139_vm11, 2143289344, %v8150_v45  ;;  %vm1820_vm1 = vcmp.gt.f32.partialorder %v19810_v43, 400.0  ;;  %v2201_v38 = vadd.f32 %v2200_v37, %v2009_v60 }
 0x40f   :  { %v2395_v12 = vadd.f32 %v8387_v56, %v2394_v23  ;;  %v14825_v50 = vsel %vm6089_vm8, 1065353216, %v6103_v10  ;;  %vm6191_vm2 = vcmp.lt.f32.partialorder %v19760_v5, 0  ;;  %8161 = vpow2.f32 %v6215_v13  ;;  %v8388_v13 = vld [vmem:[#allocation7 + $0xc8] sm:$0xff]  ;;  %v8156_v23 = vpop.eup %8155 }
 0x410   :  { %19811 = vst [vmem:[#allocation314_spill] sm:$0xff] %v14825_v50  ;;  %v1629_v15 = vmul.f32 219.71211, %v19812_v7  ;;  %v2011_v58 = vsel %vm1819_vm10, %v1627_v44, %v19807_v9  ;;  %v6129_v45 = vsel %vm6126_vm12, 2143289344, %v6125_v63  ;;  %v19813_v17 = vand.u32 2147483647, %v19745_v14 }
 0x411   :  { %vm1821_vm8 = vcmp.gt.f32.partialorder %v19816_v49, 400.0  ;;  %v2202_v10 = vadd.f32 %v2201_v38, %v2010_v25  ;;  %v2396_v37 = vadd.f32 %v8388_v13, %v2395_v12  ;;  %vm6141_vm5 = vcmp.eq.f32.partialorder %v19729_v24, 1065353216  ;;  %v19817_v63 = vld [vmem:[#allocation235_spill] sm:$0xff]  ;;  %v19840_v24 = vld [vmem:[#allocation241_spill] sm:$0xff] }
 0x412   :  { %vm14837_vm11 = vcmp.eq.f32.partialorder %v19813_v17, 2139095040  ;;  %v6146_v44 = vsel %vm6140_vm14, 0, %v6145_v48  ;;  %v6241_v9 = vmul.f32 0.1, %v14765_v41  ;;  %v1630_v56 = vmul.f32 219.71211, %v19817_v63 }
 0x413   :  { %v2012_v7 = vsel %vm1820_vm1, %v1628_v21, %v19810_v43  ;;  %vm6192_vm12 = vcmp.eq.f32.partialorder %v19760_v5, 0  ;;  %8163 = vlog2.f32 %v17626_v6  ;;  %v19818_v25 = vld [vmem:[#allocation91_spill] sm:$0xff]  ;;  %v2203_v38 = vadd.f32 %v2202_v10, %v2011_v58  ;;  %v19821_v21 = vld [vmem:[#allocation236_spill] sm:$0xff]  ;;  %v19822_v10 = vld [vmem:[#allocation22_spill] sm:$0xff] }
 0x414   :  { %vm1822_vm7 = vcmp.gt.f32.partialorder %v19818_v25, 400.0  ;;  %v8389_v12 = vld [vmem:[#allocation7 + $0xd0] sm:$0xff]  ;;  %v14856_v48 = vsel %vm6115_vm3, 1065353216, %v6129_v45  ;;  %vm6178_vm14 = vcmp.ne.f32.partialorder %v19745_v14, %v19745_v14  ;;  %v1631_v43 = vmul.f32 219.71211, %v19821_v21 }
 0x415   :  { %v2397_v17 = vadd.f32 %v8389_v12, %v2396_v37  ;;  %19819 = vst [vmem:[#allocation315_spill] sm:$0xff] %v14856_v48  ;;  %v19820_v41 = vld [vmem:[#allocation211_spill] sm:$0xff]  ;;  %v2013_v63 = vsel %vm1821_vm8, %v1629_v15, %v19816_v49  ;;  %v6151_v58 = vsel %vm14788_vm4, 2139095040, %v6146_v44  ;;  %vm1823_vm9 = vcmp.gt.f32.partialorder %v19822_v10, 400.0  ;;  %v19826_v48 = vld [vmem:[#allocation237_spill] sm:$0xff]  ;;  %v8158_v49 = vpop.eup %8157 }
 0x416   :  { %v2204_v37 = vadd.f32 %v2203_v38, %v2012_v7  ;;  %v6171_v12 = vsel %vm6165_vm0, 2143289344, %v8154_v34  ;;  %v19823_v6 = vand.u32 2147483647, %v19760_v5  ;;  %v6267_v21 = vmul.f32 0.1, %v8152_v62  ;;  %v19827_v44 = vld [vmem:[#allocation23_spill] sm:$0xff] }
 0x417   :  { %v2398_v45 = vadd.f32 %v8390_v32, %v2397_v17  ;;  %v1632_v15 = vmul.f32 219.71211, %v19826_v48  ;;  %v2014_v16 = vsel %vm1822_vm7, %v1630_v56, %v19818_v25  ;;  %vm6167_vm4 = vcmp.eq.f32.partialorder %v19745_v14, 1065353216  ;;  %v8391_v7 = vld [vmem:[#allocation7 + $0xe0] sm:$0xff]  ;;  %v19829_v17 = vld [vmem:[#allocation238_spill] sm:$0xff] }
 0x418   :  { %vm14872_vm3 = vcmp.eq.f32.partialorder %v19823_v6, 2139095040  ;;  %8165 = vpow2.f32 %v6241_v9  ;;  %vm1824_vm13 = vcmp.gt.f32.partialorder %v19827_v44, 400.0  ;;  %v2205_v34 = vadd.f32 %v2204_v37, %v2013_v63  ;;  %v8160_v25 = vpop.eup %8159  ;;  %v19830_v63 = vld [vmem:[#allocation100_spill] sm:$0xff]  ;;  %v8392_v37 = vld [vmem:[#allocation7 + $0xe8] sm:$0xff] }
 0x419   :  { %v2399_v38 = vadd.f32 %v8391_v7, %v2398_v45  ;;  %v6155_v6 = vsel %vm6152_vm15, 2143289344, %v6151_v58  ;;  %vm6217_vm0 = vcmp.lt.f32.partialorder %v19767_v35, 0  ;;  %v19828_v62 = vand.u32 2147483647, %v19820_v41  ;;  %v19831_v45 = vld [vmem:[#allocation341_spill] sm:$0xff] }
 0x41a   :  { %v1633_v56 = vmul.f32 219.71211, %v19829_v17  ;;  %v2015_v9 = vsel %vm1823_vm9, %v1631_v43, %v19822_v10  ;;  %v6172_v48 = vsel %vm6166_vm6, 0, %v6171_v12  ;;  %vm6204_vm10 = vcmp.ne.f32.partialorder %v19760_v5, %v19760_v5  ;;  %v19833_v12 = vld [vmem:[#allocation25_spill] sm:$0xff] }
 0x41b   :  { %8167 = vlog2.f32 %v19828_v62  ;;  %vm1825_vm15 = vcmp.gt.f32.partialorder %v19830_v63, 400.0  ;;  %v2206_v58 = vadd.f32 %v2205_v34, %v2014_v16  ;;  %v2400_v32 = vadd.f32 %v8392_v37, %v2399_v38  ;;  %v19832_v62 = vld [vmem:[#allocation239_spill] sm:$0xff]  ;;  %v19834_v37 = vld [vmem:[#allocation240_spill] sm:$0xff] }
 0x41c   :  { %8169 = vpow2.f32 %v6267_v21  ;;  %v17627_v7 = vand.u32 2147483647, %v19831_v45  ;;  %v1634_v17 = vmul.f32 219.71211, %v19832_v62  ;;  %v2016_v43 = vsel %vm1824_vm13, %v1632_v15, %v19827_v44  ;;  %v8393_v16 = vld [vmem:[#allocation7 + $0xf0] sm:$0xff] }
 0x41d   :  { %v6197_v10 = vsel %vm6191_vm2, 2143289344, %v8158_v49  ;;  %vm6218_vm6 = vcmp.eq.f32.partialorder %v19767_v35, 0  ;;  %vm1826_vm1 = vcmp.gt.f32.partialorder %v19833_v12, 400.0  ;;  %v2207_v50 = vadd.f32 %v2206_v58, %v2015_v9  ;;  %v8162_v49 = vpop.eup %8161  ;;  %v19836_v9 = vld [vmem:[#allocation26_spill] sm:$0xff] }
 0x41e   :  { %v2401_v34 = vadd.f32 %v8393_v16, %v2400_v32  ;;  %v6177_v21 = vsel %vm14837_vm11, 2139095040, %v6172_v48  ;;  %vm6193_vm8 = vcmp.eq.f32.partialorder %v19760_v5, 1065353216  ;;  %v6293_v38 = vmul.f32 0.1, %v8156_v23  ;;  %v8394_v48 = vld [vmem:[#allocation7 + $0xf8] sm:$0xff] }
 0x41f   :  { %v1635_v62 = vmul.f32 219.71211, %v19834_v37  ;;  %v2017_v15 = vsel %vm1825_vm15, %v1633_v56, %v19830_v63  ;;  %v14915_v44 = vsel %vm6141_vm5, 1065353216, %v6155_v6  ;;  %vm6243_vm2 = vcmp.lt.f32.partialorder %v19769_v20, 0  ;;  %v19841_v63 = vld [vmem:[#allocation109_spill] sm:$0xff] }
 0x420   :  { %19835 = vst [vmem:[#allocation316_spill] sm:$0xff] %v14915_v44  ;;  %vm1827_vm7 = vcmp.gt.f32.partialorder %v19836_v9, 400.0  ;;  %v2208_v60 = vadd.f32 %v2207_v50, %v2016_v43  ;;  %v2402_v58 = vadd.f32 %v8394_v48, %v2401_v34  ;;  %v6198_v23 = vsel %vm6192_vm12, 0, %v6197_v10  ;;  %v8395_v10 = vld [vmem:[#allocation7 + $0x100] sm:$0xff]  ;;  %v8164_v37 = vpop.eup %8163  ;;  %v19842_v48 = vld [vmem:[#allocation212_spill] sm:$0xff] }
 0x421   :  { %v19837_v32 = vand.u32 2147483647, %v19767_v35  ;;  %8171 = vlog2.f32 %v17627_v7  ;;  %v1636_v6 = vmul.f32 219.71211, %v19840_v24  ;;  %v2018_v50 = vsel %vm1826_vm1, %v1634_v17, %v19833_v12  ;;  %v19843_v24 = vld [vmem:[#allocation242_spill] sm:$0xff] }
 0x422   :  { %v6181_v56 = vsel %vm6178_vm14, 2143289344, %v6177_v21  ;;  %vm1828_vm5 = vcmp.gt.f32.partialorder %v19841_v63, 400.0  ;;  %v2209_v43 = vadd.f32 %v2208_v60, %v2017_v15  ;;  %v2403_v34 = vadd.f32 %v8395_v10, %v2402_v58  ;;  %v19844_v21 = vld [vmem:[#allocation28_spill] sm:$0xff] }
 0x423   :  { %vm14923_vm11 = vcmp.eq.f32.partialorder %v19837_v32, 2139095040  ;;  %vm6244_vm12 = vcmp.eq.f32.partialorder %v19769_v20, 0  ;;  %8173 = vpow2.f32 %v6293_v38  ;;  %v17628_v32 = vand.u32 2147483647, %v19842_v48  ;;  %v8396_v38 = vld [vmem:[#allocation7 + $0x108] sm:$0xff] }
 0x424   :  { %v1637_v7 = vmul.f32 219.71211, %v19843_v24  ;;  %v2019_v17 = vsel %vm1827_vm7, %v1635_v62, %v19836_v9  ;;  %v6203_v12 = vsel %vm14872_vm3, 2139095040, %v6198_v23  ;;  %vm6230_vm14 = vcmp.ne.f32.partialorder %v19767_v35, %v19767_v35  ;;  %v19846_v24 = vld [vmem:[#allocation243_spill] sm:$0xff] }
 0x425   :  { %vm6269_vm9 = vcmp.lt.f32.partialorder %v19777_v18, 0  ;;  %vm1829_vm13 = vcmp.gt.f32.partialorder %v19844_v21, 400.0  ;;  %v2210_v15 = vadd.f32 %v2209_v43, %v2018_v50  ;;  %v2404_v60 = vadd.f32 %v8396_v38, %v2403_v34  ;;  %v19850_v43 = vld [vmem:[#allocation29_spill] sm:$0xff]  ;;  %v8166_v34 = vpop.eup %8165  ;;  %v19872_v50 = vld [vmem:[#allocation35_spill] sm:$0xff] }
 0x426   :  { %v14951_v58 = vsel %vm6167_vm4, 1065353216, %v6181_v56  ;;  %v6319_v10 = vmul.f32 0.1, %v8160_v25  ;;  %v1638_v62 = vmul.f32 219.71211, %v19846_v24  ;;  %v2020_v13 = vsel %vm1828_vm5, %v1636_v6, %v19841_v63  ;;  %v8397_v56 = vld [vmem:[#allocation7 + $0x110] sm:$0xff] }
 0x427   :  { %19845 = vst [vmem:[#allocation317_spill] sm:$0xff] %v14951_v58  ;;  %v6223_v9 = vsel %vm6217_vm0, 2143289344, %v8162_v49  ;;  %v19847_v23 = vand.u32 2147483647, %v19769_v20  ;;  %vm1830_vm15 = vcmp.gt.f32.partialorder %v19850_v43, 400.0  ;;  %v2211_v14 = vadd.f32 %v2210_v15, %v2019_v17  ;;  %v19851_v49 = vld [vmem:[#allocation244_spill] sm:$0xff] }
 0x428   :  { %v2405_v25 = vadd.f32 %v8397_v56, %v2404_v60  ;;  %v6207_v38 = vsel %vm6204_vm10, 2143289344, %v6203_v12  ;;  %vm6270_vm4 = vcmp.eq.f32.partialorder %v19777_v18, 0  ;;  %8175 = vlog2.f32 %v17628_v32  ;;  %v8168_v24 = vpop.eup %8167  ;;  %v19852_v17 = vld [vmem:[#allocation342_spill] sm:$0xff]  ;;  %v8398_v12 = vld [vmem:[#allocation7 + $0x118] sm:$0xff] }
 0x429   :  { %vm14961_vm3 = vcmp.eq.f32.partialorder %v19847_v23, 2139095040  ;;  %v1639_v6 = vmul.f32 219.71211, %v19851_v49  ;;  %v2021_v63 = vsel %vm1829_vm13, %v1637_v7, %v19844_v21  ;;  %vm6219_vm0 = vcmp.eq.f32.partialorder %v19767_v35, 1065353216  ;;  %v19853_v60 = vld [vmem:[#allocation118_spill] sm:$0xff]  ;;  %v19854_v49 = vld [vmem:[#allocation245_spill] sm:$0xff]  ;;  %v8170_v21 = vpop.eup %8169 }
 0x42a   :  { %vm1831_vm1 = vcmp.gt.f32.partialorder %v19853_v60, 400.0  ;;  %v2212_v23 = vadd.f32 %v2211_v14, %v2020_v13  ;;  %v2406_v56 = vadd.f32 %v8398_v12, %v2405_v25  ;;  %v6224_v58 = vsel %vm6218_vm6, 0, %v6223_v9  ;;  %v19859_v9 = vld [vmem:[#allocation31_spill] sm:$0xff]  ;;  %v8399_v25 = vld [vmem:[#allocation7 + $0x120] sm:$0xff] }
 0x42b   :  { %vm6256_vm10 = vcmp.ne.f32.partialorder %v19769_v20, %v19769_v20  ;;  %8177 = vpow2.f32 %v6319_v10  ;;  %v1640_v32 = vmul.f32 219.71211, %v19854_v49  ;;  %v2022_v7 = vsel %vm1830_vm15, %v1638_v62, %v19850_v43  ;;  %v19860_v43 = vld [vmem:[#allocation246_spill] sm:$0xff] }
 0x42c   :  { %v14989_v15 = vsel %vm6193_vm8, 1065353216, %v6207_v38  ;;  %v19856_v13 = vand.u32 2147483647, %v19777_v18  ;;  %vm1832_vm6 = vcmp.gt.f32.partialorder %v19859_v9, 400.0  ;;  %v2213_v10 = vadd.f32 %v2212_v23, %v2021_v63  ;;  %v19861_v63 = vld [vmem:[#allocation32_spill] sm:$0xff] }
 0x42d   :  { %19855 = vst [vmem:[#allocation318_spill] sm:$0xff] %v14989_v15  ;;  %v2407_v12 = vadd.f32 %v8399_v25, %v2406_v56  ;;  %v6249_v49 = vsel %vm6243_vm2, 2143289344, %v8166_v34  ;;  %v6345_v62 = vmul.f32 0.1, %v8164_v37  ;;  %v1641_v44 = vmul.f32 219.71211, %v19860_v43 }
 0x42e   :  { %vm14993_vm7 = vcmp.eq.f32.partialorder %v19856_v13, 2139095040  ;;  %v2023_v5 = vsel %vm1831_vm1, %v1639_v6, %v19853_v60  ;;  %v6229_v38 = vsel %vm14923_vm11, 2139095040, %v6224_v58  ;;  %vm6245_vm8 = vcmp.eq.f32.partialorder %v19769_v20, 1065353216  ;;  %v8400_v56 = vld [vmem:[#allocation7 + $0x128] sm:$0xff]  ;;  %v19863_v34 = vld [vmem:[#allocation343_spill] sm:$0xff]  ;;  %v8172_v25 = vpop.eup %8171  ;;  %v19866_v6 = vld [vmem:[#allocation248_spill] sm:$0xff] }
 0x42f   :  { %vm6295_vm5 = vcmp.lt.f32.partialorder %v19787_v46, 0  ;;  %vm1833_vm13 = vcmp.gt.f32.partialorder %v19861_v63, 400.0  ;;  %v2214_v23 = vadd.f32 %v2213_v10, %v2022_v7  ;;  %v2408_v13 = vadd.f32 %v8400_v56, %v2407_v12  ;;  %v19864_v60 = vld [vmem:[#allocation247_spill] sm:$0xff] }
 0x430   :  { %vm6282_vm2 = vcmp.ne.f32.partialorder %v19777_v18, %v19777_v18  ;;  %v19862_v37 = vand.u32 2147483647, %v19852_v17  ;;  %v1642_v16 = vmul.f32 219.71211, %v19864_v60  ;;  %v2024_v58 = vsel %vm1832_vm6, %v1640_v32, %v19859_v9  ;;  %v19865_v10 = vld [vmem:[#allocation127_spill] sm:$0xff] }
 0x431   :  { %v6250_v7 = vsel %vm6244_vm12, 0, %v6249_v49  ;;  %vm1834_vm11 = vcmp.gt.f32.partialorder %v19865_v10, 400.0  ;;  %v2215_v12 = vadd.f32 %v2214_v23, %v2023_v5  ;;  %v8401_v43 = vld [vmem:[#allocation7 + $0x130] sm:$0xff]  ;;  %v6275_v60 = vsel %vm6269_vm9, 2143289344, %v8170_v21  ;;  %v8174_v49 = vpop.eup %8173  ;;  %v19867_v5 = vld [vmem:[#allocation34_spill] sm:$0xff] }
 0x432   :  { %8179 = vlog2.f32 %v19862_v37  ;;  %v2409_v56 = vadd.f32 %v8401_v43, %v2408_v13  ;;  %v6233_v37 = vsel %vm6230_vm14, 2143289344, %v6229_v38  ;;  %vm6296_vm15 = vcmp.eq.f32.partialorder %v19787_v46, 0  ;;  %v8402_v13 = vld [vmem:[#allocation7 + $0x138] sm:$0xff] }
 0x433   :  { %v1643_v32 = vmul.f32 219.71211, %v19866_v6  ;;  %v2025_v9 = vsel %vm1833_vm13, %v1641_v44, %v19861_v63  ;;  %vm6271_vm12 = vcmp.eq.f32.partialorder %v19777_v18, 1065353216  ;;  %8181 = vpow2.f32 %v6345_v62  ;;  %v19868_v6 = vld [vmem:[#allocation249_spill] sm:$0xff] }
 0x434   :  { %vm1835_vm1 = vcmp.gt.f32.partialorder %v19867_v5, 400.0  ;;  %v2216_v23 = vadd.f32 %v2215_v12, %v2024_v58  ;;  %v2410_v38 = vadd.f32 %v8402_v13, %v2409_v56  ;;  %v6255_v21 = vsel %vm14961_vm3, 2139095040, %v6250_v7  ;;  %v8403_v12 = vld [vmem:[#allocation7 + $0x140] sm:$0xff] }
 0x435   :  { %vm6321_vm14 = vcmp.lt.f32.partialorder %v19798_v0, 0  ;;  %v6371_v43 = vmul.f32 0.1, %v8168_v24  ;;  %v1644_v15 = vmul.f32 219.71211, %v19868_v6  ;;  %v2026_v44 = vsel %vm1834_vm11, %v1642_v16, %v19865_v10  ;;  %v19875_v10 = vld [vmem:[#allocation250_spill] sm:$0xff]  ;;  %v8176_v6 = vpop.eup %8175 }
 0x436   :  { %v6276_v62 = vsel %vm6270_vm4, 0, %v6275_v60  ;;  %v19869_v63 = vand.u32 2147483647, %v19787_v46  ;;  %vm1836_vm3 = vcmp.gt.f32.partialorder %v19872_v50, 400.0  ;;  %v2217_v7 = vadd.f32 %v2216_v23, %v2025_v9  ;;  %v19876_v23 = vld [vmem:[#allocation136_spill] sm:$0xff] }
 0x437   :  { %v2411_v24 = vadd.f32 %v8403_v12, %v2410_v38  ;;  %v15051_v56 = vsel %vm6219_vm0, 1065353216, %v6233_v37  ;;  %v19874_v16 = vand.u32 2147483647, %v19863_v34  ;;  %v1645_v60 = vmul.f32 219.71211, %v19875_v10  ;;  %v8404_v37 = vld [vmem:[#allocation7 + $0x148] sm:$0xff] }
 0x438   :  { %vm15044_vm9 = vcmp.eq.f32.partialorder %v19869_v63, 2139095040  ;;  %19873 = vst [vmem:[#allocation319_spill] sm:$0xff] %v15051_v56  ;;  %v2027_v13 = vsel %vm1835_vm1, %v1643_v32, %v19867_v5  ;;  %v6259_v9 = vsel %vm6256_vm10, 2143289344, %v6255_v21  ;;  %vm6322_vm4 = vcmp.eq.f32.partialorder %v19798_v0, 0  ;;  %v19877_v12 = vld [vmem:[#allocation344_spill] sm:$0xff]  ;;  %v19878_v5 = vld [vmem:[#allocation251_spill] sm:$0xff]  ;;  %v8178_v10 = vpop.eup %8177 }
 0x439   :  { %8183 = vlog2.f32 %v19874_v16  ;;  %vm1837_vm6 = vcmp.gt.f32.partialorder %v19876_v23, 400.0  ;;  %v2218_v35 = vadd.f32 %v2217_v7, %v2026_v44  ;;  %v2412_v38 = vadd.f32 %v8404_v37, %v2411_v24  ;;  %v19879_v56 = vld [vmem:[#allocation37_spill] sm:$0xff]  ;;  %v8405_v7 = vld [vmem:[#allocation7 + $0x150] sm:$0xff] }
 0x43a   :  { %v6281_v63 = vsel %vm14993_vm7, 2139095040, %v6276_v62  ;;  %vm6308_vm0 = vcmp.ne.f32.partialorder %v19787_v46, %v19787_v46  ;;  %v17629_v32 = vand.u32 2147483647, %v19877_v12  ;;  %v1646_v16 = vmul.f32 219.71211, %v19878_v5 }
 0x43b   :  { %v2028_v21 = vsel %vm1836_vm3, %v1644_v15, %v19872_v50  ;;  %8185 = vpow2.f32 %v6371_v43  ;;  %vm1838_vm10 = vcmp.gt.f32.partialorder %v19879_v56, 400.0  ;;  %v2219_v44 = vadd.f32 %v2218_v35, %v2027_v13  ;;  %v19884_v15 = vld [vmem:[#allocation252_spill] sm:$0xff]  ;;  %v19885_v13 = vld [vmem:[#allocation38_spill] sm:$0xff] }
 0x43c   :  { %v2413_v24 = vadd.f32 %v8405_v7, %v2412_v38  ;;  %v15076_v14 = vsel %vm6245_vm8, 1065353216, %v6259_v9  ;;  %v6301_v62 = vsel %vm6295_vm5, 2143289344, %v8174_v49  ;;  %v19881_v37 = vand.u32 2147483647, %v19798_v0  ;;  %v8406_v9 = vld [vmem:[#allocation7 + $0x158] sm:$0xff]  ;;  %v19886_v7 = vld [vmem:[#allocation253_spill] sm:$0xff] }
 0x43d   :  { %19880 = vst [vmem:[#allocation320_spill] sm:$0xff] %v15076_v14  ;;  %v1647_v43 = vmul.f32 219.71211, %v19884_v15  ;;  %v2029_v50 = vsel %vm1837_vm6, %v1645_v60, %v19876_v23  ;;  %v6285_v20 = vsel %vm6282_vm2, 2143289344, %v6281_v63  ;;  %vm6347_vm8 = vcmp.lt.f32.partialorder %v19808_v29, 0 }
 0x43e   :  { %vm15082_vm7 = vcmp.eq.f32.partialorder %v19881_v37, 2139095040  ;;  %vm1839_vm5 = vcmp.gt.f32.partialorder %v19885_v13, 400.0  ;;  %v2220_v49 = vadd.f32 %v2219_v44, %v2028_v21  ;;  %v2414_v35 = vadd.f32 %v8406_v9, %v2413_v24  ;;  %v19887_v21 = vld [vmem:[#allocation145_spill] sm:$0xff] }
 0x43f   :  { %vm6297_vm13 = vcmp.eq.f32.partialorder %v19787_v46, 1065353216  ;;  %v6397_v38 = vmul.f32 0.1, %v8172_v25  ;;  %8187 = vlog2.f32 %v17629_v32  ;;  %v1648_v37 = vmul.f32 219.71211, %v19886_v7  ;;  %v8180_v23 = vpop.eup %8179  ;;  %v8407_v25 = vld [vmem:[#allocation7 + $0x160] sm:$0xff] }
 0x440   :  { %v2030_v60 = vsel %vm1838_vm10, %v1646_v16, %v19879_v56  ;;  %v6302_v63 = vsel %vm6296_vm15, 0, %v6301_v62  ;;  %vm6334_vm2 = vcmp.ne.f32.partialorder %v19798_v0, %v19798_v0  ;;  %vm1840_vm11 = vcmp.gt.f32.partialorder %v19887_v21, 400.0  ;;  %v19889_v9 = vld [vmem:[#allocation345_spill] sm:$0xff]  ;;  %v19890_v16 = vld [vmem:[#allocation254_spill] sm:$0xff] }
 0x441   :  { %v2221_v44 = vadd.f32 %v2220_v49, %v2029_v50  ;;  %v2415_v24 = vadd.f32 %v8407_v25, %v2414_v35  ;;  %v15109_v15 = vsel %vm6271_vm12, 1065353216, %v6285_v20  ;;  %vm6348_vm1 = vcmp.eq.f32.partialorder %v19808_v29, 0  ;;  %v19891_v50 = vld [vmem:[#allocation40_spill] sm:$0xff]  ;;  %v8408_v35 = vld [vmem:[#allocation7 + $0x168] sm:$0xff]  ;;  %v8182_v20 = vpop.eup %8181 }
 0x442   :  { %19888 = vst [vmem:[#allocation321_spill] sm:$0xff] %v15109_v15  ;;  %v1649_v7 = vmul.f32 219.71211, %v19890_v16  ;;  %v2031_v62 = vsel %vm1839_vm5, %v1647_v43, %v19885_v13  ;;  %v6327_v32 = vsel %vm6321_vm14, 2143289344, %v8178_v10  ;;  %vm1841_vm15 = vcmp.gt.f32.partialorder %v19891_v50, 400.0  ;;  %v19892_v16 = vld [vmem:[#allocation255_spill] sm:$0xff] }
 0x443   :  { %v2222_v49 = vadd.f32 %v2221_v44, %v2030_v60  ;;  %v2416_v18 = vadd.f32 %v8408_v35, %v2415_v24  ;;  %v6307_v25 = vsel %vm15044_vm9, 2139095040, %v6302_v63  ;;  %vm6373_vm12 = vcmp.lt.f32.partialorder %v19820_v41, 0  ;;  %v19896_v60 = vld [vmem:[#allocation41_spill] sm:$0xff]  ;;  %v8409_v63 = vld [vmem:[#allocation7 + $0x170] sm:$0xff] }
 0x444   :  { %v6423_v56 = vmul.f32 0.1, %v8176_v6  ;;  %v1650_v15 = vmul.f32 219.71211, %v19892_v16  ;;  %v2032_v43 = vsel %vm1840_vm11, %v1648_v37, %v19887_v21  ;;  %v19893_v10 = vand.u32 2147483647, %v19808_v29 }
 0x445   :  { %8189 = vpow2.f32 %v6397_v38  ;;  %vm1842_vm3 = vcmp.gt.f32.partialorder %v19896_v60, 400.0  ;;  %v2223_v58 = vadd.f32 %v2222_v49, %v2031_v62  ;;  %v2417_v44 = vadd.f32 %v8409_v63, %v2416_v18  ;;  %v19898_v37 = vld [vmem:[#allocation256_spill] sm:$0xff]  ;;  %v19899_v49 = vld [vmem:[#allocation154_spill] sm:$0xff]  ;;  %v19920_v13 = vld [vmem:[#allocation47_spill] sm:$0xff] }
 0x446   :  { %vm15129_vm14 = vcmp.eq.f32.partialorder %v19893_v10, 2139095040  ;;  %vm6323_vm9 = vcmp.eq.f32.partialorder %v19798_v0, 1065353216  ;;  %v6328_v6 = vsel %vm6322_vm4, 0, %v6327_v32  ;;  %v19897_v24 = vand.u32 2147483647, %v19889_v9  ;;  %v8184_v38 = vpop.eup %8183  ;;  %v8410_v32 = vld [vmem:[#allocation7 + $0x178] sm:$0xff] }
 0x447   :  { %v1651_v21 = vmul.f32 219.71211, %v19898_v37  ;;  %v2033_v35 = vsel %vm1841_vm15, %v1649_v7, %v19891_v50  ;;  %v6311_v62 = vsel %vm6308_vm0, 2143289344, %v6307_v25  ;;  %vm6374_vm6 = vcmp.eq.f32.partialorder %v19820_v41, 0  ;;  %v19900_v10 = vld [vmem:[#allocation213_spill] sm:$0xff]  ;;  %v19902_v37 = vld [vmem:[#allocation43_spill] sm:$0xff] }
 0x448   :  { %8191 = vlog2.f32 %v19897_v24  ;;  %vm1843_vm10 = vcmp.gt.f32.partialorder %v19899_v49, 400.0  ;;  %v2224_v18 = vadd.f32 %v2223_v58, %v2032_v43  ;;  %v2418_v16 = vadd.f32 %v8410_v32, %v2417_v44  ;;  %v19901_v24 = vld [vmem:[#allocation257_spill] sm:$0xff]  ;;  %v8186_v32 = vpop.eup %8185 }
 0x449   :  { %vm6360_vm4 = vcmp.ne.f32.partialorder %v19808_v29, %v19808_v29  ;;  %8193 = vpow2.f32 %v6423_v56  ;;  %v1652_v7 = vmul.f32 219.71211, %v19901_v24  ;;  %v2034_v50 = vsel %vm1842_vm3, %v1650_v15, %v19896_v60  ;;  %v8411_v58 = vld [vmem:[#allocation7 + $0x180] sm:$0xff]  ;;  %v19906_v15 = vld [vmem:[#allocation258_spill] sm:$0xff]  ;;  %v19931_v24 = vld [vmem:[#allocation264_spill] sm:$0xff] }
 0x44a   :  { %v6333_v25 = vsel %vm15082_vm7, 2139095040, %v6328_v6  ;;  %vm1844_vm0 = vcmp.gt.f32.partialorder %v19902_v37, 400.0  ;;  %v2225_v43 = vadd.f32 %v2224_v18, %v2033_v35  ;;  %v2419_v44 = vadd.f32 %v8411_v58, %v2418_v16  ;;  %v8412_v18 = vld [vmem:[#allocation7 + $0x188] sm:$0xff] }
 0x44b   :  { %v6353_v56 = vsel %vm6347_vm8, 2143289344, %v8182_v20  ;;  %v19903_v63 = vand.u32 2147483647, %v19820_v41  ;;  %v6449_v14 = vmul.f32 0.1, %v8180_v23  ;;  %v2035_v5 = vsel %vm1843_vm10, %v1651_v21, %v19899_v49  ;;  %v19908_v20 = vld [vmem:[#allocation44_spill] sm:$0xff] }
 0x44c   :  { %v1653_v60 = vmul.f32 219.71211, %v19906_v15  ;;  %v15172_v6 = vsel %vm6297_vm13, 1065353216, %v6311_v62  ;;  %vm6349_vm7 = vcmp.eq.f32.partialorder %v19808_v29, 1065353216  ;;  %vm6399_vm8 = vcmp.lt.f32.partialorder %v19831_v45, 0  ;;  %v19910_v21 = vld [vmem:[#allocation259_spill] sm:$0xff]  ;;  %v8188_v49 = vpop.eup %8187 }
 0x44d   :  { %vm15162_vm5 = vcmp.eq.f32.partialorder %v19903_v63, 2139095040  ;;  %19907 = vst [vmem:[#allocation322_spill] sm:$0xff] %v15172_v6  ;;  %vm1845_vm11 = vcmp.gt.f32.partialorder %v19908_v20, 400.0  ;;  %v2226_v35 = vadd.f32 %v2225_v43, %v2034_v50  ;;  %v2420_v16 = vadd.f32 %v8412_v18, %v2419_v44  ;;  %v19911_v50 = vld [vmem:[#allocation163_spill] sm:$0xff]  ;;  %v19912_v15 = vld [vmem:[#allocation346_spill] sm:$0xff]  ;;  %v19915_v18 = vld [vmem:[#allocation261_spill] sm:$0xff] }
 0x44e   :  { %v6337_v23 = vsel %vm6334_vm2, 2143289344, %v6333_v25  ;;  %v19909_v63 = vand.u32 2147483647, %v19900_v10  ;;  %v1654_v46 = vmul.f32 219.71211, %v19910_v21  ;;  %v2036_v62 = vsel %vm1844_vm0, %v1652_v7, %v19902_v37  ;;  %v8413_v25 = vld [vmem:[#allocation7 + $0x190] sm:$0xff] }
 0x44f   :  { %v6354_v58 = vsel %vm6348_vm1, 0, %v6353_v56  ;;  %vm6386_vm13 = vcmp.ne.f32.partialorder %v19820_v41, %v19820_v41  ;;  %vm1846_vm15 = vcmp.gt.f32.partialorder %v19911_v50, 400.0  ;;  %v2227_v43 = vadd.f32 %v2226_v35, %v2035_v5  ;;  %v19914_v56 = vld [vmem:[#allocation46_spill] sm:$0xff]  ;;  %v8414_v35 = vld [vmem:[#allocation7 + $0x198] sm:$0xff] }
 0x450   :  { %8195 = vlog2.f32 %v19909_v63  ;;  %v2421_v44 = vadd.f32 %v8413_v25, %v2420_v16  ;;  %vm6400_vm2 = vcmp.eq.f32.partialorder %v19831_v45, 0  ;;  %v19913_v63 = vld [vmem:[#allocation260_spill] sm:$0xff]  ;;  %v2037_v7 = vsel %vm1845_vm11, %v1653_v60, %v19908_v20 }
 0x451   :  { %8197 = vpow2.f32 %v6449_v14  ;;  %v1655_v21 = vmul.f32 219.71211, %v19913_v63  ;;  %v6379_v37 = vsel %vm6373_vm12, 2143289344, %v8186_v32  ;;  %vm6425_vm1 = vcmp.lt.f32.partialorder %v19842_v48, 0  ;;  %v8418_v29 = vld [vmem:[#allocation7 + $0x1b8] sm:$0xff] }
 0x452   :  { %vm1847_vm3 = vcmp.gt.f32.partialorder %v19914_v56, 400.0  ;;  %v2228_v5 = vadd.f32 %v2227_v43, %v2036_v62  ;;  %v2422_v16 = vadd.f32 %v8414_v35, %v2421_v44  ;;  %v6359_v14 = vsel %vm15129_vm14, 2139095040, %v6354_v58  ;;  %v8415_v58 = vld [vmem:[#allocation7 + $0x1a0] sm:$0xff]  ;;  %v8190_v44 = vpop.eup %8189  ;;  %v8421_v62 = vld [vmem:[#allocation7 + $0x1d0] sm:$0xff] }
 0x453   :  { %v6475_v25 = vmul.f32 0.1, %v8184_v38  ;;  %v1656_v63 = vmul.f32 219.71211, %v19915_v18  ;;  %v2038_v60 = vsel %vm1846_vm15, %v1654_v46, %v19911_v50  ;;  %v15209_v32 = vsel %vm6323_vm9, 1065353216, %v6337_v23  ;;  %v19922_v23 = vld [vmem:[#allocation262_spill] sm:$0xff] }
 0x454   :  { %19916 = vst [vmem:[#allocation323_spill] sm:$0xff] %v15209_v32  ;;  %vm6375_vm12 = vcmp.eq.f32.partialorder %v19820_v41, 1065353216  ;;  %v19917_v20 = vand.u32 2147483647, %v19831_v45  ;;  %vm1848_vm14 = vcmp.gt.f32.partialorder %v19920_v13, 400.0  ;;  %v2229_v38 = vadd.f32 %v2228_v5, %v2037_v7  ;;  %v19923_v5 = vld [vmem:[#allocation183_spill] sm:$0xff] }
 0x455   :  { %v2423_v43 = vadd.f32 %v8415_v58, %v2422_v16  ;;  %v6380_v46 = vsel %vm6374_vm6, 0, %v6379_v37  ;;  %vm6426_vm9 = vcmp.eq.f32.partialorder %v19842_v48, 0  ;;  %v19921_v0 = vand.u32 2147483647, %v19912_v15  ;;  %v8192_v35 = vpop.eup %8191  ;;  %v8416_v37 = vld [vmem:[#allocation7 + $0x1a8] sm:$0xff]  ;;  %v19924_v58 = vld [vmem:[#allocation347_spill] sm:$0xff] }
 0x456   :  { %vm15214_vm10 = vcmp.eq.f32.partialorder %v19917_v20, 2139095040  ;;  %v1657_v50 = vmul.f32 219.71211, %v19922_v23  ;;  %v2039_v18 = vsel %vm1847_vm3, %v1655_v21, %v19914_v56  ;;  %v6363_v7 = vsel %vm6360_vm4, 2143289344, %v6359_v14  ;;  %v19925_v23 = vld [vmem:[#allocation263_spill] sm:$0xff]  ;;  %v8194_v56 = vpop.eup %8193 }
 0x457   :  { %8199 = vlog2.f32 %v19921_v0  ;;  %vm1849_vm0 = vcmp.gt.f32.partialorder %v19923_v5, 400.0  ;;  %v2230_v16 = vadd.f32 %v2229_v38, %v2038_v60  ;;  %v2424_v20 = vadd.f32 %v8416_v37, %v2423_v43  ;;  %v19929_v43 = vld [vmem:[#allocation184_spill] sm:$0xff]  ;;  %v8417_v37 = vld [vmem:[#allocation7 + $0x1b0] sm:$0xff] }
 0x458   :  { %vm6412_vm6 = vcmp.ne.f32.partialorder %v19831_v45, %v19831_v45  ;;  %8201 = vpow2.f32 %v6475_v25  ;;  %v1658_v32 = vmul.f32 219.71211, %v19925_v23  ;;  %v2040_v21 = vsel %vm1848_vm14, %v1656_v63, %v19920_v13 }
 0x459   :  { %v6385_v14 = vsel %vm15162_vm5, 2139095040, %v6380_v46  ;;  %v19926_v60 = vand.u32 2147483647, %v19842_v48  ;;  %vm1850_vm11 = vcmp.gt.f32.partialorder %v19929_v43, 400.0  ;;  %v2231_v25 = vadd.f32 %v2230_v16, %v2039_v18  ;;  %v19932_v16 = vld [vmem:[#allocation185_spill] sm:$0xff] }
 0x45a   :  { %v2425_v0 = vadd.f32 %v8417_v37, %v2424_v20  ;;  %v15250_v23 = vsel %vm6349_vm7, 1065353216, %v6363_v7  ;;  %v6405_v63 = vsel %vm6399_vm8, 2143289344, %v8190_v44  ;;  %vm6451_vm5 = vcmp.lt.f32.partialorder %v19852_v17, 0  ;;  %v19934_v37 = vld [vmem:[#allocation265_spill] sm:$0xff] }
 0x45b   :  { %vm15243_vm4 = vcmp.eq.f32.partialorder %v19926_v60, 2139095040  ;;  %19930 = vst [vmem:[#allocation324_spill] sm:$0xff] %v15250_v23  ;;  %v1659_v13 = vmul.f32 219.71211, %v19931_v24  ;;  %v2041_v46 = vsel %vm1849_vm0, %v1657_v50, %v19923_v5  ;;  %vm6401_vm15 = vcmp.eq.f32.partialorder %v19831_v45, 1065353216  ;;  %v19937_v23 = vld [vmem:[#allocation266_spill] sm:$0xff] }
 0x45c   :  { %v6501_v18 = vmul.f32 0.1, %v8188_v49  ;;  %vm1851_vm3 = vcmp.gt.f32.partialorder %v19932_v16, 400.0  ;;  %v2232_v20 = vadd.f32 %v2231_v25, %v2040_v21  ;;  %v2426_v7 = vadd.f32 %v8418_v29, %v2425_v0  ;;  %v19935_v21 = vld [vmem:[#allocation186_spill] sm:$0xff]  ;;  %v8419_v25 = vld [vmem:[#allocation7 + $0x1c0] sm:$0xff] }
 0x45d   :  { %v6389_v44 = vsel %vm6386_vm13, 2143289344, %v6385_v14  ;;  %vm6438_vm7 = vcmp.ne.f32.partialorder %v19842_v48, %v19842_v48  ;;  %v19933_v60 = vand.u32 2147483647, %v19924_v58  ;;  %v1660_v50 = vmul.f32 219.71211, %v19934_v37  ;;  %v15272_v5 = vpop.eup %8195 }
 0x45e   :  { %v2042_v49 = vsel %vm1850_vm11, %v1658_v32, %v19929_v43  ;;  %v6406_v0 = vsel %vm6400_vm2, 0, %v6405_v63  ;;  %vm6452_vm8 = vcmp.eq.f32.partialorder %v19852_v17, 0  ;;  %vm1852_vm13 = vcmp.gt.f32.partialorder %v19935_v21, 400.0  ;;  %v8198_v43 = vpop.eup %8197  ;;  %v19938_v63 = vld [vmem:[#allocation187_spill] sm:$0xff] }
 0x45f   :  { %8203 = vlog2.f32 %v19933_v60  ;;  %v2233_v14 = vadd.f32 %v2232_v20, %v2041_v46  ;;  %v2427_v24 = vadd.f32 %v8419_v25, %v2426_v7  ;;  %v6431_v29 = vsel %vm6425_vm1, 2143289344, %v8194_v56  ;;  %v19936_v60 = vld [vmem:[#allocation348_spill] sm:$0xff]  ;;  %v8420_v20 = vld [vmem:[#allocation7 + $0x1c8] sm:$0xff] }
 0x460   :  { %v17630_v37 = vand.u32 2147483647, %v19936_v60  ;;  %v1661_v6 = vmul.f32 219.71211, %v19937_v23  ;;  %v2043_v32 = vsel %vm1851_vm3, %v1659_v13, %v19932_v16  ;;  %vm6427_vm2 = vcmp.eq.f32.partialorder %v19842_v48, 1065353216  ;;  %v19943_v16 = vld [vmem:[#allocation267_spill] sm:$0xff] }
 0x461   :  { %8205 = vpow2.f32 %v6501_v18  ;;  %vm1853_vm14 = vcmp.gt.f32.partialorder %v19938_v63, 400.0  ;;  %v2234_v46 = vadd.f32 %v2233_v14, %v2042_v49  ;;  %v2428_v7 = vadd.f32 %v8420_v20, %v2427_v24  ;;  %v19945_v20 = vld [vmem:[#allocation268_spill] sm:$0xff]  ;;  %v19964_v48 = vld [vmem:[#allocation193_spill] sm:$0xff] }
 0x462   :  { %v15289_v56 = vsel %vm6375_vm12, 1065353216, %v6389_v44  ;;  %v6411_v23 = vsel %vm15214_vm10, 2139095040, %v6406_v0  ;;  %v19940_v25 = vand.u32 2147483647, %v19852_v17  ;;  %v1662_v18 = vmul.f32 219.71211, %v19943_v16 }
 0x463   :  { %19939 = vst [vmem:[#allocation325_spill] sm:$0xff] %v15289_v56  ;;  %v2044_v49 = vsel %vm1852_vm13, %v1660_v50, %v19935_v21  ;;  %v6432_v41 = vsel %vm6426_vm9, 0, %v6431_v29  ;;  %v19944_v44 = vld [vmem:[#allocation188_spill] sm:$0xff]  ;;  %v2235_v14 = vadd.f32 %v2234_v46, %v2043_v32  ;;  %v2429_v0 = vadd.f32 %v8421_v62, %v2428_v7  ;;  %v19946_v32 = vld [vmem:[#allocation189_spill] sm:$0xff] }
 0x464   :  { %vm15295_vm1 = vcmp.eq.f32.partialorder %v19940_v25, 2139095040  ;;  %vm1854_vm12 = vcmp.gt.f32.partialorder %v19944_v44, 400.0  ;;  %vm6477_vm10 = vcmp.lt.f32.partialorder %v19863_v34, 0  ;;  %v6527_v24 = vmul.f32 0.1, %v8192_v35  ;;  %v8200_v21 = vpop.eup %8199  ;;  %v8422_v46 = vld [vmem:[#allocation7 + $0x1d8] sm:$0xff] }
 0x465   :  { %8207 = vlog2.f32 %v17630_v37  ;;  %v1663_v25 = vmul.f32 219.71211, %v19945_v20  ;;  %v2045_v50 = vsel %vm1853_vm14, %v1661_v6, %v19938_v63  ;;  %v6415_v29 = vsel %vm6412_vm6, 2143289344, %v6411_v23  ;;  %v19947_v62 = vld [vmem:[#allocation349_spill] sm:$0xff]  ;;  %v8202_v37 = vpop.eup %8201 }
 0x466   :  { %vm6464_vm9 = vcmp.ne.f32.partialorder %v19852_v17, %v19852_v17  ;;  %vm1855_vm0 = vcmp.gt.f32.partialorder %v19946_v32, 400.0  ;;  %v2236_v35 = vadd.f32 %v2235_v14, %v2044_v49  ;;  %v2430_v7 = vadd.f32 %v8422_v46, %v2429_v0  ;;  %v19948_v63 = vld [vmem:[#allocation269_spill] sm:$0xff]  ;;  %v19949_v49 = vld [vmem:[#allocation190_spill] sm:$0xff] }
 0x467   :  { %v6437_v16 = vsel %vm15243_vm4, 2139095040, %v6432_v41  ;;  %vm6503_vm11 = vcmp.lt.f32.partialorder %v19877_v12, 0  ;;  %v17631_v6 = vand.u32 2147483647, %v19947_v62  ;;  %v1664_v20 = vmul.f32 219.71211, %v19948_v63 }
 0x468   :  { %v2046_v23 = vsel %vm1854_vm12, %v1662_v18, %v19944_v44  ;;  %v6457_v56 = vsel %vm6451_vm5, 2143289344, %v8198_v43  ;;  %vm6478_vm6 = vcmp.eq.f32.partialorder %v19863_v34, 0  ;;  %vm1856_vm3 = vcmp.gt.f32.partialorder %v19949_v49, 400.0  ;;  %v8423_v41 = vld [vmem:[#allocation7 + $0x1e0] sm:$0xff]  ;;  %v19951_v46 = vld [vmem:[#allocation270_spill] sm:$0xff]  ;;  %v19952_v44 = vld [vmem:[#allocation191_spill] sm:$0xff] }
 0x469   :  { %v2237_v38 = vadd.f32 %v2236_v35, %v2045_v50  ;;  %v2431_v14 = vadd.f32 %v8423_v41, %v2430_v7  ;;  %v15333_v0 = vsel %vm6401_vm15, 1065353216, %v6415_v29  ;;  %8209 = vpow2.f32 %v6527_v24  ;;  %v8424_v35 = vld [vmem:[#allocation7 + $0x1e8] sm:$0xff] }
 0x46a   :  { %19950 = vst [vmem:[#allocation326_spill] sm:$0xff] %v15333_v0  ;;  %v1665_v63 = vmul.f32 219.71211, %v19951_v46  ;;  %v2047_v18 = vsel %vm1855_vm0, %v1663_v25, %v19946_v32  ;;  %v6441_v43 = vsel %vm6438_vm7, 2143289344, %v6437_v16  ;;  %vm6504_vm4 = vcmp.eq.f32.partialorder %v19877_v12, 0  ;;  %v19956_v32 = vld [vmem:[#allocation271_spill] sm:$0xff] }
 0x46b   :  { %vm1857_vm5 = vcmp.gt.f32.partialorder %v19952_v44, 400.0  ;;  %v2238_v50 = vadd.f32 %v2237_v38, %v2046_v23  ;;  %v2432_v45 = vadd.f32 %v8424_v35, %v2431_v14  ;;  %v6458_v24 = vsel %vm6452_vm8, 0, %v6457_v56  ;;  %v19957_v56 = vld [vmem:[#allocation192_spill] sm:$0xff]  ;;  %v8425_v14 = vld [vmem:[#allocation7 + $0x1f0] sm:$0xff] }
 0x46c   :  { %v19953_v29 = vand.u32 2147483647, %v19863_v34  ;;  %v6553_v25 = vmul.f32 0.1, %v15272_v5  ;;  %v1666_v16 = vmul.f32 219.71211, %v19956_v32  ;;  %v2048_v41 = vsel %vm1856_vm3, %v1664_v20, %v19949_v49  ;;  %v8204_v23 = vpop.eup %8203 }
 0x46d   :  { %vm6453_vm7 = vcmp.eq.f32.partialorder %v19852_v17, 1065353216  ;;  %8211 = vlog2.f32 %v17631_v6  ;;  %vm1858_vm8 = vcmp.gt.f32.partialorder %v19957_v56, 400.0  ;;  %v2239_v38 = vadd.f32 %v2238_v50, %v2047_v18  ;;  %v19962_v20 = vld [vmem:[#allocation350_spill] sm:$0xff]  ;;  %v19963_v32 = vld [vmem:[#allocation272_spill] sm:$0xff]  ;;  %v19965_v49 = vld [vmem:[#allocation273_spill] sm:$0xff] }
 0x46e   :  { %vm15348_vm15 = vcmp.eq.f32.partialorder %v19953_v29, 2139095040  ;;  %v2433_v46 = vadd.f32 %v8425_v14, %v2432_v45  ;;  %v15363_v5 = vsel %vm6427_vm2, 1065353216, %v6441_v43  ;;  %v19959_v35 = vand.u32 2147483647, %v19877_v12  ;;  %v8426_v45 = vld [vmem:[#allocation7 + $0x1f8] sm:$0xff] }
 0x46f   :  { %19958 = vst [vmem:[#allocation327_spill] sm:$0xff] %v15363_v5  ;;  %v1667_v0 = vmul.f32 219.71211, %v19963_v32  ;;  %v2049_v18 = vsel %vm1857_vm5, %v1665_v63, %v19952_v44  ;;  %v6463_v50 = vsel %vm15295_vm1, 2139095040, %v6458_v24  ;;  %vm6490_vm2 = vcmp.ne.f32.partialorder %v19863_v34, %v19863_v34  ;;  %v19966_v44 = vld [vmem:[#allocation194_spill] sm:$0xff]  ;;  %v19973_v5 = vld [vmem:[#allocation276_spill] sm:$0xff] }
 0x470   :  { %vm15367_vm13 = vcmp.eq.f32.partialorder %v19959_v35, 2139095040  ;;  %vm1859_vm14 = vcmp.gt.f32.partialorder %v19964_v48, 400.0  ;;  %v2240_v43 = vadd.f32 %v2239_v38, %v2048_v41  ;;  %v2434_v14 = vadd.f32 %v8426_v45, %v2433_v46  ;;  %v8206_v35 = vpop.eup %8205  ;;  %v8427_v41 = vld [vmem:[#allocation7 + $0x200] sm:$0xff] }
 0x471   :  { %8213 = vpow2.f32 %v6553_v25  ;;  %v6579_v6 = vmul.f32 0.1, %v8200_v21  ;;  %v1668_v32 = vmul.f32 219.71211, %v19965_v49  ;;  %v2050_v63 = vsel %vm1858_vm8, %v1666_v16, %v19957_v56  ;;  %v19968_v16 = vld [vmem:[#allocation274_spill] sm:$0xff] }
 0x472   :  { %v6483_v13 = vsel %vm6477_vm10, 2143289344, %v8202_v37  ;;  %vm6516_vm1 = vcmp.ne.f32.partialorder %v19877_v12, %v19877_v12  ;;  %vm1860_vm12 = vcmp.gt.f32.partialorder %v19966_v44, 400.0  ;;  %v2241_v24 = vadd.f32 %v2240_v43, %v2049_v18  ;;  %v8208_v46 = vpop.eup %8207  ;;  %v19969_v18 = vld [vmem:[#allocation195_spill] sm:$0xff]  ;;  %v8428_v43 = vld [vmem:[#allocation7 + $0x208] sm:$0xff] }
 0x473   :  { %v2435_v38 = vadd.f32 %v8427_v41, %v2434_v14  ;;  %v6467_v21 = vsel %vm6464_vm9, 2143289344, %v6463_v50  ;;  %vm6529_vm0 = vcmp.lt.f32.partialorder %v19889_v9, 0  ;;  %v19967_v25 = vand.u32 2147483647, %v19962_v20  ;;  %v19970_v41 = vld [vmem:[#allocation351_spill] sm:$0xff] }
 0x474   :  { %v1669_v56 = vmul.f32 219.71211, %v19968_v16  ;;  %v2051_v37 = vsel %vm1859_vm14, %v1667_v0, %v19964_v48  ;;  %vm6479_vm10 = vcmp.eq.f32.partialorder %v19863_v34, 1065353216  ;;  %v6509_v49 = vsel %vm6503_vm11, 2143289344, %v8206_v35  ;;  %v19971_v16 = vld [vmem:[#allocation275_spill] sm:$0xff]  ;;  %v19972_v35 = vld [vmem:[#allocation196_spill] sm:$0xff] }
 0x475   :  { %8215 = vlog2.f32 %v19967_v25  ;;  %vm1861_vm3 = vcmp.gt.f32.partialorder %v19969_v18, 400.0  ;;  %v2242_v50 = vadd.f32 %v2241_v24, %v2050_v63  ;;  %v2436_v45 = vadd.f32 %v8428_v43, %v2435_v38  ;;  %v8429_v24 = vld [vmem:[#allocation7 + $0x210] sm:$0xff] }
 0x476   :  { %v6484_v14 = vsel %vm6478_vm6, 0, %v6483_v13  ;;  %vm6505_vm9 = vcmp.eq.f32.partialorder %v19877_v12, 1065353216  ;;  %v1670_v0 = vmul.f32 219.71211, %v19971_v16  ;;  %v2052_v48 = vsel %vm1860_vm12, %v1668_v32, %v19966_v44  ;;  %v8210_v33 = vpop.eup %8209 }
 0x477   :  { %vm6530_vm11 = vcmp.eq.f32.partialorder %v19889_v9, 0  ;;  %8217 = vpow2.f32 %v6579_v6  ;;  %vm1862_vm5 = vcmp.gt.f32.partialorder %v19972_v35, 400.0  ;;  %v2243_v63 = vadd.f32 %v2242_v50, %v2051_v37  ;;  %v19974_v6 = vld [vmem:[#allocation197_spill] sm:$0xff]  ;;  %v8430_v37 = vld [vmem:[#allocation7 + $0x218] sm:$0xff] }
 0x478   :  { %v2437_v38 = vadd.f32 %v8429_v24, %v2436_v45  ;;  %v6510_v13 = vsel %vm6504_vm4, 0, %v6509_v49  ;;  %v6605_v43 = vmul.f32 0.1, %v8204_v23  ;;  %v1671_v25 = vmul.f32 219.71211, %v19973_v5 }
 0x479   :  { %v2053_v16 = vsel %vm1861_vm3, %v1669_v56, %v19969_v18  ;;  %v6489_v32 = vsel %vm15348_vm15, 2139095040, %v6484_v14  ;;  %vm6555_vm6 = vcmp.lt.f32.partialorder %v19900_v10, 0  ;;  %vm1863_vm8 = vcmp.gt.f32.partialorder %v19974_v6, 400.0  ;;  %v19980_v56 = vld [vmem:[#allocation277_spill] sm:$0xff] }
 0x47a   :  { %v2244_v44 = vadd.f32 %v2243_v63, %v2052_v48  ;;  %v2438_v50 = vadd.f32 %v8430_v37, %v2437_v38  ;;  %v15426_v23 = vsel %vm6453_vm7, 1065353216, %v6467_v21  ;;  %v19976_v5 = vand.u32 2147483647, %v19889_v9  ;;  %v19981_v21 = vld [vmem:[#allocation198_spill] sm:$0xff]  ;;  %v8431_v48 = vld [vmem:[#allocation7 + $0x220] sm:$0xff]  ;;  %v8212_v24 = vpop.eup %8211  ;;  %v19982_v37 = vld [vmem:[#allocation352_spill] sm:$0xff] }
 0x47b   :  { %19975 = vst [vmem:[#allocation328_spill] sm:$0xff] %v15426_v23  ;;  %v19979_v7 = vand.u32 2147483647, %v19970_v41  ;;  %v1672_v18 = vmul.f32 219.71211, %v19980_v56  ;;  %v2054_v45 = vsel %vm1862_vm5, %v1670_v0, %v19972_v35  ;;  %v6515_v17 = vsel %vm15367_vm13, 2139095040, %v6510_v13 }
 0x47c   :  { %vm15430_vm4 = vcmp.eq.f32.partialorder %v19976_v5, 2139095040  ;;  %vm1864_vm15 = vcmp.gt.f32.partialorder %v19981_v21, 400.0  ;;  %v2245_v14 = vadd.f32 %v2244_v44, %v2053_v16  ;;  %v2439_v63 = vadd.f32 %v8431_v48, %v2438_v50  ;;  %v19984_v0 = vld [vmem:[#allocation199_spill] sm:$0xff]  ;;  %v8432_v13 = vld [vmem:[#allocation7 + $0x228] sm:$0xff] }
 0x47d   :  { %8219 = vlog2.f32 %v19979_v7  ;;  %v6493_v38 = vsel %vm6490_vm2, 2143289344, %v6489_v32  ;;  %vm6556_vm7 = vcmp.eq.f32.partialorder %v19900_v10, 0  ;;  %v17632_v5 = vand.u32 2147483647, %v19982_v37  ;;  %v19983_v7 = vld [vmem:[#allocation278_spill] sm:$0xff]  ;;  %v19985_v50 = vld [vmem:[#allocation279_spill] sm:$0xff] }
 0x47e   :  { %v1673_v56 = vmul.f32 219.71211, %v19983_v7  ;;  %v2055_v29 = vsel %vm1863_vm8, %v1671_v25, %v19974_v6  ;;  %vm6542_vm13 = vcmp.ne.f32.partialorder %v19889_v9, %v19889_v9  ;;  %8221 = vpow2.f32 %v6605_v43  ;;  %v8214_v6 = vpop.eup %8213 }
 0x47f   :  { %vm1865_vm14 = vcmp.gt.f32.partialorder %v19984_v0, 400.0  ;;  %v2246_v35 = vadd.f32 %v2245_v14, %v2054_v45  ;;  %v2440_v16 = vadd.f32 %v8432_v13, %v2439_v63  ;;  %v6519_v32 = vsel %vm6516_vm1, 2143289344, %v6515_v17  ;;  %v19989_v17 = vld [vmem:[#allocation200_spill] sm:$0xff] }
 0x480   :  { %vm6581_vm2 = vcmp.lt.f32.partialorder %v19912_v15, 0  ;;  %v6631_v44 = vmul.f32 0.1, %v8208_v46  ;;  %v1674_v48 = vmul.f32 219.71211, %v19985_v50  ;;  %v2056_v25 = vsel %vm1864_vm15, %v1672_v18, %v19981_v21  ;;  %v8433_v46 = vld [vmem:[#allocation7 + $0x230] sm:$0xff] }
 0x481   :  { %v6535_v43 = vsel %vm6529_vm0, 2143289344, %v8210_v33  ;;  %v19986_v45 = vand.u32 2147483647, %v19900_v10  ;;  %vm1866_vm1 = vcmp.gt.f32.partialorder %v19989_v17, 400.0  ;;  %v2247_v63 = vadd.f32 %v2246_v35, %v2055_v29  ;;  %v19991_v18 = vld [vmem:[#allocation280_spill] sm:$0xff]  ;;  %v19993_v29 = vld [vmem:[#allocation201_spill] sm:$0xff] }
 0x482   :  { %v2441_v7 = vadd.f32 %v8433_v46, %v2440_v16  ;;  %v15474_v13 = vsel %vm6479_vm10, 1065353216, %v6493_v38  ;;  %8223 = vlog2.f32 %v17632_v5  ;;  %v1675_v33 = vmul.f32 219.71211, %v19991_v18  ;;  %v8216_v50 = vpop.eup %8215  ;;  %v8434_v38 = vld [vmem:[#allocation7 + $0x238] sm:$0xff]  ;;  %v19994_v46 = vld [vmem:[#allocation353_spill] sm:$0xff] }
 0x483   :  { %vm15467_vm12 = vcmp.eq.f32.partialorder %v19986_v45, 2139095040  ;;  %19990 = vst [vmem:[#allocation329_spill] sm:$0xff] %v15474_v13  ;;  %v2057_v21 = vsel %vm1865_vm14, %v1673_v56, %v19984_v0  ;;  %v15484_v45 = vsel %vm6505_vm9, 1065353216, %v6519_v32  ;;  %vm6582_vm0 = vcmp.eq.f32.partialorder %v19912_v15, 0  ;;  %v19995_v0 = vld [vmem:[#allocation281_spill] sm:$0xff]  ;;  %v19996_v32 = vld [vmem:[#allocation202_spill] sm:$0xff] }
 0x484   :  { %19992 = vst [vmem:[#allocation15_spill] sm:$0xff] %v15484_v45  ;;  %vm1867_vm3 = vcmp.gt.f32.partialorder %v19993_v29, 400.0  ;;  %v2248_v34 = vadd.f32 %v2247_v63, %v2056_v25  ;;  %v2442_v35 = vadd.f32 %v8434_v38, %v2441_v7  ;;  %v6536_v16 = vsel %vm6530_vm11, 0, %v6535_v43  ;;  %v8435_v63 = vld [vmem:[#allocation7 + $0x240] sm:$0xff]  ;;  %v8218_v43 = vpop.eup %8217  ;;  %v20004_v45 = vld [vmem:[#allocation283_spill] sm:$0xff]  ;;  %v20013_v14 = vld [vmem:[#allocation52_spill] sm:$0xff] }
 0x485   :  { %vm6568_vm10 = vcmp.ne.f32.partialorder %v19900_v10, %v19900_v10  ;;  %v1676_v18 = vmul.f32 219.71211, %v19995_v0  ;;  %v2058_v12 = vsel %vm1866_vm1, %v1674_v48, %v19989_v17  ;;  %vm6531_vm9 = vcmp.eq.f32.partialorder %v19889_v9, 1065353216  ;;  %v20000_v48 = vld [vmem:[#allocation282_spill] sm:$0xff]  ;;  %v20021_v9 = vld [vmem:[#allocation53_spill] sm:$0xff] }
 0x486   :  { %8225 = vpow2.f32 %v6631_v44  ;;  %vm1868_vm5 = vcmp.gt.f32.partialorder %v19996_v32, 400.0  ;;  %v2249_v25 = vadd.f32 %v2248_v34, %v2057_v21  ;;  %v2443_v7 = vadd.f32 %v8435_v63, %v2442_v35  ;;  %v8436_v34 = vld [vmem:[#allocation7 + $0x248] sm:$0xff] }
 0x487   :  { %v6561_v38 = vsel %vm6555_vm6, 2143289344, %v8214_v6  ;;  %v19997_v5 = vand.u32 2147483647, %v19912_v15  ;;  %v6657_v56 = vmul.f32 0.1, %v8212_v24  ;;  %v2059_v44 = vsel %vm1867_vm3, %v1675_v33, %v19993_v29  ;;  %v20001_v6 = vld [vmem:[#allocation49_spill] sm:$0xff] }
 0x488   :  { %v1677_v17 = vmul.f32 219.71211, %v20000_v48  ;;  %v6541_v21 = vsel %vm15430_vm4, 2139095040, %v6536_v16  ;;  %vm6557_vm8 = vcmp.eq.f32.partialorder %v19900_v10, 1065353216  ;;  %vm6607_vm6 = vcmp.lt.f32.partialorder %v19924_v58, 0  ;;  %v20003_v63 = vld [vmem:[#allocation354_spill] sm:$0xff] }
 0x489   :  { %vm15503_vm11 = vcmp.eq.f32.partialorder %v19997_v5, 2139095040  ;;  %vm1869_vm15 = vcmp.gt.f32.partialorder %v20001_v6, 400.0  ;;  %v2250_v5 = vadd.f32 %v2249_v25, %v2058_v12  ;;  %v2444_v35 = vadd.f32 %v8436_v34, %v2443_v7  ;;  %v20005_v16 = vld [vmem:[#allocation203_spill] sm:$0xff] }
 0x48a   :  { %v20002_v24 = vand.u32 2147483647, %v19994_v46  ;;  %v1678_v13 = vmul.f32 219.71211, %v20004_v45  ;;  %v2060_v49 = vsel %vm1868_vm5, %v1676_v18, %v19996_v32  ;;  %v15523_v33 = vpop.eup %8219  ;;  %v6562_v29 = vsel %vm6556_vm7, 0, %v6561_v38  ;;  %v8437_v25 = vld [vmem:[#allocation7 + $0x250] sm:$0xff] }
 0x48b   :  { %vm6594_vm4 = vcmp.ne.f32.partialorder %v19912_v15, %v19912_v15  ;;  %vm1870_vm14 = vcmp.gt.f32.partialorder %v20005_v16, 400.0  ;;  %v2251_v12 = vadd.f32 %v2250_v5, %v2059_v44  ;;  %v2445_v7 = vadd.f32 %v8437_v25, %v2444_v35  ;;  %v20006_v18 = vld [vmem:[#allocation284_spill] sm:$0xff]  ;;  %v20007_v44 = vld [vmem:[#allocation50_spill] sm:$0xff] }
 0x48c   :  { %8227 = vlog2.f32 %v20002_v24  ;;  %v6545_v45 = vsel %vm6542_vm13, 2143289344, %v6541_v21  ;;  %vm6608_vm1 = vcmp.eq.f32.partialorder %v19924_v58, 0  ;;  %v1679_v32 = vmul.f32 219.71211, %v20006_v18  ;;  %v8438_v35 = vld [vmem:[#allocation7 + $0x258] sm:$0xff]  ;;  %v8222_v21 = vpop.eup %8221  ;;  %v20008_v18 = vld [vmem:[#allocation285_spill] sm:$0xff] }
 0x48d   :  { %8229 = vpow2.f32 %v6657_v56  ;;  %v2061_v38 = vsel %vm1869_vm15, %v1677_v17, %v20001_v6  ;;  %v6587_v34 = vsel %vm6581_vm2, 2143289344, %v8218_v43  ;;  %vm6633_vm7 = vcmp.lt.f32.partialorder %v19936_v60, 0  ;;  %v20034_v6 = vld [vmem:[#allocation58_spill] sm:$0xff] }
 0x48e   :  { %vm1871_vm3 = vcmp.gt.f32.partialorder %v20007_v44, 400.0  ;;  %v2252_v5 = vadd.f32 %v2251_v12, %v2060_v49  ;;  %v2446_v24 = vadd.f32 %v8438_v35, %v2445_v7  ;;  %v6567_v56 = vsel %vm15467_vm12, 2139095040, %v6562_v29  ;;  %v8439_v12 = vld [vmem:[#allocation7 + $0x260] sm:$0xff]  ;;  %v20015_v35 = vld [vmem:[#allocation286_spill] sm:$0xff] }
 0x48f   :  { %vm6583_vm13 = vcmp.eq.f32.partialorder %v19912_v15, 1065353216  ;;  %v6683_v25 = vmul.f32 0.1, %v8216_v50  ;;  %v1680_v48 = vmul.f32 219.71211, %v20008_v18  ;;  %v2062_v43 = vsel %vm1870_vm14, %v1678_v13, %v20005_v16  ;;  %v20014_v13 = vld [vmem:[#allocation355_spill] sm:$0xff]  ;;  %v15566_v23 = vpop.eup %8223 }
 0x490   :  { %v20009_v17 = vand.u32 2147483647, %v19924_v58  ;;  %v20012_v49 = vand.u32 2147483647, %v20003_v63  ;;  %vm1872_vm12 = vcmp.gt.f32.partialorder %v20013_v14, 400.0  ;;  %v2253_v29 = vadd.f32 %v2252_v5, %v2061_v38  ;;  %v20016_v5 = vld [vmem:[#allocation204_spill] sm:$0xff] }
 0x491   :  { %v2447_v50 = vadd.f32 %v8439_v12, %v2446_v24  ;;  %v6588_v7 = vsel %vm6582_vm0, 0, %v6587_v34  ;;  %vm6634_vm5 = vcmp.eq.f32.partialorder %v19936_v60, 0  ;;  %v17633_v16 = vand.u32 2147483647, %v20014_v13  ;;  %v8440_v34 = vld [vmem:[#allocation7 + $0x268] sm:$0xff]  ;;  %v20033_v15 = vld [vmem:[#allocation291_spill] sm:$0xff] }
 0x492   :  { %vm15551_vm2 = vcmp.eq.f32.partialorder %v20009_v17, 2139095040  ;;  %8231 = vlog2.f32 %v20012_v49  ;;  %v1681_v18 = vmul.f32 219.71211, %v20015_v35  ;;  %v2063_v17 = vsel %vm1871_vm3, %v1679_v32, %v20007_v44  ;;  %v20017_v32 = vld [vmem:[#allocation287_spill] sm:$0xff] }
 0x493   :  { %v6571_v38 = vsel %vm6568_vm10, 2143289344, %v6567_v56  ;;  %vm1873_vm15 = vcmp.gt.f32.partialorder %v20016_v5, 400.0  ;;  %v2254_v24 = vadd.f32 %v2253_v29, %v2062_v43  ;;  %v2448_v49 = vadd.f32 %v8440_v34, %v2447_v50  ;;  %v8441_v50 = vld [vmem:[#allocation7 + $0x270] sm:$0xff]  ;;  %v8226_v34 = vpop.eup %8225 }
 0x494   :  { %v15574_v12 = vsel %vm6531_vm9, 1065353216, %v6545_v45  ;;  %vm6620_vm0 = vcmp.ne.f32.partialorder %v19924_v58, %v19924_v58  ;;  %8233 = vpow2.f32 %v6683_v25  ;;  %v1682_v44 = vmul.f32 219.71211, %v20017_v32 }
 0x495   :  { %v2064_v35 = vsel %vm1872_vm12, %v1680_v48, %v20013_v14  ;;  %v6593_v56 = vsel %vm15503_vm11, 2139095040, %v6588_v7  ;;  %v20018_v43 = vand.u32 2147483647, %v19936_v60  ;;  %vm1874_vm9 = vcmp.gt.f32.partialorder %v20021_v9, 400.0  ;;  %v20023_v48 = vld [vmem:[#allocation288_spill] sm:$0xff] }
 0x496   :  { %v2255_v45 = vadd.f32 %v2254_v24, %v2063_v17  ;;  %v2449_v25 = vadd.f32 %v8441_v50, %v2448_v49  ;;  %v15593_v32 = vsel %vm6557_vm8, 1065353216, %v6571_v38  ;;  %v6613_v0 = vsel %vm6607_vm6, 2143289344, %v8222_v21  ;;  %v20024_v17 = vld [vmem:[#allocation55_spill] sm:$0xff]  ;;  %v8442_v38 = vld [vmem:[#allocation7 + $0x278] sm:$0xff] }
 0x497   :  { %vm15586_vm10 = vcmp.eq.f32.partialorder %v20018_v43, 2139095040  ;;  %20022 = vst [vmem:[#allocation16_spill] sm:$0xff] %v15593_v32  ;;  %vm6659_vm11 = vcmp.lt.f32.partialorder %v19947_v62, 0  ;;  %v1683_v14 = vmul.f32 219.71211, %v20023_v48  ;;  %v2065_v7 = vsel %vm1873_vm15, %v1681_v18, %v20016_v5  ;;  %v20025_v18 = vld [vmem:[#allocation289_spill] sm:$0xff] }
 0x498   :  { %vm6609_vm14 = vcmp.eq.f32.partialorder %v19924_v58, 1065353216  ;;  %8235 = vlog2.f32 %v17633_v16  ;;  %vm1875_vm3 = vcmp.gt.f32.partialorder %v20024_v17, 400.0  ;;  %v2256_v10 = vadd.f32 %v2255_v45, %v2064_v35  ;;  %v20026_v45 = vld [vmem:[#allocation205_spill] sm:$0xff]  ;;  %v20028_v16 = vld [vmem:[#allocation290_spill] sm:$0xff] }
 0x499   :  { %v2450_v24 = vadd.f32 %v8442_v38, %v2449_v25  ;;  %v6597_v21 = vsel %vm6594_vm4, 2143289344, %v6593_v56  ;;  %vm6646_vm8 = vcmp.ne.f32.partialorder %v19936_v60, %v19936_v60  ;;  %v6709_v49 = vmul.f32 0.1, %v15523_v33  ;;  %v15616_v50 = vpop.eup %8227  ;;  %v8443_v25 = vld [vmem:[#allocation7 + $0x280] sm:$0xff]  ;;  %v20027_v38 = vld [vmem:[#allocation356_spill] sm:$0xff] }
 0x49a   :  { %v1684_v5 = vmul.f32 219.71211, %v20025_v18  ;;  %v2066_v43 = vsel %vm1874_vm9, %v1682_v44, %v20021_v9  ;;  %v6614_v35 = vsel %vm6608_vm1, 0, %v6613_v0  ;;  %vm6660_vm6 = vcmp.eq.f32.partialorder %v19947_v62, 0  ;;  %v8230_v9 = vpop.eup %8229  ;;  %v20042_v58 = vld [vmem:[#allocation61_spill] sm:$0xff] }
 0x49b   :  { %vm1876_vm4 = vcmp.gt.f32.partialorder %v20026_v45, 400.0  ;;  %v2257_v56 = vadd.f32 %v2256_v10, %v2065_v7  ;;  %v2451_v48 = vadd.f32 %v8443_v25, %v2450_v24  ;;  %v6639_v33 = vsel %vm6633_vm7, 2143289344, %v8226_v34  ;;  %v20029_v7 = vld [vmem:[#allocation56_spill] sm:$0xff]  ;;  %v8444_v24 = vld [vmem:[#allocation7 + $0x288] sm:$0xff] }
 0x49c   :  { %v1685_v32 = vmul.f32 219.71211, %v20028_v16  ;;  %v2067_v44 = vsel %vm1875_vm3, %v1683_v14, %v20024_v17  ;;  %v15631_v0 = vsel %vm6583_vm13, 1065353216, %v6597_v21  ;;  %vm6635_vm1 = vcmp.eq.f32.partialorder %v19936_v60, 1065353216  ;;  %v8450_v60 = vld [vmem:[#allocation7 + $0x2b8] sm:$0xff] }
 0x49d   :  { %vm1877_vm12 = vcmp.gt.f32.partialorder %v20029_v7, 400.0  ;;  %v2258_v10 = vadd.f32 %v2257_v56, %v2066_v43  ;;  %v2452_v34 = vadd.f32 %v8444_v24, %v2451_v48  ;;  %v6619_v25 = vsel %vm15551_vm2, 2139095040, %v6614_v35  ;;  %v8445_v35 = vld [vmem:[#allocation7 + $0x290] sm:$0xff] }
 0x49e   :  { %v20030_v16 = vand.u32 2147483647, %v19947_v62  ;;  %8237 = vpow2.f32 %v6709_v49  ;;  %v1686_v14 = vmul.f32 219.71211, %v20033_v15  ;;  %v2068_v17 = vsel %vm1876_vm4, %v1684_v5, %v20026_v45 }
 0x49f   :  { %v6640_v21 = vsel %vm6634_vm5, 0, %v6639_v33  ;;  %vm6685_vm13 = vcmp.lt.f32.partialorder %v19962_v20, 0  ;;  %vm1878_vm2 = vcmp.gt.f32.partialorder %v20034_v6, 400.0  ;;  %v2259_v43 = vadd.f32 %v2258_v10, %v2067_v44  ;;  %v8232_v48 = vpop.eup %8231  ;;  %v20036_v33 = vld [vmem:[#allocation206_spill] sm:$0xff] }
 0x4a0   :  { %vm15639_vm7 = vcmp.eq.f32.partialorder %v20030_v16, 2139095040  ;;  %v2453_v56 = vadd.f32 %v8445_v35, %v2452_v34  ;;  %v6735_v24 = vmul.f32 0.1, %v15566_v23  ;;  %v20035_v49 = vand.u32 2147483647, %v20027_v38  ;;  %v8446_v23 = vld [vmem:[#allocation7 + $0x298] sm:$0xff] }
 0x4a1   :  { %v1687_v16 = vmul.f32 219.71211, %v13515_v47  ;;  %v2069_v5 = vsel %vm1877_vm12, %v1685_v32, %v20029_v7  ;;  %v6623_v45 = vsel %vm6620_vm0, 2143289344, %v6619_v25  ;;  %vm6672_vm5 = vcmp.ne.f32.partialorder %v19947_v62, %v19947_v62  ;;  %v20037_v47 = vld [vmem:[#allocation182_spill] sm:$0xff]  ;;  %v8234_v25 = vpop.eup %8233 }
 0x4a2   :  { %8239 = vlog2.f32 %v20035_v49  ;;  %vm1879_vm15 = vcmp.gt.f32.partialorder %v20036_v33, 400.0  ;;  %v2260_v44 = vadd.f32 %v2259_v43, %v2068_v17  ;;  %v2454_v10 = vadd.f32 %v8446_v23, %v2453_v56  ;;  %v20038_v17 = vld [vmem:[#allocation59_spill] sm:$0xff]  ;;  %v8447_v56 = vld [vmem:[#allocation7 + $0x2a0] sm:$0xff] }
 0x4a3   :  { %v6645_v34 = vsel %vm15586_vm10, 2139095040, %v6640_v21  ;;  %vm6686_vm9 = vcmp.eq.f32.partialorder %v19962_v20, 0  ;;  %v17634_v15 = vand.u32 2147483647, %v20037_v47  ;;  %v1688_v32 = vmul.f32 219.71211, %v13519_v22 }
 0x4a4   :  { %v2070_v7 = vsel %vm1878_vm2, %v1686_v14, %v20034_v6  ;;  %v6665_v35 = vsel %vm6659_vm11, 2143289344, %v8230_v9  ;;  %vm1880_vm0 = vcmp.gt.f32.partialorder %v20038_v17, 400.0  ;;  %v2261_v43 = vadd.f32 %v2260_v44, %v2069_v5  ;;  %v20043_v44 = vld [vmem:[#allocation292_spill] sm:$0xff] }
 0x4a5   :  { %v2455_v29 = vadd.f32 %v8447_v56, %v2454_v10  ;;  %v15677_v21 = vsel %vm6609_vm14, 1065353216, %v6623_v45  ;;  %vm6711_vm10 = vcmp.lt.f32.partialorder %v19970_v41, 0  ;;  %8241 = vpow2.f32 %v6735_v24  ;;  %v8448_v24 = vld [vmem:[#allocation7 + $0x2a8] sm:$0xff] }
 0x4a6   :  { %v1689_v22 = vmul.f32 219.71211, %v13559_v4  ;;  %v2071_v14 = vsel %vm1879_vm15, %v1687_v16, %v20036_v33  ;;  %v6649_v9 = vsel %vm6646_vm8, 2143289344, %v6645_v34  ;;  %v20039_v6 = vand.u32 2147483647, %v19962_v20  ;;  %v8236_v4 = vpop.eup %8235  ;;  %v20044_v34 = vld [vmem:[#allocation62_spill] sm:$0xff] }
 0x4a7   :  { %vm1881_vm14 = vcmp.gt.f32.partialorder %v20042_v58, 400.0  ;;  %v2262_v5 = vadd.f32 %v2261_v43, %v2070_v7  ;;  %v2456_v45 = vadd.f32 %v8448_v24, %v2455_v29  ;;  %vm6661_vm3 = vcmp.eq.f32.partialorder %v19947_v62, 1065353216  ;;  %v8449_v43 = vld [vmem:[#allocation7 + $0x2b0] sm:$0xff]  ;;  %v20062_v62 = vld [vmem:[#allocation297_spill] sm:$0xff] }
 0x4a8   :  { %vm15689_vm11 = vcmp.eq.f32.partialorder %v20039_v6, 2139095040  ;;  %v6666_v16 = vsel %vm6660_vm6, 0, %v6665_v35  ;;  %v6761_v33 = vmul.f32 0.1, %v15616_v50  ;;  %v1690_v23 = vmul.f32 219.71211, %v20043_v44 }
 0x4a9   :  { %v2072_v10 = vsel %vm1880_vm0, %v1688_v32, %v20038_v17  ;;  %vm6712_vm8 = vcmp.eq.f32.partialorder %v19970_v41, 0  ;;  %8243 = vlog2.f32 %v17634_v15  ;;  %vm1882_vm4 = vcmp.gt.f32.partialorder %v20044_v34, 400.0  ;;  %v20045_v50 = vld [vmem:[#allocation357_spill] sm:$0xff]  ;;  %v20051_v15 = vld [vmem:[#allocation294_spill] sm:$0xff] }
 0x4aa   :  { %v2263_v7 = vadd.f32 %v2262_v5, %v2071_v14  ;;  %v2457_v56 = vadd.f32 %v8449_v43, %v2456_v45  ;;  %v15708_v35 = vsel %vm6635_vm1, 1065353216, %v6649_v9  ;;  %vm6698_vm6 = vcmp.ne.f32.partialorder %v19962_v20, %v19962_v20  ;;  %v20046_v32 = vld [vmem:[#allocation293_spill] sm:$0xff]  ;;  %v20047_v5 = vld [vmem:[#allocation64_spill] sm:$0xff] }
 0x4ab   :  { %v17637_v29 = vand.u32 2147483647, %v20045_v50  ;;  %v1691_v17 = vmul.f32 219.71211, %v20046_v32  ;;  %v2073_v6 = vsel %vm1881_vm14, %v1689_v22, %v20042_v58  ;;  %v6671_v14 = vsel %vm15639_vm7, 2139095040, %v6666_v16  ;;  %v8238_v58 = vpop.eup %8237  ;;  %v20052_v16 = vld [vmem:[#allocation65_spill] sm:$0xff] }
 0x4ac   :  { %vm1883_vm12 = vcmp.gt.f32.partialorder %v20047_v5, 400.0  ;;  %v2264_v24 = vadd.f32 %v2263_v7, %v2072_v10  ;;  %v2458_v9 = vadd.f32 %v8450_v60, %v2457_v56  ;;  %v6691_v45 = vsel %vm6685_vm13, 2143289344, %v8234_v25  ;;  %v8451_v10 = vld [vmem:[#allocation7 + $0x2c0] sm:$0xff] }
 0x4ad   :  { %v20048_v44 = vand.u32 2147483647, %v19970_v41  ;;  %v6787_v32 = vmul.f32 0.1, %v8232_v48  ;;  %v1692_v22 = vmul.f32 219.71211, %v20051_v15  ;;  %v2074_v18 = vsel %vm1882_vm4, %v1690_v23, %v20044_v34 }
 0x4ae   :  { %vm6687_vm7 = vcmp.eq.f32.partialorder %v19962_v20, 1065353216  ;;  %8245 = vpow2.f32 %v6761_v33  ;;  %vm1884_vm2 = vcmp.gt.f32.partialorder %v20052_v16, 400.0  ;;  %v2265_v25 = vadd.f32 %v2264_v24, %v2073_v6  ;;  %v20053_v48 = vld [vmem:[#allocation295_spill] sm:$0xff]  ;;  %v8452_v24 = vld [vmem:[#allocation7 + $0x2c8] sm:$0xff] }
 0x4af   :  { %vm15724_vm1 = vcmp.eq.f32.partialorder %v20048_v44, 2139095040  ;;  %v2459_v7 = vadd.f32 %v8451_v10, %v2458_v9  ;;  %v6675_v56 = vsel %vm6672_vm5, 2143289344, %v6671_v14  ;;  %vm6737_vm13 = vcmp.lt.f32.partialorder %v19982_v37, 0  ;;  %v8240_v23 = vpop.eup %8239  ;;  %v20054_v6 = vld [vmem:[#allocation67_spill] sm:$0xff]  ;;  %v20055_v9 = vld [vmem:[#allocation358_spill] sm:$0xff] }
 0x4b0   :  { %8247 = vlog2.f32 %v17637_v29  ;;  %v1693_v15 = vmul.f32 219.71211, %v20053_v48  ;;  %v2075_v33 = vsel %vm1883_vm12, %v1691_v17, %v20047_v5  ;;  %v6692_v34 = vsel %vm6686_vm9, 0, %v6691_v45  ;;  %v20056_v45 = vld [vmem:[#allocation68_spill] sm:$0xff] }
 0x4b1   :  { %vm6724_vm15 = vcmp.ne.f32.partialorder %v19970_v41, %v19970_v41  ;;  %vm1885_vm5 = vcmp.gt.f32.partialorder %v20054_v6, 400.0  ;;  %v2266_v14 = vadd.f32 %v2265_v25, %v2074_v18  ;;  %v2460_v60 = vadd.f32 %v8452_v24, %v2459_v7  ;;  %v8453_v18 = vld [vmem:[#allocation7 + $0x2d0] sm:$0xff]  ;;  %v20057_v7 = vld [vmem:[#allocation296_spill] sm:$0xff] }
 0x4b2   :  { %8249 = vpow2.f32 %v6787_v32  ;;  %v17636_v44 = vand.u32 2147483647, %v20055_v9  ;;  %v1694_v10 = vmul.f32 219.71211, %v13673_v61  ;;  %v2076_v17 = vsel %vm1884_vm2, %v1692_v22, %v20052_v16 }
 0x4b3   :  { %v6717_v5 = vsel %vm6711_vm10, 2143289344, %v8238_v58  ;;  %vm6738_vm9 = vcmp.eq.f32.partialorder %v19982_v37, 0  ;;  %vm1886_vm0 = vcmp.gt.f32.partialorder %v20056_v45, 400.0  ;;  %v2267_v48 = vadd.f32 %v2266_v14, %v2075_v33  ;;  %v8242_v58 = vpop.eup %8241  ;;  %v20058_v33 = vld [vmem:[#allocation70_spill] sm:$0xff] }
 0x4b4   :  { %v2461_v25 = vadd.f32 %v8453_v18, %v2460_v60  ;;  %v6697_v32 = vsel %vm15689_vm11, 2139095040, %v6692_v34  ;;  %vm6713_vm14 = vcmp.eq.f32.partialorder %v19970_v41, 1065353216  ;;  %v6813_v61 = vmul.f32 0.1, %v8236_v4  ;;  %v8454_v34 = vld [vmem:[#allocation7 + $0x2d8] sm:$0xff] }
 0x4b5   :  { %v1695_v24 = vmul.f32 219.71211, %v20057_v7  ;;  %v2077_v22 = vsel %vm1885_vm5, %v1693_v15, %v20054_v6  ;;  %v15767_v16 = vsel %vm6661_vm3, 1065353216, %v6675_v56  ;;  %vm6763_vm10 = vcmp.lt.f32.partialorder %v19994_v46, 0 }
 0x4b6   :  { %vm1887_vm4 = vcmp.gt.f32.partialorder %v20058_v33, 400.0  ;;  %v2268_v49 = vadd.f32 %v2267_v48, %v2076_v17  ;;  %v2462_v14 = vadd.f32 %v8454_v34, %v2461_v25  ;;  %v6718_v4 = vsel %vm6712_vm8, 0, %v6717_v5  ;;  %v20063_v17 = vld [vmem:[#allocation71_spill] sm:$0xff]  ;;  %v8455_v48 = vld [vmem:[#allocation7 + $0x2e0] sm:$0xff]  ;;  %v8244_v7 = vpop.eup %8243 }
 0x4b7   :  { %v20059_v60 = vand.u32 2147483647, %v19982_v37  ;;  %8251 = vlog2.f32 %v17636_v44  ;;  %v1696_v56 = vmul.f32 219.71211, %v20062_v62  ;;  %v2078_v15 = vsel %vm1886_vm0, %v1694_v10, %v20056_v45  ;;  %v20064_v34 = vld [vmem:[#allocation359_spill] sm:$0xff] }
 0x4b8   :  { %v6701_v6 = vsel %vm6698_vm6, 2143289344, %v6697_v32  ;;  %vm1888_vm3 = vcmp.gt.f32.partialorder %v20063_v17, 400.0  ;;  %v2269_v5 = vadd.f32 %v2268_v49, %v2077_v22  ;;  %v2463_v25 = vadd.f32 %v8455_v48, %v2462_v14  ;;  %v20065_v32 = vld [vmem:[#allocation73_spill] sm:$0xff] }
 0x4b9   :  { %vm15775_vm11 = vcmp.eq.f32.partialorder %v20059_v60, 2139095040  ;;  %vm6764_vm8 = vcmp.eq.f32.partialorder %v19994_v46, 0  ;;  %8253 = vpow2.f32 %v6813_v61  ;;  %v17635_v60 = vand.u32 2147483647, %v20064_v34  ;;  %v8456_v61 = vld [vmem:[#allocation7 + $0x2e8] sm:$0xff] }
 0x4ba   :  { %v1697_v62 = vmul.f32 219.71211, %v13773_v53  ;;  %v2079_v10 = vsel %vm1887_vm4, %v1695_v24, %v20058_v33  ;;  %v6723_v45 = vsel %vm15724_vm1, 2139095040, %v6718_v4  ;;  %vm6750_vm6 = vcmp.ne.f32.partialorder %v19982_v37, %v19982_v37 }
 0x4bb   :  { %vm6789_vm12 = vcmp.lt.f32.partialorder %v20003_v63, 0  ;;  %vm1889_vm2 = vcmp.gt.f32.partialorder %v20065_v32, 400.0  ;;  %v2270_v22 = vadd.f32 %v2269_v5, %v2078_v15  ;;  %v2464_v49 = vadd.f32 %v8456_v61, %v2463_v25  ;;  %v20069_v5 = vld [vmem:[#allocation74_spill] sm:$0xff]  ;;  %v8246_v48 = vpop.eup %8245  ;;  %v20072_v61 = vld [vmem:[#allocation76_spill] sm:$0xff]  ;;  %v20089_v15 = vld [vmem:[#allocation83_spill] sm:$0xff] }
 0x4bc   :  { %v15803_v53 = vsel %vm6687_vm7, 1065353216, %v6701_v6  ;;  %v6839_v14 = vmul.f32 0.1, %v8240_v23  ;;  %v1698_v24 = vmul.f32 219.71211, %v13788_v54  ;;  %v2080_v43 = vsel %vm1888_vm3, %v1696_v56, %v20063_v17  ;;  %v8457_v6 = vld [vmem:[#allocation7 + $0x2f0] sm:$0xff] }
 0x4bd   :  { %v6743_v33 = vsel %vm6737_vm13, 2143289344, %v8242_v58  ;;  %v20066_v4 = vand.u32 2147483647, %v19994_v46  ;;  %vm1890_vm5 = vcmp.gt.f32.partialorder %v20069_v5, 400.0  ;;  %v2271_v20 = vadd.f32 %v2270_v22, %v2079_v10  ;;  %v20070_v58 = vld [vmem:[#allocation298_spill] sm:$0xff]  ;;  %v8248_v25 = vpop.eup %8247  ;;  %v20071_v10 = vld [vmem:[#allocation215_spill] sm:$0xff] }
 0x4be   :  { %v2465_v23 = vadd.f32 %v8457_v6, %v2464_v49  ;;  %v6727_v54 = vsel %vm6724_vm15, 2143289344, %v6723_v45  ;;  %vm6790_vm7 = vcmp.eq.f32.partialorder %v20003_v63, 0  ;;  %8255 = vlog2.f32 %v17635_v60  ;;  %v8458_v45 = vld [vmem:[#allocation7 + $0x2f8] sm:$0xff] }
 0x4bf   :  { %vm15813_vm1 = vcmp.eq.f32.partialorder %v20066_v4, 2139095040  ;;  %v1699_v56 = vmul.f32 219.71211, %v20070_v58  ;;  %v2081_v17 = vsel %vm1889_vm2, %v1697_v62, %v20065_v32  ;;  %vm6739_vm13 = vcmp.eq.f32.partialorder %v19982_v37, 1065353216  ;;  %v20073_v58 = vld [vmem:[#allocation299_spill] sm:$0xff]  ;;  %v8250_v32 = vpop.eup %8249 }
 0x4c0   :  { %v17638_v22 = vand.u32 2147483647, %v20071_v10  ;;  %vm1891_vm0 = vcmp.gt.f32.partialorder %v20072_v61, 400.0  ;;  %v2272_v49 = vadd.f32 %v2271_v20, %v2080_v43  ;;  %v2466_v4 = vadd.f32 %v8458_v45, %v2465_v23  ;;  %v8459_v23 = vld [vmem:[#allocation7 + $0x300] sm:$0xff] }
 0x4c1   :  { %v6744_v6 = vsel %vm6738_vm9, 0, %v6743_v33  ;;  %vm6776_vm15 = vcmp.ne.f32.partialorder %v19994_v46, %v19994_v46  ;;  %8257 = vpow2.f32 %v6839_v14  ;;  %v1700_v60 = vmul.f32 219.71211, %v20073_v58  ;;  %v20077_v33 = vld [vmem:[#allocation77_spill] sm:$0xff] }
 0x4c2   :  { %v2082_v62 = vsel %vm1890_vm5, %v1698_v24, %v20069_v5  ;;  %v15841_v44 = vsel %vm6713_vm14, 1065353216, %v6727_v54  ;;  %v20074_v43 = vand.u32 2147483647, %v20003_v63  ;;  %vm1892_vm9 = vcmp.gt.f32.partialorder %v20077_v33, 400.0  ;;  %v20078_v5 = vld [vmem:[#allocation300_spill] sm:$0xff] }
 0x4c3   :  { %v2273_v14 = vadd.f32 %v2272_v49, %v2081_v17  ;;  %v2467_v45 = vadd.f32 %v8459_v23, %v2466_v4  ;;  %v6769_v58 = vsel %vm6763_vm10, 2143289344, %v8246_v48  ;;  %v6865_v24 = vmul.f32 0.1, %v8244_v7  ;;  %v20079_v17 = vld [vmem:[#allocation79_spill] sm:$0xff]  ;;  %v8460_v4 = vld [vmem:[#allocation7 + $0x308] sm:$0xff]  ;;  %v20080_v7 = vld [vmem:[#allocation360_spill] sm:$0xff] }
 0x4c4   :  { %vm15845_vm4 = vcmp.eq.f32.partialorder %v20074_v43, 2139095040  ;;  %v1701_v29 = vmul.f32 219.71211, %v20078_v5  ;;  %v2083_v41 = vsel %vm1891_vm0, %v1699_v56, %v20072_v61  ;;  %v6749_v54 = vsel %vm15775_vm11, 2139095040, %v6744_v6  ;;  %v20081_v56 = vld [vmem:[#allocation301_spill] sm:$0xff]  ;;  %v8252_v6 = vpop.eup %8251 }
 0x4c5   :  { %vm6765_vm14 = vcmp.eq.f32.partialorder %v19994_v46, 1065353216  ;;  %vm6815_vm3 = vcmp.lt.f32.partialorder %v20014_v13, 0  ;;  %vm1893_vm2 = vcmp.gt.f32.partialorder %v20079_v17, 400.0  ;;  %v2274_v49 = vadd.f32 %v2273_v14, %v2082_v62  ;;  %v20082_v14 = vld [vmem:[#allocation80_spill] sm:$0xff] }
 0x4c6   :  { %v2468_v43 = vadd.f32 %v8460_v4, %v2467_v45  ;;  %vm6802_vm10 = vcmp.ne.f32.partialorder %v20003_v63, %v20003_v63  ;;  %8259 = vlog2.f32 %v17638_v22  ;;  %v1702_v18 = vmul.f32 219.71211, %v20081_v56  ;;  %v8461_v45 = vld [vmem:[#allocation7 + $0x310] sm:$0xff]  ;;  %v20083_v22 = vld [vmem:[#allocation302_spill] sm:$0xff] }
 0x4c7   :  { %v2084_v61 = vsel %vm1892_vm9, %v1700_v60, %v20077_v33  ;;  %v6770_v62 = vsel %vm6764_vm8, 0, %v6769_v58  ;;  %vm1894_vm11 = vcmp.gt.f32.partialorder %v20082_v14, 400.0  ;;  %v2275_v23 = vadd.f32 %v2274_v49, %v2083_v41  ;;  %v8254_v58 = vpop.eup %8253  ;;  %v20084_v41 = vld [vmem:[#allocation82_spill] sm:$0xff] }
 0x4c8   :  { %v2469_v5 = vadd.f32 %v8461_v45, %v2468_v43  ;;  %v6753_v4 = vsel %vm6750_vm6, 2143289344, %v6749_v54  ;;  %v6795_v56 = vsel %vm6789_vm12, 2143289344, %v8250_v32  ;;  %vm6816_vm5 = vcmp.eq.f32.partialorder %v20014_v13, 0  ;;  %v8462_v43 = vld [vmem:[#allocation7 + $0x318] sm:$0xff] }
 0x4c9   :  { %v1703_v60 = vmul.f32 219.71211, %v20083_v22  ;;  %v2085_v33 = vsel %vm1893_vm2, %v1701_v29, %v20079_v17  ;;  %vm6791_vm8 = vcmp.eq.f32.partialorder %v20003_v63, 1065353216  ;;  %8261 = vpow2.f32 %v6865_v24  ;;  %v20085_v22 = vld [vmem:[#allocation303_spill] sm:$0xff] }
 0x4ca   :  { %vm1895_vm0 = vcmp.gt.f32.partialorder %v20084_v41, 400.0  ;;  %v2276_v49 = vadd.f32 %v2275_v23, %v2084_v61  ;;  %v2470_v54 = vadd.f32 %v8462_v43, %v2469_v5  ;;  %v6775_v32 = vsel %vm15813_vm1, 2139095040, %v6770_v62  ;;  %v8463_v23 = vld [vmem:[#allocation7 + $0x320] sm:$0xff] }
 0x4cb   :  { %vm6841_vm6 = vcmp.lt.f32.partialorder %v20027_v38, 0  ;;  %v6891_v45 = vmul.f32 0.1, %v8248_v25  ;;  %v1704_v48 = vmul.f32 219.71211, %v20085_v22  ;;  %v2086_v29 = vsel %vm1894_vm11, %v1702_v18, %v20082_v14  ;;  %v20092_v14 = vld [vmem:[#allocation304_spill] sm:$0xff]  ;;  %v8256_v22 = vpop.eup %8255 }
 0x4cc   :  { %v6796_v24 = vsel %vm6790_vm7, 0, %v6795_v56  ;;  %v20086_v17 = vand.u32 2147483647, %v20014_v13  ;;  %vm1896_vm1 = vcmp.gt.f32.partialorder %v20089_v15, 400.0  ;;  %v2277_v62 = vadd.f32 %v2276_v49, %v2085_v33  ;;  %v20093_v49 = vld [vmem:[#allocation85_spill] sm:$0xff] }
 0x4cd   :  { %v2471_v25 = vadd.f32 %v8463_v23, %v2470_v54  ;;  %v15903_v5 = vsel %vm6739_vm13, 1065353216, %v6753_v4  ;;  %v20091_v18 = vand.u32 2147483647, %v20080_v7  ;;  %v1705_v56 = vmul.f32 219.71211, %v20092_v14  ;;  %v8464_v4 = vld [vmem:[#allocation7 + $0x328] sm:$0xff] }
 0x4ce   :  { %vm15896_vm12 = vcmp.eq.f32.partialorder %v20086_v17, 2139095040  ;;  %20090 = vst [vmem:[#allocation330_spill] sm:$0xff] %v15903_v5  ;;  %v2087_v43 = vsel %vm1895_vm0, %v1703_v60, %v20084_v41  ;;  %v6779_v33 = vsel %vm6776_vm15, 2143289344, %v6775_v32  ;;  %vm6842_vm7 = vcmp.eq.f32.partialorder %v20027_v38, 0  ;;  %v20094_v23 = vld [vmem:[#allocation216_spill] sm:$0xff]  ;;  %v20095_v41 = vld [vmem:[#allocation305_spill] sm:$0xff]  ;;  %v8258_v14 = vpop.eup %8257 }
 0x4cf   :  { %8263 = vlog2.f32 %v20091_v18  ;;  %vm1897_vm9 = vcmp.gt.f32.partialorder %v20093_v49, 400.0  ;;  %v2278_v37 = vadd.f32 %v2277_v62, %v2086_v29  ;;  %v2472_v54 = vadd.f32 %v8464_v4, %v2471_v25  ;;  %v20096_v5 = vld [vmem:[#allocation86_spill] sm:$0xff]  ;;  %v8465_v62 = vld [vmem:[#allocation7 + $0x330] sm:$0xff] }
 0x4d0   :  { %v6801_v17 = vsel %vm15845_vm4, 2139095040, %v6796_v24  ;;  %vm6828_vm13 = vcmp.ne.f32.partialorder %v20014_v13, %v20014_v13  ;;  %v17639_v60 = vand.u32 2147483647, %v20094_v23  ;;  %v1706_v18 = vmul.f32 219.71211, %v20095_v41 }
 0x4d1   :  { %v2088_v32 = vsel %vm1896_vm1, %v1704_v48, %v20089_v15  ;;  %8265 = vpow2.f32 %v6891_v45  ;;  %vm1898_vm15 = vcmp.gt.f32.partialorder %v20096_v5, 400.0  ;;  %v2279_v29 = vadd.f32 %v2278_v37, %v2087_v43  ;;  %v20100_v15 = vld [vmem:[#allocation88_spill] sm:$0xff] }
 0x4d2   :  { %v2473_v25 = vadd.f32 %v8465_v62, %v2472_v54  ;;  %v15928_v20 = vsel %vm6765_vm14, 1065353216, %v6779_v33  ;;  %v6821_v24 = vsel %vm6815_vm3, 2143289344, %v8254_v58  ;;  %v20097_v4 = vand.u32 2147483647, %v20027_v38  ;;  %v8466_v43 = vld [vmem:[#allocation7 + $0x338] sm:$0xff] }
 0x4d3   :  { %v1707_v48 = vmul.f32 219.71211, %v14060_v2  ;;  %v2089_v45 = vsel %vm1897_vm9, %v1705_v56, %v20093_v49  ;;  %v6805_v46 = vsel %vm6802_vm10, 2143289344, %v6801_v17  ;;  %vm6867_vm14 = vcmp.lt.f32.partialorder %v20037_v47, 0  ;;  %v20101_v2 = vld [vmem:[#allocation306_spill] sm:$0xff]  ;;  %v8260_v49 = vpop.eup %8259 }
 0x4d4   :  { %vm15934_vm4 = vcmp.eq.f32.partialorder %v20097_v4, 2139095040  ;;  %vm1899_vm3 = vcmp.gt.f32.partialorder %v20100_v15, 400.0  ;;  %v2280_v58 = vadd.f32 %v2279_v29, %v2088_v32  ;;  %v2474_v33 = vadd.f32 %v8466_v43, %v2473_v25  ;;  %v20102_v32 = vld [vmem:[#allocation89_spill] sm:$0xff] }
 0x4d5   :  { %vm6817_vm2 = vcmp.eq.f32.partialorder %v20014_v13, 1065353216  ;;  %v6917_v37 = vmul.f32 0.1, %v8252_v6  ;;  %8267 = vlog2.f32 %v17639_v60  ;;  %v1708_v54 = vmul.f32 219.71211, %v20101_v2  ;;  %v8467_v6 = vld [vmem:[#allocation7 + $0x340] sm:$0xff] }
 0x4d6   :  { %v2090_v56 = vsel %vm1898_vm15, %v1706_v18, %v20096_v5  ;;  %v6822_v17 = vsel %vm6816_vm5, 0, %v6821_v24  ;;  %vm6854_vm10 = vcmp.ne.f32.partialorder %v20027_v38, %v20027_v38  ;;  %vm1900_vm11 = vcmp.gt.f32.partialorder %v20102_v32, 400.0  ;;  %v20103_v4 = vld [vmem:[#allocation361_spill] sm:$0xff]  ;;  %v20104_v18 = vld [vmem:[#allocation307_spill] sm:$0xff] }
 0x4d7   :  { %v2281_v29 = vadd.f32 %v2280_v58, %v2089_v45  ;;  %v2475_v62 = vadd.f32 %v8467_v6, %v2474_v33  ;;  %v15961_v25 = vsel %vm6791_vm8, 1065353216, %v6805_v46  ;;  %vm6868_vm0 = vcmp.eq.f32.partialorder %v20037_v47, 0  ;;  %v20105_v45 = vld [vmem:[#allocation90_spill] sm:$0xff]  ;;  %v8262_v46 = vpop.eup %8261 }
 0x4d8   :  { %v1709_v43 = vmul.f32 219.71211, %v20104_v18  ;;  %v2091_v24 = vsel %vm1899_vm3, %v1707_v48, %v20100_v15  ;;  %v6847_v2 = vsel %vm6841_vm6, 2143289344, %v8258_v14  ;;  %vm1901_vm5 = vcmp.gt.f32.partialorder %v20105_v45, 400.0  ;;  %v8468_v33 = vld [vmem:[#allocation7 + $0x348] sm:$0xff]  ;;  %v20106_v18 = vld [vmem:[#allocation308_spill] sm:$0xff] }
 0x4d9   :  { %v2282_v58 = vadd.f32 %v2281_v29, %v2090_v56  ;;  %v2476_v63 = vadd.f32 %v8468_v33, %v2475_v62  ;;  %v6827_v6 = vsel %vm15896_vm12, 2139095040, %v6822_v17  ;;  %vm6893_vm8 = vcmp.lt.f32.partialorder %v20045_v50, 0  ;;  %v20110_v56 = vld [vmem:[#allocation92_spill] sm:$0xff]  ;;  %v8469_v17 = vld [vmem:[#allocation7 + $0x350] sm:$0xff]  ;;  %v20130_v15 = vld [vmem:[#allocation98_spill] sm:$0xff] }
 0x4da   :  { %v6943_v60 = vmul.f32 0.1, %v8256_v22  ;;  %v1710_v5 = vmul.f32 219.71211, %v20106_v18  ;;  %v2092_v48 = vsel %vm1900_vm11, %v1708_v54, %v20102_v32  ;;  %v20107_v14 = vand.u32 2147483647, %v20037_v47 }
 0x4db   :  { %8269 = vpow2.f32 %v6917_v37  ;;  %vm1902_vm1 = vcmp.gt.f32.partialorder %v20110_v56, 400.0  ;;  %v2283_v61 = vadd.f32 %v2282_v58, %v2091_v24  ;;  %v2477_v29 = vadd.f32 %v8469_v17, %v2476_v63  ;;  %v20112_v54 = vld [vmem:[#allocation309_spill] sm:$0xff] }
 0x4dc   :  { %vm15981_vm6 = vcmp.eq.f32.partialorder %v20107_v14, 2139095040  ;;  %vm6843_vm12 = vcmp.eq.f32.partialorder %v20027_v38, 1065353216  ;;  %v6848_v22 = vsel %vm6842_vm7, 0, %v6847_v2  ;;  %v20111_v62 = vand.u32 2147483647, %v20103_v4  ;;  %v8264_v37 = vpop.eup %8263  ;;  %v20113_v58 = vld [vmem:[#allocation93_spill] sm:$0xff] }
 0x4dd   :  { %v1711_v32 = vmul.f32 219.71211, %v20112_v54  ;;  %v2093_v33 = vsel %vm1901_vm5, %v1709_v43, %v20105_v45  ;;  %v6831_v24 = vsel %vm6828_vm13, 2143289344, %v6827_v6  ;;  %vm6894_vm9 = vcmp.eq.f32.partialorder %v20045_v50, 0  ;;  %v8470_v2 = vld [vmem:[#allocation7 + $0x358] sm:$0xff]  ;;  %v20114_v14 = vld [vmem:[#allocation217_spill] sm:$0xff] }
 0x4de   :  { %8271 = vlog2.f32 %v20111_v62  ;;  %vm1903_vm15 = vcmp.gt.f32.partialorder %v20113_v58, 400.0  ;;  %v2284_v63 = vadd.f32 %v2283_v61, %v2092_v48  ;;  %v2478_v18 = vadd.f32 %v8470_v2, %v2477_v29  ;;  %v20115_v62 = vld [vmem:[#allocation94_spill] sm:$0xff]  ;;  %v8471_v61 = vld [vmem:[#allocation7 + $0x360] sm:$0xff]  ;;  %v8266_v54 = vpop.eup %8265 }
 0x4df   :  { %vm6880_vm7 = vcmp.ne.f32.partialorder %v20037_v47, %v20037_v47  ;;  %8273 = vpow2.f32 %v6943_v60  ;;  %v1712_v43 = vmul.f32 219.71211, %v14181_v26  ;;  %v2094_v45 = vsel %vm1902_vm1, %v1710_v5, %v20110_v56  ;;  %v20119_v5 = vld [vmem:[#allocation310_spill] sm:$0xff] }
 0x4e0   :  { %v6853_v6 = vsel %vm15934_vm4, 2139095040, %v6848_v22  ;;  %vm1904_vm13 = vcmp.gt.f32.partialorder %v20115_v62, 400.0  ;;  %v2285_v48 = vadd.f32 %v2284_v63, %v2093_v33  ;;  %v2479_v29 = vadd.f32 %v8471_v61, %v2478_v18  ;;  %v8472_v63 = vld [vmem:[#allocation7 + $0x368] sm:$0xff] }
 0x4e1   :  { %v6873_v60 = vsel %vm6867_vm14, 2143289344, %v8262_v46  ;;  %v20116_v2 = vand.u32 2147483647, %v20045_v50  ;;  %v6969_v17 = vmul.f32 0.1, %v8260_v49  ;;  %v2095_v41 = vsel %vm1903_vm15, %v1711_v32, %v20113_v58  ;;  %v20120_v46 = vld [vmem:[#allocation95_spill] sm:$0xff] }
 0x4e2   :  { %v1713_v56 = vmul.f32 219.71211, %v20119_v5  ;;  %v16024_v22 = vsel %vm6817_vm2, 1065353216, %v6831_v24  ;;  %vm6869_vm4 = vcmp.eq.f32.partialorder %v20037_v47, 1065353216  ;;  %vm6919_vm14 = vcmp.lt.f32.partialorder %v20055_v9, 0  ;;  %v20122_v32 = vld [vmem:[#allocation311_spill] sm:$0xff]  ;;  %v8268_v58 = vpop.eup %8267 }
 0x4e3   :  { %vm16014_vm3 = vcmp.eq.f32.partialorder %v20116_v2, 2139095040  ;;  %vm1905_vm11 = vcmp.gt.f32.partialorder %v20120_v46, 400.0  ;;  %v2286_v33 = vadd.f32 %v2285_v48, %v2094_v45  ;;  %v2480_v18 = vadd.f32 %v8472_v63, %v2479_v29  ;;  %v20123_v45 = vld [vmem:[#allocation96_spill] sm:$0xff]  ;;  %v20124_v5 = vld [vmem:[#allocation362_spill] sm:$0xff] }
 0x4e4   :  { %v6857_v49 = vsel %vm6854_vm10, 2143289344, %v6853_v6  ;;  %v20121_v61 = vand.u32 2147483647, %v20114_v14  ;;  %v1714_v13 = vmul.f32 219.71211, %v20122_v32  ;;  %v2096_v24 = vsel %vm1904_vm13, %v1712_v43, %v20115_v62  ;;  %v8473_v6 = vld [vmem:[#allocation7 + $0x370] sm:$0xff] }
 0x4e5   :  { %v6874_v2 = vsel %vm6868_vm0, 0, %v6873_v60  ;;  %vm6906_vm2 = vcmp.ne.f32.partialorder %v20045_v50, %v20045_v50  ;;  %vm1906_vm5 = vcmp.gt.f32.partialorder %v20123_v45, 400.0  ;;  %v2287_v48 = vadd.f32 %v2286_v33, %v2095_v41  ;;  %v20125_v60 = vld [vmem:[#allocation97_spill] sm:$0xff]  ;;  %v8474_v33 = vld [vmem:[#allocation7 + $0x378] sm:$0xff] }
 0x4e6   :  { %8275 = vlog2.f32 %v20121_v61  ;;  %v2481_v29 = vadd.f32 %v8473_v6, %v2480_v18  ;;  %vm6920_vm10 = vcmp.eq.f32.partialorder %v20055_v9, 0  ;;  %v7097_v63 = vand.u32 2147483647, %v20124_v5  ;;  %v20126_v6 = vld [vmem:[#allocation312_spill] sm:$0xff] }
 0x4e7   :  { %8277 = vpow2.f32 %v6969_v17  ;;  %v1715_v61 = vmul.f32 219.71211, %v14222_v59  ;;  %v2097_v43 = vsel %vm1905_vm11, %v1713_v56, %v20120_v46  ;;  %v6899_v62 = vsel %vm6893_vm8, 2143289344, %v8266_v54  ;;  %v8478_v47 = vld [vmem:[#allocation7 + $0x398] sm:$0xff] }
 0x4e8   :  { %vm6945_vm0 = vcmp.lt.f32.partialorder %v20064_v34, 0  ;;  %vm1907_vm1 = vcmp.gt.f32.partialorder %v20125_v60, 400.0  ;;  %v2288_v41 = vadd.f32 %v2287_v48, %v2096_v24  ;;  %v2482_v18 = vadd.f32 %v8474_v33, %v2481_v29  ;;  %v8270_v29 = vpop.eup %8269  ;;  %v8476_v33 = vld [vmem:[#allocation7 + $0x388] sm:$0xff] }
 0x4e9   :  { %v6879_v17 = vsel %vm15981_vm6, 2139095040, %v6874_v2  ;;  %v6995_v32 = vmul.f32 0.1, %v8264_v37  ;;  %v1716_v59 = vmul.f32 219.71211, %v20126_v6  ;;  %v2098_v56 = vsel %vm1906_vm5, %v1714_v13, %v20123_v45  ;;  %v8475_v2 = vld [vmem:[#allocation7 + $0x380] sm:$0xff] }
 0x4ea   :  { %v16061_v54 = vsel %vm6843_vm12, 1065353216, %v6857_v49  ;;  %vm6895_vm8 = vcmp.eq.f32.partialorder %v20045_v50, 1065353216  ;;  %v20127_v46 = vand.u32 2147483647, %v20055_v9  ;;  %vm1908_vm6 = vcmp.gt.f32.partialorder %v20130_v15, 400.0 }
 0x4eb   :  { %v2289_v37 = vadd.f32 %v2288_v41, %v2097_v43  ;;  %v2483_v48 = vadd.f32 %v8475_v2, %v2482_v18  ;;  %v6900_v13 = vsel %vm6894_vm9, 0, %v6899_v62  ;;  %vm6946_vm12 = vcmp.eq.f32.partialorder %v20064_v34, 0  ;;  %v16080_v45 = vpop.eup %8271  ;;  %v20131_v41 = vld [vmem:[#allocation99_spill] sm:$0xff]  ;;  %v20136_v2 = vld [vmem:[#allocation101_spill] sm:$0xff] }
 0x4ec   :  { %vm16066_vm15 = vcmp.eq.f32.partialorder %v20127_v46, 2139095040  ;;  %8279 = vlog2.f32 %v7097_v63  ;;  %v1717_v38 = vmul.f32 219.71211, %v14301_v31  ;;  %v2099_v49 = vsel %vm1907_vm1, %v1715_v61, %v20125_v60  ;;  %v20132_v31 = vld [vmem:[#allocation218_spill] sm:$0xff]  ;;  %v8274_v60 = vpop.eup %8273 }
 0x4ed   :  { %v6883_v43 = vsel %vm6880_vm7, 2143289344, %v6879_v17  ;;  %vm1909_vm13 = vcmp.gt.f32.partialorder %v20131_v41, 400.0  ;;  %v2290_v62 = vadd.f32 %v2289_v37, %v2098_v56  ;;  %v2484_v18 = vadd.f32 %v8476_v33, %v2483_v48  ;;  %v8477_v48 = vld [vmem:[#allocation7 + $0x390] sm:$0xff] }
 0x4ee   :  { %vm6932_vm9 = vcmp.ne.f32.partialorder %v20055_v9, %v20055_v9  ;;  %8281 = vpow2.f32 %v6995_v32  ;;  %v7123_v6 = vand.u32 2147483647, %v20132_v31  ;;  %v1718_v46 = vmul.f32 219.71211, %v14339_v40 }
 0x4ef   :  { %v2100_v61 = vsel %vm1908_vm6, %v1716_v59, %v20130_v15  ;;  %v6905_v17 = vsel %vm16014_vm3, 2139095040, %v6900_v13  ;;  %v20133_v56 = vand.u32 2147483647, %v20064_v34  ;;  %vm1910_vm11 = vcmp.gt.f32.partialorder %v20136_v2, 400.0 }
 0x4f0   :  { %v2291_v32 = vadd.f32 %v2290_v62, %v2099_v49  ;;  %v2485_v33 = vadd.f32 %v8477_v48, %v2484_v18  ;;  %v16104_v40 = vsel %vm6869_vm4, 1065353216, %v6883_v43  ;;  %v6925_v59 = vsel %vm6919_vm14, 2143289344, %v8270_v29  ;;  %v20137_v49 = vld [vmem:[#allocation102_spill] sm:$0xff]  ;;  %v20138_v18 = vld [vmem:[#allocation103_spill] sm:$0xff] }
 0x4f1   :  { %vm16097_vm7 = vcmp.eq.f32.partialorder %v20133_v56, 2139095040  ;;  %vm6971_vm3 = vcmp.lt.f32.partialorder %v20071_v10, 0  ;;  %v1719_v26 = vmul.f32 219.71211, %v14372_v30  ;;  %v2101_v15 = vsel %vm1909_vm13, %v1717_v38, %v20131_v41 }
 0x4f2   :  { %vm6921_vm5 = vcmp.eq.f32.partialorder %v20055_v9, 1065353216  ;;  %v7021_v13 = vmul.f32 0.1, %v8268_v58  ;;  %vm1911_vm1 = vcmp.gt.f32.partialorder %v20137_v49, 400.0  ;;  %v2292_v62 = vadd.f32 %v2291_v32, %v2100_v61  ;;  %v20151_v9 = vld [vmem:[#allocation108_spill] sm:$0xff] }
 0x4f3   :  { %v2486_v43 = vadd.f32 %v8478_v47, %v2485_v33  ;;  %v6909_v29 = vsel %vm6906_vm2, 2143289344, %v6905_v17  ;;  %vm6958_vm4 = vcmp.ne.f32.partialorder %v20064_v34, %v20064_v34  ;;  %8283 = vlog2.f32 %v7123_v6  ;;  %v16126_v38 = vpop.eup %8275  ;;  %v8479_v17 = vld [vmem:[#allocation7 + $0x3a0] sm:$0xff] }
 0x4f4   :  { %v1720_v30 = vmul.f32 219.71211, %v14390_v51  ;;  %v2102_v58 = vsel %vm1910_vm11, %v1718_v46, %v20136_v2  ;;  %v6926_v41 = vsel %vm6920_vm10, 0, %v6925_v59  ;;  %vm6972_vm14 = vcmp.eq.f32.partialorder %v20071_v10, 0  ;;  %v20139_v51 = vld [vmem:[#allocation363_spill] sm:$0xff]  ;;  %v8278_v2 = vpop.eup %8277  ;;  %v20140_v59 = vld [vmem:[#allocation104_spill] sm:$0xff] }
 0x4f5   :  { %vm1912_vm2 = vcmp.gt.f32.partialorder %v20138_v18, 400.0  ;;  %v2293_v61 = vadd.f32 %v2292_v62, %v2101_v15  ;;  %v2487_v56 = vadd.f32 %v8479_v17, %v2486_v43  ;;  %v6951_v32 = vsel %vm6945_vm0, 2143289344, %v8274_v60  ;;  %v8480_v62 = vld [vmem:[#allocation7 + $0x3a8] sm:$0xff] }
 0x4f6   :  { %v7149_v48 = vand.u32 2147483647, %v20139_v51  ;;  %v1721_v33 = vmul.f32 219.71211, %v14412_v39  ;;  %v2103_v46 = vsel %vm1911_vm1, %v1719_v26, %v20137_v49  ;;  %vm6947_vm10 = vcmp.eq.f32.partialorder %v20064_v34, 1065353216  ;;  %v8492_v34 = vld [vmem:[#allocation7 + $0x408] sm:$0xff] }
 0x4f7   :  { %8285 = vpow2.f32 %v7021_v13  ;;  %vm1913_vm6 = vcmp.gt.f32.partialorder %v20140_v59, 400.0  ;;  %v2294_v15 = vadd.f32 %v2293_v61, %v2102_v58  ;;  %v2488_v47 = vadd.f32 %v8480_v62, %v2487_v56  ;;  %v8481_v58 = vld [vmem:[#allocation7 + $0x3b0] sm:$0xff]  ;;  %v20145_v56 = vld [vmem:[#allocation106_spill] sm:$0xff] }
 0x4f8   :  { %v16143_v60 = vsel %vm6895_vm8, 1065353216, %v6909_v29  ;;  %v6931_v39 = vsel %vm16066_vm15, 2139095040, %v6926_v41  ;;  %v20141_v43 = vand.u32 2147483647, %v20071_v10  ;;  %v1722_v13 = vmul.f32 219.71211, %v14475_v42 }
 0x4f9   :  { %v2104_v49 = vsel %vm1912_vm2, %v1720_v30, %v20138_v18  ;;  %v6952_v50 = vsel %vm6946_vm12, 0, %v6951_v32  ;;  %vm6997_vm8 = vcmp.lt.f32.partialorder %v20080_v7, 0  ;;  %v20144_v29 = vld [vmem:[#allocation105_spill] sm:$0xff]  ;;  %v2295_v24 = vadd.f32 %v2294_v15, %v2103_v46  ;;  %v8280_v18 = vpop.eup %8279  ;;  %v8482_v32 = vld [vmem:[#allocation7 + $0x3b8] sm:$0xff] }
 0x4fa   :  { %vm16149_vm0 = vcmp.eq.f32.partialorder %v20141_v43, 2139095040  ;;  %vm1914_vm13 = vcmp.gt.f32.partialorder %v20144_v29, 400.0  ;;  %v2489_v41 = vadd.f32 %v8481_v58, %v2488_v47  ;;  %v7047_v61 = vmul.f32 0.1, %v16080_v45  ;;  %v20146_v15 = vld [vmem:[#allocation364_spill] sm:$0xff]  ;;  %v20147_v43 = vld [vmem:[#allocation107_spill] sm:$0xff] }
 0x4fb   :  { %8287 = vlog2.f32 %v7149_v48  ;;  %v1723_v42 = vmul.f32 219.71211, %v14479_v11  ;;  %v2105_v30 = vsel %vm1913_vm6, %v1721_v33, %v20140_v59  ;;  %v6935_v17 = vsel %vm6932_vm9, 2143289344, %v6931_v39  ;;  %v8282_v47 = vpop.eup %8281  ;;  %v20165_v58 = vld [vmem:[#allocation115_spill] sm:$0xff] }
 0x4fc   :  { %vm6984_vm15 = vcmp.ne.f32.partialorder %v20071_v10, %v20071_v10  ;;  %vm1915_vm12 = vcmp.gt.f32.partialorder %v20145_v56, 400.0  ;;  %v2296_v45 = vadd.f32 %v2295_v24, %v2104_v49  ;;  %v2490_v46 = vadd.f32 %v8482_v32, %v2489_v41  ;;  %v8483_v49 = vld [vmem:[#allocation7 + $0x3c0] sm:$0xff]  ;;  %v20152_v32 = vld [vmem:[#allocation110_spill] sm:$0xff] }
 0x4fd   :  { %v6957_v11 = vsel %vm16097_vm7, 2139095040, %v6952_v50  ;;  %vm6998_vm11 = vcmp.eq.f32.partialorder %v20080_v7, 0  ;;  %v7175_v33 = vand.u32 2147483647, %v20146_v15  ;;  %v1724_v59 = vmul.f32 219.71211, %v14519_v55 }
 0x4fe   :  { %v2106_v62 = vsel %vm1914_vm13, %v1722_v13, %v20144_v29  ;;  %v6977_v39 = vsel %vm6971_vm3, 2143289344, %v8278_v2  ;;  %vm7023_vm9 = vcmp.lt.f32.partialorder %v20094_v23, 0  ;;  %vm1916_vm1 = vcmp.gt.f32.partialorder %v20147_v43, 400.0 }
 0x4ff   :  { %v2297_v37 = vadd.f32 %v2296_v45, %v2105_v30  ;;  %v2491_v50 = vadd.f32 %v8483_v49, %v2490_v46  ;;  %v16188_v24 = vsel %vm6921_vm5, 1065353216, %v6935_v17  ;;  %vm6973_vm7 = vcmp.eq.f32.partialorder %v20071_v10, 1065353216 }
 0x500   :  { %8289 = vpow2.f32 %v7047_v61  ;;  %v1725_v55 = vmul.f32 219.71211, %v14579_v28  ;;  %v2107_v2 = vsel %vm1915_vm12, %v1723_v42, %v20145_v56  ;;  %v6961_v13 = vsel %vm6958_vm4, 2143289344, %v6957_v11  ;;  %v8484_v61 = vld [vmem:[#allocation7 + $0x3c8] sm:$0xff]  ;;  %v16213_v45 = vpop.eup %8283  ;;  %v8485_v11 = vld [vmem:[#allocation7 + $0x3d0] sm:$0xff] }
 0x501   :  { %v20148_v29 = vand.u32 2147483647, %v20080_v7  ;;  %vm1917_vm5 = vcmp.gt.f32.partialorder %v20151_v9, 400.0  ;;  %v2298_v41 = vadd.f32 %v2297_v37, %v2106_v62  ;;  %v2492_v30 = vadd.f32 %v8484_v61, %v2491_v50  ;;  %v20157_v50 = vld [vmem:[#allocation111_spill] sm:$0xff]  ;;  %v20158_v61 = vld [vmem:[#allocation112_spill] sm:$0xff] }
 0x502   :  { %v6978_v28 = vsel %vm6972_vm14, 0, %v6977_v39  ;;  %vm7024_vm2 = vcmp.eq.f32.partialorder %v20094_v23, 0  ;;  %v7073_v42 = vmul.f32 0.1, %v16126_v38  ;;  %v1726_v17 = vmul.f32 219.71211, %v14588_v27 }
 0x503   :  { %vm16200_vm3 = vcmp.eq.f32.partialorder %v20148_v29, 2139095040  ;;  %v2108_v56 = vsel %vm1916_vm1, %v1724_v59, %v20147_v43  ;;  %8291 = vlog2.f32 %v7175_v33  ;;  %vm1918_vm4 = vcmp.gt.f32.partialorder %v20152_v32, 400.0  ;;  %v20153_v27 = vld [vmem:[#allocation365_spill] sm:$0xff] }
 0x504   :  { %v2299_v46 = vadd.f32 %v2298_v41, %v2107_v2  ;;  %v2493_v62 = vadd.f32 %v8485_v11, %v2492_v30  ;;  %v16220_v39 = vsel %vm6947_vm10, 1065353216, %v6961_v13  ;;  %vm7010_vm14 = vcmp.ne.f32.partialorder %v20080_v7, %v20080_v7  ;;  %v8486_v13 = vld [vmem:[#allocation7 + $0x3d8] sm:$0xff]  ;;  %v8286_v41 = vpop.eup %8285  ;;  %v8488_v11 = vld [vmem:[#allocation7 + $0x3e8] sm:$0xff] }
 0x505   :  { %v7201_v38 = vand.u32 2147483647, %v20153_v27  ;;  %v1727_v59 = vmul.f32 219.71211, %v14599_v52  ;;  %v2109_v43 = vsel %vm1917_vm5, %v1725_v55, %v20151_v9  ;;  %v6983_v37 = vsel %vm16149_vm0, 2139095040, %v6978_v28  ;;  %v8487_v28 = vld [vmem:[#allocation7 + $0x3e0] sm:$0xff] }
 0x506   :  { %v20154_v49 = vand.u32 2147483647, %v20094_v23  ;;  %vm1919_vm10 = vcmp.gt.f32.partialorder %v20157_v50, 400.0  ;;  %v2300_v2 = vadd.f32 %v2299_v46, %v2108_v56  ;;  %v2494_v29 = vadd.f32 %v8486_v13, %v2493_v62 }
 0x507   :  { %v7003_v52 = vsel %vm6997_vm8, 2143289344, %v8282_v47  ;;  %vm7049_vm13 = vcmp.lt.f32.partialorder %v20103_v4, 0  ;;  %8293 = vpow2.f32 %v7073_v42  ;;  %v1728_v26 = vmul.f32 219.71211, %v14603_v57 }
 0x508   :  { %vm16233_vm6 = vcmp.eq.f32.partialorder %v20154_v49, 2139095040  ;;  %v2110_v55 = vsel %vm1918_vm4, %v1726_v17, %v20152_v32  ;;  %vm6999_vm0 = vcmp.eq.f32.partialorder %v20080_v7, 1065353216  ;;  %v7099_v9 = vmul.f32 0.1, %v8280_v18  ;;  %v16258_v42 = vpop.eup %8287  ;;  %v20159_v32 = vld [vmem:[#allocation113_spill] sm:$0xff]  ;;  %v20173_v7 = vld [vmem:[#allocation119_spill] sm:$0xff] }
 0x509   :  { %vm1920_vm12 = vcmp.gt.f32.partialorder %v20158_v61, 400.0  ;;  %v2301_v30 = vadd.f32 %v2300_v2, %v2109_v43  ;;  %v2495_v56 = vadd.f32 %v8487_v28, %v2494_v29  ;;  %v6987_v47 = vsel %vm6984_vm15, 2143289344, %v6983_v37  ;;  %v20161_v2 = vld [vmem:[#allocation114_spill] sm:$0xff]  ;;  %v8489_v29 = vld [vmem:[#allocation7 + $0x3f0] sm:$0xff] }
 0x50a   :  { %vm7036_vm8 = vcmp.ne.f32.partialorder %v20094_v23, %v20094_v23  ;;  %8295 = vlog2.f32 %v7201_v38  ;;  %v1729_v57 = vmul.f32 219.71211, %v14621_v3  ;;  %v2111_v18 = vsel %vm1919_vm10, %v1727_v59, %v20157_v50  ;;  %v20160_v3 = vld [vmem:[#allocation366_spill] sm:$0xff] }
 0x50b   :  { %v7004_v17 = vsel %vm6998_vm11, 0, %v7003_v52  ;;  %vm7050_vm1 = vcmp.eq.f32.partialorder %v20103_v4, 0  ;;  %vm1921_vm15 = vcmp.gt.f32.partialorder %v20159_v32, 400.0  ;;  %v2302_v46 = vadd.f32 %v2301_v30, %v2110_v55 }
 0x50c   :  { %v2496_v62 = vadd.f32 %v8488_v11, %v2495_v56  ;;  %v7029_v43 = vsel %vm7023_vm9, 2143289344, %v8286_v41  ;;  %v7227_v37 = vand.u32 2147483647, %v20160_v3  ;;  %v1730_v49 = vmul.f32 219.71211, %v14629_v8  ;;  %v8490_v56 = vld [vmem:[#allocation7 + $0x3f8] sm:$0xff] }
 0x50d   :  { %v2112_v59 = vsel %vm1920_vm12, %v1728_v26, %v20158_v61  ;;  %v16273_v50 = vsel %vm6973_vm7, 1065353216, %v6987_v47  ;;  %vm7025_vm11 = vcmp.eq.f32.partialorder %v20094_v23, 1065353216  ;;  %vm1922_vm5 = vcmp.gt.f32.partialorder %v20161_v2, 400.0  ;;  %v8290_v61 = vpop.eup %8289 }
 0x50e   :  { %v2303_v13 = vadd.f32 %v2302_v46, %v2111_v18  ;;  %v2497_v52 = vadd.f32 %v8489_v29, %v2496_v62  ;;  %v7009_v41 = vsel %vm16200_vm3, 2139095040, %v7004_v17  ;;  %v20162_v8 = vand.u32 2147483647, %v20103_v4  ;;  %v20166_v17 = vld [vmem:[#allocation116_spill] sm:$0xff]  ;;  %v20167_v62 = vld [vmem:[#allocation367_spill] sm:$0xff] }
 0x50f   :  { %8297 = vpow2.f32 %v7099_v9  ;;  %v1731_v10 = vmul.f32 219.71211, %v14661_v19  ;;  %v2113_v26 = vsel %vm1921_vm15, %v1729_v57, %v20159_v32  ;;  %v7030_v30 = vsel %vm7024_vm2, 0, %v7029_v43 }
 0x510   :  { %vm16281_vm9 = vcmp.eq.f32.partialorder %v20162_v8, 2139095040  ;;  %vm7075_vm7 = vcmp.lt.f32.partialorder %v20114_v14, 0  ;;  %vm1923_vm3 = vcmp.gt.f32.partialorder %v20165_v58, 400.0  ;;  %v2304_v28 = vadd.f32 %v2303_v13, %v2112_v59  ;;  %v8292_v11 = vpop.eup %8291  ;;  %v20168_v13 = vld [vmem:[#allocation117_spill] sm:$0xff] }
 0x511   :  { %v2498_v47 = vadd.f32 %v8490_v56, %v2497_v52  ;;  %v7125_v18 = vmul.f32 0.1, %v16213_v45  ;;  %8299 = vlog2.f32 %v7227_v37  ;;  %v1732_v19 = vmul.f32 219.71211, %v14724_v36  ;;  %v8491_v45 = vld [vmem:[#allocation7 + $0x400] sm:$0xff]  ;;  %v8493_v56 = vld [vmem:[#allocation7 + $0x410] sm:$0xff] }
 0x512   :  { %v2114_v9 = vsel %vm1922_vm5, %v1730_v49, %v20161_v2  ;;  %v7013_v57 = vsel %vm7010_vm14, 2143289344, %v7009_v41  ;;  %vm7062_vm2 = vcmp.ne.f32.partialorder %v20103_v4, %v20103_v4  ;;  %vm1924_vm4 = vcmp.gt.f32.partialorder %v20166_v17, 400.0 }
 0x513   :  { %v2305_v32 = vadd.f32 %v2304_v28, %v2113_v26  ;;  %v2499_v46 = vadd.f32 %v8491_v45, %v2498_v47  ;;  %v7035_v36 = vsel %vm16233_vm6, 2139095040, %v7030_v30  ;;  %vm7076_vm10 = vcmp.eq.f32.partialorder %v20114_v14, 0  ;;  %v20175_v45 = vld [vmem:[#allocation120_spill] sm:$0xff] }
 0x514   :  { %v7253_v43 = vand.u32 2147483647, %v20167_v62  ;;  %v1733_v49 = vmul.f32 219.71211, %v14743_v1  ;;  %v2115_v59 = vsel %vm1923_vm3, %v1731_v10, %v20165_v58  ;;  %v7055_v2 = vsel %vm7049_vm13, 2143289344, %v8290_v61  ;;  %v20169_v1 = vld [vmem:[#allocation313_spill] sm:$0xff]  ;;  %v8294_v26 = vpop.eup %8293 }
 0x515   :  { %vm7101_vm14 = vcmp.lt.f32.partialorder %v20124_v5, 0  ;;  %vm1925_vm12 = vcmp.gt.f32.partialorder %v20168_v13, 400.0  ;;  %v2306_v29 = vadd.f32 %v2305_v32, %v2114_v9  ;;  %v2500_v52 = vadd.f32 %v8492_v34, %v2499_v46  ;;  %v20174_v9 = vld [vmem:[#allocation314_spill] sm:$0xff]  ;;  %v20191_v58 = vld [vmem:[#allocation125_spill] sm:$0xff] }
 0x516   :  { %v16320_v41 = vsel %vm6999_vm0, 1065353216, %v7013_v57  ;;  %8301 = vpow2.f32 %v7125_v18  ;;  %v1734_v8 = vmul.f32 219.71211, %v20169_v1  ;;  %v2116_v10 = vsel %vm1924_vm4, %v1732_v19, %v20166_v17  ;;  %v20180_v1 = vld [vmem:[#allocation121_spill] sm:$0xff] }
 0x517   :  { %v7039_v61 = vsel %vm7036_vm8, 2143289344, %v7035_v36  ;;  %v20170_v30 = vand.u32 2147483647, %v20114_v14  ;;  %vm1926_vm13 = vcmp.gt.f32.partialorder %v20173_v7, 400.0  ;;  %v2307_v28 = vadd.f32 %v2306_v29, %v2115_v59  ;;  %v8296_v32 = vpop.eup %8295  ;;  %v8494_v36 = vld [vmem:[#allocation7 + $0x418] sm:$0xff] }
 0x518   :  { %v2501_v47 = vadd.f32 %v8493_v56, %v2500_v52  ;;  %v7056_v18 = vsel %vm7050_vm1, 0, %v7055_v2  ;;  %vm7102_vm0 = vcmp.eq.f32.partialorder %v20124_v5, 0  ;;  %v7151_v19 = vmul.f32 0.1, %v16258_v42  ;;  %v20176_v2 = vld [vmem:[#allocation368_spill] sm:$0xff] }
 0x519   :  { %vm16331_vm6 = vcmp.eq.f32.partialorder %v20170_v30, 2139095040  ;;  %v1735_v57 = vmul.f32 219.71211, %v20174_v9  ;;  %v2117_v17 = vsel %vm1925_vm12, %v1733_v49, %v20168_v13  ;;  %vm7051_vm8 = vcmp.eq.f32.partialorder %v20103_v4, 1065353216  ;;  %v20177_v13 = vld [vmem:[#allocation315_spill] sm:$0xff]  ;;  %v20181_v56 = vld [vmem:[#allocation316_spill] sm:$0xff] }
 0x51a   :  { %8303 = vlog2.f32 %v7253_v43  ;;  %vm1927_vm15 = vcmp.gt.f32.partialorder %v20175_v45, 400.0  ;;  %v2308_v46 = vadd.f32 %v2307_v28, %v2116_v10  ;;  %v2502_v59 = vadd.f32 %v8494_v36, %v2501_v47  ;;  %v20182_v47 = vld [vmem:[#allocation122_spill] sm:$0xff]  ;;  %v20184_v36 = vld [vmem:[#allocation123_spill] sm:$0xff] }
 0x51b   :  { %v16350_v42 = vsel %vm7025_vm11, 1065353216, %v7039_v61  ;;  %vm7088_vm1 = vcmp.ne.f32.partialorder %v20114_v14, %v20114_v14  ;;  %v7279_v49 = vand.u32 2147483647, %v20176_v2  ;;  %v1736_v29 = vmul.f32 219.71211, %v20177_v13  ;;  %v8495_v61 = vld [vmem:[#allocation7 + $0x420] sm:$0xff] }
 0x51c   :  { %v2118_v34 = vsel %vm1926_vm13, %v1734_v8, %v20173_v7  ;;  %v7061_v52 = vsel %vm16281_vm9, 2139095040, %v7056_v18  ;;  %vm16363_vm5 = vcmp.eq.f32.partialorder %v7097_v63, 2139095040  ;;  %vm1928_vm11 = vcmp.gt.f32.partialorder %v20180_v1, 400.0  ;;  %v8298_v7 = vpop.eup %8297  ;;  %v8496_v9 = vld [vmem:[#allocation7 + $0x428] sm:$0xff]  ;;  %v8497_v13 = vld [vmem:[#allocation7 + $0x430] sm:$0xff] }
 0x51d   :  { %v2309_v10 = vadd.f32 %v2308_v46, %v2117_v17  ;;  %v2503_v30 = vadd.f32 %v8495_v61, %v2502_v59  ;;  %v7081_v28 = vsel %vm7075_vm7, 2143289344, %v8294_v26  ;;  %8305 = vpow2.f32 %v7151_v19  ;;  %v20183_v19 = vld [vmem:[#allocation317_spill] sm:$0xff] }
 0x51e   :  { %v1737_v8 = vmul.f32 219.71211, %v20181_v56  ;;  %v2119_v55 = vsel %vm1927_vm15, %v1735_v57, %v20175_v45  ;;  %vm7077_vm9 = vcmp.eq.f32.partialorder %v20114_v14, 1065353216  ;;  %vm7127_vm3 = vcmp.lt.f32.partialorder %v20132_v31, 0  ;;  %v16388_v45 = vpop.eup %8299 }
 0x51f   :  { %v7177_v63 = vmul.f32 0.1, %v8292_v11  ;;  %vm1929_vm4 = vcmp.gt.f32.partialorder %v20182_v47, 400.0  ;;  %v2310_v18 = vadd.f32 %v2309_v10, %v2118_v34  ;;  %v2504_v17 = vadd.f32 %v8496_v9, %v2503_v30  ;;  %v20185_v10 = vld [vmem:[#allocation369_spill] sm:$0xff]  ;;  %v20186_v30 = vld [vmem:[#allocation318_spill] sm:$0xff] }
 0x520   :  { %v7065_v26 = vsel %vm7062_vm2, 2143289344, %v7061_v52  ;;  %vm7114_vm7 = vcmp.ne.f32.partialorder %v20124_v5, %v20124_v5  ;;  %8307 = vlog2.f32 %v7279_v49  ;;  %v1738_v57 = vmul.f32 219.71211, %v20183_v19 }
 0x521   :  { %v2120_v11 = vsel %vm1928_vm11, %v1736_v29, %v20180_v1  ;;  %v7082_v46 = vsel %vm7076_vm10, 0, %v7081_v28  ;;  %vm1930_vm12 = vcmp.gt.f32.partialorder %v20184_v36, 400.0  ;;  %v2311_v59 = vadd.f32 %v2310_v18, %v2119_v55  ;;  %v20187_v1 = vld [vmem:[#allocation124_spill] sm:$0xff] }
 0x522   :  { %v2505_v34 = vadd.f32 %v8497_v13, %v2504_v17  ;;  %v7107_v52 = vsel %vm7101_vm14, 2143289344, %v8298_v7  ;;  %vm7128_vm2 = vcmp.eq.f32.partialorder %v20132_v31, 0  ;;  %v7305_v61 = vand.u32 2147483647, %v20185_v10  ;;  %v8498_v55 = vld [vmem:[#allocation7 + $0x438] sm:$0xff]  ;;  %v20188_v17 = vld [vmem:[#allocation319_spill] sm:$0xff] }
 0x523   :  { %v1739_v56 = vmul.f32 219.71211, %v20186_v30  ;;  %v2121_v29 = vsel %vm1929_vm4, %v1737_v8, %v20182_v47  ;;  %vm7103_vm10 = vcmp.eq.f32.partialorder %v20124_v5, 1065353216  ;;  %8309 = vpow2.f32 %v7177_v63  ;;  %v8302_v47 = vpop.eup %8301  ;;  %v20207_v5 = vld [vmem:[#allocation131_spill] sm:$0xff] }
 0x524   :  { %vm1931_vm13 = vcmp.gt.f32.partialorder %v20187_v1, 400.0  ;;  %v2312_v28 = vadd.f32 %v2311_v59, %v2120_v11  ;;  %v2506_v18 = vadd.f32 %v8498_v55, %v2505_v34  ;;  %v7087_v7 = vsel %vm16331_vm6, 2139095040, %v7082_v46  ;;  %v20194_v55 = vld [vmem:[#allocation370_spill] sm:$0xff] }
 0x525   :  { %vm7153_vm14 = vcmp.lt.f32.partialorder %v20139_v51, 0  ;;  %v7203_v9 = vmul.f32 0.1, %v8296_v32  ;;  %v1740_v19 = vmul.f32 219.71211, %v20188_v17  ;;  %v2122_v8 = vsel %vm1930_vm12, %v1738_v57, %v20184_v36  ;;  %v8499_v32 = vld [vmem:[#allocation7 + $0x440] sm:$0xff] }
 0x526   :  { %v7108_v63 = vsel %vm7102_vm0, 0, %v7107_v52  ;;  %vm16414_vm15 = vcmp.eq.f32.partialorder %v7123_v6, 2139095040  ;;  %vm1932_vm6 = vcmp.gt.f32.partialorder %v20191_v58, 400.0  ;;  %v2313_v46 = vadd.f32 %v2312_v28, %v2121_v29  ;;  %v20192_v57 = vld [vmem:[#allocation320_spill] sm:$0xff]  ;;  %v20193_v52 = vld [vmem:[#allocation126_spill] sm:$0xff] }
 0x527   :  { %v2507_v59 = vadd.f32 %v8499_v32, %v2506_v18  ;;  %v16421_v13 = vsel %vm7051_vm8, 1065353216, %v7065_v26  ;;  %8311 = vlog2.f32 %v7305_v61  ;;  %v1741_v36 = vmul.f32 219.71211, %v20192_v57  ;;  %v8500_v26 = vld [vmem:[#allocation7 + $0x448] sm:$0xff]  ;;  %v8304_v29 = vpop.eup %8303  ;;  %v20196_v17 = vld [vmem:[#allocation128_spill] sm:$0xff] }
 0x528   :  { %v2123_v6 = vsel %vm1931_vm13, %v1739_v56, %v20187_v1  ;;  %v7091_v34 = vsel %vm7088_vm1, 2143289344, %v7087_v7  ;;  %vm7154_vm0 = vcmp.eq.f32.partialorder %v20139_v51, 0  ;;  %vm1933_vm11 = vcmp.gt.f32.partialorder %v20193_v52, 400.0  ;;  %v20195_v1 = vld [vmem:[#allocation321_spill] sm:$0xff] }
 0x529   :  { %v2314_v4 = vadd.f32 %v2313_v46, %v2122_v8  ;;  %v2508_v30 = vadd.f32 %v8500_v26, %v2507_v59  ;;  %v7113_v28 = vsel %vm16363_vm5, 2139095040, %v7108_v63  ;;  %vm7140_vm8 = vcmp.ne.f32.partialorder %v20132_v31, %v20132_v31  ;;  %v8501_v46 = vld [vmem:[#allocation7 + $0x450] sm:$0xff] }
 0x52a   :  { %v7331_v56 = vand.u32 2147483647, %v20194_v55  ;;  %v1742_v18 = vmul.f32 219.71211, %v20195_v1  ;;  %v2124_v7 = vsel %vm1932_vm6, %v1740_v19, %v20191_v58  ;;  %vm7179_vm1 = vcmp.lt.f32.partialorder %v20146_v15, 0  ;;  %v20199_v19 = vld [vmem:[#allocation322_spill] sm:$0xff]  ;;  %v8306_v57 = vpop.eup %8305 }
 0x52b   :  { %8313 = vpow2.f32 %v7203_v9  ;;  %vm1934_vm4 = vcmp.gt.f32.partialorder %v20196_v17, 400.0  ;;  %v2315_v8 = vadd.f32 %v2314_v4, %v2123_v6  ;;  %v2509_v23 = vadd.f32 %v8501_v46, %v2508_v30  ;;  %v20201_v26 = vld [vmem:[#allocation371_spill] sm:$0xff] }
 0x52c   :  { %v16447_v63 = vsel %vm7077_vm9, 1065353216, %v7091_v34  ;;  %v7133_v32 = vsel %vm7127_vm3, 2143289344, %v8302_v47  ;;  %vm16453_vm5 = vcmp.eq.f32.partialorder %v7149_v48, 2139095040  ;;  %v1743_v9 = vmul.f32 219.71211, %v20199_v19  ;;  %v20200_v47 = vld [vmem:[#allocation129_spill] sm:$0xff] }
 0x52d   :  { %v2125_v58 = vsel %vm1933_vm11, %v1741_v36, %v20193_v52  ;;  %v7117_v14 = vsel %vm7114_vm7, 2143289344, %v7113_v28  ;;  %vm7129_vm9 = vcmp.eq.f32.partialorder %v20132_v31, 1065353216  ;;  %vm1935_vm3 = vcmp.gt.f32.partialorder %v20200_v47, 400.0  ;;  %v8502_v48 = vld [vmem:[#allocation7 + $0x458] sm:$0xff]  ;;  %v20202_v1 = vld [vmem:[#allocation323_spill] sm:$0xff]  ;;  %v16473_v28 = vpop.eup %8307 }
 0x52e   :  { %v2316_v6 = vadd.f32 %v2315_v8, %v2124_v7  ;;  %v2510_v34 = vadd.f32 %v8502_v48, %v2509_v23  ;;  %vm7180_vm12 = vcmp.eq.f32.partialorder %v20146_v15, 0  ;;  %v7229_v4 = vmul.f32 0.1, %v16388_v45  ;;  %v20203_v7 = vld [vmem:[#allocation130_spill] sm:$0xff]  ;;  %v8503_v45 = vld [vmem:[#allocation7 + $0x460] sm:$0xff]  ;;  %v20218_v31 = vld [vmem:[#allocation135_spill] sm:$0xff] }
 0x52f   :  { %v17640_v30 = vand.u32 2147483647, %v20201_v26  ;;  %v1744_v36 = vmul.f32 219.71211, %v20202_v1  ;;  %v2126_v52 = vsel %vm1934_vm4, %v1742_v18, %v20196_v17  ;;  %v7134_v46 = vsel %vm7128_vm2, 0, %v7133_v32  ;;  %v20204_v18 = vld [vmem:[#allocation324_spill] sm:$0xff] }
 0x530   :  { %vm7166_vm7 = vcmp.ne.f32.partialorder %v20139_v51, %v20139_v51  ;;  %vm1936_vm13 = vcmp.gt.f32.partialorder %v20203_v7, 400.0  ;;  %v2317_v8 = vadd.f32 %v2316_v6, %v2125_v58  ;;  %v2511_v23 = vadd.f32 %v8503_v45, %v2510_v34  ;;  %v8504_v6 = vld [vmem:[#allocation7 + $0x468] sm:$0xff]  ;;  %v8310_v1 = vpop.eup %8309 }
 0x531   :  { %v16482_v19 = vsel %vm7103_vm10, 1065353216, %v7117_v14  ;;  %8315 = vlog2.f32 %v7331_v56  ;;  %v1745_v17 = vmul.f32 219.71211, %v20204_v18  ;;  %v2127_v32 = vsel %vm1935_vm3, %v1743_v9, %v20200_v47  ;;  %v20208_v9 = vld [vmem:[#allocation325_spill] sm:$0xff]  ;;  %v20209_v47 = vld [vmem:[#allocation132_spill] sm:$0xff] }
 0x532   :  { %v7159_v48 = vsel %vm7153_vm14, 2143289344, %v8306_v57  ;;  %vm16494_vm2 = vcmp.eq.f32.partialorder %v7175_v33, 2139095040  ;;  %vm1937_vm10 = vcmp.gt.f32.partialorder %v20207_v5, 400.0  ;;  %v2318_v14 = vadd.f32 %v2317_v8, %v2126_v52  ;;  %v8505_v8 = vld [vmem:[#allocation7 + $0x470] sm:$0xff] }
 0x533   :  { %v2512_v34 = vadd.f32 %v8504_v6, %v2511_v23  ;;  %v7139_v45 = vsel %vm16414_vm15, 2139095040, %v7134_v46  ;;  %vm7155_vm6 = vcmp.eq.f32.partialorder %v20139_v51, 1065353216  ;;  %8317 = vpow2.f32 %v7229_v4  ;;  %v20210_v23 = vld [vmem:[#allocation326_spill] sm:$0xff] }
 0x534   :  { %v1746_v57 = vmul.f32 219.71211, %v20208_v9  ;;  %v2128_v33 = vsel %vm1936_vm13, %v1744_v36, %v20203_v7  ;;  %vm7205_vm14 = vcmp.lt.f32.partialorder %v20153_v27, 0  ;;  %8319 = vlog2.f32 %v17640_v30  ;;  %v16518_v7 = vpop.eup %8311  ;;  %v20212_v9 = vld [vmem:[#allocation372_spill] sm:$0xff] }
 0x535   :  { %vm1938_vm11 = vcmp.gt.f32.partialorder %v20209_v47, 400.0  ;;  %v2319_v52 = vadd.f32 %v2318_v14, %v2127_v32  ;;  %v2513_v11 = vadd.f32 %v8505_v8, %v2512_v34  ;;  %v7160_v46 = vsel %vm7154_vm0, 0, %v7159_v48  ;;  %v20211_v14 = vld [vmem:[#allocation133_spill] sm:$0xff]  ;;  %v8506_v48 = vld [vmem:[#allocation7 + $0x478] sm:$0xff] }
 0x536   :  { %vm7192_vm15 = vcmp.ne.f32.partialorder %v20146_v15, %v20146_v15  ;;  %v7255_v4 = vmul.f32 0.1, %v8304_v29  ;;  %v1747_v18 = vmul.f32 219.71211, %v20210_v23  ;;  %v2129_v36 = vsel %vm1937_vm10, %v1745_v17, %v20207_v5  ;;  %v20213_v23 = vld [vmem:[#allocation327_spill] sm:$0xff] }
 0x537   :  { %v7143_v32 = vsel %vm7140_vm8, 2143289344, %v7139_v45  ;;  %vm1939_vm4 = vcmp.gt.f32.partialorder %v20211_v14, 400.0  ;;  %v2320_v6 = vadd.f32 %v2319_v52, %v2128_v33  ;;  %v2514_v34 = vadd.f32 %v8506_v48, %v2513_v11  ;;  %v20214_v33 = vld [vmem:[#allocation134_spill] sm:$0xff]  ;;  %v8507_v11 = vld [vmem:[#allocation7 + $0x480] sm:$0xff] }
 0x538   :  { %v7185_v29 = vsel %vm7179_vm1, 2143289344, %v8310_v1  ;;  %vm7206_vm0 = vcmp.eq.f32.partialorder %v20153_v27, 0  ;;  %v7383_v8 = vand.u32 2147483647, %v20212_v9  ;;  %v1748_v17 = vmul.f32 219.71211, %v20213_v23  ;;  %v8314_v48 = vpop.eup %8313 }
 0x539   :  { %v2130_v5 = vsel %vm1938_vm11, %v1746_v57, %v20209_v47  ;;  %v7165_v45 = vsel %vm16453_vm5, 2139095040, %v7160_v46  ;;  %vm7181_vm8 = vcmp.eq.f32.partialorder %v20146_v15, 1065353216  ;;  %vm1940_vm3 = vcmp.gt.f32.partialorder %v20214_v33, 400.0  ;;  %v20215_v23 = vld [vmem:[#allocation328_spill] sm:$0xff] }
 0x53a   :  { %v2321_v52 = vadd.f32 %v2320_v6, %v2129_v36  ;;  %v2515_v1 = vadd.f32 %v8507_v11, %v2514_v34  ;;  %v16538_v30 = vsel %vm7129_vm9, 1065353216, %v7143_v32  ;;  %vm7231_vm1 = vcmp.lt.f32.partialorder %v20160_v3, 0  ;;  %v8508_v32 = vld [vmem:[#allocation7 + $0x488] sm:$0xff] }
 0x53b   :  { %8321 = vpow2.f32 %v7255_v4  ;;  %v1749_v57 = vmul.f32 219.71211, %v20215_v23  ;;  %v2131_v59 = vsel %vm1939_vm4, %v1747_v18, %v20211_v14  ;;  %v7186_v47 = vsel %vm7180_vm12, 0, %v7185_v29  ;;  %v20219_v14 = vld [vmem:[#allocation329_spill] sm:$0xff]  ;;  %v20222_v23 = vld [vmem:[#allocation15_spill] sm:$0xff] }
 0x53c   :  { %vm16549_vm5 = vcmp.eq.f32.partialorder %v7201_v38, 2139095040  ;;  %vm1941_vm9 = vcmp.gt.f32.partialorder %v20218_v31, 400.0  ;;  %v2322_v36 = vadd.f32 %v2321_v52, %v2130_v5  ;;  %v2516_v4 = vadd.f32 %v8508_v32, %v2515_v1  ;;  %v20220_v29 = vld [vmem:[#allocation137_spill] sm:$0xff]  ;;  %v8509_v52 = vld [vmem:[#allocation7 + $0x490] sm:$0xff] }
 0x53d   :  { %v7169_v6 = vsel %vm7166_vm7, 2143289344, %v7165_v45  ;;  %v7281_v18 = vmul.f32 0.1, %v16473_v28  ;;  %v1750_v34 = vmul.f32 219.71211, %v20219_v14  ;;  %v2132_v38 = vsel %vm1940_vm3, %v1748_v17, %v20214_v33  ;;  %v20221_v28 = vld [vmem:[#allocation373_spill] sm:$0xff] }
 0x53e   :  { %vm7232_vm12 = vcmp.eq.f32.partialorder %v20160_v3, 0  ;;  %8323 = vlog2.f32 %v7383_v8  ;;  %vm1942_vm13 = vcmp.gt.f32.partialorder %v20220_v29, 400.0  ;;  %v2323_v5 = vadd.f32 %v2322_v36, %v2131_v59  ;;  %v8316_v32 = vpop.eup %8315  ;;  %v20223_v36 = vld [vmem:[#allocation138_spill] sm:$0xff] }
 0x53f   :  { %v2517_v11 = vadd.f32 %v8509_v52, %v2516_v4  ;;  %v7191_v45 = vsel %vm16494_vm2, 2139095040, %v7186_v47  ;;  %vm7218_vm7 = vcmp.ne.f32.partialorder %v20153_v27, %v20153_v27  ;;  %v7409_v1 = vand.u32 2147483647, %v20221_v28  ;;  %v8510_v47 = vld [vmem:[#allocation7 + $0x498] sm:$0xff] }
 0x540   :  { %v1751_v17 = vmul.f32 219.71211, %v20222_v23  ;;  %v2133_v33 = vsel %vm1941_vm9, %v1749_v57, %v20218_v31  ;;  %v16577_v59 = vsel %vm7155_vm6, 1065353216, %v7169_v6  ;;  %vm1943_vm10 = vcmp.gt.f32.partialorder %v20223_v36, 400.0  ;;  %v8318_v31 = vpop.eup %8317  ;;  %v20228_v23 = vld [vmem:[#allocation140_spill] sm:$0xff] }
 0x541   :  { %v2324_v58 = vadd.f32 %v2323_v5, %v2132_v38  ;;  %v2518_v4 = vadd.f32 %v8510_v47, %v2517_v11  ;;  %v7211_v14 = vsel %vm7205_vm14, 2143289344, %v8314_v48  ;;  %vm16584_vm2 = vcmp.eq.f32.partialorder %v7227_v37, 2139095040  ;;  %v20226_v48 = vld [vmem:[#allocation139_spill] sm:$0xff]  ;;  %v8511_v38 = vld [vmem:[#allocation7 + $0x4a0] sm:$0xff]  ;;  %v8320_v11 = vpop.eup %8319 }
 0x542   :  { %8325 = vpow2.f32 %v7281_v18  ;;  %v1752_v57 = vmul.f32 219.71211, %v15574_v12  ;;  %v2134_v51 = vsel %vm1942_vm13, %v1750_v34, %v20220_v29  ;;  %v7195_v6 = vsel %vm7192_vm15, 2143289344, %v7191_v45  ;;  %v20227_v18 = vld [vmem:[#allocation16_spill] sm:$0xff] }
 0x543   :  { %vm7257_vm6 = vcmp.lt.f32.partialorder %v20167_v62, 0  ;;  %vm1944_vm14 = vcmp.gt.f32.partialorder %v20226_v48, 400.0  ;;  %v2325_v37 = vadd.f32 %v2324_v58, %v2133_v33  ;;  %v2519_v5 = vadd.f32 %v8511_v38, %v2518_v4  ;;  %v8512_v58 = vld [vmem:[#allocation7 + $0x4a8] sm:$0xff]  ;;  %v20229_v4 = vld [vmem:[#allocation219_spill] sm:$0xff] }
 0x544   :  { %vm7207_vm11 = vcmp.eq.f32.partialorder %v20153_v27, 1065353216  ;;  %v7307_v12 = vmul.f32 0.1, %v16518_v7  ;;  %8327 = vlog2.f32 %v7409_v1  ;;  %v1753_v34 = vmul.f32 219.71211, %v20227_v18 }
 0x545   :  { %v2135_v29 = vsel %vm1943_vm10, %v1751_v17, %v20223_v36  ;;  %v7212_v45 = vsel %vm7206_vm0, 0, %v7211_v14  ;;  %vm7244_vm15 = vcmp.ne.f32.partialorder %v20160_v3, %v20160_v3  ;;  %vm1945_vm4 = vcmp.gt.f32.partialorder %v20228_v23, 400.0 }
 0x546   :  { %v2326_v33 = vadd.f32 %v2325_v37, %v2134_v51  ;;  %v2520_v7 = vadd.f32 %v8512_v58, %v2519_v5  ;;  %v16612_v47 = vsel %vm7181_vm8, 1065353216, %v7195_v6  ;;  %vm7258_vm3 = vcmp.eq.f32.partialorder %v20167_v62, 0  ;;  %v20230_v51 = vld [vmem:[#allocation141_spill] sm:$0xff]  ;;  %v8513_v5 = vld [vmem:[#allocation7 + $0x4b0] sm:$0xff] }
 0x547   :  { %v7435_v38 = vand.u32 2147483647, %v20229_v4  ;;  %v1754_v17 = vmul.f32 219.71211, %v15631_v0  ;;  %v2136_v36 = vsel %vm1944_vm14, %v1752_v57, %v20226_v48  ;;  %v7237_v14 = vsel %vm7231_vm1, 2143289344, %v8318_v31  ;;  %v8515_v58 = vld [vmem:[#allocation7 + $0x4c0] sm:$0xff] }
 0x548   :  { %vm1946_vm0 = vcmp.gt.f32.partialorder %v20230_v51, 400.0  ;;  %v2327_v37 = vadd.f32 %v2326_v33, %v2135_v29  ;;  %v2521_v15 = vadd.f32 %v8513_v5, %v2520_v7  ;;  %v7217_v6 = vsel %vm16549_vm5, 2139095040, %v7212_v45  ;;  %v8322_v48 = vpop.eup %8321  ;;  %v20233_v29 = vld [vmem:[#allocation142_spill] sm:$0xff]  ;;  %v8514_v45 = vld [vmem:[#allocation7 + $0x4b8] sm:$0xff] }
 0x549   :  { %vm7233_vm8 = vcmp.eq.f32.partialorder %v20160_v3, 1065353216  ;;  %v7333_v18 = vmul.f32 0.1, %v8316_v32  ;;  %v1755_v0 = vmul.f32 219.71211, %v15677_v21  ;;  %v2137_v57 = vsel %vm1945_vm4, %v1753_v34, %v20228_v23  ;;  %v20234_v34 = vld [vmem:[#allocation143_spill] sm:$0xff] }
 0x54a   :  { %vm16632_vm1 = vcmp.eq.f32.partialorder %v7253_v43, 2139095040  ;;  %8329 = vpow2.f32 %v7307_v12  ;;  %vm1947_vm9 = vcmp.gt.f32.partialorder %v20233_v29, 400.0  ;;  %v2328_v46 = vadd.f32 %v2327_v37, %v2136_v36  ;;  %v20236_v5 = vld [vmem:[#allocation144_spill] sm:$0xff] }
 0x54b   :  { %v2522_v33 = vadd.f32 %v8514_v45, %v2521_v15  ;;  %v7238_v21 = vsel %vm7232_vm12, 0, %v7237_v14  ;;  %vm7283_vm5 = vcmp.lt.f32.partialorder %v20176_v2, 0  ;;  %8331 = vlog2.f32 %v7435_v38  ;;  %v8324_v36 = vpop.eup %8323  ;;  %v20235_v14 = vld [vmem:[#allocation374_spill] sm:$0xff] }
 0x54c   :  { %v1756_v32 = vmul.f32 219.71211, %v15708_v35  ;;  %v2138_v43 = vsel %vm1946_vm0, %v1754_v17, %v20230_v51  ;;  %v7221_v12 = vsel %vm7218_vm7, 2143289344, %v7217_v6  ;;  %vm1948_vm13 = vcmp.gt.f32.partialorder %v20234_v34, 400.0  ;;  %v8516_v6 = vld [vmem:[#allocation7 + $0x4c8] sm:$0xff] }
 0x54d   :  { %v2329_v23 = vadd.f32 %v2328_v46, %v2137_v57  ;;  %v2523_v7 = vadd.f32 %v8515_v58, %v2522_v33  ;;  %vm7270_vm12 = vcmp.ne.f32.partialorder %v20167_v62, %v20167_v62  ;;  %8333 = vpow2.f32 %v7333_v18  ;;  %v20237_v45 = vld [vmem:[#allocation146_spill] sm:$0xff]  ;;  %v8518_v58 = vld [vmem:[#allocation7 + $0x4d8] sm:$0xff] }
 0x54e   :  { %v7461_v35 = vand.u32 2147483647, %v20235_v14  ;;  %v1757_v37 = vmul.f32 219.71211, %v15767_v16  ;;  %v2139_v17 = vsel %vm1947_vm9, %v1755_v0, %v20233_v29  ;;  %v7243_v51 = vsel %vm16584_vm2, 2139095040, %v7238_v21  ;;  %v8517_v21 = vld [vmem:[#allocation7 + $0x4d0] sm:$0xff] }
 0x54f   :  { %vm7284_vm7 = vcmp.eq.f32.partialorder %v20176_v2, 0  ;;  %vm1949_vm10 = vcmp.gt.f32.partialorder %v20236_v5, 400.0  ;;  %v2330_v15 = vadd.f32 %v2329_v23, %v2138_v43  ;;  %v2524_v57 = vadd.f32 %v8516_v6, %v2523_v7  ;;  %v8326_v29 = vpop.eup %8325  ;;  %v20241_v7 = vld [vmem:[#allocation375_spill] sm:$0xff] }
 0x550   :  { %v7263_v18 = vsel %vm7257_vm6, 2143289344, %v8322_v48  ;;  %v7359_v46 = vmul.f32 0.1, %v8320_v11  ;;  %v1758_v16 = vmul.f32 219.71211, %v15803_v53  ;;  %v2140_v0 = vsel %vm1948_vm13, %v1756_v32, %v20234_v34  ;;  %v20240_v34 = vld [vmem:[#allocation147_spill] sm:$0xff] }
 0x551   :  { %v16669_v52 = vsel %vm7207_vm11, 1065353216, %v7221_v12  ;;  %vm7259_vm2 = vcmp.eq.f32.partialorder %v20167_v62, 1065353216  ;;  %vm1950_vm14 = vcmp.gt.f32.partialorder %v20237_v45, 400.0  ;;  %v2331_v33 = vadd.f32 %v2330_v15, %v2139_v17  ;;  %v16682_v48 = vpop.eup %8327  ;;  %v20243_v15 = vld [vmem:[#allocation148_spill] sm:$0xff]  ;;  %v20255_v12 = vld [vmem:[#allocation153_spill] sm:$0xff] }
 0x552   :  { %v2525_v43 = vadd.f32 %v8517_v21, %v2524_v57  ;;  %v7247_v53 = vsel %vm7244_vm15, 2143289344, %v7243_v51  ;;  %8335 = vlog2.f32 %v7461_v35  ;;  %v1759_v11 = vmul.f32 219.71211, %v15841_v44  ;;  %v8519_v57 = vld [vmem:[#allocation7 + $0x4e0] sm:$0xff] }
 0x553   :  { %v2141_v27 = vsel %vm1949_vm10, %v1757_v37, %v20236_v5  ;;  %v7264_v32 = vsel %vm7258_vm3, 0, %v7263_v18  ;;  %vm16688_vm6 = vcmp.eq.f32.partialorder %v7279_v49, 2139095040  ;;  %vm1951_vm11 = vcmp.gt.f32.partialorder %v20240_v34, 400.0  ;;  %v20242_v37 = vld [vmem:[#allocation330_spill] sm:$0xff] }
 0x554   :  { %v2332_v23 = vadd.f32 %v2331_v33, %v2140_v0  ;;  %v2526_v44 = vadd.f32 %v8518_v58, %v2525_v43  ;;  %8337 = vpow2.f32 %v7359_v46  ;;  %v7487_v17 = vand.u32 2147483647, %v20241_v7  ;;  %v8520_v43 = vld [vmem:[#allocation7 + $0x4e8] sm:$0xff]  ;;  %v8521_v58 = vld [vmem:[#allocation7 + $0x4f0] sm:$0xff] }
 0x555   :  { %v1760_v51 = vmul.f32 219.71211, %v20242_v37  ;;  %v2142_v5 = vsel %vm1950_vm14, %v1758_v16, %v20237_v45  ;;  %v16700_v49 = vsel %vm7233_vm8, 1065353216, %v7247_v53  ;;  %vm7309_vm15 = vcmp.lt.f32.partialorder %v20185_v10, 0  ;;  %v20244_v45 = vld [vmem:[#allocation149_spill] sm:$0xff] }
 0x556   :  { %vm1952_vm4 = vcmp.gt.f32.partialorder %v20243_v15, 400.0  ;;  %v2333_v6 = vadd.f32 %v2332_v23, %v2141_v27  ;;  %v2527_v18 = vadd.f32 %v8519_v57, %v2526_v44  ;;  %v7269_v46 = vsel %vm16632_vm1, 2139095040, %v7264_v32 }
 0x557   :  { %v7385_v0 = vmul.f32 0.1, %v8324_v36  ;;  %v1761_v33 = vmul.f32 219.71211, %v15928_v20  ;;  %v2143_v16 = vsel %vm1951_vm11, %v1759_v11, %v20240_v34  ;;  %v7289_v3 = vsel %vm7283_vm5, 2143289344, %v8326_v29  ;;  %v8330_v31 = vpop.eup %8329  ;;  %v20245_v20 = vld [vmem:[#allocation376_spill] sm:$0xff] }
 0x558   :  { %vm7296_vm3 = vcmp.ne.f32.partialorder %v20176_v2, %v20176_v2  ;;  %vm1953_vm0 = vcmp.gt.f32.partialorder %v20244_v45, 400.0  ;;  %v2334_v21 = vadd.f32 %v2333_v6, %v2142_v5  ;;  %v2528_v53 = vadd.f32 %v8520_v43, %v2527_v18  ;;  %v8332_v27 = vpop.eup %8331  ;;  %v20246_v34 = vld [vmem:[#allocation150_spill] sm:$0xff]  ;;  %v20249_v6 = vld [vmem:[#allocation377_spill] sm:$0xff]  ;;  %v20250_v18 = vld [vmem:[#allocation151_spill] sm:$0xff] }
 0x559   :  { %vm7310_vm8 = vcmp.eq.f32.partialorder %v20185_v10, 0  ;;  %8339 = vlog2.f32 %v7487_v17  ;;  %v7513_v36 = vand.u32 2147483647, %v20245_v20  ;;  %v1762_v11 = vmul.f32 219.71211, %v15961_v25  ;;  %v8523_v43 = vld [vmem:[#allocation7 + $0x500] sm:$0xff] }
 0x55a   :  { %v2144_v29 = vsel %vm1952_vm4, %v1760_v51, %v20243_v15  ;;  %v7273_v32 = vsel %vm7270_vm12, 2143289344, %v7269_v46  ;;  %vm7335_vm1 = vcmp.lt.f32.partialorder %v20194_v55, 0  ;;  %vm1954_vm9 = vcmp.gt.f32.partialorder %v20246_v34, 400.0  ;;  %v8334_v5 = vpop.eup %8333 }
 0x55b   :  { %v2335_v23 = vadd.f32 %v2334_v21, %v2143_v16  ;;  %v2529_v44 = vadd.f32 %v8521_v58, %v2528_v53  ;;  %vm7285_vm5 = vcmp.eq.f32.partialorder %v20176_v2, 1065353216  ;;  %v7290_v25 = vsel %vm7284_vm7, 0, %v7289_v3  ;;  %v8522_v16 = vld [vmem:[#allocation7 + $0x4f8] sm:$0xff]  ;;  %v20251_v3 = vld [vmem:[#allocation378_spill] sm:$0xff] }
 0x55c   :  { %8341 = vpow2.f32 %v7385_v0  ;;  %v1763_v37 = vmul.f32 219.71211, %v16024_v22  ;;  %v2145_v51 = vsel %vm1953_vm0, %v1761_v33, %v20244_v45  ;;  %vm16737_vm13 = vcmp.eq.f32.partialorder %v7305_v61, 2139095040  ;;  %v20252_v21 = vld [vmem:[#allocation152_spill] sm:$0xff] }
 0x55d   :  { %v7539_v57 = vand.u32 2147483647, %v20249_v6  ;;  %vm1955_vm12 = vcmp.gt.f32.partialorder %v20250_v18, 400.0  ;;  %v2336_v46 = vadd.f32 %v2335_v23, %v2144_v29  ;;  %v2530_v0 = vadd.f32 %v8522_v16, %v2529_v44  ;;  %v8525_v16 = vld [vmem:[#allocation7 + $0x510] sm:$0xff] }
 0x55e   :  { %v16745_v22 = vsel %vm7259_vm2, 1065353216, %v7273_v32  ;;  %vm7336_vm7 = vcmp.eq.f32.partialorder %v20194_v55, 0  ;;  %8343 = vlog2.f32 %v7513_v36  ;;  %v1764_v61 = vmul.f32 219.71211, %v16061_v54 }
 0x55f   :  { %v2146_v33 = vsel %vm1954_vm9, %v1762_v11, %v20246_v34  ;;  %vm7361_vm10 = vcmp.lt.f32.partialorder %v20201_v26, 0  ;;  %v7565_v45 = vand.u32 2147483647, %v20251_v3  ;;  %vm1956_vm14 = vcmp.gt.f32.partialorder %v20252_v21, 400.0  ;;  %v8336_v34 = vpop.eup %8335 }
 0x560   :  { %v2337_v62 = vadd.f32 %v2336_v46, %v2145_v51  ;;  %v2531_v53 = vadd.f32 %v8523_v43, %v2530_v0  ;;  %v7295_v29 = vsel %vm16688_vm6, 2139095040, %v7290_v25  ;;  %vm7322_vm2 = vcmp.ne.f32.partialorder %v20185_v10, %v20185_v10 }
 0x561   :  { %v7411_v54 = vmul.f32 0.1, %v16682_v48  ;;  %v1765_v32 = vmul.f32 219.71211, %v16104_v40  ;;  %v2147_v11 = vsel %vm1955_vm12, %v1763_v37, %v20250_v18  ;;  %vm16768_vm11 = vcmp.eq.f32.partialorder %v7331_v56, 2139095040  ;;  %v8524_v48 = vld [vmem:[#allocation7 + $0x508] sm:$0xff]  ;;  %v8338_v51 = vpop.eup %8337 }
 0x562   :  { %8345 = vlog2.f32 %v7539_v57  ;;  %vm1957_vm6 = vcmp.gt.f32.partialorder %v20255_v12, 400.0  ;;  %v2338_v58 = vadd.f32 %v2337_v62, %v2146_v33  ;;  %v2532_v44 = vadd.f32 %v8524_v48, %v2531_v53  ;;  %v20256_v18 = vld [vmem:[#allocation155_spill] sm:$0xff]  ;;  %v20260_v62 = vld [vmem:[#allocation156_spill] sm:$0xff] }
 0x563   :  { %v7315_v40 = vsel %vm7309_vm15, 2143289344, %v8330_v31  ;;  %vm7362_vm4 = vcmp.eq.f32.partialorder %v20201_v26, 0  ;;  %v7437_v25 = vmul.f32 0.1, %v8332_v27  ;;  %v1766_v37 = vmul.f32 219.71211, %v16143_v60 }
 0x564   :  { %v2148_v56 = vsel %vm1956_vm14, %v1764_v61, %v20252_v21  ;;  %8347 = vlog2.f32 %v7565_v45  ;;  %vm1958_vm0 = vcmp.gt.f32.partialorder %v20256_v18, 400.0  ;;  %v2339_v46 = vadd.f32 %v2338_v58, %v2147_v11  ;;  %v20261_v58 = vld [vmem:[#allocation157_spill] sm:$0xff] }
 0x565   :  { %v2533_v0 = vadd.f32 %v8525_v16, %v2532_v44  ;;  %v7299_v31 = vsel %vm7296_vm3, 2143289344, %v7295_v29  ;;  %vm7311_vm15 = vcmp.eq.f32.partialorder %v20185_v10, 1065353216  ;;  %8349 = vpow2.f32 %v7411_v54  ;;  %v8527_v44 = vld [vmem:[#allocation7 + $0x520] sm:$0xff] }
 0x566   :  { %v1767_v60 = vmul.f32 219.71211, %v16188_v24  ;;  %v2149_v27 = vsel %vm1957_vm6, %v1765_v32, %v20255_v12  ;;  %v7316_v61 = vsel %vm7310_vm8, 0, %v7315_v40  ;;  %vm7348_vm9 = vcmp.ne.f32.partialorder %v20194_v55, %v20194_v55  ;;  %v8526_v24 = vld [vmem:[#allocation7 + $0x518] sm:$0xff]  ;;  %v8340_v11 = vpop.eup %8339 }
 0x567   :  { %v20257_v33 = vand.u32 2147483647, %v20201_v26  ;;  %vm1959_vm3 = vcmp.gt.f32.partialorder %v20260_v62, 400.0  ;;  %v2340_v43 = vadd.f32 %v2339_v46, %v2148_v56  ;;  %v2534_v53 = vadd.f32 %v8526_v24, %v2533_v0  ;;  %v8528_v46 = vld [vmem:[#allocation7 + $0x528] sm:$0xff] }
 0x568   :  { %v7341_v29 = vsel %vm7335_vm1, 2143289344, %v8334_v5  ;;  %8351 = vpow2.f32 %v7437_v25  ;;  %v1768_v54 = vmul.f32 219.71211, %v16220_v39  ;;  %v2150_v32 = vsel %vm1958_vm0, %v1766_v37, %v20256_v18  ;;  %v20262_v18 = vld [vmem:[#allocation158_spill] sm:$0xff] }
 0x569   :  { %vm16799_vm12 = vcmp.eq.f32.partialorder %v20257_v33, 2139095040  ;;  %v16812_v12 = vsel %vm7285_vm5, 1065353216, %v7299_v31  ;;  %vm7387_vm8 = vcmp.lt.f32.partialorder %v20212_v9, 0  ;;  %vm1960_vm14 = vcmp.gt.f32.partialorder %v20261_v58, 400.0  ;;  %v8342_v2 = vpop.eup %8341 }
 0x56a   :  { %v2341_v48 = vadd.f32 %v2340_v43, %v2149_v27  ;;  %v2535_v40 = vadd.f32 %v8527_v44, %v2534_v53  ;;  %v7321_v5 = vsel %vm16737_vm13, 2139095040, %v7316_v61  ;;  %v7463_v39 = vmul.f32 0.1, %v8336_v34  ;;  %v20263_v61 = vld [vmem:[#allocation159_spill] sm:$0xff] }
 0x56b   :  { %v1769_v25 = vmul.f32 219.71211, %v16273_v50  ;;  %v2151_v37 = vsel %vm1959_vm3, %v1767_v60, %v20260_v62  ;;  %v7342_v56 = vsel %vm7336_vm7, 0, %v7341_v29  ;;  %vm7374_vm1 = vcmp.ne.f32.partialorder %v20201_v26, %v20201_v26  ;;  %v8344_v60 = vpop.eup %8343  ;;  %v20264_v29 = vld [vmem:[#allocation160_spill] sm:$0xff] }
 0x56c   :  { %vm7413_vm5 = vcmp.lt.f32.partialorder %v20221_v28, 0  ;;  %vm1961_vm6 = vcmp.gt.f32.partialorder %v20262_v18, 400.0  ;;  %v2342_v15 = vadd.f32 %v2341_v48, %v2150_v32  ;;  %v2536_v34 = vadd.f32 %v8528_v46, %v2535_v40  ;;  %v8530_v32 = vld [vmem:[#allocation7 + $0x538] sm:$0xff] }
 0x56d   :  { %v7367_v50 = vsel %vm7361_vm10, 2143289344, %v8338_v51  ;;  %v7489_v16 = vmul.f32 0.1, %v8340_v11  ;;  %v1770_v0 = vmul.f32 219.71211, %v16320_v41  ;;  %v2152_v31 = vsel %vm1960_vm14, %v1768_v54, %v20261_v58  ;;  %v8529_v51 = vld [vmem:[#allocation7 + $0x530] sm:$0xff] }
 0x56e   :  { %v7325_v27 = vsel %vm7322_vm2, 2143289344, %v7321_v5  ;;  %vm7388_vm13 = vcmp.eq.f32.partialorder %v20212_v9, 0  ;;  %vm7439_vm7 = vcmp.lt.f32.partialorder %v20229_v4, 0  ;;  %vm1962_vm0 = vcmp.gt.f32.partialorder %v20263_v61, 400.0 }
 0x56f   :  { %v2343_v33 = vadd.f32 %v2342_v15, %v2151_v37  ;;  %v2537_v62 = vadd.f32 %v8529_v51, %v2536_v34  ;;  %v7347_v41 = vsel %vm16768_vm11, 2139095040, %v7342_v56  ;;  %8353 = vpow2.f32 %v7463_v39  ;;  %v8346_v11 = vpop.eup %8345  ;;  %v8531_v39 = vld [vmem:[#allocation7 + $0x540] sm:$0xff]  ;;  %v20270_v34 = vld [vmem:[#allocation162_spill] sm:$0xff] }
 0x570   :  { %v1771_v43 = vmul.f32 219.71211, %v16350_v42  ;;  %v2153_v24 = vsel %vm1961_vm6, %v1769_v25, %v20262_v18  ;;  %vm7337_vm10 = vcmp.eq.f32.partialorder %v20194_v55, 1065353216  ;;  %v7368_v53 = vsel %vm7362_vm4, 0, %v7367_v50 }
 0x571   :  { %vm7414_vm2 = vcmp.eq.f32.partialorder %v20221_v28, 0  ;;  %vm1963_vm3 = vcmp.gt.f32.partialorder %v20264_v29, 400.0  ;;  %v2344_v54 = vadd.f32 %v2343_v33, %v2152_v31  ;;  %v2538_v23 = vadd.f32 %v8530_v32, %v2537_v62  ;;  %v8348_v37 = vpop.eup %8347  ;;  %v8533_v33 = vld [vmem:[#allocation7 + $0x550] sm:$0xff] }
 0x572   :  { %vm16853_vm11 = vcmp.eq.f32.partialorder %v7383_v8, 2139095040  ;;  %8355 = vpow2.f32 %v7489_v16  ;;  %v7515_v58 = vmul.f32 0.1, %v8344_v60  ;;  %v1772_v48 = vmul.f32 219.71211, %v16421_v13  ;;  %v20267_v8 = vld [vmem:[#allocation161_spill] sm:$0xff]  ;;  %v8350_v46 = vpop.eup %8349 }
 0x573   :  { %v2154_v44 = vsel %vm1962_vm0, %v1770_v0, %v20263_v61  ;;  %v16863_v40 = vsel %vm7311_vm15, 1065353216, %v7325_v27  ;;  %vm7363_vm4 = vcmp.eq.f32.partialorder %v20201_v26, 1065353216  ;;  %vm1964_vm6 = vcmp.gt.f32.partialorder %v20267_v8, 400.0  ;;  %v20273_v61 = vld [vmem:[#allocation164_spill] sm:$0xff] }
 0x574   :  { %v2345_v5 = vadd.f32 %v2344_v54, %v2153_v24  ;;  %v2539_v25 = vadd.f32 %v8531_v39, %v2538_v23  ;;  %v7351_v13 = vsel %vm7348_vm9, 2143289344, %v7347_v41  ;;  %v7373_v56 = vsel %vm16799_vm12, 2139095040, %v7368_v53  ;;  %v20274_v24 = vld [vmem:[#allocation165_spill] sm:$0xff]  ;;  %v20282_v26 = vld [vmem:[#allocation168_spill] sm:$0xff] }
 0x575   :  { %vm16875_vm15 = vcmp.eq.f32.partialorder %v7409_v1, 2139095040  ;;  %v1773_v18 = vmul.f32 219.71211, %v16447_v63  ;;  %v2155_v15 = vsel %vm1963_vm3, %v1771_v43, %v20264_v29  ;;  %v7541_v21 = vmul.f32 0.1, %v8346_v11  ;;  %v8532_v1 = vld [vmem:[#allocation7 + $0x548] sm:$0xff]  ;;  %v8352_v27 = vpop.eup %8351 }
 0x576   :  { %vm1965_vm12 = vcmp.gt.f32.partialorder %v20270_v34, 400.0  ;;  %v2346_v50 = vadd.f32 %v2345_v5, %v2154_v44  ;;  %v2540_v16 = vadd.f32 %v8532_v1, %v2539_v25  ;;  %v7393_v0 = vsel %vm7387_vm8, 2143289344, %v8342_v2  ;;  %v8534_v29 = vld [vmem:[#allocation7 + $0x558] sm:$0xff] }
 0x577   :  { %vm16891_vm14 = vcmp.eq.f32.partialorder %v7435_v38, 2139095040  ;;  %8357 = vpow2.f32 %v7515_v58  ;;  %v1774_v31 = vmul.f32 219.71211, %v16482_v19  ;;  %v2156_v60 = vsel %vm1964_vm6, %v1772_v48, %v20267_v8  ;;  %v20277_v48 = vld [vmem:[#allocation166_spill] sm:$0xff]  ;;  %v8535_v8 = vld [vmem:[#allocation7 + $0x560] sm:$0xff] }
 0x578   :  { %v7567_v2 = vmul.f32 0.1, %v8348_v37  ;;  %vm1966_vm8 = vcmp.gt.f32.partialorder %v20273_v61, 400.0  ;;  %v2347_v38 = vadd.f32 %v2346_v50, %v2155_v15  ;;  %v2541_v51 = vadd.f32 %v8533_v33, %v2540_v16  ;;  %v8537_v16 = vld [vmem:[#allocation7 + $0x570] sm:$0xff] }
 0x579   :  { %v7377_v19 = vsel %vm7374_vm1, 2143289344, %v7373_v56  ;;  %v7419_v62 = vsel %vm7413_vm5, 2143289344, %v8350_v46  ;;  %vm7466_vm6 = vcmp.eq.f32.partialorder %v20235_v14, 0  ;;  %v1775_v41 = vmul.f32 219.71211, %v16538_v30 }
 0x57a   :  { %v2157_v43 = vsel %vm1965_vm12, %v1773_v18, %v20270_v34  ;;  %vm7389_vm9 = vcmp.eq.f32.partialorder %v20212_v9, 1065353216  ;;  %vm7452_vm3 = vcmp.ne.f32.partialorder %v20229_v4, %v20229_v4  ;;  %8359 = vpow2.f32 %v7541_v21 }
 0x57b   :  { %vm1967_vm0 = vcmp.gt.f32.partialorder %v20274_v24, 400.0  ;;  %v2348_v53 = vadd.f32 %v2347_v38, %v2156_v60  ;;  %v2542_v54 = vadd.f32 %v8534_v29, %v2541_v51  ;;  %v7394_v32 = vsel %vm7388_vm13, 0, %v7393_v0  ;;  %v8538_v38 = vld [vmem:[#allocation7 + $0x578] sm:$0xff] }
 0x57c   :  { %v7445_v30 = vsel %vm7439_vm7, 2143289344, %v8352_v27  ;;  %vm7492_vm1 = vcmp.eq.f32.partialorder %v20241_v7, 0  ;;  %v1776_v23 = vmul.f32 219.71211, %v16577_v59  ;;  %v2158_v11 = vsel %vm1966_vm8, %v1774_v31, %v20273_v61  ;;  %v8354_v37 = vpop.eup %8353 }
 0x57d   :  { %vm7415_vm5 = vcmp.eq.f32.partialorder %v20221_v28, 1065353216  ;;  %vm16929_vm12 = vcmp.eq.f32.partialorder %v7461_v35, 2139095040  ;;  %8361 = vpow2.f32 %v7567_v2  ;;  %vm1968_vm13 = vcmp.gt.f32.partialorder %v20277_v48, 400.0  ;;  %v20285_v2 = vld [vmem:[#allocation169_spill] sm:$0xff] }
 0x57e   :  { %v2349_v44 = vadd.f32 %v2348_v53, %v2157_v43  ;;  %v2543_v5 = vadd.f32 %v8535_v8, %v2542_v54  ;;  %v16936_v59 = vsel %vm7337_vm10, 1065353216, %v7351_v13  ;;  %v7420_v39 = vsel %vm7414_vm2, 0, %v7419_v62  ;;  %v20280_v13 = vld [vmem:[#allocation167_spill] sm:$0xff]  ;;  %v8539_v53 = vld [vmem:[#allocation7 + $0x580] sm:$0xff] }
 0x57f   :  { %v1777_v35 = vmul.f32 219.71211, %v16612_v47  ;;  %v2159_v25 = vsel %vm1967_vm0, %v1775_v41, %v20274_v24  ;;  %v7399_v56 = vsel %vm16853_vm11, 2139095040, %v7394_v32  ;;  %vm16950_vm10 = vcmp.eq.f32.partialorder %v7487_v17, 2139095040  ;;  %v8536_v47 = vld [vmem:[#allocation7 + $0x568] sm:$0xff]  ;;  %v8356_v34 = vpop.eup %8355 }
 0x580   :  { %vm1969_vm2 = vcmp.gt.f32.partialorder %v20280_v13, 400.0  ;;  %v2350_v18 = vadd.f32 %v2349_v44, %v2158_v11  ;;  %v2544_v15 = vadd.f32 %v8536_v47, %v2543_v5  ;;  %v16957_v46 = vsel %vm7363_vm4, 1065353216, %v7377_v19  ;;  %v20290_v24 = vld [vmem:[#allocation170_spill] sm:$0xff]  ;;  %v20293_v11 = vld [vmem:[#allocation171_spill] sm:$0xff] }
 0x581   :  { %vm20281_vm0 = vcmp.eq.f32.partialorder %v20229_v4, 0  ;;  %v1778_v21 = vmul.f32 219.71211, %v16669_v52  ;;  %v2160_v17 = vsel %vm1968_vm13, %v1776_v23, %v20277_v48  ;;  %v7425_v50 = vsel %vm16875_vm15, 2139095040, %v7420_v39  ;;  %v8540_v48 = vld [vmem:[#allocation7 + $0x588] sm:$0xff] }
 0x582   :  { %v7446_v42 = vsel %vm20281_vm0, 0, %v7445_v30  ;;  %vm7478_vm8 = vcmp.ne.f32.partialorder %v20235_v14, %v20235_v14  ;;  %vm1970_vm7 = vcmp.gt.f32.partialorder %v20282_v26, 400.0  ;;  %v2351_v1 = vadd.f32 %v2350_v18, %v2159_v25 }
 0x583   :  { %v2545_v0 = vadd.f32 %v8537_v16, %v2544_v15  ;;  %vm20283_vm0 = vcmp.ne.f32.partialorder %v20212_v9, %v20212_v9  ;;  %vm20284_vm13 = vcmp.lt.f32.partialorder %v20235_v14, 0  ;;  %v1779_v10 = vmul.f32 219.71211, %v16700_v49  ;;  %v20303_v16 = vld [vmem:[#allocation174_spill] sm:$0xff] }
 0x584   :  { %v7403_v52 = vsel %vm20283_vm0, 2143289344, %v7399_v56  ;;  %v7471_v31 = vsel %vm20284_vm13, 2143289344, %v8354_v37  ;;  %v2161_v60 = vsel %vm1969_vm2, %v1777_v35, %v20280_v13  ;;  %v7451_v27 = vsel %vm16891_vm14, 2139095040, %v7446_v42  ;;  %v8358_v41 = vpop.eup %8357  ;;  %v8541_v56 = vld [vmem:[#allocation7 + $0x590] sm:$0xff] }
 0x585   :  { %vm7504_vm15 = vcmp.ne.f32.partialorder %v20241_v7, %v20241_v7  ;;  %vm7544_vm4 = vcmp.eq.f32.partialorder %v20249_v6, 0  ;;  %vm1971_vm0 = vcmp.gt.f32.partialorder %v20285_v2, 400.0  ;;  %v2352_v61 = vadd.f32 %v2351_v1, %v2160_v17  ;;  %v8542_v17 = vld [vmem:[#allocation7 + $0x598] sm:$0xff] }
 0x586   :  { %v2546_v33 = vadd.f32 %v8538_v38, %v2545_v0  ;;  %vm20286_vm13 = vcmp.ne.f32.partialorder %v20221_v28, %v20221_v28  ;;  %vm20287_vm11 = vcmp.lt.f32.partialorder %v20241_v7, 0  ;;  %vm16995_vm14 = vcmp.eq.f32.partialorder %v7513_v36, 2139095040  ;;  %v20297_v28 = vld [vmem:[#allocation172_spill] sm:$0xff] }
 0x587   :  { %v7429_v49 = vsel %vm20286_vm13, 2143289344, %v7425_v50  ;;  %v7497_v51 = vsel %vm20287_vm11, 2143289344, %v8356_v34  ;;  %v1780_v19 = vmul.f32 219.71211, %v16745_v22  ;;  %v2162_v62 = vsel %vm1970_vm7, %v1778_v21, %v20282_v26  ;;  %v8360_v8 = vpop.eup %8359  ;;  %v20300_v21 = vld [vmem:[#allocation173_spill] sm:$0xff] }
 0x588   :  { %vm7467_vm2 = vcmp.eq.f32.partialorder %v20235_v14, 1065353216  ;;  %v7472_v43 = vsel %vm7466_vm6, 0, %v7471_v31  ;;  %vm7570_vm11 = vcmp.eq.f32.partialorder %v20251_v3, 0  ;;  %vm1972_vm13 = vcmp.gt.f32.partialorder %v20290_v24, 400.0 }
 0x589   :  { %v2353_v36 = vadd.f32 %v2352_v61, %v2161_v60  ;;  %v2547_v29 = vadd.f32 %v8539_v53, %v2546_v33  ;;  %v7404_v22 = vsel %vm7389_vm9, 1065353216, %v7403_v52  ;;  %v7455_v54 = vsel %vm7452_vm3, 2143289344, %v7451_v27  ;;  %v8543_v52 = vld [vmem:[#allocation7 + $0x5a0] sm:$0xff]  ;;  %v20304_v61 = vld [vmem:[#allocation175_spill] sm:$0xff]  ;;  %v8544_v33 = vld [vmem:[#allocation7 + $0x5a8] sm:$0xff] }
 0x58a   :  { %vm17015_vm7 = vcmp.eq.f32.partialorder %v7539_v57, 2139095040  ;;  %v1781_v30 = vmul.f32 219.71211, %v16812_v12  ;;  %v2163_v23 = vsel %vm1971_vm0, %v1779_v10, %v20285_v2  ;;  %v7498_v9 = vsel %vm7492_vm1, 0, %v7497_v51  ;;  %v8362_v13 = vpop.eup %8361 }
 0x58b   :  { %vm1973_vm3 = vcmp.gt.f32.partialorder %v20293_v11, 400.0  ;;  %v2354_v57 = vadd.f32 %v2353_v36, %v2162_v62  ;;  %v2548_v44 = vadd.f32 %v8540_v48, %v2547_v29  ;;  %v7430_v12 = vsel %vm7415_vm5, 1065353216, %v7429_v49  ;;  %v8545_v36 = vld [vmem:[#allocation7 + $0x5b0] sm:$0xff] }
 0x58c   :  { %v7477_v5 = vsel %vm16929_vm12, 2139095040, %v7472_v43  ;;  %vm17035_vm0 = vcmp.eq.f32.partialorder %v7565_v45, 2139095040  ;;  %v1782_v35 = vmul.f32 219.71211, %v16863_v40  ;;  %v2164_v25 = vsel %vm1972_vm13, %v1780_v19, %v20290_v24  ;;  %v20305_v43 = vld [vmem:[#allocation176_spill] sm:$0xff] }
 0x58d   :  { %vm20296_vm1 = vcmp.lt.f32.partialorder %v20245_v20, 0  ;;  %vm1974_vm12 = vcmp.gt.f32.partialorder %v20297_v28, 400.0  ;;  %v2355_v58 = vadd.f32 %v2354_v57, %v2163_v23  ;;  %v2549_v45 = vadd.f32 %v8541_v56, %v2548_v44 }
 0x58e   :  { %v7523_v37 = vsel %vm20296_vm1, 2143289344, %v8358_v41  ;;  %vm20298_vm9 = vcmp.eq.f32.partialorder %v20229_v4, 1065353216  ;;  %v7503_v40 = vsel %vm16950_vm10, 2139095040, %v7498_v9  ;;  %vm7519_vm13 = vcmp.eq.f32.partialorder %v20245_v20, 1065353216  ;;  %v8546_v9 = vld [vmem:[#allocation7 + $0x5b8] sm:$0xff] }
 0x58f   :  { %v7456_v18 = vsel %vm20298_vm9, 1065353216, %v7455_v54  ;;  %v1783_v47 = vmul.f32 219.71211, %v16936_v59  ;;  %v2165_v15 = vsel %vm1973_vm3, %v1781_v30, %v20293_v11  ;;  %vm20299_vm1 = vcmp.lt.f32.partialorder %v20249_v6, 0  ;;  %v20308_v30 = vld [vmem:[#allocation207_spill] sm:$0xff] }
 0x590   :  { %v7549_v42 = vsel %vm20299_vm1, 2143289344, %v8360_v8  ;;  %vm7582_vm5 = vcmp.ne.f32.partialorder %v20251_v3, %v20251_v3  ;;  %vm1975_vm6 = vcmp.gt.f32.partialorder %v20300_v21, 400.0  ;;  %v2356_v4 = vadd.f32 %v2355_v58, %v2164_v25  ;;  %v20310_v8 = vld [vmem:[#allocation208_spill] sm:$0xff]  ;;  %v8548_v58 = vld [vmem:[#allocation7 + $0x5c8] sm:$0xff] }
 0x591   :  { %v2550_v55 = vadd.f32 %v8542_v17, %v2549_v45  ;;  %v7481_v34 = vsel %vm7478_vm8, 2143289344, %v7477_v5  ;;  %vm20301_vm10 = vcmp.eq.f32.partialorder %v20245_v20, 0  ;;  %v1784_v50 = vmul.f32 219.71211, %v16957_v46  ;;  %v8547_v5 = vld [vmem:[#allocation7 + $0x5c0] sm:$0xff] }
 0x592   :  { %v7524_v59 = vsel %vm20301_vm10, 0, %v7523_v37  ;;  %v2166_v26 = vsel %vm1974_vm12, %v1782_v35, %v20297_v28  ;;  %vm20302_vm9 = vcmp.lt.f32.partialorder %v20251_v3, 0  ;;  %vm1976_vm3 = vcmp.gt.f32.partialorder %v20303_v16, 400.0  ;;  %v20311_v28 = vld [vmem:[#allocation179_spill] sm:$0xff] }
 0x593   :  { %v7575_v1 = vsel %vm20302_vm9, 2143289344, %v8362_v13  ;;  %v2357_v0 = vadd.f32 %v2356_v4, %v2165_v15  ;;  %v2551_v31 = vadd.f32 %v8543_v52, %v2550_v55  ;;  %v7507_v10 = vsel %vm7504_vm15, 2143289344, %v7503_v40  ;;  %v20312_v40 = vld [vmem:[#allocation180_spill] sm:$0xff]  ;;  %v20313_v4 = vld [vmem:[#allocation181_spill] sm:$0xff] }
 0x594   :  { %v7550_v60 = vsel %vm7544_vm4, 0, %v7549_v42  ;;  %v1785_v46 = vmul.f32 219.71211, %v7404_v22  ;;  %v2167_v27 = vsel %vm1975_vm6, %v1783_v47, %v20300_v21  ;;  %v7529_v2 = vsel %vm16995_vm14, 2139095040, %v7524_v59  ;;  %v8550_v55 = vld [vmem:[#allocation7 + $0x5d8] sm:$0xff] }
 0x595   :  { %vm1977_vm8 = vcmp.gt.f32.partialorder %v20304_v61, 400.0  ;;  %v2358_v38 = vadd.f32 %v2357_v0, %v2166_v26  ;;  %v2552_v49 = vadd.f32 %v8544_v33, %v2551_v31  ;;  %v7482_v51 = vsel %vm7467_vm2, 1065353216, %v7481_v34  ;;  %v20314_v26 = vld [vmem:[#allocation214_spill] sm:$0xff]  ;;  %v8554_v33 = vld [vmem:[#allocation7 + $0x5f8] sm:$0xff] }
 0x596   :  { %v7576_v19 = vsel %vm7570_vm11, 0, %v7575_v1  ;;  %v1786_v62 = vmul.f32 219.71211, %v7430_v12  ;;  %v2168_v41 = vsel %vm1976_vm3, %v1784_v50, %v20303_v16  ;;  %v7555_v63 = vsel %vm17015_vm7, 2139095040, %v7550_v60  ;;  %v8551_v16 = vld [vmem:[#allocation7 + $0x5e0] sm:$0xff] }
 0x597   :  { %vm1978_vm4 = vcmp.gt.f32.partialorder %v20305_v43, 400.0  ;;  %v2359_v24 = vadd.f32 %v2358_v38, %v2167_v27  ;;  %v2553_v53 = vadd.f32 %v8545_v36, %v2552_v49  ;;  %vm20306_vm15 = vcmp.eq.f32.partialorder %v20241_v7, 1065353216 }
 0x598   :  { %v7508_v14 = vsel %vm20306_vm15, 1065353216, %v7507_v10  ;;  %vm20307_vm14 = vcmp.ne.f32.partialorder %v20245_v20, %v20245_v20  ;;  %v1787_v22 = vmul.f32 219.71211, %v7456_v18  ;;  %v2169_v54 = vsel %vm1977_vm8, %v1785_v46, %v20304_v61  ;;  %v8552_v10 = vld [vmem:[#allocation7 + $0x5e8] sm:$0xff] }
 0x599   :  { %v7533_v29 = vsel %vm20307_vm14, 2143289344, %v7529_v2  ;;  %v7581_v32 = vsel %vm17035_vm0, 2139095040, %v7576_v19  ;;  %vm1979_vm2 = vcmp.gt.f32.partialorder %v20308_v30, 400.0  ;;  %v2360_v23 = vadd.f32 %v2359_v24, %v2168_v41  ;;  %v8553_v2 = vld [vmem:[#allocation7 + $0x5f0] sm:$0xff] }
 0x59a   :  { %v2554_v11 = vadd.f32 %v8546_v9, %v2553_v53  ;;  %vm7545_vm11 = vcmp.eq.f32.partialorder %v20249_v6, 1065353216  ;;  %vm20309_vm7 = vcmp.ne.f32.partialorder %v20249_v6, %v20249_v6  ;;  %v1788_v57 = vmul.f32 219.71211, %v7482_v51 }
 0x59b   :  { %v7559_v7 = vsel %vm20309_vm7, 2143289344, %v7555_v63  ;;  %v2170_v48 = vsel %vm1978_vm4, %v1786_v62, %v20305_v43  ;;  %v7534_v44 = vsel %vm7519_vm13, 1065353216, %v7533_v29  ;;  %vm1980_vm6 = vcmp.gt.f32.partialorder %v20310_v8, 400.0 }
 0x59c   :  { %v2361_v12 = vadd.f32 %v2360_v23, %v2169_v54  ;;  %v2555_v39 = vadd.f32 %v8547_v5, %v2554_v11  ;;  %vm7571_vm0 = vcmp.eq.f32.partialorder %v20251_v3, 1065353216  ;;  %v7585_v6 = vsel %vm7582_vm5, 2143289344, %v7581_v32  ;;  %v8549_v3 = vld [vmem:[#allocation7 + $0x5d0] sm:$0xff] }
 0x59d   :  { %v1789_v35 = vmul.f32 219.71211, %v7508_v14  ;;  %v2171_v25 = vsel %vm1979_vm2, %v1787_v22, %v20308_v30  ;;  %v7560_v37 = vsel %vm7545_vm11, 1065353216, %v7559_v7  ;;  %vm1981_vm12 = vcmp.gt.f32.partialorder %v20311_v28, 400.0 }
 0x59e   :  { %v2362_v20 = vadd.f32 %v2361_v12, %v2170_v48  ;;  %v2556_v56 = vadd.f32 %v8548_v58, %v2555_v39  ;;  %v1790_v45 = vmul.f32 219.71211, %v7534_v44  ;;  %v2172_v13 = vsel %vm1980_vm6, %v1788_v57, %v20310_v8 }
 0x59f   :  { %v7586_v18 = vsel %vm7571_vm0, 1065353216, %v7585_v6  ;;  %vm1982_vm13 = vcmp.gt.f32.partialorder %v20312_v40, 400.0  ;;  %v1791_v42 = vmul.f32 219.71211, %v7560_v37  ;;  %v2173_v21 = vsel %vm1981_vm12, %v1789_v35, %v20311_v28 }
 0x5a0   :  { %v2363_v47 = vadd.f32 %v2362_v20, %v2171_v25  ;;  %v2557_v15 = vadd.f32 %v8549_v3, %v2556_v56  ;;  %vm1983_vm5 = vcmp.gt.f32.partialorder %v20313_v4, 400.0  ;;  %v1792_v59 = vmul.f32 219.71211, %v7586_v18 }
 0x5a1   :  { %v2174_v50 = vsel %vm1982_vm13, %v1790_v45, %v20312_v40  ;;  %vm1984_vm1 = vcmp.gt.f32.partialorder %v20314_v26, 400.0  ;;  %v2175_v52 = vsel %vm1983_vm5, %v1791_v42, %v20313_v4 }
 0x5a2   :  { %v2364_v17 = vadd.f32 %v2363_v47, %v2172_v13  ;;  %v2558_v34 = vadd.f32 %v8550_v55, %v2557_v15  ;;  %v2176_v46 = vsel %vm1984_vm1, %v1792_v59, %v20314_v26 }
 0x5a4   :  { %v2365_v1 = vadd.f32 %v2364_v17, %v2173_v21  ;;  %v2559_v0 = vadd.f32 %v8551_v16, %v2558_v34 }
 0x5a6   :  { %v2366_v31 = vadd.f32 %v2365_v1, %v2174_v50  ;;  %v2560_v60 = vadd.f32 %v8552_v10, %v2559_v0 }
 0x5a8   :  { %v2367_v27 = vadd.f32 %v2366_v31, %v2175_v52  ;;  %v2561_v61 = vadd.f32 %v8553_v2, %v2560_v60 }
 0x5aa   :  { %v2368_v38 = vadd.f32 %v2367_v27, %v2176_v46  ;;  %v2562_v49 = vadd.f32 %v8554_v33, %v2561_v61 }
 0x5ac   :  { %2370 = vst [vmem:[#allocation8] sm:$0xff] %v2368_v38  ;;  %2564 = vst [vmem:[#allocation9] sm:$0xff] %v2562_v49 }
 0x5ad   :  { %8626 = shalt.err (!%p8623_p5)
}
 0x5ae   :  { %2574 = dma.vmem_to_hbm [thread:$0]  %s2572_s2, 128, %s17141_s3, [#allocation4]  }
 0x5af   :  { %s8635_s10 = scalar_lea.vmem %s2582_s6, 128  ;;  %p8640_p7 = scmp.lt.s32.totalorder %s2582_s6, %s2582_s6 }
 0x5b0   :  { %p8636_p6 = scmp.ne.s32.totalorder %s2582_s6, %s8635_s10  ;;  %p8641_p8 = scmp.lt.s32.totalorder %s8635_s10, %s8635_s10 }
 0x5b2   :  { %p8642_p9 = por %p8641_p8, %p8640_p7 }
 0x5b4   :  { %p8643_p10 = pnand %p8642_p9, %p8636_p6 }
 0x5b6   :  { %8646 = shalt.err (!%p8643_p10)
}
 0x5b7   :  { %2584 = dma.vmem_to_hbm [thread:$0]  %s2582_s6, 128, %s17142_s4, [#allocation10]  }
 0x5b8   :  { %8659 = dma.done.wait [#allocation4], 128  }
 0x5b9   :  { %8660 = vsyncadd [#allocation4], 4294967168 }
 0x5ba   :  { %8661 = dma.done.wait [#allocation10], 128  }
 0x5bb   :  { %8662 = vsyncadd [#allocation10], 4294967168 }
 0x5bc   :  { %2591 = vsyncpa [#allocation3], 1 }
 0x5bd   :  { %2592 = vsyncpa [#allocation6], 1 }
 0x5be   :  { %2593 = vsyncpa [#allocation4], 1 }
 0x5bf   :  { %2594 = vsyncpa [#allocation10], 1 }

</bundles_post_ra>
